<compile_context>
chip_gen: v7x
topology: tpu7x:2x2x1
jax: 0.10.0
libtpu: 0.0.40
codegen_flags: <defaults>
</compile_context>

<pallas_src>
import functools

import jax
import jax.numpy as jnp
from jax.experimental import pallas as pl
from jax.experimental.pallas import tpu as pltpu


_VMEM_SPEC = pl.BlockSpec(memory_space=pltpu.MemorySpace.VMEM)
_VMEM_LIMIT = 32 * 1024 * 1024     # explicit scoped-VMEM budget (safe on v5e/v6e/v7x)
_ROW_TILE = 512                     # >=512-row tiles reach ~85% of HBM roofline


def _round_up(a, b):
    return (a + b - 1) // b * b


def _row_tiling(m, row_tile=_ROW_TILE):
    """Pick (padded_M, row_tile, num_tiles); tiles are multiples of 8 sublanes."""
    mp = _round_up(m, 8)
    if mp <= row_tile:
        return mp, mp, 1
    mp = _round_up(m, row_tile)
    return mp, row_tile, mp // row_tile


# ----------------------------------------------------------------------------
# Pallas kernels
# ----------------------------------------------------------------------------
def _conv_lrelu_kernel(x_ref, w_ref, o_ref):
    """One M-tile of: LeakyReLU_{0.2}(patches @ W).  bf16 MXU, fp32 epilogue."""
    y = jnp.dot(x_ref[...], w_ref[...], preferred_element_type=jnp.float32)
    o_ref[...] = jnp.where(y > 0, y, 0.2 * y).astype(o_ref.dtype)


def _conv_bn_lrelu_kernel(x_ref, w_ref, g_ref, b_ref, o_ref, sum_ref, ssq_ref,
                          *, m_true):
    """Two-pass (grid=(2, Mt)) conv + train-mode BatchNorm + LeakyReLU(0.2).

    Pass 0 accumulates per-channel sum / sum-of-squares of y = x @ W across all
    row tiles (zero-padded rows contribute exactly zero); pass 1 recomputes the
    tile and normalizes with the GLOBAL statistics, so BN stays correct no
    matter how M is tiled (addresses the per-tile-stats correctness concern).
    """
    p = pl.program_id(0)     # 0: stats pass, 1: normalize pass
    i = pl.program_id(1)     # row tile
    y = jnp.dot(x_ref[...], w_ref[...], preferred_element_type=jnp.float32)

    @pl.when((p == 0) & (i == 0))
    def _():
        sum_ref[...] = jnp.zeros_like(sum_ref)
        ssq_ref[...] = jnp.zeros_like(ssq_ref)

    @pl.when(p == 0)
    def _():
        sum_ref[...] += jnp.sum(y, axis=0, keepdims=True)
        ssq_ref[...] += jnp.sum(y * y, axis=0, keepdims=True)

    @pl.when(p == 1)
    def _():
        inv_m = 1.0 / m_true
        mean = sum_ref[...] * inv_m
        var = jnp.maximum(ssq_ref[...] * inv_m - mean * mean, 0.0)   # biased var
        h = (y - mean) * jax.lax.rsqrt(var + 1e-5) * g_ref[...] + b_ref[...]
        o_ref[...] = jnp.where(h > 0, h, 0.2 * h).astype(o_ref.dtype)


def _bottleneck_kernel(x_ref, we4_ref, wfc1_ref, bfc1_ref, w2122_ref, b2122_ref,
                       wfc3s_ref, bfc3_ref, wfc4_ref, bfc4_ref, wd1_ref, epsp_ref,
                       ml_ref, zd1_ref, *, nz):
    """Fused: enc-conv4 + LReLU -> fc1 -> merged fc21|fc22 -> reparametrize
    -> relu(fc3) -> fc4 -> dec-deconv1-as-matmul.  Single launch, all in VMEM."""
    def mm(a, b_ref):
        return jnp.dot(a.astype(jnp.bfloat16), b_ref[...],
                       preferred_element_type=jnp.float32)

    conv = mm(x_ref[...], we4_ref)                      # conv4 (k4,s1,p0 == flatten @ W)
    conv = jnp.where(conv > 0, conv, 0.2 * conv)        # LeakyReLU(0.2)
    h1 = mm(conv, wfc1_ref) + bfc1_ref[...]             # fc1 (no activation, as in the module)
    ml = mm(h1, w2122_ref) + b2122_ref[...]             # merged fc21|fc22 -> [mu | logvar]
    ml_ref[...] = ml                                    # lane-dense (2*nz wide) store

    # Reparametrize with no lane slicing:  z_big = [mu | eps*exp(0.5*logvar)],
    # fc3 weight is stacked [W; W] so z_big @ Wstack == (mu + eps*std) @ W.
    col = jax.lax.broadcasted_iota(jnp.int32, ml.shape, 1)
    z_big = jnp.where(col < nz, ml, 0.0) + epsp_ref[...] * jnp.exp(0.5 * ml)
    h3 = jnp.maximum(mm(z_big, wfc3s_ref) + bfc3_ref[...], 0.0)   # relu(fc3)
    d = mm(h3, wfc4_ref) + bfc4_ref[...]                # fc4
    zd1_ref[...] = mm(d, wd1_ref)                       # deconv1: x @ W[Cin, kh*kw*Cout]


def _bn_relu_matmul_kernel(y_ref, g_ref, b_ref, w_ref, o_ref):
    """Decoder transition: train-mode BN(prev layer) + ReLU + next deconv matmul.

    Whole-slab kernel => BN statistics are over all N*H*W rows (global).
    """
    y = y_ref[...]
    mean = jnp.mean(y, axis=0, keepdims=True)
    var = jnp.mean(jnp.square(y - mean), axis=0, keepdims=True)      # biased var
    h = (y - mean) * jax.lax.rsqrt(var + 1e-5) * g_ref[...] + b_ref[...]
    h = jnp.maximum(h, 0.0)                                          # ReLU
    o_ref[...] = jnp.dot(h.astype(jnp.bfloat16), w_ref[...],
                         preferred_element_type=jnp.float32)


def _sigmoid_kernel(x_ref, o_ref):
    """Numerically-stable sigmoid; reciprocal on the EUP (approx), then clamp."""
    y = x_ref[...]
    t = jnp.exp(-jnp.abs(y))
    s = pl.reciprocal(1.0 + t, approx=True)
    out = jnp.where(y >= 0, s, 1.0 - s)
    o_ref[...] = jnp.clip(out, 0.0, 1.0)


# ----------------------------------------------------------------------------
# Pallas wrappers
# ----------------------------------------------------------------------------
def conv2d_fused(x_nhwc, w_mat, *, kh, kw, stride, pad, bn=None):
    """NHWC conv via im2col + gridded fused matmul kernel.  Output NHWC bf16."""
    n, h, w, c = x_nhwc.shape
    ho = (h + 2 * pad - kh) // stride + 1
    wo = (w + 2 * pad - kw) // stride + 1
    cout = w_mat.shape[1]

    xp = jnp.pad(x_nhwc, ((0, 0), (pad, pad), (pad, pad), (0, 0)))
    taps = [xp[:, i:i + stride * ho:stride, j:j + stride * wo:stride, :]
            for i in range(kh) for j in range(kw)]
    patches = jnp.concatenate(taps, axis=-1).reshape(n * ho * wo, kh * kw * c)

    m, k = patches.shape
    mp, tm, mt = _row_tiling(m)
    if mp != m:
        patches = jnp.pad(patches, ((0, mp - m), (0, 0)))    # zero rows: BN-safe

    if bn is None:
        y = pl.pallas_call(
            _conv_lrelu_kernel,
            out_shape=jax.ShapeDtypeStruct((mp, cout), jnp.bfloat16),
            grid=(mt,),
            in_specs=[pl.BlockSpec((tm, k), lambda i: (i, 0)),
                      pl.BlockSpec((k, cout), lambda i: (0, 0))],
            out_specs=pl.BlockSpec((tm, cout), lambda i: (i, 0)),
            compiler_params=pltpu.CompilerParams(
                dimension_semantics=("parallel",),          # megacore on v7x
                vmem_limit_bytes=_VMEM_LIMIT),
        )(patches, w_mat)
    else:
        gamma, beta = bn
        y = pl.pallas_call(
            functools.partial(_conv_bn_lrelu_kernel, m_true=float(m)),
            out_shape=jax.ShapeDtypeStruct((mp, cout), jnp.bfloat16),
            grid=(2, mt),                                    # (stats pass, normalize pass)
            in_specs=[pl.BlockSpec((tm, k), lambda p, i: (i, 0)),
                      pl.BlockSpec((k, cout), lambda p, i: (0, 0)),
                      pl.BlockSpec((1, cout), lambda p, i: (0, 0)),
                      pl.BlockSpec((1, cout), lambda p, i: (0, 0))],
            out_specs=pl.BlockSpec((tm, cout), lambda p, i: (i, 0)),
            scratch_shapes=[pltpu.VMEM((1, cout), jnp.float32),
                            pltpu.VMEM((1, cout), jnp.float32)],
            compiler_params=pltpu.CompilerParams(
                dimension_semantics=("arbitrary", "arbitrary"),
                vmem_limit_bytes=_VMEM_LIMIT),
        )(patches, w_mat, gamma, beta)

    return y[:m].reshape(n, ho, wo, cout)


def bottleneck_fused(x_flat, eps_pad, q, *, nz):
    """Single fused kernel for conv4 + the whole fc/reparam chain + deconv1 matmul."""
    n = x_flat.shape[0]
    cols_d1 = q["d1_w"].shape[1]
    return pl.pallas_call(
        functools.partial(_bottleneck_kernel, nz=nz),
        out_shape=(jax.ShapeDtypeStruct((n, 2 * nz), jnp.float32),   # [mu | logvar]
                   jax.ShapeDtypeStruct((n, cols_d1), jnp.float32)),  # deconv1 columns
        in_specs=[_VMEM_SPEC] * 12,
        out_specs=(_VMEM_SPEC, _VMEM_SPEC),
        compiler_params=pltpu.CompilerParams(vmem_limit_bytes=_VMEM_LIMIT),
    )(x_flat, q["e4_w"], q["fc1_w"], q["fc1_b"], q["fc2122_w"], q["fc2122_b"],
      q["fc3_ws"], q["fc3_b"], q["fc4_w"], q["fc4_b"], q["d1_w"], eps_pad)


def bn_relu_matmul(y_flat, gamma, beta, w_next):
    r = y_flat.shape[0]
    kout = w_next.shape[1]
    return pl.pallas_call(
        _bn_relu_matmul_kernel,
        out_shape=jax.ShapeDtypeStruct((r, kout), jnp.float32),
        in_specs=[_VMEM_SPEC] * 4,
        out_specs=_VMEM_SPEC,
        compiler_params=pltpu.CompilerParams(vmem_limit_bytes=_VMEM_LIMIT),
    )(y_flat, gamma, beta, w_next)


def sigmoid_pallas(x):
    return pl.pallas_call(
        _sigmoid_kernel,
        out_shape=jax.ShapeDtypeStruct(x.shape, jnp.float32),
        in_specs=[_VMEM_SPEC],
        out_specs=_VMEM_SPEC,
        compiler_params=pltpu.CompilerParams(vmem_limit_bytes=_VMEM_LIMIT),
    )(x)


# ----------------------------------------------------------------------------
# ConvTranspose col2im (scatter-add) glue -- no zero-dilated intermediate,
# no zero kernel taps in the matmul.
# ----------------------------------------------------------------------------
def col2im_nhwc(z, n, h, w, *, kh, kw, stride, pad):
    """z: (N*H*W, kh*kw*Cout) -> transposed-conv output (N, Ho, Wo, Cout)."""
    cout = z.shape[1] // (kh * kw)
    z = z.reshape(n, h, w, kh, kw, cout)
    hf = (h - 1) * stride + kh
    wf = (w - 1) * stride + kw
    out = jnp.zeros((n, hf, wf, cout), z.dtype)
    for ki in range(kh):
        for kj in range(kw):
            out = out.at[:, ki:ki + (h - 1) * stride + 1:stride,
                            kj:kj + (w - 1) * stride + 1:stride, :].add(
                z[:, :, :, ki, kj, :])
    ho = (h - 1) * stride - 2 * pad + kh
    wo = (w - 1) * stride - 2 * pad + kw
    return out[:, pad:pad + ho, pad:pad + wo, :]


# ----------------------------------------------------------------------------
# Parameters
# ----------------------------------------------------------------------------
def init_params(key, nz, nc, ngf, ndf):
    """PyTorch-layout parameters (deterministic synthetic init)."""
    ks = jax.random.split(key, 16)
    n = lambda k, shp: (jax.random.normal(k, shp, jnp.float32) * 0.05)
    return {
        "w_e1": n(ks[0], (ndf, nc, 4, 4)),
        "w_e2": n(ks[1], (ndf * 2, ndf, 4, 4)),
        "g_e2": jnp.ones((ndf * 2,), jnp.float32), "b_e2": jnp.zeros((ndf * 2,), jnp.float32),
        "w_e3": n(ks[2], (ndf * 4, ndf * 2, 3, 3)),
        "g_e3": jnp.ones((ndf * 4,), jnp.float32), "b_e3": jnp.zeros((ndf * 4,), jnp.float32),
        "w_e4": n(ks[3], (1024, ndf * 4, 4, 4)),
        "fc1_w": n(ks[4], (512, 1024)), "fc1_b": jnp.zeros((512,), jnp.float32),
        "fc21_w": n(ks[5], (nz, 512)), "fc21_b": jnp.zeros((nz,), jnp.float32),
        "fc22_w": n(ks[6], (nz, 512)), "fc22_b": jnp.zeros((nz,), jnp.float32),
        "fc3_w": n(ks[7], (512, nz)), "fc3_b": jnp.zeros((512,), jnp.float32),
        "fc4_w": n(ks[8], (1024, 512)), "fc4_b": jnp.zeros((1024,), jnp.float32),
        "w_d1": n(ks[9], (1024, ngf * 8, 4, 4)),
        "g_d1": jnp.ones((ngf * 8,), jnp.float32), "b_d1": jnp.zeros((ngf * 8,), jnp.float32),
        "w_d2": n(ks[10], (ngf * 8, ngf * 4, 3, 3)),
        "g_d2": jnp.ones((ngf * 4,), jnp.float32), "b_d2": jnp.zeros((ngf * 4,), jnp.float32),
        "w_d3": n(ks[11], (ngf * 4, ngf * 2, 4, 4)),
        "g_d3": jnp.ones((ngf * 2,), jnp.float32), "b_d3": jnp.zeros((ngf * 2,), jnp.float32),
        "w_d4": n(ks[12], (ngf * 2, nc, 4, 4)),
    }


def prepare_params(p):
    """One-time reorder / merge / bf16-cast of weights into kernel-ready layout."""
    bf, f32 = jnp.bfloat16, jnp.float32

    def conv_w(w):       # Conv2d (Cout,Cin,kh,kw) -> (kh*kw*Cin, Cout), matches NHWC im2col
        co, ci, kh, kw = w.shape
        return jnp.transpose(w, (2, 3, 1, 0)).reshape(kh * kw * ci, co).astype(bf)

    def deconv_w(w):     # ConvTranspose2d (Cin,Cout,kh,kw) -> (Cin, kh*kw*Cout) for col2im
        ci, co, kh, kw = w.shape
        return jnp.transpose(w, (0, 2, 3, 1)).reshape(ci, kh * kw * co).astype(bf)

    def lin_w(w):        # Linear (out,in) -> (in,out), pre-transposed once
        return jnp.transpose(w).astype(bf)

    def vec(v):
        return v.reshape(1, -1).astype(f32)

    return {
        "e1_w": conv_w(p["w_e1"]),
        "e2_w": conv_w(p["w_e2"]), "e2_g": vec(p["g_e2"]), "e2_b": vec(p["b_e2"]),
        "e3_w": conv_w(p["w_e3"]), "e3_g": vec(p["g_e3"]), "e3_b": vec(p["b_e3"]),
        "e4_w": conv_w(p["w_e4"]),
        "fc1_w": lin_w(p["fc1_w"]), "fc1_b": vec(p["fc1_b"]),
        # fc21 | fc22 merged into one (512, 2*nz) matmul
        "fc2122_w": jnp.concatenate([lin_w(p["fc21_w"]), lin_w(p["fc22_w"])], axis=1),
        "fc2122_b": jnp.concatenate([p["fc21_b"], p["fc22_b"]]).reshape(1, -1).astype(f32),
        # fc3 weight stacked [W; W] so the reparam needs no in-kernel lane slicing
        "fc3_ws": jnp.concatenate([lin_w(p["fc3_w"]), lin_w(p["fc3_w"])], axis=0),
        "fc3_b": vec(p["fc3_b"]),
        "fc4_w": lin_w(p["fc4_w"]), "fc4_b": vec(p["fc4_b"]),
        "d1_w": deconv_w(p["w_d1"]), "d1_g": vec(p["g_d1"]), "d1_b": vec(p["b_d1"]),
        "d2_w": deconv_w(p["w_d2"]), "d2_g": vec(p["g_d2"]), "d2_b": vec(p["b_d2"]),
        "d3_w": deconv_w(p["w_d3"]), "d3_g": vec(p["g_d3"]), "d3_b": vec(p["b_d3"]),
        "d4_w": deconv_w(p["w_d4"]),
    }


# ----------------------------------------------------------------------------
# ConvVAE forward
# ----------------------------------------------------------------------------
def conv_vae_forward(q, x, eps, *, nz):
    n = x.shape[0]
    xh = jnp.transpose(x, (0, 2, 3, 1)).astype(jnp.bfloat16)     # NCHW -> NHWC once

    # ---- encoder (NHWC, fused im2col-matmul [+BN] + LeakyReLU kernels) ----
    h = conv2d_fused(xh, q["e1_w"], kh=4, kw=4, stride=2, pad=1)                         # (N,14,14,ndf)
    h = conv2d_fused(h, q["e2_w"], kh=4, kw=4, stride=2, pad=1, bn=(q["e2_g"], q["e2_b"]))
    h = conv2d_fused(h, q["e3_w"], kh=3, kw=3, stride=2, pad=1, bn=(q["e3_g"], q["e3_b"]))  # (N,4,4,4*ndf)

    # ---- fused bottleneck: conv4 + fc1 + fc21|22 + reparam + fc3 + fc4 + deconv1 ----
    eps_pad = jnp.concatenate([jnp.zeros_like(eps), eps], axis=1)    # [0 | eps]
    ml, zd1 = bottleneck_fused(h.reshape(n, -1), eps_pad, q, nz=nz)
    mu, logvar = ml[:, :nz], ml[:, nz:]

    # ---- decoder: col2im scatter (zero-FLOP-free ConvTranspose) + fused BN/ReLU/matmul ----
    y1 = col2im_nhwc(zd1, n, 1, 1, kh=4, kw=4, stride=1, pad=0)                         # (N,4,4,8*ngf)
    z2 = bn_relu_matmul(y1.reshape(-1, y1.shape[-1]), q["d1_g"], q["d1_b"], q["d2_w"])
    y2 = col2im_nhwc(z2, n, y1.shape[1], y1.shape[2], kh=3, kw=3, stride=2, pad=1)      # (N,7,7,4*ngf)
    z3 = bn_relu_matmul(y2.reshape(-1, y2.shape[-1]), q["d2_g"], q["d2_b"], q["d3_w"])
    y3 = col2im_nhwc(z3, n, y2.shape[1], y2.shape[2], kh=4, kw=4, stride=2, pad=1)      # (N,14,14,2*ngf)
    z4 = bn_relu_matmul(y3.reshape(-1, y3.shape[-1]), q["d3_g"], q["d3_b"], q["d4_w"])
    y4 = col2im_nhwc(z4, n, y3.shape[1], y3.shape[2], kh=4, kw=4, stride=2, pad=1)      # (N,28,28,nc)

    recon_nhwc = sigmoid_pallas(y4.reshape(n, -1)).reshape(y4.shape)
    recon = jnp.transpose(recon_nhwc, (0, 3, 1, 2))                 # NHWC -> NCHW once
    return recon, mu, logvar


# ----------------------------------------------------------------------------
if __name__ == "__main__":
    nz, nc, ngf, ndf = 16, 3, 8, 8
    N, H, W = 2, 28, 28   # 28x28 input -> encoder bottleneck is exactly 1x1x1024

    key = jax.random.PRNGKey(0)
    k_x, k_eps, k_par = jax.random.split(key, 3)
    x = jax.random.uniform(k_x, (N, nc, H, W), jnp.float32)          # NCHW module input
    eps = jax.random.normal(k_eps, (N, nz), jnp.float32)             # torch.randn_like(std)
    params = init_params(k_par, nz, nc, ngf, ndf)
    qparams = prepare_params(params)                                 # one-time weight prep

    fwd = jax.jit(functools.partial(conv_vae_forward, nz=nz))
    recon, mu, logvar = fwd(qparams, x, eps)
    jax.block_until_ready((recon, mu, logvar))

    assert recon.shape == (N, nc, 28, 28), recon.shape
    assert mu.shape == (N, nz) and logvar.shape == (N, nz)
    assert bool(jnp.all(jnp.isfinite(recon)))
    assert bool(jnp.all((recon >= 0.0) & (recon <= 1.0)))            # sigmoid output
    print("KERNEL_OK")
</pallas_src>

<mosaic_0001>
module attributes {stable_mosaic.version = 11 : i64} {
  func.func @_conv_lrelu_kernel(%arg0: i32, %arg1: memref<392x48xbf16, #tpu.memory_space<vmem>>, %arg2: memref<48x8xbf16, #tpu.memory_space<vmem>>, %arg3: memref<392x8xbf16, #tpu.memory_space<vmem>>) attributes {dimension_semantics = [#tpu.dimension_semantics<parallel>], iteration_bounds = array<i64: 1>, scalar_prefetch = 0 : i64, scratch_operands = 0 : i64, tpu.core_type = #tpu.core_type<tc>, window_params = [{transform_indices = @transform_0, window_bounds = array<i64: 392, 48>}, {pipeline_mode = #tpu.pipeline_mode<synchronous>, transform_indices = @transform_1, window_bounds = array<i64: 48, 8>}, {transform_indices = @transform_2, window_bounds = array<i64: 392, 8>}]} {
    %c0 = arith.constant 0 : index
    %c0_0 = arith.constant 0 : index
    %0 = vector.load %arg1[%c0, %c0_0] : memref<392x48xbf16, #tpu.memory_space<vmem>>, vector<392x48xbf16>
    %c0_1 = arith.constant 0 : index
    %c0_2 = arith.constant 0 : index
    %1 = vector.load %arg2[%c0_1, %c0_2] : memref<48x8xbf16, #tpu.memory_space<vmem>>, vector<48x8xbf16>
    %cst = arith.constant dense<0.000000e+00> : vector<392x8xf32>
    %2 = tpu.matmul %0, %1, %cst {dimension_numbers = #tpu.dot_dimension_numbers<[1], [0], [0], [1], [0, 0, 1, 1], [], []>} : vector<392x48xbf16>, vector<48x8xbf16>, vector<392x8xf32> -> vector<392x8xf32>
    %cst_3 = arith.constant 0.000000e+00 : f32
    %3 = vector.broadcast %cst_3 : f32 to vector<392x8xf32>
    %4 = arith.cmpf ogt, %2, %3 : vector<392x8xf32>
    %cst_4 = arith.constant 2.000000e-01 : f32
    %5 = vector.broadcast %cst_4 : f32 to vector<392x8xf32>
    %6 = arith.mulf %5, %2 : vector<392x8xf32>
    %7 = arith.select %4, %2, %6 : vector<392x8xi1>, vector<392x8xf32>
    %8 = arith.truncf %7 : vector<392x8xf32> to vector<392x8xbf16>
    %c0_5 = arith.constant 0 : index
    %c0_6 = arith.constant 0 : index
    %9 = vector.load %arg3[%c0_5, %c0_6] : memref<392x8xbf16, #tpu.memory_space<vmem>>, vector<392x8xbf16>
    tpu.vector_store %arg3[%c0_5, %c0_6], %8 {strides = array<i32>} : memref<392x8xbf16, #tpu.memory_space<vmem>>, vector<392x8xbf16>,
    return
  }
  func.func @transform_0(%arg0: i32) -> (i32, i32) {
    %c0_i32 = arith.constant 0 : i32
    %c0_i32_0 = arith.constant 0 : i32
    return %arg0, %c0_i32 : i32, i32
  }
  func.func @transform_1(%arg0: i32) -> (i32, i32) {
    %c0_i32 = arith.constant 0 : i32
    %c0_i32_0 = arith.constant 0 : i32
    %c0_i32_1 = arith.constant 0 : i32
    return %c0_i32, %c0_i32_0 : i32, i32
  }
  func.func @transform_2(%arg0: i32) -> (i32, i32) {
    %c0_i32 = arith.constant 0 : i32
    %c0_i32_0 = arith.constant 0 : i32
    return %arg0, %c0_i32 : i32, i32
  }
}

module attributes {stable_mosaic.version = 11 : i64} {
  func.func @_conv_bn_lrelu_kernel(%arg0: i32, %arg1: i32, %arg2: memref<104x128xbf16, #tpu.memory_space<vmem>>, %arg3: memref<128x16xbf16, #tpu.memory_space<vmem>>, %arg4: memref<1x16xf32, #tpu.memory_space<vmem>>, %arg5: memref<1x16xf32, #tpu.memory_space<vmem>>, %arg6: memref<104x16xbf16, #tpu.memory_space<vmem>>, %arg7: memref<1x16xf32, #tpu.memory_space<vmem>>, %arg8: memref<1x16xf32, #tpu.memory_space<vmem>>) attributes {dimension_semantics = [#tpu.dimension_semantics<arbitrary>, #tpu.dimension_semantics<arbitrary>], iteration_bounds = array<i64: 2, 1>, scalar_prefetch = 0 : i64, scratch_operands = 2 : i64, tpu.core_type = #tpu.core_type<tc>, window_params = [{transform_indices = @transform_0, window_bounds = array<i64: 104, 128>}, {pipeline_mode = #tpu.pipeline_mode<synchronous>, transform_indices = @transform_1, window_bounds = array<i64: 128, 16>}, {pipeline_mode = #tpu.pipeline_mode<synchronous>, transform_indices = @transform_2, window_bounds = array<i64: 1, 16>}, {pipeline_mode = #tpu.pipeline_mode<synchronous>, transform_indices = @transform_3, window_bounds = array<i64: 1, 16>}, {transform_indices = @transform_4, window_bounds = array<i64: 104, 16>}]} {
    %c0 = arith.constant 0 : index
    %c0_0 = arith.constant 0 : index
    %0 = vector.load %arg2[%c0, %c0_0] : memref<104x128xbf16, #tpu.memory_space<vmem>>, vector<104x128xbf16>
    %c0_1 = arith.constant 0 : index
    %c0_2 = arith.constant 0 : index
    %1 = vector.load %arg3[%c0_1, %c0_2] : memref<128x16xbf16, #tpu.memory_space<vmem>>, vector<128x16xbf16>
    %cst = arith.constant dense<0.000000e+00> : vector<104x16xf32>
    %2 = tpu.matmul %0, %1, %cst {dimension_numbers = #tpu.dot_dimension_numbers<[1], [0], [0], [1], [0, 0, 1, 1], [], []>} : vector<104x128xbf16>, vector<128x16xbf16>, vector<104x16xf32> -> vector<104x16xf32>
    %c0_i32 = arith.constant 0 : i32
    %3 = arith.cmpi eq, %arg0, %c0_i32 : i32
    %c0_i32_3 = arith.constant 0 : i32
    %4 = arith.cmpi eq, %arg1, %c0_i32_3 : i32
    %5 = arith.andi %3, %4 : i1
    %6 = arith.extui %5 : i1 to i32
    %c0_i32_4 = arith.constant 0 : i32
    %7 = arith.cmpi ne, %6, %c0_i32_4 : i32
    scf.if %7 {
      %cst_8 = arith.constant 0.000000e+00 : f32
      %14 = vector.broadcast %cst_8 : f32 to vector<1x16xf32>
      %c0_9 = arith.constant 0 : index
      %c0_10 = arith.constant 0 : index
      %15 = vector.load %arg7[%c0_9, %c0_10] : memref<1x16xf32, #tpu.memory_space<vmem>>, vector<1x16xf32>
      tpu.vector_store %arg7[%c0_9, %c0_10], %14 {strides = array<i32>} : memref<1x16xf32, #tpu.memory_space<vmem>>, vector<1x16xf32>,
      %cst_11 = arith.constant 0.000000e+00 : f32
      %16 = vector.broadcast %cst_11 : f32 to vector<1x16xf32>
      %c0_12 = arith.constant 0 : index
      %c0_13 = arith.constant 0 : index
      %17 = vector.load %arg8[%c0_12, %c0_13] : memref<1x16xf32, #tpu.memory_space<vmem>>, vector<1x16xf32>
      tpu.vector_store %arg8[%c0_12, %c0_13], %16 {strides = array<i32>} : memref<1x16xf32, #tpu.memory_space<vmem>>, vector<1x16xf32>,
    } else {
    }
    %c0_i32_5 = arith.constant 0 : i32
    %8 = arith.cmpi eq, %arg0, %c0_i32_5 : i32
    %9 = arith.extui %8 : i1 to i32
    %c0_i32_6 = arith.constant 0 : i32
    %10 = arith.cmpi ne, %9, %c0_i32_6 : i32
    scf.if %10 {
      %c0_8 = arith.constant 0 : index
      %c0_9 = arith.constant 0 : index
      %14 = vector.load %arg7[%c0_8, %c0_9] : memref<1x16xf32, #tpu.memory_space<vmem>>, vector<1x16xf32>
      %cst_10 = arith.constant dense<0.000000e+00> : vector<16xf32>
      %15 = vector.multi_reduction <add>, %2, %cst_10 [0] : vector<104x16xf32> to vector<16xf32>
      %16 = vector.shape_cast %15 : vector<16xf32> to vector<1x16xf32>
      %17 = arith.addf %14, %16 : vector<1x16xf32>
      %c0_11 = arith.constant 0 : index
      %c0_12 = arith.constant 0 : index
      %18 = vector.load %arg7[%c0_11, %c0_12] : memref<1x16xf32, #tpu.memory_space<vmem>>, vector<1x16xf32>
      tpu.vector_store %arg7[%c0_11, %c0_12], %17 {strides = array<i32>} : memref<1x16xf32, #tpu.memory_space<vmem>>, vector<1x16xf32>,
      %c0_13 = arith.constant 0 : index
      %c0_14 = arith.constant 0 : index
      %19 = vector.load %arg8[%c0_13, %c0_14] : memref<1x16xf32, #tpu.memory_space<vmem>>, vector<1x16xf32>
      %20 = arith.mulf %2, %2 : vector<104x16xf32>
      %cst_15 = arith.constant dense<0.000000e+00> : vector<16xf32>
      %21 = vector.multi_reduction <add>, %20, %cst_15 [0] : vector<104x16xf32> to vector<16xf32>
      %22 = vector.shape_cast %21 : vector<16xf32> to vector<1x16xf32>
      %23 = arith.addf %19, %22 : vector<1x16xf32>
      %c0_16 = arith.constant 0 : index
      %c0_17 = arith.constant 0 : index
      %24 = vector.load %arg8[%c0_16, %c0_17] : memref<1x16xf32, #tpu.memory_space<vmem>>, vector<1x16xf32>
      tpu.vector_store %arg8[%c0_16, %c0_17], %23 {strides = array<i32>} : memref<1x16xf32, #tpu.memory_space<vmem>>, vector<1x16xf32>,
    } else {
    }
    %c1_i32 = arith.constant 1 : i32
    %11 = arith.cmpi eq, %arg0, %c1_i32 : i32
    %12 = arith.extui %11 : i1 to i32
    %c0_i32_7 = arith.constant 0 : i32
    %13 = arith.cmpi ne, %12, %c0_i32_7 : i32
    scf.if %13 {
      %c0_8 = arith.constant 0 : index
      %c0_9 = arith.constant 0 : index
      %14 = vector.load %arg7[%c0_8, %c0_9] : memref<1x16xf32, #tpu.memory_space<vmem>>, vector<1x16xf32>
      %cst_10 = arith.constant 0.0102040814 : f32
      %15 = vector.broadcast %cst_10 : f32 to vector<1x16xf32>
      %16 = arith.mulf %14, %15 : vector<1x16xf32>
      %c0_11 = arith.constant 0 : index
      %c0_12 = arith.constant 0 : index
      %17 = vector.load %arg8[%c0_11, %c0_12] : memref<1x16xf32, #tpu.memory_space<vmem>>, vector<1x16xf32>
      %cst_13 = arith.constant 0.0102040814 : f32
      %18 = vector.broadcast %cst_13 : f32 to vector<1x16xf32>
      %19 = arith.mulf %17, %18 : vector<1x16xf32>
      %20 = arith.mulf %16, %16 : vector<1x16xf32>
      %21 = arith.subf %19, %20 : vector<1x16xf32>
      %cst_14 = arith.constant 0.000000e+00 : f32
      %22 = vector.broadcast %cst_14 : f32 to vector<1x16xf32>
      %23 = arith.maximumf %21, %22 : vector<1x16xf32>
      %24 = vector.broadcast %16 : vector<1x16xf32> to vector<104x16xf32>
      %25 = arith.subf %2, %24 : vector<104x16xf32>
      %cst_15 = arith.constant 9.99999974E-6 : f32
      %26 = vector.broadcast %cst_15 : f32 to vector<1x16xf32>
      %27 = arith.addf %23, %26 : vector<1x16xf32>
      %28 = math.rsqrt %27 : vector<1x16xf32>
      %29 = vector.broadcast %28 : vector<1x16xf32> to vector<104x16xf32>
      %30 = arith.mulf %25, %29 : vector<104x16xf32>
      %c0_16 = arith.constant 0 : index
      %c0_17 = arith.constant 0 : index
      %31 = vector.load %arg4[%c0_16, %c0_17] : memref<1x16xf32, #tpu.memory_space<vmem>>, vector<1x16xf32>
      %32 = vector.broadcast %31 : vector<1x16xf32> to vector<104x16xf32>
      %33 = arith.mulf %30, %32 : vector<104x16xf32>
      %c0_18 = arith.constant 0 : index
      %c0_19 = arith.constant 0 : index
      %34 = vector.load %arg5[%c0_18, %c0_19] : memref<1x16xf32, #tpu.memory_space<vmem>>, vector<1x16xf32>
      %35 = vector.broadcast %34 : vector<1x16xf32> to vector<104x16xf32>
      %36 = arith.addf %33, %35 : vector<104x16xf32>
      %cst_20 = arith.constant 0.000000e+00 : f32
      %37 = vector.broadcast %cst_20 : f32 to vector<104x16xf32>
      %38 = arith.cmpf ogt, %36, %37 : vector<104x16xf32>
      %cst_21 = arith.constant 2.000000e-01 : f32
      %39 = vector.broadcast %cst_21 : f32 to vector<104x16xf32>
      %40 = arith.mulf %39, %36 : vector<104x16xf32>
      %41 = arith.select %38, %36, %40 : vector<104x16xi1>, vector<104x16xf32>
      %42 = arith.truncf %41 : vector<104x16xf32> to vector<104x16xbf16>
      %c0_22 = arith.constant 0 : index
      %c0_23 = arith.constant 0 : index
      %43 = vector.load %arg6[%c0_22, %c0_23] : memref<104x16xbf16, #tpu.memory_space<vmem>>, vector<104x16xbf16>
      tpu.vector_store %arg6[%c0_22, %c0_23], %42 {strides = array<i32>} : memref<104x16xbf16, #tpu.memory_space<vmem>>, vector<104x16xbf16>,
    } else {
    }
    return
  }
  func.func @transform_0(%arg0: i32, %arg1: i32) -> (i32, i32) {
    %c0_i32 = arith.constant 0 : i32
    %c0_i32_0 = arith.constant 0 : i32
    return %arg1, %c0_i32 : i32, i32
  }
  func.func @transform_1(%arg0: i32, %arg1: i32) -> (i32, i32) {
    %c0_i32 = arith.constant 0 : i32
    %c0_i32_0 = arith.constant 0 : i32
    %c0_i32_1 = arith.constant 0 : i32
    return %c0_i32, %c0_i32_0 : i32, i32
  }
  func.func @transform_2(%arg0: i32, %arg1: i32) -> (i32, i32) {
    %c0_i32 = arith.constant 0 : i32
    %c0_i32_0 = arith.constant 0 : i32
    %c0_i32_1 = arith.constant 0 : i32
    return %c0_i32, %c0_i32_0 : i32, i32
  }
  func.func @transform_3(%arg0: i32, %arg1: i32) -> (i32, i32) {
    %c0_i32 = arith.constant 0 : i32
    %c0_i32_0 = arith.constant 0 : i32
    %c0_i32_1 = arith.constant 0 : i32
    return %c0_i32, %c0_i32_0 : i32, i32
  }
  func.func @transform_4(%arg0: i32, %arg1: i32) -> (i32, i32) {
    %c0_i32 = arith.constant 0 : i32
    %c0_i32_0 = arith.constant 0 : i32
    return %arg1, %c0_i32 : i32, i32
  }
}

module attributes {stable_mosaic.version = 11 : i64} {
  func.func @_conv_bn_lrelu_kernel(%arg0: i32, %arg1: i32, %arg2: memref<32x144xbf16, #tpu.memory_space<vmem>>, %arg3: memref<144x32xbf16, #tpu.memory_space<vmem>>, %arg4: memref<1x32xf32, #tpu.memory_space<vmem>>, %arg5: memref<1x32xf32, #tpu.memory_space<vmem>>, %arg6: memref<32x32xbf16, #tpu.memory_space<vmem>>, %arg7: memref<1x32xf32, #tpu.memory_space<vmem>>, %arg8: memref<1x32xf32, #tpu.memory_space<vmem>>) attributes {dimension_semantics = [#tpu.dimension_semantics<arbitrary>, #tpu.dimension_semantics<arbitrary>], iteration_bounds = array<i64: 2, 1>, scalar_prefetch = 0 : i64, scratch_operands = 2 : i64, tpu.core_type = #tpu.core_type<tc>, window_params = [{transform_indices = @transform_0, window_bounds = array<i64: 32, 144>}, {pipeline_mode = #tpu.pipeline_mode<synchronous>, transform_indices = @transform_1, window_bounds = array<i64: 144, 32>}, {pipeline_mode = #tpu.pipeline_mode<synchronous>, transform_indices = @transform_2, window_bounds = array<i64: 1, 32>}, {pipeline_mode = #tpu.pipeline_mode<synchronous>, transform_indices = @transform_3, window_bounds = array<i64: 1, 32>}, {transform_indices = @transform_4, window_bounds = array<i64: 32, 32>}]} {
    %c0 = arith.constant 0 : index
    %c0_0 = arith.constant 0 : index
    %0 = vector.load %arg2[%c0, %c0_0] : memref<32x144xbf16, #tpu.memory_space<vmem>>, vector<32x144xbf16>
    %c0_1 = arith.constant 0 : index
    %c0_2 = arith.constant 0 : index
    %1 = vector.load %arg3[%c0_1, %c0_2] : memref<144x32xbf16, #tpu.memory_space<vmem>>, vector<144x32xbf16>
    %cst = arith.constant dense<0.000000e+00> : vector<32x32xf32>
    %2 = tpu.matmul %0, %1, %cst {dimension_numbers = #tpu.dot_dimension_numbers<[1], [0], [0], [1], [0, 0, 1, 1], [], []>} : vector<32x144xbf16>, vector<144x32xbf16>, vector<32x32xf32> -> vector<32x32xf32>
    %c0_i32 = arith.constant 0 : i32
    %3 = arith.cmpi eq, %arg0, %c0_i32 : i32
    %c0_i32_3 = arith.constant 0 : i32
    %4 = arith.cmpi eq, %arg1, %c0_i32_3 : i32
    %5 = arith.andi %3, %4 : i1
    %6 = arith.extui %5 : i1 to i32
    %c0_i32_4 = arith.constant 0 : i32
    %7 = arith.cmpi ne, %6, %c0_i32_4 : i32
    scf.if %7 {
      %cst_8 = arith.constant 0.000000e+00 : f32
      %14 = vector.broadcast %cst_8 : f32 to vector<1x32xf32>
      %c0_9 = arith.constant 0 : index
      %c0_10 = arith.constant 0 : index
      %15 = vector.load %arg7[%c0_9, %c0_10] : memref<1x32xf32, #tpu.memory_space<vmem>>, vector<1x32xf32>
      tpu.vector_store %arg7[%c0_9, %c0_10], %14 {strides = array<i32>} : memref<1x32xf32, #tpu.memory_space<vmem>>, vector<1x32xf32>,
      %cst_11 = arith.constant 0.000000e+00 : f32
      %16 = vector.broadcast %cst_11 : f32 to vector<1x32xf32>
      %c0_12 = arith.constant 0 : index
      %c0_13 = arith.constant 0 : index
      %17 = vector.load %arg8[%c0_12, %c0_13] : memref<1x32xf32, #tpu.memory_space<vmem>>, vector<1x32xf32>
      tpu.vector_store %arg8[%c0_12, %c0_13], %16 {strides = array<i32>} : memref<1x32xf32, #tpu.memory_space<vmem>>, vector<1x32xf32>,
    } else {
    }
    %c0_i32_5 = arith.constant 0 : i32
    %8 = arith.cmpi eq, %arg0, %c0_i32_5 : i32
    %9 = arith.extui %8 : i1 to i32
    %c0_i32_6 = arith.constant 0 : i32
    %10 = arith.cmpi ne, %9, %c0_i32_6 : i32
    scf.if %10 {
      %c0_8 = arith.constant 0 : index
      %c0_9 = arith.constant 0 : index
      %14 = vector.load %arg7[%c0_8, %c0_9] : memref<1x32xf32, #tpu.memory_space<vmem>>, vector<1x32xf32>
      %cst_10 = arith.constant dense<0.000000e+00> : vector<32xf32>
      %15 = vector.multi_reduction <add>, %2, %cst_10 [0] : vector<32x32xf32> to vector<32xf32>
      %16 = vector.shape_cast %15 : vector<32xf32> to vector<1x32xf32>
      %17 = arith.addf %14, %16 : vector<1x32xf32>
      %c0_11 = arith.constant 0 : index
      %c0_12 = arith.constant 0 : index
      %18 = vector.load %arg7[%c0_11, %c0_12] : memref<1x32xf32, #tpu.memory_space<vmem>>, vector<1x32xf32>
      tpu.vector_store %arg7[%c0_11, %c0_12], %17 {strides = array<i32>} : memref<1x32xf32, #tpu.memory_space<vmem>>, vector<1x32xf32>,
      %c0_13 = arith.constant 0 : index
      %c0_14 = arith.constant 0 : index
      %19 = vector.load %arg8[%c0_13, %c0_14] : memref<1x32xf32, #tpu.memory_space<vmem>>, vector<1x32xf32>
      %20 = arith.mulf %2, %2 : vector<32x32xf32>
      %cst_15 = arith.constant dense<0.000000e+00> : vector<32xf32>
      %21 = vector.multi_reduction <add>, %20, %cst_15 [0] : vector<32x32xf32> to vector<32xf32>
      %22 = vector.shape_cast %21 : vector<32xf32> to vector<1x32xf32>
      %23 = arith.addf %19, %22 : vector<1x32xf32>
      %c0_16 = arith.constant 0 : index
      %c0_17 = arith.constant 0 : index
      %24 = vector.load %arg8[%c0_16, %c0_17] : memref<1x32xf32, #tpu.memory_space<vmem>>, vector<1x32xf32>
      tpu.vector_store %arg8[%c0_16, %c0_17], %23 {strides = array<i32>} : memref<1x32xf32, #tpu.memory_space<vmem>>, vector<1x32xf32>,
    } else {
    }
    %c1_i32 = arith.constant 1 : i32
    %11 = arith.cmpi eq, %arg0, %c1_i32 : i32
    %12 = arith.extui %11 : i1 to i32
    %c0_i32_7 = arith.constant 0 : i32
    %13 = arith.cmpi ne, %12, %c0_i32_7 : i32
    scf.if %13 {
      %c0_8 = arith.constant 0 : index
      %c0_9 = arith.constant 0 : index
      %14 = vector.load %arg7[%c0_8, %c0_9] : memref<1x32xf32, #tpu.memory_space<vmem>>, vector<1x32xf32>
      %cst_10 = arith.constant 3.125000e-02 : f32
      %15 = vector.broadcast %cst_10 : f32 to vector<1x32xf32>
      %16 = arith.mulf %14, %15 : vector<1x32xf32>
      %c0_11 = arith.constant 0 : index
      %c0_12 = arith.constant 0 : index
      %17 = vector.load %arg8[%c0_11, %c0_12] : memref<1x32xf32, #tpu.memory_space<vmem>>, vector<1x32xf32>
      %cst_13 = arith.constant 3.125000e-02 : f32
      %18 = vector.broadcast %cst_13 : f32 to vector<1x32xf32>
      %19 = arith.mulf %17, %18 : vector<1x32xf32>
      %20 = arith.mulf %16, %16 : vector<1x32xf32>
      %21 = arith.subf %19, %20 : vector<1x32xf32>
      %cst_14 = arith.constant 0.000000e+00 : f32
      %22 = vector.broadcast %cst_14 : f32 to vector<1x32xf32>
      %23 = arith.maximumf %21, %22 : vector<1x32xf32>
      %24 = vector.broadcast %16 : vector<1x32xf32> to vector<32x32xf32>
      %25 = arith.subf %2, %24 : vector<32x32xf32>
      %cst_15 = arith.constant 9.99999974E-6 : f32
      %26 = vector.broadcast %cst_15 : f32 to vector<1x32xf32>
      %27 = arith.addf %23, %26 : vector<1x32xf32>
      %28 = math.rsqrt %27 : vector<1x32xf32>
      %29 = vector.broadcast %28 : vector<1x32xf32> to vector<32x32xf32>
      %30 = arith.mulf %25, %29 : vector<32x32xf32>
      %c0_16 = arith.constant 0 : index
      %c0_17 = arith.constant 0 : index
      %31 = vector.load %arg4[%c0_16, %c0_17] : memref<1x32xf32, #tpu.memory_space<vmem>>, vector<1x32xf32>
      %32 = vector.broadcast %31 : vector<1x32xf32> to vector<32x32xf32>
      %33 = arith.mulf %30, %32 : vector<32x32xf32>
      %c0_18 = arith.constant 0 : index
      %c0_19 = arith.constant 0 : index
      %34 = vector.load %arg5[%c0_18, %c0_19] : memref<1x32xf32, #tpu.memory_space<vmem>>, vector<1x32xf32>
      %35 = vector.broadcast %34 : vector<1x32xf32> to vector<32x32xf32>
      %36 = arith.addf %33, %35 : vector<32x32xf32>
      %cst_20 = arith.constant 0.000000e+00 : f32
      %37 = vector.broadcast %cst_20 : f32 to vector<32x32xf32>
      %38 = arith.cmpf ogt, %36, %37 : vector<32x32xf32>
      %cst_21 = arith.constant 2.000000e-01 : f32
      %39 = vector.broadcast %cst_21 : f32 to vector<32x32xf32>
      %40 = arith.mulf %39, %36 : vector<32x32xf32>
      %41 = arith.select %38, %36, %40 : vector<32x32xi1>, vector<32x32xf32>
      %42 = arith.truncf %41 : vector<32x32xf32> to vector<32x32xbf16>
      %c0_22 = arith.constant 0 : index
      %c0_23 = arith.constant 0 : index
      %43 = vector.load %arg6[%c0_22, %c0_23] : memref<32x32xbf16, #tpu.memory_space<vmem>>, vector<32x32xbf16>
      tpu.vector_store %arg6[%c0_22, %c0_23], %42 {strides = array<i32>} : memref<32x32xbf16, #tpu.memory_space<vmem>>, vector<32x32xbf16>,
    } else {
    }
    return
  }
  func.func @transform_0(%arg0: i32, %arg1: i32) -> (i32, i32) {
    %c0_i32 = arith.constant 0 : i32
    %c0_i32_0 = arith.constant 0 : i32
    return %arg1, %c0_i32 : i32, i32
  }
  func.func @transform_1(%arg0: i32, %arg1: i32) -> (i32, i32) {
    %c0_i32 = arith.constant 0 : i32
    %c0_i32_0 = arith.constant 0 : i32
    %c0_i32_1 = arith.constant 0 : i32
    return %c0_i32, %c0_i32_0 : i32, i32
  }
  func.func @transform_2(%arg0: i32, %arg1: i32) -> (i32, i32) {
    %c0_i32 = arith.constant 0 : i32
    %c0_i32_0 = arith.constant 0 : i32
    %c0_i32_1 = arith.constant 0 : i32
    return %c0_i32, %c0_i32_0 : i32, i32
  }
  func.func @transform_3(%arg0: i32, %arg1: i32) -> (i32, i32) {
    %c0_i32 = arith.constant 0 : i32
    %c0_i32_0 = arith.constant 0 : i32
    %c0_i32_1 = arith.constant 0 : i32
    return %c0_i32, %c0_i32_0 : i32, i32
  }
  func.func @transform_4(%arg0: i32, %arg1: i32) -> (i32, i32) {
    %c0_i32 = arith.constant 0 : i32
    %c0_i32_0 = arith.constant 0 : i32
    return %arg1, %c0_i32 : i32, i32
  }
}

module attributes {stable_mosaic.version = 11 : i64} {
  func.func @_bottleneck_kernel(%arg0: memref<2x512xbf16, #tpu.memory_space<vmem>>, %arg1: memref<512x1024xbf16, #tpu.memory_space<vmem>>, %arg2: memref<1024x512xbf16, #tpu.memory_space<vmem>>, %arg3: memref<1x512xf32, #tpu.memory_space<vmem>>, %arg4: memref<512x32xbf16, #tpu.memory_space<vmem>>, %arg5: memref<1x32xf32, #tpu.memory_space<vmem>>, %arg6: memref<32x512xbf16, #tpu.memory_space<vmem>>, %arg7: memref<1x512xf32, #tpu.memory_space<vmem>>, %arg8: memref<512x1024xbf16, #tpu.memory_space<vmem>>, %arg9: memref<1x1024xf32, #tpu.memory_space<vmem>>, %arg10: memref<1024x1024xbf16, #tpu.memory_space<vmem>>, %arg11: memref<2x32xf32, #tpu.memory_space<vmem>>, %arg12: memref<2x32xf32, #tpu.memory_space<vmem>>, %arg13: memref<2x1024xf32, #tpu.memory_space<vmem>>) attributes {dimension_semantics = [], scalar_prefetch = 0 : i64, scratch_operands = 0 : i64, tpu.core_type = #tpu.core_type<tc>} {
    %c0 = arith.constant 0 : index
    %c0_0 = arith.constant 0 : index
    %0 = vector.load %arg0[%c0, %c0_0] : memref<2x512xbf16, #tpu.memory_space<vmem>>, vector<2x512xbf16>
    %c0_1 = arith.constant 0 : index
    %c0_2 = arith.constant 0 : index
    %1 = vector.load %arg1[%c0_1, %c0_2] : memref<512x1024xbf16, #tpu.memory_space<vmem>>, vector<512x1024xbf16>
    %cst = arith.constant dense<0.000000e+00> : vector<2x1024xf32>
    %2 = tpu.matmul %0, %1, %cst {dimension_numbers = #tpu.dot_dimension_numbers<[1], [0], [0], [1], [0, 0, 1, 1], [], []>} : vector<2x512xbf16>, vector<512x1024xbf16>, vector<2x1024xf32> -> vector<2x1024xf32>
    %cst_3 = arith.constant 0.000000e+00 : f32
    %3 = vector.broadcast %cst_3 : f32 to vector<2x1024xf32>
    %4 = arith.cmpf ogt, %2, %3 : vector<2x1024xf32>
    %cst_4 = arith.constant 2.000000e-01 : f32
    %5 = vector.broadcast %cst_4 : f32 to vector<2x1024xf32>
    %6 = arith.mulf %5, %2 : vector<2x1024xf32>
    %7 = arith.select %4, %2, %6 : vector<2x1024xi1>, vector<2x1024xf32>
    %8 = arith.truncf %7 : vector<2x1024xf32> to vector<2x1024xbf16>
    %c0_5 = arith.constant 0 : index
    %c0_6 = arith.constant 0 : index
    %9 = vector.load %arg2[%c0_5, %c0_6] : memref<1024x512xbf16, #tpu.memory_space<vmem>>, vector<1024x512xbf16>
    %cst_7 = arith.constant dense<0.000000e+00> : vector<2x512xf32>
    %10 = tpu.matmul %8, %9, %cst_7 {dimension_numbers = #tpu.dot_dimension_numbers<[1], [0], [0], [1], [0, 0, 1, 1], [], []>} : vector<2x1024xbf16>, vector<1024x512xbf16>, vector<2x512xf32> -> vector<2x512xf32>
    %c0_8 = arith.constant 0 : index
    %c0_9 = arith.constant 0 : index
    %11 = vector.load %arg3[%c0_8, %c0_9] : memref<1x512xf32, #tpu.memory_space<vmem>>, vector<1x512xf32>
    %12 = vector.broadcast %11 : vector<1x512xf32> to vector<2x512xf32>
    %13 = arith.addf %10, %12 : vector<2x512xf32>
    %14 = arith.truncf %13 : vector<2x512xf32> to vector<2x512xbf16>
    %c0_10 = arith.constant 0 : index
    %c0_11 = arith.constant 0 : index
    %15 = vector.load %arg4[%c0_10, %c0_11] : memref<512x32xbf16, #tpu.memory_space<vmem>>, vector<512x32xbf16>
    %cst_12 = arith.constant dense<0.000000e+00> : vector<2x32xf32>
    %16 = tpu.matmul %14, %15, %cst_12 {dimension_numbers = #tpu.dot_dimension_numbers<[1], [0], [0], [1], [0, 0, 1, 1], [], []>} : vector<2x512xbf16>, vector<512x32xbf16>, vector<2x32xf32> -> vector<2x32xf32>
    %c0_13 = arith.constant 0 : index
    %c0_14 = arith.constant 0 : index
    %17 = vector.load %arg5[%c0_13, %c0_14] : memref<1x32xf32, #tpu.memory_space<vmem>>, vector<1x32xf32>
    %18 = vector.broadcast %17 : vector<1x32xf32> to vector<2x32xf32>
    %19 = arith.addf %16, %18 : vector<2x32xf32>
    %c0_15 = arith.constant 0 : index
    %c0_16 = arith.constant 0 : index
    %20 = vector.load %arg12[%c0_15, %c0_16] : memref<2x32xf32, #tpu.memory_space<vmem>>, vector<2x32xf32>
    tpu.vector_store %arg12[%c0_15, %c0_16], %19 {strides = array<i32>} : memref<2x32xf32, #tpu.memory_space<vmem>>, vector<2x32xf32>,
    %21 = tpu.iota {dimensions = array<i32: 1>} : vector<2x32xi32>
    %c16_i32 = arith.constant 16 : i32
    %22 = vector.broadcast %c16_i32 : i32 to vector<2x32xi32>
    %23 = arith.cmpi slt, %21, %22 : vector<2x32xi32>
    %cst_17 = arith.constant 0.000000e+00 : f32
    %24 = vector.broadcast %cst_17 : f32 to vector<2x32xf32>
    %25 = arith.select %23, %19, %24 : vector<2x32xi1>, vector<2x32xf32>
    %c0_18 = arith.constant 0 : index
    %c0_19 = arith.constant 0 : index
    %26 = vector.load %arg11[%c0_18, %c0_19] : memref<2x32xf32, #tpu.memory_space<vmem>>, vector<2x32xf32>
    %cst_20 = arith.constant 5.000000e-01 : f32
    %27 = vector.broadcast %cst_20 : f32 to vector<2x32xf32>
    %28 = arith.mulf %27, %19 : vector<2x32xf32>
    %29 = math.exp %28 : vector<2x32xf32>
    %30 = arith.mulf %26, %29 : vector<2x32xf32>
    %31 = arith.addf %25, %30 : vector<2x32xf32>
    %32 = arith.truncf %31 : vector<2x32xf32> to vector<2x32xbf16>
    %c0_21 = arith.constant 0 : index
    %c0_22 = arith.constant 0 : index
    %33 = vector.load %arg6[%c0_21, %c0_22] : memref<32x512xbf16, #tpu.memory_space<vmem>>, vector<32x512xbf16>
    %cst_23 = arith.constant dense<0.000000e+00> : vector<2x512xf32>
    %34 = tpu.matmul %32, %33, %cst_23 {dimension_numbers = #tpu.dot_dimension_numbers<[1], [0], [0], [1], [0, 0, 1, 1], [], []>} : vector<2x32xbf16>, vector<32x512xbf16>, vector<2x512xf32> -> vector<2x512xf32>
    %c0_24 = arith.constant 0 : index
    %c0_25 = arith.constant 0 : index
    %35 = vector.load %arg7[%c0_24, %c0_25] : memref<1x512xf32, #tpu.memory_space<vmem>>, vector<1x512xf32>
    %36 = vector.broadcast %35 : vector<1x512xf32> to vector<2x512xf32>
    %37 = arith.addf %34, %36 : vector<2x512xf32>
    %cst_26 = arith.constant 0.000000e+00 : f32
    %38 = vector.broadcast %cst_26 : f32 to vector<2x512xf32>
    %39 = arith.maximumf %37, %38 : vector<2x512xf32>
    %40 = arith.truncf %39 : vector<2x512xf32> to vector<2x512xbf16>
    %c0_27 = arith.constant 0 : index
    %c0_28 = arith.constant 0 : index
    %41 = vector.load %arg8[%c0_27, %c0_28] : memref<512x1024xbf16, #tpu.memory_space<vmem>>, vector<512x1024xbf16>
    %cst_29 = arith.constant dense<0.000000e+00> : vector<2x1024xf32>
    %42 = tpu.matmul %40, %41, %cst_29 {dimension_numbers = #tpu.dot_dimension_numbers<[1], [0], [0], [1], [0, 0, 1, 1], [], []>} : vector<2x512xbf16>, vector<512x1024xbf16>, vector<2x1024xf32> -> vector<2x1024xf32>
    %c0_30 = arith.constant 0 : index
    %c0_31 = arith.constant 0 : index
    %43 = vector.load %arg9[%c0_30, %c0_31] : memref<1x1024xf32, #tpu.memory_space<vmem>>, vector<1x1024xf32>
    %44 = vector.broadcast %43 : vector<1x1024xf32> to vector<2x1024xf32>
    %45 = arith.addf %42, %44 : vector<2x1024xf32>
    %46 = arith.truncf %45 : vector<2x1024xf32> to vector<2x1024xbf16>
    %c0_32 = arith.constant 0 : index
    %c0_33 = arith.constant 0 : index
    %47 = vector.load %arg10[%c0_32, %c0_33] : memref<1024x1024xbf16, #tpu.memory_space<vmem>>, vector<1024x1024xbf16>
    %cst_34 = arith.constant dense<0.000000e+00> : vector<2x1024xf32>
    %48 = tpu.matmul %46, %47, %cst_34 {dimension_numbers = #tpu.dot_dimension_numbers<[1], [0], [0], [1], [0, 0, 1, 1], [], []>} : vector<2x1024xbf16>, vector<1024x1024xbf16>, vector<2x1024xf32> -> vector<2x1024xf32>
    %c0_35 = arith.constant 0 : index
    %c0_36 = arith.constant 0 : index
    %49 = vector.load %arg13[%c0_35, %c0_36] : memref<2x1024xf32, #tpu.memory_space<vmem>>, vector<2x1024xf32>
    tpu.vector_store %arg13[%c0_35, %c0_36], %48 {strides = array<i32>} : memref<2x1024xf32, #tpu.memory_space<vmem>>, vector<2x1024xf32>,
    return
  }
}

module attributes {stable_mosaic.version = 11 : i64} {
  func.func @_bn_relu_matmul_kernel(%arg0: memref<32x64xf32, #tpu.memory_space<vmem>>, %arg1: memref<1x64xf32, #tpu.memory_space<vmem>>, %arg2: memref<1x64xf32, #tpu.memory_space<vmem>>, %arg3: memref<64x288xbf16, #tpu.memory_space<vmem>>, %arg4: memref<32x288xf32, #tpu.memory_space<vmem>>) attributes {dimension_semantics = [], scalar_prefetch = 0 : i64, scratch_operands = 0 : i64, tpu.core_type = #tpu.core_type<tc>} {
    %c0 = arith.constant 0 : index
    %c0_0 = arith.constant 0 : index
    %0 = vector.load %arg0[%c0, %c0_0] : memref<32x64xf32, #tpu.memory_space<vmem>>, vector<32x64xf32>
    %cst = arith.constant dense<0.000000e+00> : vector<64xf32>
    %1 = vector.multi_reduction <add>, %0, %cst [0] : vector<32x64xf32> to vector<64xf32>
    %2 = vector.shape_cast %1 : vector<64xf32> to vector<1x64xf32>
    %cst_1 = arith.constant 3.200000e+01 : f32
    %3 = vector.broadcast %cst_1 : f32 to vector<1x64xf32>
    %4 = arith.divf %2, %3 : vector<1x64xf32>
    %5 = vector.broadcast %4 : vector<1x64xf32> to vector<32x64xf32>
    %6 = arith.subf %0, %5 : vector<32x64xf32>
    %7 = arith.mulf %6, %6 : vector<32x64xf32>
    %cst_2 = arith.constant dense<0.000000e+00> : vector<64xf32>
    %8 = vector.multi_reduction <add>, %7, %cst_2 [0] : vector<32x64xf32> to vector<64xf32>
    %9 = vector.shape_cast %8 : vector<64xf32> to vector<1x64xf32>
    %cst_3 = arith.constant 3.200000e+01 : f32
    %10 = vector.broadcast %cst_3 : f32 to vector<1x64xf32>
    %11 = arith.divf %9, %10 : vector<1x64xf32>
    %12 = vector.broadcast %4 : vector<1x64xf32> to vector<32x64xf32>
    %13 = arith.subf %0, %12 : vector<32x64xf32>
    %cst_4 = arith.constant 9.99999974E-6 : f32
    %14 = vector.broadcast %cst_4 : f32 to vector<1x64xf32>
    %15 = arith.addf %11, %14 : vector<1x64xf32>
    %16 = math.rsqrt %15 : vector<1x64xf32>
    %17 = vector.broadcast %16 : vector<1x64xf32> to vector<32x64xf32>
    %18 = arith.mulf %13, %17 : vector<32x64xf32>
    %c0_5 = arith.constant 0 : index
    %c0_6 = arith.constant 0 : index
    %19 = vector.load %arg1[%c0_5, %c0_6] : memref<1x64xf32, #tpu.memory_space<vmem>>, vector<1x64xf32>
    %20 = vector.broadcast %19 : vector<1x64xf32> to vector<32x64xf32>
    %21 = arith.mulf %18, %20 : vector<32x64xf32>
    %c0_7 = arith.constant 0 : index
    %c0_8 = arith.constant 0 : index
    %22 = vector.load %arg2[%c0_7, %c0_8] : memref<1x64xf32, #tpu.memory_space<vmem>>, vector<1x64xf32>
    %23 = vector.broadcast %22 : vector<1x64xf32> to vector<32x64xf32>
    %24 = arith.addf %21, %23 : vector<32x64xf32>
    %cst_9 = arith.constant 0.000000e+00 : f32
    %25 = vector.broadcast %cst_9 : f32 to vector<32x64xf32>
    %26 = arith.maximumf %24, %25 : vector<32x64xf32>
    %27 = arith.truncf %26 : vector<32x64xf32> to vector<32x64xbf16>
    %c0_10 = arith.constant 0 : index
    %c0_11 = arith.constant 0 : index
    %28 = vector.load %arg3[%c0_10, %c0_11] : memref<64x288xbf16, #tpu.memory_space<vmem>>, vector<64x288xbf16>
    %cst_12 = arith.constant dense<0.000000e+00> : vector<32x288xf32>
    %29 = tpu.matmul %27, %28, %cst_12 {dimension_numbers = #tpu.dot_dimension_numbers<[1], [0], [0], [1], [0, 0, 1, 1], [], []>} : vector<32x64xbf16>, vector<64x288xbf16>, vector<32x288xf32> -> vector<32x288xf32>
    %c0_13 = arith.constant 0 : index
    %c0_14 = arith.constant 0 : index
    %30 = vector.load %arg4[%c0_13, %c0_14] : memref<32x288xf32, #tpu.memory_space<vmem>>, vector<32x288xf32>
    tpu.vector_store %arg4[%c0_13, %c0_14], %29 {strides = array<i32>} : memref<32x288xf32, #tpu.memory_space<vmem>>, vector<32x288xf32>,
    return
  }
}

module attributes {stable_mosaic.version = 11 : i64} {
  func.func @_bn_relu_matmul_kernel(%arg0: memref<98x32xf32, #tpu.memory_space<vmem>>, %arg1: memref<1x32xf32, #tpu.memory_space<vmem>>, %arg2: memref<1x32xf32, #tpu.memory_space<vmem>>, %arg3: memref<32x256xbf16, #tpu.memory_space<vmem>>, %arg4: memref<98x256xf32, #tpu.memory_space<vmem>>) attributes {dimension_semantics = [], scalar_prefetch = 0 : i64, scratch_operands = 0 : i64, tpu.core_type = #tpu.core_type<tc>} {
    %c0 = arith.constant 0 : index
    %c0_0 = arith.constant 0 : index
    %0 = vector.load %arg0[%c0, %c0_0] : memref<98x32xf32, #tpu.memory_space<vmem>>, vector<98x32xf32>
    %cst = arith.constant dense<0.000000e+00> : vector<32xf32>
    %1 = vector.multi_reduction <add>, %0, %cst [0] : vector<98x32xf32> to vector<32xf32>
    %2 = vector.shape_cast %1 : vector<32xf32> to vector<1x32xf32>
    %cst_1 = arith.constant 9.800000e+01 : f32
    %3 = vector.broadcast %cst_1 : f32 to vector<1x32xf32>
    %4 = arith.divf %2, %3 : vector<1x32xf32>
    %5 = vector.broadcast %4 : vector<1x32xf32> to vector<98x32xf32>
    %6 = arith.subf %0, %5 : vector<98x32xf32>
    %7 = arith.mulf %6, %6 : vector<98x32xf32>
    %cst_2 = arith.constant dense<0.000000e+00> : vector<32xf32>
    %8 = vector.multi_reduction <add>, %7, %cst_2 [0] : vector<98x32xf32> to vector<32xf32>
    %9 = vector.shape_cast %8 : vector<32xf32> to vector<1x32xf32>
    %cst_3 = arith.constant 9.800000e+01 : f32
    %10 = vector.broadcast %cst_3 : f32 to vector<1x32xf32>
    %11 = arith.divf %9, %10 : vector<1x32xf32>
    %12 = vector.broadcast %4 : vector<1x32xf32> to vector<98x32xf32>
    %13 = arith.subf %0, %12 : vector<98x32xf32>
    %cst_4 = arith.constant 9.99999974E-6 : f32
    %14 = vector.broadcast %cst_4 : f32 to vector<1x32xf32>
    %15 = arith.addf %11, %14 : vector<1x32xf32>
    %16 = math.rsqrt %15 : vector<1x32xf32>
    %17 = vector.broadcast %16 : vector<1x32xf32> to vector<98x32xf32>
    %18 = arith.mulf %13, %17 : vector<98x32xf32>
    %c0_5 = arith.constant 0 : index
    %c0_6 = arith.constant 0 : index
    %19 = vector.load %arg1[%c0_5, %c0_6] : memref<1x32xf32, #tpu.memory_space<vmem>>, vector<1x32xf32>
    %20 = vector.broadcast %19 : vector<1x32xf32> to vector<98x32xf32>
    %21 = arith.mulf %18, %20 : vector<98x32xf32>
    %c0_7 = arith.constant 0 : index
    %c0_8 = arith.constant 0 : index
    %22 = vector.load %arg2[%c0_7, %c0_8] : memref<1x32xf32, #tpu.memory_space<vmem>>, vector<1x32xf32>
    %23 = vector.broadcast %22 : vector<1x32xf32> to vector<98x32xf32>
    %24 = arith.addf %21, %23 : vector<98x32xf32>
    %cst_9 = arith.constant 0.000000e+00 : f32
    %25 = vector.broadcast %cst_9 : f32 to vector<98x32xf32>
    %26 = arith.maximumf %24, %25 : vector<98x32xf32>
    %27 = arith.truncf %26 : vector<98x32xf32> to vector<98x32xbf16>
    %c0_10 = arith.constant 0 : index
    %c0_11 = arith.constant 0 : index
    %28 = vector.load %arg3[%c0_10, %c0_11] : memref<32x256xbf16, #tpu.memory_space<vmem>>, vector<32x256xbf16>
    %cst_12 = arith.constant dense<0.000000e+00> : vector<98x256xf32>
    %29 = tpu.matmul %27, %28, %cst_12 {dimension_numbers = #tpu.dot_dimension_numbers<[1], [0], [0], [1], [0, 0, 1, 1], [], []>} : vector<98x32xbf16>, vector<32x256xbf16>, vector<98x256xf32> -> vector<98x256xf32>
    %c0_13 = arith.constant 0 : index
    %c0_14 = arith.constant 0 : index
    %30 = vector.load %arg4[%c0_13, %c0_14] : memref<98x256xf32, #tpu.memory_space<vmem>>, vector<98x256xf32>
    tpu.vector_store %arg4[%c0_13, %c0_14], %29 {strides = array<i32>} : memref<98x256xf32, #tpu.memory_space<vmem>>, vector<98x256xf32>,
    return
  }
}

module attributes {stable_mosaic.version = 11 : i64} {
  func.func @_bn_relu_matmul_kernel(%arg0: memref<392x16xf32, #tpu.memory_space<vmem>>, %arg1: memref<1x16xf32, #tpu.memory_space<vmem>>, %arg2: memref<1x16xf32, #tpu.memory_space<vmem>>, %arg3: memref<16x48xbf16, #tpu.memory_space<vmem>>, %arg4: memref<392x48xf32, #tpu.memory_space<vmem>>) attributes {dimension_semantics = [], scalar_prefetch = 0 : i64, scratch_operands = 0 : i64, tpu.core_type = #tpu.core_type<tc>} {
    %c0 = arith.constant 0 : index
    %c0_0 = arith.constant 0 : index
    %0 = vector.load %arg0[%c0, %c0_0] : memref<392x16xf32, #tpu.memory_space<vmem>>, vector<392x16xf32>
    %cst = arith.constant dense<0.000000e+00> : vector<16xf32>
    %1 = vector.multi_reduction <add>, %0, %cst [0] : vector<392x16xf32> to vector<16xf32>
    %2 = vector.shape_cast %1 : vector<16xf32> to vector<1x16xf32>
    %cst_1 = arith.constant 3.920000e+02 : f32
    %3 = vector.broadcast %cst_1 : f32 to vector<1x16xf32>
    %4 = arith.divf %2, %3 : vector<1x16xf32>
    %5 = vector.broadcast %4 : vector<1x16xf32> to vector<392x16xf32>
    %6 = arith.subf %0, %5 : vector<392x16xf32>
    %7 = arith.mulf %6, %6 : vector<392x16xf32>
    %cst_2 = arith.constant dense<0.000000e+00> : vector<16xf32>
    %8 = vector.multi_reduction <add>, %7, %cst_2 [0] : vector<392x16xf32> to vector<16xf32>
    %9 = vector.shape_cast %8 : vector<16xf32> to vector<1x16xf32>
    %cst_3 = arith.constant 3.920000e+02 : f32
    %10 = vector.broadcast %cst_3 : f32 to vector<1x16xf32>
    %11 = arith.divf %9, %10 : vector<1x16xf32>
    %12 = vector.broadcast %4 : vector<1x16xf32> to vector<392x16xf32>
    %13 = arith.subf %0, %12 : vector<392x16xf32>
    %cst_4 = arith.constant 9.99999974E-6 : f32
    %14 = vector.broadcast %cst_4 : f32 to vector<1x16xf32>
    %15 = arith.addf %11, %14 : vector<1x16xf32>
    %16 = math.rsqrt %15 : vector<1x16xf32>
    %17 = vector.broadcast %16 : vector<1x16xf32> to vector<392x16xf32>
    %18 = arith.mulf %13, %17 : vector<392x16xf32>
    %c0_5 = arith.constant 0 : index
    %c0_6 = arith.constant 0 : index
    %19 = vector.load %arg1[%c0_5, %c0_6] : memref<1x16xf32, #tpu.memory_space<vmem>>, vector<1x16xf32>
    %20 = vector.broadcast %19 : vector<1x16xf32> to vector<392x16xf32>
    %21 = arith.mulf %18, %20 : vector<392x16xf32>
    %c0_7 = arith.constant 0 : index
    %c0_8 = arith.constant 0 : index
    %22 = vector.load %arg2[%c0_7, %c0_8] : memref<1x16xf32, #tpu.memory_space<vmem>>, vector<1x16xf32>
    %23 = vector.broadcast %22 : vector<1x16xf32> to vector<392x16xf32>
    %24 = arith.addf %21, %23 : vector<392x16xf32>
    %cst_9 = arith.constant 0.000000e+00 : f32
    %25 = vector.broadcast %cst_9 : f32 to vector<392x16xf32>
    %26 = arith.maximumf %24, %25 : vector<392x16xf32>
    %27 = arith.truncf %26 : vector<392x16xf32> to vector<392x16xbf16>
    %c0_10 = arith.constant 0 : index
    %c0_11 = arith.constant 0 : index
    %28 = vector.load %arg3[%c0_10, %c0_11] : memref<16x48xbf16, #tpu.memory_space<vmem>>, vector<16x48xbf16>
    %cst_12 = arith.constant dense<0.000000e+00> : vector<392x48xf32>
    %29 = tpu.matmul %27, %28, %cst_12 {dimension_numbers = #tpu.dot_dimension_numbers<[1], [0], [0], [1], [0, 0, 1, 1], [], []>} : vector<392x16xbf16>, vector<16x48xbf16>, vector<392x48xf32> -> vector<392x48xf32>
    %c0_13 = arith.constant 0 : index
    %c0_14 = arith.constant 0 : index
    %30 = vector.load %arg4[%c0_13, %c0_14] : memref<392x48xf32, #tpu.memory_space<vmem>>, vector<392x48xf32>
    tpu.vector_store %arg4[%c0_13, %c0_14], %29 {strides = array<i32>} : memref<392x48xf32, #tpu.memory_space<vmem>>, vector<392x48xf32>,
    return
  }
}

module attributes {stable_mosaic.version = 11 : i64} {
  func.func @_sigmoid_kernel(%arg0: memref<2x2352xf32, #tpu.memory_space<vmem>>, %arg1: memref<2x2352xf32, #tpu.memory_space<vmem>>) attributes {dimension_semantics = [], scalar_prefetch = 0 : i64, scratch_operands = 0 : i64, tpu.core_type = #tpu.core_type<tc>} {
    %c0 = arith.constant 0 : index
    %c0_0 = arith.constant 0 : index
    %0 = vector.load %arg0[%c0, %c0_0] : memref<2x2352xf32, #tpu.memory_space<vmem>>, vector<2x2352xf32>
    %1 = math.absf %0 : vector<2x2352xf32>
    %cst = arith.constant 0.000000e+00 : f32
    %2 = vector.broadcast %cst : f32 to vector<2x2352xf32>
    %3 = arith.subf %2, %1 : vector<2x2352xf32>
    %4 = math.exp %3 : vector<2x2352xf32>
    %cst_1 = arith.constant 1.000000e+00 : f32
    %5 = vector.broadcast %cst_1 : f32 to vector<2x2352xf32>
    %6 = arith.addf %5, %4 : vector<2x2352xf32>
    %7 = tpu.reciprocal %6 {approx = true} : vector<2x2352xf32> -> vector<2x2352xf32>
    %cst_2 = arith.constant 0.000000e+00 : f32
    %8 = vector.broadcast %cst_2 : f32 to vector<2x2352xf32>
    %9 = arith.cmpf oge, %0, %8 : vector<2x2352xf32>
    %cst_3 = arith.constant 1.000000e+00 : f32
    %10 = vector.broadcast %cst_3 : f32 to vector<2x2352xf32>
    %11 = arith.subf %10, %7 : vector<2x2352xf32>
    %12 = arith.select %9, %7, %11 : vector<2x2352xi1>, vector<2x2352xf32>
    %cst_4 = arith.constant 0.000000e+00 : f32
    %cst_5 = arith.constant 1.000000e+00 : f32
    %13 = vector.broadcast %cst_4 : f32 to vector<2x2352xf32>
    %14 = arith.maximumf %13, %12 : vector<2x2352xf32>
    %15 = vector.broadcast %cst_5 : f32 to vector<2x2352xf32>
    %16 = arith.minimumf %15, %14 : vector<2x2352xf32>
    %c0_6 = arith.constant 0 : index
    %c0_7 = arith.constant 0 : index
    %17 = vector.load %arg1[%c0_6, %c0_7] : memref<2x2352xf32, #tpu.memory_space<vmem>>, vector<2x2352xf32>
    tpu.vector_store %arg1[%c0_6, %c0_7], %16 {strides = array<i32>} : memref<2x2352xf32, #tpu.memory_space<vmem>>, vector<2x2352xf32>,
    return
  }
}

</mosaic_0001>

<bundles_post_ra>
// kernel: conv_vae_forward.8
= control target key start
LH: loop header
LB: loop body
LE: loop exit
PB: predicated region body
PF: predicated region fallthrough
CT: control target
= control target key end

     0   :  { %v1235_v0 = vmov 0.0   ;;  %vm1236_vm0 = vmmov 0   ;;  %vm208_vm1 = vcmask 392192   ;;  %vm860_vm4 = vcmask 60416   ;;  %s1613_s1 = inlined_call_operand.vmem [shape: bf16[48,8], index: 1, kind: input, shape index: {}]   ;;  %s1614_s0 = inlined_call_operand.vmem [shape: bf16[392,48], index: 0, kind: input, shape index: {}]   ;;  %s1615_s2 = inlined_call_operand.vmem [shape: bf16[392,8], index: 2, kind: output, shape index: {}]  }
   0x1   :  { %1093 = vmatprep.subr.bf16.mxu0 %v1235_v0  ;;  %v1207_v1 = vld [vmem:[%s1613_s1] sm:$0xff]   ;;  %1199 = vmatprep.subr.bf16.mxu1 %v1235_v0  ;;  %v1208_v2 = vld [vmem:[%s1613_s1 + $0x8] sm:$0xff]   ;;  %v1209_v3 = vld [vmem:[%s1613_s1 + $0x10] sm:$0xff]  }
   0x2   :  { %1099 = vmatprep.mubr.msk.bf16.mxu0 %vm1236_vm0, %v1235_v0  ;;  %1151 = vmatprep.mubr.msk.bf16.mxu1 %vm1236_vm0, %v1235_v0  ;;  %v1210_v4 = vld [vmem:[%s1614_s0] sm:$0xff]   ;;  %v1211_v5 = vld [vmem:[%s1614_s0 + $0x68] sm:$0xff]   ;;  %v1213_v7 = vld [vmem:[%s1614_s0 + $0x70] sm:$0xff]  }
   0x3   :  { %1094 = vmatpush3.bf16.msra.mxu0 %v1207_v1  ;;  %1202 = vmatpush3.bf16.msra.mxu1 %v1207_v1  ;;  %v1212_v6 = vld [vmem:[%s1614_s0 + $0x8] sm:$0xff]   ;;  %v1214_v8 = vld [vmem:[%s1614_s0 + $0x10] sm:$0xff]   ;;  %v1215_v9 = vld [vmem:[%s1614_s0 + $0x78] sm:$0xff]  }
   0x4   :  { %1095 = vmatprep.subr.bf16.mxu0 %v1235_v0  ;;  %1200 = vmatprep.subr.bf16.mxu1 %v1235_v0  ;;  %v1216_v10 = vld [vmem:[%s1614_s0 + $0x18] sm:$0xff]   ;;  %v1217_v11 = vld [vmem:[%s1614_s0 + $0x80] sm:$0xff]   ;;  %v1219_v13 = vld [vmem:[%s1614_s0 + $0x88] sm:$0xff]  }
   0x5   :  { %v1218_v12 = vld [vmem:[%s1614_s0 + $0x20] sm:$0xff]   ;;  %v1220_v14 = vld [vmem:[%s1614_s0 + $0x28] sm:$0xff]   ;;  %v1221_v15 = vld [vmem:[%s1614_s0 + $0x90] sm:$0xff]  }
   0x6   :  { %v1222_v16 = vld [vmem:[%s1614_s0 + $0x30] sm:$0xff]   ;;  %v1223_v17 = vld [vmem:[%s1614_s0 + $0x98] sm:$0xff]   ;;  %v1225_v19 = vld [vmem:[%s1614_s0 + $0xa0] sm:$0xff]  }
   0x7   :  { %1096 = vmatpush3.bf16.msra.mxu0 %v1208_v2  ;;  %1203 = vmatpush3.bf16.msra.mxu1 %v1208_v2  ;;  %v1224_v18 = vld [vmem:[%s1614_s0 + $0x38] sm:$0xff]   ;;  %v1226_v20 = vld [vmem:[%s1614_s0 + $0x40] sm:$0xff]   ;;  %v1227_v21 = vld [vmem:[%s1614_s0 + $0xa8] sm:$0xff]  }
   0x8   :  { %1097 = vmatprep.subr.bf16.mxu0 %v1235_v0  ;;  %1201 = vmatprep.subr.bf16.mxu1 %v1235_v0  ;;  %v1228_v22 = vld [vmem:[%s1614_s0 + $0x48] sm:$0xff]   ;;  %v1229_v23 = vld [vmem:[%s1614_s0 + $0xb0] sm:$0xff]   ;;  %v1231_v25 = vld [vmem:[%s1614_s0 + $0xb8] sm:$0xff]  }
   0x9   :  { %v1230_v24 = vld [vmem:[%s1614_s0 + $0x50] sm:$0xff]   ;;  %v1232_v26 = vld [vmem:[%s1614_s0 + $0x58] sm:$0xff]   ;;  %v1233_v27 = vld [vmem:[%s1614_s0 + $0xc0] ss:$0 sps:$4 sm:$0xff]  }
   0xa   :  { %v1234_v28 = vld [vmem:[%s1614_s0 + $0x60] sm:$0xff]  }
   0xb   :  { %1098 = vmatpush3.bf16.msra.mxu0 %v1209_v3  ;;  %1204 = vmatpush3.bf16.msra.mxu1 %v1209_v3 }
   0xe   :  { %1100 = vmatmul.mubr.msk.bf16.vlgmr.msra.gmra.mrb[0].mxu0 %vm208_vm1, %v1210_v4  ;;  %1152 = vmatmul.mubr.msk.bf16.vlgmr.msra.gmra.mrb[0].mxu1 %vm208_vm1, %v1211_v5 }
   0xf   :  { %1103 = vmatprep.mubr.msk.bf16.mxu0 %vm1236_vm0, %v1235_v0  ;;  %1155 = vmatprep.mubr.msk.bf16.mxu1 %vm1236_vm0, %v1235_v0 }
  0x16   :  { %1104 = vmatmul.mubr.msk.bf16.gmra.mrb[4].mxu0 %vm208_vm1, %v1212_v6  ;;  %1156 = vmatmul.mubr.msk.bf16.gmra.mrb[4].mxu1 %vm208_vm1, %v1213_v7 }
  0x17   :  { %1107 = vmatprep.mubr.msk.bf16.mxu0 %vm1236_vm0, %v1235_v0  ;;  %1159 = vmatprep.mubr.msk.bf16.mxu1 %vm1236_vm0, %v1235_v0 }
  0x1e   :  { %1108 = vmatmul.mubr.msk.bf16.gmra.mrb[8].mxu0 %vm208_vm1, %v1214_v8  ;;  %1160 = vmatmul.mubr.msk.bf16.gmra.mrb[8].mxu1 %vm208_vm1, %v1215_v9 }
  0x1f   :  { %1111 = vmatprep.mubr.msk.bf16.mxu0 %vm1236_vm0, %v1235_v0  ;;  %1163 = vmatprep.mubr.msk.bf16.mxu1 %vm1236_vm0, %v1235_v0 }
  0x26   :  { %1112 = vmatmul.mubr.msk.bf16.gmra.mrb[12].mxu0 %vm208_vm1, %v1216_v10  ;;  %1164 = vmatmul.mubr.msk.bf16.gmra.mrb[12].mxu1 %vm208_vm1, %v1217_v11 }
  0x27   :  { %1115 = vmatprep.mubr.msk.bf16.mxu0 %vm1236_vm0, %v1235_v0  ;;  %1167 = vmatprep.mubr.msk.bf16.mxu1 %vm1236_vm0, %v1235_v0 }
  0x2e   :  { %1116 = vmatmul.mubr.msk.bf16.gmra.mrb[16].mxu0 %vm208_vm1, %v1218_v12  ;;  %1168 = vmatmul.mubr.msk.bf16.gmra.mrb[16].mxu1 %vm208_vm1, %v1219_v13 }
  0x2f   :  { %1119 = vmatprep.mubr.msk.bf16.mxu0 %vm1236_vm0, %v1235_v0  ;;  %1171 = vmatprep.mubr.msk.bf16.mxu1 %vm1236_vm0, %v1235_v0 }
  0x36   :  { %1120 = vmatmul.mubr.msk.bf16.gmra.mrb[20].mxu0 %vm208_vm1, %v1220_v14  ;;  %1172 = vmatmul.mubr.msk.bf16.gmra.mrb[20].mxu1 %vm208_vm1, %v1221_v15 }
  0x37   :  { %1123 = vmatprep.mubr.msk.bf16.mxu0 %vm1236_vm0, %v1235_v0  ;;  %1175 = vmatprep.mubr.msk.bf16.mxu1 %vm1236_vm0, %v1235_v0 }
  0x3e   :  { %1124 = vmatmul.mubr.msk.bf16.gmra.mrb[24].mxu0 %vm208_vm1, %v1222_v16  ;;  %1176 = vmatmul.mubr.msk.bf16.gmra.mrb[24].mxu1 %vm208_vm1, %v1223_v17 }
  0x3f   :  { %1127 = vmatprep.mubr.msk.bf16.mxu0 %vm1236_vm0, %v1235_v0  ;;  %1179 = vmatprep.mubr.msk.bf16.mxu1 %vm1236_vm0, %v1235_v0 }
  0x46   :  { %1128 = vmatmul.mubr.msk.bf16.gmra.mrb[28].mxu0 %vm208_vm1, %v1224_v18  ;;  %1180 = vmatmul.mubr.msk.bf16.gmra.mrb[28].mxu1 %vm208_vm1, %v1225_v19 }
  0x47   :  { %1131 = vmatprep.mubr.msk.bf16.mxu0 %vm1236_vm0, %v1235_v0  ;;  %1183 = vmatprep.mubr.msk.bf16.mxu1 %vm1236_vm0, %v1235_v0 }
  0x4e   :  { %1132 = vmatmul.mubr.msk.bf16.gmra.mrb[32].mxu0 %vm208_vm1, %v1226_v20  ;;  %1184 = vmatmul.mubr.msk.bf16.gmra.mrb[32].mxu1 %vm208_vm1, %v1227_v21 }
  0x4f   :  { %1135 = vmatprep.mubr.msk.bf16.mxu0 %vm1236_vm0, %v1235_v0  ;;  %1187 = vmatprep.mubr.msk.bf16.mxu1 %vm1236_vm0, %v1235_v0 }
  0x56   :  { %1136 = vmatmul.mubr.msk.bf16.gmra.mrb[36].mxu0 %vm208_vm1, %v1228_v22  ;;  %1188 = vmatmul.mubr.msk.bf16.gmra.mrb[36].mxu1 %vm208_vm1, %v1229_v23 }
  0x57   :  { %1139 = vmatprep.mubr.msk.bf16.mxu0 %vm1236_vm0, %v1235_v0  ;;  %1191 = vmatprep.mubr.msk.bf16.mxu1 %vm1236_vm0, %v1235_v0 }
  0x5e   :  { %1140 = vmatmul.mubr.msk.bf16.gmra.mrb[40].mxu0 %vm208_vm1, %v1230_v24  ;;  %1192 = vmatmul.mubr.msk.bf16.gmra.mrb[40].mxu1 %vm208_vm1, %v1231_v25 }
  0x5f   :  { %1143 = vmatprep.mubr.msk.bf16.mxu0 %vm1236_vm0, %v1235_v0  ;;  %1195 = vmatprep.mubr.msk.bf16.mxu1 %vm1236_vm0, %v1235_v0 }
  0x66   :  { %1144 = vmatmul.mubr.msk.bf16.gmra.mrb[44].mxu0 %vm208_vm1, %v1232_v26  ;;  %1196 = vmatmul.mubr.msk.bf16.gmra.mrb[44].mxu1 %vm208_vm1, %v1233_v27 }
  0x67   :  { %1147 = vmatprep.mubr.msk.bf16.mxu0 %vm1236_vm0, %v1235_v0 }
  0x6e   :  { %1148 = vmatmul.mubr.msk.bf16.gmra.mrb[48].mxu0 %vm208_vm1, %v1234_v28 }
  0xe1   :  { %v318_v29 = vpop.f32.mrb[0].mxu0  ;;  %v422_v30 = vpop.f32.mrb[0].mxu1 }
  0xe2   :  { %vm516_vm2 = vcmp.gt.f32.partialorder %v318_v29, 0.0  ;;  %v565_v31 = vmul.f32 0.2, %v318_v29  ;;  %v1101_v32 = vpop.f32.mrb[1].mxu0  ;;  %vm542_vm3 = vcmp.gt.f32.partialorder %v422_v30, 0.0  ;;  %v1153_v33 = vpop.f32.mrb[1].mxu1 }
  0xe3   :  { %v321_v34 = vpop.f32.mrb[2].mxu0  ;;  %v591_v35 = vmul.f32 0.2, %v422_v30  ;;  %v425_v36 = vpop.f32.mrb[2].mxu1 }
  0xe4   :  { %v614_v37 = vsel %vm516_vm2, %v318_v29, %v565_v31  ;;  %vm517_vm5 = vcmp.gt.f32.partialorder %v321_v34, 0.0  ;;  %v566_v38 = vmul.f32 0.2, %v321_v34  ;;  %v1102_v39 = vpop.f32.mrb[3].mxu0  ;;  %vm543_vm6 = vcmp.gt.f32.partialorder %v425_v36, 0.0  ;;  %v1154_v40 = vpop.f32.mrb[3].mxu1 }
  0xe5   :  { %v1016_v41 = vpack.c.bf16 %v614_v37, %v614_v37  ;;  %v640_v42 = vsel %vm542_vm3, %v422_v30, %v591_v35  ;;  %v592_v43 = vmul.f32 0.2, %v425_v36 }
  0xe6   :  { %v615_v44 = vsel %vm517_vm5, %v321_v34, %v566_v38  ;;  %v1042_v45 = vpack.c.bf16 %v640_v42, %v640_v42 }
  0xe7   :  { %861 = vst.msk [vmem:[%s1615_s2] sm:$0xf] %vm860_vm4, %v1016_v41  ;;  %v1017_v46 = vpack.c.bf16 %v615_v44, %v615_v44  ;;  %v641_v47 = vsel %vm543_vm6, %v425_v36, %v592_v43 }
  0xe8   :  { %887 = vst.msk [vmem:[%s1615_s2 + $0x68] sm:$0xf] %vm860_vm4, %v1042_v45  ;;  %v1043_v48 = vpack.c.bf16 %v641_v47, %v641_v47 }
  0xe9   :  { %862 = vst.msk [vmem:[%s1615_s2 + $0x4] sm:$0xf] %vm860_vm4, %v1017_v46  ;;  %v326_v49 = vpop.f32.mrb[4].mxu0  ;;  %v430_v50 = vpop.f32.mrb[4].mxu1 }
  0xea   :  { %vm518_vm7 = vcmp.gt.f32.partialorder %v326_v49, 0.0  ;;  %v567_v51 = vmul.f32 0.2, %v326_v49  ;;  %888 = vst.msk [vmem:[%s1615_s2 + $0x6c] sm:$0xf] %vm860_vm4, %v1043_v48  ;;  %v1105_v52 = vpop.f32.mrb[5].mxu0 }
  0xeb   :  { %vm544_vm8 = vcmp.gt.f32.partialorder %v430_v50, 0.0  ;;  %v1157_v53 = vpop.f32.mrb[5].mxu1  ;;  %v329_v54 = vpop.f32.mrb[6].mxu0  ;;  %v593_v55 = vmul.f32 0.2, %v430_v50 }
  0xec   :  { %v433_v56 = vpop.f32.mrb[6].mxu1  ;;  %v616_v57 = vsel %vm518_vm7, %v326_v49, %v567_v51  ;;  %vm519_vm9 = vcmp.gt.f32.partialorder %v329_v54, 0.0  ;;  %v568_v58 = vmul.f32 0.2, %v329_v54  ;;  %v1106_v59 = vpop.f32.mrb[7].mxu0 }
  0xed   :  { %vm545_vm10 = vcmp.gt.f32.partialorder %v433_v56, 0.0  ;;  %v1158_v60 = vpop.f32.mrb[7].mxu1  ;;  %v1018_v61 = vpack.c.bf16 %v616_v57, %v616_v57  ;;  %v642_v62 = vsel %vm544_vm8, %v430_v50, %v593_v55  ;;  %v594_v63 = vmul.f32 0.2, %v433_v56 }
  0xee   :  { %v617_v0 = vsel %vm519_vm9, %v329_v54, %v568_v58  ;;  %v1044_v1 = vpack.c.bf16 %v642_v62, %v642_v62 }
  0xef   :  { %863 = vst.msk [vmem:[%s1615_s2 + $0x8] sm:$0xf] %vm860_vm4, %v1018_v61  ;;  %v1019_v2 = vpack.c.bf16 %v617_v0, %v617_v0  ;;  %v643_v3 = vsel %vm545_vm10, %v433_v56, %v594_v63 }
  0xf0   :  { %889 = vst.msk [vmem:[%s1615_s2 + $0x70] sm:$0xf] %vm860_vm4, %v1044_v1  ;;  %v1045_v4 = vpack.c.bf16 %v643_v3, %v643_v3 }
  0xf1   :  { %864 = vst.msk [vmem:[%s1615_s2 + $0xc] sm:$0xf] %vm860_vm4, %v1019_v2  ;;  %v334_v5 = vpop.f32.mrb[8].mxu0  ;;  %v438_v6 = vpop.f32.mrb[8].mxu1 }
  0xf2   :  { %vm520_vm11 = vcmp.gt.f32.partialorder %v334_v5, 0.0  ;;  %v569_v7 = vmul.f32 0.2, %v334_v5  ;;  %890 = vst.msk [vmem:[%s1615_s2 + $0x74] sm:$0xf] %vm860_vm4, %v1045_v4  ;;  %v1109_v8 = vpop.f32.mrb[9].mxu0 }
  0xf3   :  { %vm546_vm12 = vcmp.gt.f32.partialorder %v438_v6, 0.0  ;;  %v1161_v9 = vpop.f32.mrb[9].mxu1  ;;  %v337_v10 = vpop.f32.mrb[10].mxu0  ;;  %v595_v11 = vmul.f32 0.2, %v438_v6 }
  0xf4   :  { %v441_v12 = vpop.f32.mrb[10].mxu1  ;;  %v618_v13 = vsel %vm520_vm11, %v334_v5, %v569_v7  ;;  %vm521_vm13 = vcmp.gt.f32.partialorder %v337_v10, 0.0  ;;  %v570_v14 = vmul.f32 0.2, %v337_v10  ;;  %v1110_v15 = vpop.f32.mrb[11].mxu0 }
  0xf5   :  { %vm547_vm14 = vcmp.gt.f32.partialorder %v441_v12, 0.0  ;;  %v1162_v16 = vpop.f32.mrb[11].mxu1  ;;  %v1020_v17 = vpack.c.bf16 %v618_v13, %v618_v13  ;;  %v644_v18 = vsel %vm546_vm12, %v438_v6, %v595_v11  ;;  %v596_v19 = vmul.f32 0.2, %v441_v12 }
  0xf6   :  { %v619_v20 = vsel %vm521_vm13, %v337_v10, %v570_v14  ;;  %v1046_v21 = vpack.c.bf16 %v644_v18, %v644_v18 }
  0xf7   :  { %865 = vst.msk [vmem:[%s1615_s2 + $0x10] sm:$0xf] %vm860_vm4, %v1020_v17  ;;  %v1021_v22 = vpack.c.bf16 %v619_v20, %v619_v20  ;;  %v645_v23 = vsel %vm547_vm14, %v441_v12, %v596_v19 }
  0xf8   :  { %891 = vst.msk [vmem:[%s1615_s2 + $0x78] sm:$0xf] %vm860_vm4, %v1046_v21  ;;  %v1047_v24 = vpack.c.bf16 %v645_v23, %v645_v23 }
  0xf9   :  { %866 = vst.msk [vmem:[%s1615_s2 + $0x14] sm:$0xf] %vm860_vm4, %v1021_v22  ;;  %v342_v25 = vpop.f32.mrb[12].mxu0  ;;  %v446_v26 = vpop.f32.mrb[12].mxu1 }
  0xfa   :  { %vm522_vm15 = vcmp.gt.f32.partialorder %v342_v25, 0.0  ;;  %v571_v27 = vmul.f32 0.2, %v342_v25  ;;  %892 = vst.msk [vmem:[%s1615_s2 + $0x7c] sm:$0xf] %vm860_vm4, %v1047_v24  ;;  %v1113_v28 = vpop.f32.mrb[13].mxu0 }
  0xfb   :  { %vm548_vm0 = vcmp.gt.f32.partialorder %v446_v26, 0.0  ;;  %v1165_v29 = vpop.f32.mrb[13].mxu1  ;;  %v345_v30 = vpop.f32.mrb[14].mxu0  ;;  %v597_v31 = vmul.f32 0.2, %v446_v26 }
  0xfc   :  { %v449_v32 = vpop.f32.mrb[14].mxu1  ;;  %v620_v33 = vsel %vm522_vm15, %v342_v25, %v571_v27  ;;  %vm523_vm1 = vcmp.gt.f32.partialorder %v345_v30, 0.0  ;;  %v572_v34 = vmul.f32 0.2, %v345_v30  ;;  %v1114_v35 = vpop.f32.mrb[15].mxu0 }
  0xfd   :  { %vm549_vm2 = vcmp.gt.f32.partialorder %v449_v32, 0.0  ;;  %v1166_v36 = vpop.f32.mrb[15].mxu1  ;;  %v1022_v37 = vpack.c.bf16 %v620_v33, %v620_v33  ;;  %v646_v38 = vsel %vm548_vm0, %v446_v26, %v597_v31  ;;  %v598_v39 = vmul.f32 0.2, %v449_v32 }
  0xfe   :  { %v621_v40 = vsel %vm523_vm1, %v345_v30, %v572_v34  ;;  %v1048_v41 = vpack.c.bf16 %v646_v38, %v646_v38 }
  0xff   :  { %867 = vst.msk [vmem:[%s1615_s2 + $0x18] sm:$0xf] %vm860_vm4, %v1022_v37  ;;  %v1023_v42 = vpack.c.bf16 %v621_v40, %v621_v40  ;;  %v647_v43 = vsel %vm549_vm2, %v449_v32, %v598_v39 }
 0x100   :  { %893 = vst.msk [vmem:[%s1615_s2 + $0x80] sm:$0xf] %vm860_vm4, %v1048_v41  ;;  %v1049_v44 = vpack.c.bf16 %v647_v43, %v647_v43 }
 0x101   :  { %868 = vst.msk [vmem:[%s1615_s2 + $0x1c] sm:$0xf] %vm860_vm4, %v1023_v42  ;;  %v350_v45 = vpop.f32.mrb[16].mxu0  ;;  %v454_v46 = vpop.f32.mrb[16].mxu1 }
 0x102   :  { %vm524_vm3 = vcmp.gt.f32.partialorder %v350_v45, 0.0  ;;  %v573_v47 = vmul.f32 0.2, %v350_v45  ;;  %894 = vst.msk [vmem:[%s1615_s2 + $0x84] sm:$0xf] %vm860_vm4, %v1049_v44  ;;  %v1117_v48 = vpop.f32.mrb[17].mxu0 }
 0x103   :  { %vm550_vm5 = vcmp.gt.f32.partialorder %v454_v46, 0.0  ;;  %v1169_v49 = vpop.f32.mrb[17].mxu1  ;;  %v353_v50 = vpop.f32.mrb[18].mxu0  ;;  %v599_v51 = vmul.f32 0.2, %v454_v46 }
 0x104   :  { %v457_v52 = vpop.f32.mrb[18].mxu1  ;;  %v622_v53 = vsel %vm524_vm3, %v350_v45, %v573_v47  ;;  %vm525_vm6 = vcmp.gt.f32.partialorder %v353_v50, 0.0  ;;  %v574_v54 = vmul.f32 0.2, %v353_v50  ;;  %v1118_v55 = vpop.f32.mrb[19].mxu0 }
 0x105   :  { %vm551_vm7 = vcmp.gt.f32.partialorder %v457_v52, 0.0  ;;  %v1170_v56 = vpop.f32.mrb[19].mxu1  ;;  %v1024_v57 = vpack.c.bf16 %v622_v53, %v622_v53  ;;  %v648_v58 = vsel %vm550_vm5, %v454_v46, %v599_v51  ;;  %v600_v59 = vmul.f32 0.2, %v457_v52 }
 0x106   :  { %v623_v60 = vsel %vm525_vm6, %v353_v50, %v574_v54  ;;  %v1050_v61 = vpack.c.bf16 %v648_v58, %v648_v58 }
 0x107   :  { %869 = vst.msk [vmem:[%s1615_s2 + $0x20] sm:$0xf] %vm860_vm4, %v1024_v57  ;;  %v1025_v62 = vpack.c.bf16 %v623_v60, %v623_v60  ;;  %v649_v63 = vsel %vm551_vm7, %v457_v52, %v600_v59 }
 0x108   :  { %895 = vst.msk [vmem:[%s1615_s2 + $0x88] sm:$0xf] %vm860_vm4, %v1050_v61  ;;  %v1051_v0 = vpack.c.bf16 %v649_v63, %v649_v63 }
 0x109   :  { %870 = vst.msk [vmem:[%s1615_s2 + $0x24] sm:$0xf] %vm860_vm4, %v1025_v62  ;;  %v358_v1 = vpop.f32.mrb[20].mxu0  ;;  %v462_v2 = vpop.f32.mrb[20].mxu1 }
 0x10a   :  { %vm526_vm8 = vcmp.gt.f32.partialorder %v358_v1, 0.0  ;;  %v575_v3 = vmul.f32 0.2, %v358_v1  ;;  %896 = vst.msk [vmem:[%s1615_s2 + $0x8c] sm:$0xf] %vm860_vm4, %v1051_v0  ;;  %v1121_v4 = vpop.f32.mrb[21].mxu0 }
 0x10b   :  { %vm552_vm9 = vcmp.gt.f32.partialorder %v462_v2, 0.0  ;;  %v1173_v5 = vpop.f32.mrb[21].mxu1  ;;  %v361_v6 = vpop.f32.mrb[22].mxu0  ;;  %v601_v7 = vmul.f32 0.2, %v462_v2 }
 0x10c   :  { %v465_v8 = vpop.f32.mrb[22].mxu1  ;;  %v624_v9 = vsel %vm526_vm8, %v358_v1, %v575_v3  ;;  %vm527_vm10 = vcmp.gt.f32.partialorder %v361_v6, 0.0  ;;  %v576_v10 = vmul.f32 0.2, %v361_v6  ;;  %v1122_v11 = vpop.f32.mrb[23].mxu0 }
 0x10d   :  { %vm553_vm11 = vcmp.gt.f32.partialorder %v465_v8, 0.0  ;;  %v1174_v12 = vpop.f32.mrb[23].mxu1  ;;  %v1026_v13 = vpack.c.bf16 %v624_v9, %v624_v9  ;;  %v650_v14 = vsel %vm552_vm9, %v462_v2, %v601_v7  ;;  %v602_v15 = vmul.f32 0.2, %v465_v8 }
 0x10e   :  { %v625_v16 = vsel %vm527_vm10, %v361_v6, %v576_v10  ;;  %v1052_v17 = vpack.c.bf16 %v650_v14, %v650_v14 }
 0x10f   :  { %871 = vst.msk [vmem:[%s1615_s2 + $0x28] sm:$0xf] %vm860_vm4, %v1026_v13  ;;  %v1027_v18 = vpack.c.bf16 %v625_v16, %v625_v16  ;;  %v651_v19 = vsel %vm553_vm11, %v465_v8, %v602_v15 }
 0x110   :  { %897 = vst.msk [vmem:[%s1615_s2 + $0x90] sm:$0xf] %vm860_vm4, %v1052_v17  ;;  %v1053_v20 = vpack.c.bf16 %v651_v19, %v651_v19 }
 0x111   :  { %872 = vst.msk [vmem:[%s1615_s2 + $0x2c] sm:$0xf] %vm860_vm4, %v1027_v18  ;;  %v366_v21 = vpop.f32.mrb[24].mxu0  ;;  %v470_v22 = vpop.f32.mrb[24].mxu1 }
 0x112   :  { %vm528_vm12 = vcmp.gt.f32.partialorder %v366_v21, 0.0  ;;  %v577_v23 = vmul.f32 0.2, %v366_v21  ;;  %898 = vst.msk [vmem:[%s1615_s2 + $0x94] sm:$0xf] %vm860_vm4, %v1053_v20  ;;  %v1125_v24 = vpop.f32.mrb[25].mxu0 }
 0x113   :  { %vm554_vm13 = vcmp.gt.f32.partialorder %v470_v22, 0.0  ;;  %v1177_v25 = vpop.f32.mrb[25].mxu1  ;;  %v369_v26 = vpop.f32.mrb[26].mxu0  ;;  %v603_v27 = vmul.f32 0.2, %v470_v22 }
 0x114   :  { %v473_v28 = vpop.f32.mrb[26].mxu1  ;;  %v626_v29 = vsel %vm528_vm12, %v366_v21, %v577_v23  ;;  %vm529_vm14 = vcmp.gt.f32.partialorder %v369_v26, 0.0  ;;  %v578_v30 = vmul.f32 0.2, %v369_v26  ;;  %v1126_v31 = vpop.f32.mrb[27].mxu0 }
 0x115   :  { %vm555_vm15 = vcmp.gt.f32.partialorder %v473_v28, 0.0  ;;  %v1178_v32 = vpop.f32.mrb[27].mxu1  ;;  %v1028_v33 = vpack.c.bf16 %v626_v29, %v626_v29  ;;  %v652_v34 = vsel %vm554_vm13, %v470_v22, %v603_v27  ;;  %v604_v35 = vmul.f32 0.2, %v473_v28 }
 0x116   :  { %v627_v36 = vsel %vm529_vm14, %v369_v26, %v578_v30  ;;  %v1054_v37 = vpack.c.bf16 %v652_v34, %v652_v34 }
 0x117   :  { %873 = vst.msk [vmem:[%s1615_s2 + $0x30] sm:$0xf] %vm860_vm4, %v1028_v33  ;;  %v1029_v38 = vpack.c.bf16 %v627_v36, %v627_v36  ;;  %v653_v39 = vsel %vm555_vm15, %v473_v28, %v604_v35 }
 0x118   :  { %899 = vst.msk [vmem:[%s1615_s2 + $0x98] sm:$0xf] %vm860_vm4, %v1054_v37  ;;  %v1055_v40 = vpack.c.bf16 %v653_v39, %v653_v39 }
 0x119   :  { %874 = vst.msk [vmem:[%s1615_s2 + $0x34] sm:$0xf] %vm860_vm4, %v1029_v38  ;;  %v374_v41 = vpop.f32.mrb[28].mxu0  ;;  %v478_v42 = vpop.f32.mrb[28].mxu1 }
 0x11a   :  { %vm530_vm0 = vcmp.gt.f32.partialorder %v374_v41, 0.0  ;;  %v579_v43 = vmul.f32 0.2, %v374_v41  ;;  %900 = vst.msk [vmem:[%s1615_s2 + $0x9c] sm:$0xf] %vm860_vm4, %v1055_v40  ;;  %v1129_v44 = vpop.f32.mrb[29].mxu0 }
 0x11b   :  { %vm556_vm1 = vcmp.gt.f32.partialorder %v478_v42, 0.0  ;;  %v1181_v45 = vpop.f32.mrb[29].mxu1  ;;  %v377_v46 = vpop.f32.mrb[30].mxu0  ;;  %v605_v47 = vmul.f32 0.2, %v478_v42 }
 0x11c   :  { %v481_v48 = vpop.f32.mrb[30].mxu1  ;;  %v628_v49 = vsel %vm530_vm0, %v374_v41, %v579_v43  ;;  %vm531_vm2 = vcmp.gt.f32.partialorder %v377_v46, 0.0  ;;  %v580_v50 = vmul.f32 0.2, %v377_v46  ;;  %v1130_v51 = vpop.f32.mrb[31].mxu0 }
 0x11d   :  { %vm557_vm3 = vcmp.gt.f32.partialorder %v481_v48, 0.0  ;;  %v1182_v52 = vpop.f32.mrb[31].mxu1  ;;  %v1030_v53 = vpack.c.bf16 %v628_v49, %v628_v49  ;;  %v654_v54 = vsel %vm556_vm1, %v478_v42, %v605_v47  ;;  %v606_v55 = vmul.f32 0.2, %v481_v48 }
 0x11e   :  { %v629_v56 = vsel %vm531_vm2, %v377_v46, %v580_v50  ;;  %v1056_v57 = vpack.c.bf16 %v654_v54, %v654_v54 }
 0x11f   :  { %875 = vst.msk [vmem:[%s1615_s2 + $0x38] sm:$0xf] %vm860_vm4, %v1030_v53  ;;  %v1031_v58 = vpack.c.bf16 %v629_v56, %v629_v56  ;;  %v655_v59 = vsel %vm557_vm3, %v481_v48, %v606_v55 }
 0x120   :  { %901 = vst.msk [vmem:[%s1615_s2 + $0xa0] sm:$0xf] %vm860_vm4, %v1056_v57  ;;  %v1057_v60 = vpack.c.bf16 %v655_v59, %v655_v59 }
 0x121   :  { %876 = vst.msk [vmem:[%s1615_s2 + $0x3c] sm:$0xf] %vm860_vm4, %v1031_v58  ;;  %v382_v61 = vpop.f32.mrb[32].mxu0  ;;  %v486_v62 = vpop.f32.mrb[32].mxu1 }
 0x122   :  { %vm532_vm5 = vcmp.gt.f32.partialorder %v382_v61, 0.0  ;;  %v581_v63 = vmul.f32 0.2, %v382_v61  ;;  %902 = vst.msk [vmem:[%s1615_s2 + $0xa4] sm:$0xf] %vm860_vm4, %v1057_v60  ;;  %v1133_v0 = vpop.f32.mrb[33].mxu0 }
 0x123   :  { %vm558_vm6 = vcmp.gt.f32.partialorder %v486_v62, 0.0  ;;  %v1185_v1 = vpop.f32.mrb[33].mxu1  ;;  %v385_v2 = vpop.f32.mrb[34].mxu0  ;;  %v607_v3 = vmul.f32 0.2, %v486_v62 }
 0x124   :  { %v489_v4 = vpop.f32.mrb[34].mxu1  ;;  %v630_v5 = vsel %vm532_vm5, %v382_v61, %v581_v63  ;;  %vm533_vm7 = vcmp.gt.f32.partialorder %v385_v2, 0.0  ;;  %v582_v6 = vmul.f32 0.2, %v385_v2  ;;  %v1134_v7 = vpop.f32.mrb[35].mxu0 }
 0x125   :  { %vm559_vm8 = vcmp.gt.f32.partialorder %v489_v4, 0.0  ;;  %v1186_v8 = vpop.f32.mrb[35].mxu1  ;;  %v1032_v9 = vpack.c.bf16 %v630_v5, %v630_v5  ;;  %v656_v10 = vsel %vm558_vm6, %v486_v62, %v607_v3  ;;  %v608_v11 = vmul.f32 0.2, %v489_v4 }
 0x126   :  { %v631_v12 = vsel %vm533_vm7, %v385_v2, %v582_v6  ;;  %v1058_v13 = vpack.c.bf16 %v656_v10, %v656_v10 }
 0x127   :  { %877 = vst.msk [vmem:[%s1615_s2 + $0x40] sm:$0xf] %vm860_vm4, %v1032_v9  ;;  %v1033_v14 = vpack.c.bf16 %v631_v12, %v631_v12  ;;  %v657_v15 = vsel %vm559_vm8, %v489_v4, %v608_v11 }
 0x128   :  { %903 = vst.msk [vmem:[%s1615_s2 + $0xa8] sm:$0xf] %vm860_vm4, %v1058_v13  ;;  %v1059_v16 = vpack.c.bf16 %v657_v15, %v657_v15 }
 0x129   :  { %878 = vst.msk [vmem:[%s1615_s2 + $0x44] sm:$0xf] %vm860_vm4, %v1033_v14  ;;  %v390_v17 = vpop.f32.mrb[36].mxu0  ;;  %v494_v18 = vpop.f32.mrb[36].mxu1 }
 0x12a   :  { %vm534_vm9 = vcmp.gt.f32.partialorder %v390_v17, 0.0  ;;  %v583_v19 = vmul.f32 0.2, %v390_v17  ;;  %904 = vst.msk [vmem:[%s1615_s2 + $0xac] sm:$0xf] %vm860_vm4, %v1059_v16  ;;  %v1137_v20 = vpop.f32.mrb[37].mxu0 }
 0x12b   :  { %vm560_vm10 = vcmp.gt.f32.partialorder %v494_v18, 0.0  ;;  %v1189_v21 = vpop.f32.mrb[37].mxu1  ;;  %v393_v22 = vpop.f32.mrb[38].mxu0  ;;  %v609_v23 = vmul.f32 0.2, %v494_v18 }
 0x12c   :  { %v497_v24 = vpop.f32.mrb[38].mxu1  ;;  %v632_v25 = vsel %vm534_vm9, %v390_v17, %v583_v19  ;;  %vm535_vm11 = vcmp.gt.f32.partialorder %v393_v22, 0.0  ;;  %v584_v26 = vmul.f32 0.2, %v393_v22  ;;  %v1138_v27 = vpop.f32.mrb[39].mxu0 }
 0x12d   :  { %vm561_vm12 = vcmp.gt.f32.partialorder %v497_v24, 0.0  ;;  %v1190_v28 = vpop.f32.mrb[39].mxu1  ;;  %v1034_v29 = vpack.c.bf16 %v632_v25, %v632_v25  ;;  %v658_v30 = vsel %vm560_vm10, %v494_v18, %v609_v23  ;;  %v610_v31 = vmul.f32 0.2, %v497_v24 }
 0x12e   :  { %v633_v32 = vsel %vm535_vm11, %v393_v22, %v584_v26  ;;  %v1060_v33 = vpack.c.bf16 %v658_v30, %v658_v30 }
 0x12f   :  { %879 = vst.msk [vmem:[%s1615_s2 + $0x48] sm:$0xf] %vm860_vm4, %v1034_v29  ;;  %v1035_v34 = vpack.c.bf16 %v633_v32, %v633_v32  ;;  %v659_v35 = vsel %vm561_vm12, %v497_v24, %v610_v31 }
 0x130   :  { %905 = vst.msk [vmem:[%s1615_s2 + $0xb0] sm:$0xf] %vm860_vm4, %v1060_v33  ;;  %v1061_v36 = vpack.c.bf16 %v659_v35, %v659_v35 }
 0x131   :  { %880 = vst.msk [vmem:[%s1615_s2 + $0x4c] sm:$0xf] %vm860_vm4, %v1035_v34  ;;  %v398_v37 = vpop.f32.mrb[40].mxu0  ;;  %v502_v38 = vpop.f32.mrb[40].mxu1 }
 0x132   :  { %vm536_vm13 = vcmp.gt.f32.partialorder %v398_v37, 0.0  ;;  %v585_v39 = vmul.f32 0.2, %v398_v37  ;;  %906 = vst.msk [vmem:[%s1615_s2 + $0xb4] sm:$0xf] %vm860_vm4, %v1061_v36  ;;  %v1141_v40 = vpop.f32.mrb[41].mxu0 }
 0x133   :  { %vm562_vm14 = vcmp.gt.f32.partialorder %v502_v38, 0.0  ;;  %v1193_v41 = vpop.f32.mrb[41].mxu1  ;;  %v401_v42 = vpop.f32.mrb[42].mxu0  ;;  %v611_v43 = vmul.f32 0.2, %v502_v38 }
 0x134   :  { %v505_v44 = vpop.f32.mrb[42].mxu1  ;;  %v634_v45 = vsel %vm536_vm13, %v398_v37, %v585_v39  ;;  %vm537_vm15 = vcmp.gt.f32.partialorder %v401_v42, 0.0  ;;  %v586_v46 = vmul.f32 0.2, %v401_v42  ;;  %v1142_v47 = vpop.f32.mrb[43].mxu0 }
 0x135   :  { %vm563_vm0 = vcmp.gt.f32.partialorder %v505_v44, 0.0  ;;  %v1194_v48 = vpop.f32.mrb[43].mxu1  ;;  %v1036_v49 = vpack.c.bf16 %v634_v45, %v634_v45  ;;  %v660_v50 = vsel %vm562_vm14, %v502_v38, %v611_v43  ;;  %v612_v51 = vmul.f32 0.2, %v505_v44 }
 0x136   :  { %v635_v52 = vsel %vm537_vm15, %v401_v42, %v586_v46  ;;  %v1062_v53 = vpack.c.bf16 %v660_v50, %v660_v50 }
 0x137   :  { %881 = vst.msk [vmem:[%s1615_s2 + $0x50] sm:$0xf] %vm860_vm4, %v1036_v49  ;;  %v1037_v54 = vpack.c.bf16 %v635_v52, %v635_v52  ;;  %v661_v55 = vsel %vm563_vm0, %v505_v44, %v612_v51 }
 0x138   :  { %907 = vst.msk [vmem:[%s1615_s2 + $0xb8] sm:$0xf] %vm860_vm4, %v1062_v53  ;;  %v1063_v56 = vpack.c.bf16 %v661_v55, %v661_v55 }
 0x139   :  { %882 = vst.msk [vmem:[%s1615_s2 + $0x54] sm:$0xf] %vm860_vm4, %v1037_v54  ;;  %v406_v57 = vpop.f32.mrb[44].mxu0  ;;  %v510_v58 = vpop.f32.mrb[44].mxu1 }
 0x13a   :  { %vm538_vm1 = vcmp.gt.f32.partialorder %v406_v57, 0.0  ;;  %v587_v59 = vmul.f32 0.2, %v406_v57  ;;  %908 = vst.msk [vmem:[%s1615_s2 + $0xbc] sm:$0xf] %vm860_vm4, %v1063_v56  ;;  %v1145_v60 = vpop.f32.mrb[45].mxu0 }
 0x13b   :  { %vm564_vm2 = vcmp.gt.f32.partialorder %v510_v58, 0.0  ;;  %v1197_v61 = vpop.f32.mrb[45].mxu1  ;;  %v409_v62 = vpop.f32.mrb[46].mxu0  ;;  %v613_v63 = vmul.f32 0.2, %v510_v58 }
 0x13c   :  { %v513_v0 = vpop.f32.mrb[46].mxu1  ;;  %v636_v1 = vsel %vm538_vm1, %v406_v57, %v587_v59  ;;  %vm539_vm3 = vcmp.gt.f32.partialorder %v409_v62, 0.0  ;;  %v588_v2 = vmul.f32 0.2, %v409_v62  ;;  %v1146_v3 = vpop.f32.mrb[47].mxu0 }
 0x13d   :  { %v1198_v4 = vpop.f32.mrb[47].mxu1  ;;  %v1038_v5 = vpack.c.bf16 %v636_v1, %v636_v1  ;;  %v662_v6 = vsel %vm564_vm2, %v510_v58, %v613_v63 }
 0x13e   :  { %v637_v7 = vsel %vm539_vm3, %v409_v62, %v588_v2  ;;  %v1064_v8 = vpack.c.bf16 %v662_v6, %v662_v6 }
 0x13f   :  { %883 = vst.msk [vmem:[%s1615_s2 + $0x58] sm:$0xf] %vm860_vm4, %v1038_v5  ;;  %v1039_v9 = vpack.c.bf16 %v637_v7, %v637_v7 }
 0x140   :  { %909 = vst.msk [vmem:[%s1615_s2 + $0xc0] sm:$0xf] %vm860_vm4, %v1064_v8 }
 0x141   :  { %884 = vst.msk [vmem:[%s1615_s2 + $0x5c] sm:$0xf] %vm860_vm4, %v1039_v9  ;;  %v414_v10 = vpop.f32.mrb[48].mxu0 }
 0x142   :  { %vm540_vm5 = vcmp.gt.f32.partialorder %v414_v10, 0.0  ;;  %v589_v11 = vmul.f32 0.2, %v414_v10  ;;  %v1149_v12 = vpop.f32.mrb[49].mxu0 }
 0x143   :  { %v417_v13 = vpop.f32.mrb[50].mxu0 }
 0x144   :  { %v638_v14 = vsel %vm540_vm5, %v414_v10, %v589_v11  ;;  %vm541_vm6 = vcmp.gt.f32.partialorder %v417_v13, 0.0  ;;  %v590_v15 = vmul.f32 0.2, %v417_v13  ;;  %v1150_v16 = vpop.f32.mrb[51].mxu0 }
 0x145   :  { %v1040_v17 = vpack.c.bf16 %v638_v14, %v638_v14 }
 0x146   :  { %v639_v18 = vsel %vm541_vm6, %v417_v13, %v590_v15 }
 0x147   :  { %885 = vst.msk [vmem:[%s1615_s2 + $0x60] sm:$0xf] %vm860_vm4, %v1040_v17  ;;  %v1041_v19 = vpack.c.bf16 %v639_v18, %v639_v18 }
 0x149   :  { %886 = vst.msk [vmem:[%s1615_s2 + $0x64] sm:$0xf] %vm860_vm4, %v1041_v19 }

// kernel: conv_vae_forward.9
= control target key start
LH: loop header
LB: loop body
LE: loop exit
PB: predicated region body
PF: predicated region fallthrough
CT: control target
= control target key end

     0   :  { %s1002_s15 = smov 0   ;;  %s1004_s16 = smov 0   ;;  %s1319_s0 = inlined_call_operand.vmem [shape: bf16[104,128], index: 0, kind: input, shape index: {}]   ;;  %s1320_s1 = inlined_call_operand.vmem [shape: bf16[128,16], index: 1, kind: input, shape index: {}]   ;;  %s1321_s2 = inlined_call_operand.vmem [shape: f32[1,16], index: 2, kind: input, shape index: {}]   ;;  %s1322_s3 = inlined_call_operand.vmem [shape: f32[1,16], index: 3, kind: input, shape index: {}]   ;;  %s1323_s4 = inlined_call_operand.vmem [shape: bf16[104,16], index: 4, kind: output, shape index: {}]  }
   0x1   :  { %s1006_s17 = smov 0  }
   0x2 LB: > { %s26_s18 = sadd.s32 1, %s968_s16  ;;  %p779_p0 = scmp.ge.s32.totalorder %s972_s17, 1  ;;  %s972_s17 = sphi %s1006_s17, %s14_s17   ;;  %s968_s16 = sphi %s1004_s16, %s1325_s16   ;;  %s964_s15 = sphi %s1002_s15, %s1324_s15  }
   0x3   : > { %p28_p1 = scmp.ge.s32.totalorder %s26_s18, 2  ;;  %p175_p2 = scmp.lt.s32.totalorder %s972_s17, 3 }
   0x5   : > { %s1327_s18 = smov (%p28_p1, %s26_s18), 0  ;;  %p176_p3 = pnand %p779_p0, %p175_p2 }
   0x6   : > { %v933_v0 = vld [vmem:[%s1320_s1] sm:$0xff] (!%p176_p3)   ;;  %v974_v1 = vmov (!%p176_p3), 0.0   ;;  %v934_v2 = vld [vmem:[%s1320_s1 + $0x8] sm:$0xff] (!%p176_p3)   ;;  %vm975_vm0 = vmmov (!%p176_p3), 0   ;;  %v935_v3 = vld [vmem:[%s1320_s1 + $0x10] sm:$0xff] (!%p176_p3)   ;;  %p419_p4 = scmp.eq.s32.totalorder (!%p176_p3), %s964_s15, 0 }
   0x7   : > { %179 = sbr.rel (%p176_p3) target bundleno = 378 (0x17a), region = 36  ;;  %846 = vmatprep.subr.bf16.mxu0 (!%p176_p3), %v974_v1  ;;  %890 = vmatprep.subr.bf16.mxu1 (!%p176_p3), %v974_v1  ;;  %v936_v4 = vld [vmem:[%s1320_s1 + $0x18] sm:$0xff] (!%p176_p3)   ;;  %v937_v5 = vld [vmem:[%s1320_s1 + $0x20] sm:$0xff] (!%p176_p3)   ;;  %v938_v6 = vld [vmem:[%s1320_s1 + $0x28] sm:$0xff] (!%p176_p3)  }
   0x8   : > { %847 = vmatpush3.bf16.msra.mxu0 (!%p176_p3), %v933_v0  ;;  %898 = vmatpush3.bf16.msra.mxu1 (!%p176_p3), %v933_v0  ;;  %v939_v7 = vld [vmem:[%s1320_s1 + $0x30] sm:$0xff] (!%p176_p3)   ;;  %v940_v8 = vld [vmem:[%s1320_s1 + $0x38] sm:$0xff] (!%p176_p3)   ;;  %v941_v9 = vld [vmem:[%s1319_s0] sm:$0xff] (!%p176_p3)  }
   0x9   : > { %848 = vmatprep.subr.bf16.mxu0 (!%p176_p3), %v974_v1  ;;  %891 = vmatprep.subr.bf16.mxu1 (!%p176_p3), %v974_v1  ;;  %v942_v10 = vld [vmem:[%s1319_s0 + $0x20] sm:$0xff] (!%p176_p3)   ;;  %v943_v11 = vld [vmem:[%s1319_s0 + $0x8] sm:$0xff] (!%p176_p3)   ;;  %v945_v13 = vld [vmem:[%s1319_s0 + $0x10] sm:$0xff] (!%p176_p3)  }
   0xa   : > { %862 = vmatprep.mubr.msk.bf16.mxu0 (!%p176_p3), %vm975_vm0, %v974_v1  ;;  %878 = vmatprep.mubr.msk.bf16.mxu1 (!%p176_p3), %vm975_vm0, %v974_v1  ;;  %v944_v12 = vld [vmem:[%s1319_s0 + $0x28] sm:$0xff] (!%p176_p3)   ;;  %v946_v14 = vld [vmem:[%s1319_s0 + $0x30] ss:$0 sps:$4 sm:$0xff] (!%p176_p3)   ;;  %v947_v15 = vld [vmem:[%s1319_s0 + $0x18] sm:$0xff] (!%p176_p3)  }
   0xc   : > { %849 = vmatpush3.bf16.msra.mxu0 (!%p176_p3), %v934_v2  ;;  %899 = vmatpush3.bf16.msra.mxu1 (!%p176_p3), %v934_v2 }
   0xd   : > { %850 = vmatprep.subr.bf16.mxu0 (!%p176_p3), %v974_v1  ;;  %892 = vmatprep.subr.bf16.mxu1 (!%p176_p3), %v974_v1 }
   0xe   : > { %vm425_vm1 = vcmask (%p419_p4), 122880   ;;  %v976_v44 = vmov (%p419_p4), 0.0  }
   0xf   : > { %426 = vst.msk [vmem:[#allocation2] sm:$0x1] (%p419_p4), %vm425_vm1, %v976_v44  ;;  %427 = vst.msk [vmem:[#allocation3] sm:$0x1] (%p419_p4), %vm425_vm1, %v976_v44 }
  0x10   : > { %851 = vmatpush3.bf16.msra.mxu0 %v935_v3  ;;  %900 = vmatpush3.bf16.msra.mxu1 %v935_v3 }
  0x11   : > { %852 = vmatprep.subr.bf16.mxu0 %v974_v1  ;;  %893 = vmatprep.subr.bf16.mxu1 %v974_v1 }
  0x14   : > { %853 = vmatpush3.bf16.msra.mxu0 %v936_v4  ;;  %901 = vmatpush3.bf16.msra.mxu1 %v936_v4 }
  0x15   : > { %854 = vmatprep.subr.bf16.mxu0 %v974_v1  ;;  %894 = vmatprep.subr.bf16.mxu1 %v974_v1 }
  0x18   : > { %855 = vmatpush3.bf16.msra.mxu0 %v937_v5  ;;  %902 = vmatpush3.bf16.msra.mxu1 %v937_v5 }
  0x19   : > { %856 = vmatprep.subr.bf16.mxu0 %v974_v1  ;;  %895 = vmatprep.subr.bf16.mxu1 %v974_v1 }
  0x1c   : > { %857 = vmatpush3.bf16.msra.mxu0 %v938_v6  ;;  %903 = vmatpush3.bf16.msra.mxu1 %v938_v6 }
  0x1d   : > { %858 = vmatprep.subr.bf16.mxu0 %v974_v1  ;;  %896 = vmatprep.subr.bf16.mxu1 %v974_v1 }
  0x20   : > { %859 = vmatpush3.bf16.msra.mxu0 %v939_v7  ;;  %904 = vmatpush3.bf16.msra.mxu1 %v939_v7 }
  0x21   : > { %860 = vmatprep.subr.bf16.mxu0 %v974_v1  ;;  %897 = vmatprep.subr.bf16.mxu1 %v974_v1 }
  0x24   : > { %861 = vmatpush3.bf16.msra.mxu0 %v940_v8  ;;  %905 = vmatpush3.bf16.msra.mxu1 %v940_v8 }
  0x27   : > { %863 = vmatmul.mubr.bf16.vlgmr.msra.gmra.mrb[0].mxu0 %v941_v9  ;;  %879 = vmatmul.mubr.bf16.vlgmr.msra.gmra.mrb[0].mxu1 %v942_v10 }
  0x28   : > { %866 = vmatprep.mubr.msk.bf16.mxu0 %vm975_vm0, %v974_v1  ;;  %882 = vmatprep.mubr.msk.bf16.mxu1 %vm975_vm0, %v974_v1 }
  0x2f   : > { %867 = vmatmul.mubr.bf16.gmra.mrb[4].mxu0 %v943_v11  ;;  %883 = vmatmul.mubr.bf16.gmra.mrb[4].mxu1 %v944_v12 }
  0x30   : > { %870 = vmatprep.mubr.msk.bf16.mxu0 %vm975_vm0, %v974_v1  ;;  %886 = vmatprep.mubr.msk.bf16.mxu1 %vm975_vm0, %v974_v1 }
  0x37   : > { %871 = vmatmul.mubr.bf16.gmra.mrb[8].mxu0 %v945_v13  ;;  %887 = vmatmul.mubr.bf16.gmra.mrb[8].mxu1 %v946_v14 }
  0x38   : > { %874 = vmatprep.mubr.msk.bf16.mxu0 %vm975_vm0, %v974_v1 }
  0x3f   : > { %875 = vmatmul.mubr.bf16.gmra.mrb[12].mxu0 %v947_v15 }
  0xfa   : > { %v1075_v16 = vpop.f32.mrb[0].mxu0  ;;  %v1077_v17 = vpop.f32.mrb[0].mxu1 }
  0xfb   : > { %v864_v18 = vpop.f32.mrb[1].mxu0  ;;  %v880_v19 = vpop.f32.mrb[1].mxu1 }
  0xfc   : > { %v1079_v20 = vpop.f32.mrb[2].mxu0  ;;  %v1081_v21 = vpop.f32.mrb[2].mxu1 }
  0xfd   : > { %v865_v22 = vpop.f32.mrb[3].mxu0  ;;  %v881_v23 = vpop.f32.mrb[3].mxu1 }
 0x102   : > { %v1083_v24 = vpop.f32.mrb[4].mxu0  ;;  %v1085_v25 = vpop.f32.mrb[4].mxu1 }
 0x103   : > { %v868_v26 = vpop.f32.mrb[5].mxu0  ;;  %v884_v27 = vpop.f32.mrb[5].mxu1 }
 0x104   : > { %v1087_v28 = vpop.f32.mrb[6].mxu0  ;;  %v1089_v29 = vpop.f32.mrb[6].mxu1 }
 0x105   : > { %v869_v30 = vpop.f32.mrb[7].mxu0  ;;  %v885_v31 = vpop.f32.mrb[7].mxu1 }
 0x10a   : > { %v1091_v32 = vpop.f32.mrb[8].mxu0  ;;  %v1093_v33 = vpop.f32.mrb[8].mxu1 }
 0x10b   : > { %v872_v34 = vpop.f32.mrb[9].mxu0  ;;  %v888_v35 = vpop.f32.mrb[9].mxu1 }
 0x10c   : > { %v1095_v36 = vpop.f32.mrb[10].mxu0  ;;  %v416_v37 = vpop.f32.mrb[10].mxu1 }
 0x10d   : > { %v873_v38 = vpop.f32.mrb[11].mxu0  ;;  %v889_v39 = vpop.f32.mrb[11].mxu1 }
 0x10f   : > { %424 = sbr.rel (!%p419_p4) target bundleno = 278 (0x116), region = 40 }
 0x112   : > { %v1097_v40 = vpop.f32.mrb[12].mxu0 }
 0x113   : > { %v876_v41 = vpop.f32.mrb[13].mxu0 }
 0x114   : > { %v1099_v42 = vpop.f32.mrb[14].mxu0 }
 0x115   : > { %v877_v43 = vpop.f32.mrb[15].mxu0 }
 0x116 PF: > { %p796_p5 = scmp.ne.s32.totalorder %s964_s15, 0 }
 0x117   : > { %vm432_vm2 = vcmask (!%p796_p5), 130048   ;;  %v468_v50 = vmul.f32 (!%p796_p5), %v1075_v16, %v1075_v16  ;;  %v469_v52 = vmul.f32 (!%p796_p5), %v1079_v20, %v1079_v20  ;;  %v470_v53 = vmul.f32 (!%p796_p5), %v1083_v24, %v1083_v24 }
 0x118   : > { %430 = sbr.rel (%p796_p5) target bundleno = 322 (0x142), region = 44  ;;  %v433_v45 = vsel (!%p796_p5), %vm432_vm2, %v1075_v16, 0.0  ;;  %v434_v46 = vsel (!%p796_p5), %vm432_vm2, %v1079_v20, 0.0  ;;  %v436_v47 = vsel (!%p796_p5), %vm432_vm2, %v1083_v24, 0.0  ;;  %v438_v49 = vsel (!%p796_p5), %vm432_vm2, %v1087_v28, 0.0 }
 0x119   : > { %v435_v48 = vadd.f32 (!%p796_p5), %v434_v46, %v433_v45  ;;  %v440_v54 = vsel (!%p796_p5), %vm432_vm2, %v1091_v32, 0.0  ;;  %v471_v56 = vmul.f32 (!%p796_p5), %v1087_v28, %v1087_v28  ;;  %v442_v57 = vsel (!%p796_p5), %vm432_vm2, %v1095_v36, 0.0 }
 0x11a   : > { %v481_v58 = vsel (!%p796_p5), %vm432_vm2, %v468_v50, 0.0  ;;  %v472_v60 = vmul.f32 (!%p796_p5), %v1091_v32, %v1091_v32  ;;  %v482_v61 = vsel (!%p796_p5), %vm432_vm2, %v469_v52, 0.0  ;;  %v484_v62 = vsel (!%p796_p5), %vm432_vm2, %v470_v53, 0.0 }
 0x11b   : > { %v437_v51 = vadd.f32 (!%p796_p5), %v436_v47, %v435_v48  ;;  %v444_v63 = vsel (!%p796_p5), %vm432_vm2, %v1097_v40, 0.0  ;;  %v483_v0 = vadd.f32 (!%p796_p5), %v482_v61, %v481_v58  ;;  %v473_v2 = vmul.f32 (!%p796_p5), %v1095_v36, %v1095_v36 }
 0x11c   : > { %v486_v3 = vsel (!%p796_p5), %vm432_vm2, %v471_v56, 0.0  ;;  %v446_v4 = vsel (!%p796_p5), %vm432_vm2, %v1099_v42, 0.0  ;;  %v474_v7 = vmul.f32 (!%p796_p5), %v1097_v40, %v1097_v40  ;;  %v488_v8 = vsel (!%p796_p5), %vm432_vm2, %v472_v60, 0.0 }
 0x11d   : > { %v439_v55 = vadd.f32 (!%p796_p5), %v438_v49, %v437_v51  ;;  %v485_v5 = vadd.f32 (!%p796_p5), %v484_v62, %v483_v0  ;;  %v448_v9 = vsel (!%p796_p5), %vm432_vm2, %v1077_v17, 0.0  ;;  %v475_v12 = vmul.f32 (!%p796_p5), %v1099_v42, %v1099_v42 }
 0x11e   : > { %v490_v13 = vsel (!%p796_p5), %vm432_vm2, %v473_v2, 0.0  ;;  %v450_v14 = vsel (!%p796_p5), %vm432_vm2, %v1081_v21, 0.0  ;;  %v476_v19 = vmul.f32 (!%p796_p5), %v1077_v17, %v1077_v17  ;;  %v492_v22 = vsel (!%p796_p5), %vm432_vm2, %v474_v7, 0.0 }
 0x11f   : > { %v441_v59 = vadd.f32 %v440_v54, %v439_v55  ;;  %v487_v10 = vadd.f32 %v486_v3, %v485_v5  ;;  %v452_v23 = vsel %vm432_vm2, %v1085_v25, 0.0  ;;  %v477_v30 = vmul.f32 %v1081_v21, %v1081_v21 }
 0x120   : > { %v494_v31 = vsel %vm432_vm2, %v475_v12, 0.0  ;;  %v454_v34 = vsel %vm432_vm2, %v1089_v29, 0.0  ;;  %v478_v38 = vmul.f32 %v1085_v25, %v1085_v25  ;;  %v496_v39 = vsel %vm432_vm2, %v476_v19, 0.0 }
 0x121   : > { %v443_v1 = vadd.f32 %v442_v57, %v441_v59  ;;  %v489_v15 = vadd.f32 %v488_v8, %v487_v10  ;;  %v456_v41 = vsel %vm432_vm2, %v1093_v33, 0.0  ;;  %v479_v45 = vmul.f32 %v1089_v29, %v1089_v29 }
 0x122   : > { %v498_v46 = vsel %vm432_vm2, %v477_v30, 0.0  ;;  %v480_v49 = vmul.f32 %v1093_v33, %v1093_v33  ;;  %v500_v50 = vsel %vm432_vm2, %v478_v38, 0.0  ;;  %vm465_vm3 = vcmask 122880  }
 0x123   : > { %v445_v6 = vadd.f32 %v444_v63, %v443_v1  ;;  %v491_v26 = vadd.f32 %v490_v13, %v489_v15  ;;  %v502_v53 = vsel %vm432_vm2, %v479_v45, 0.0  ;;  %v431_v63 = vld [vmem:[#allocation2] sm:$0x1] }
 0x124   : > { %v504_v56 = vsel %vm432_vm2, %v480_v49, 0.0 }
 0x125   : > { %v447_v11 = vadd.f32 %v446_v4, %v445_v6  ;;  %v493_v35 = vadd.f32 %v492_v22, %v491_v26  ;;  %v467_v6 = vld [vmem:[#allocation3] sm:$0x1] }
 0x127   : > { %v449_v18 = vadd.f32 %v448_v9, %v447_v11  ;;  %v495_v43 = vadd.f32 %v494_v31, %v493_v35 }
 0x129   : > { %v451_v27 = vadd.f32 %v450_v14, %v449_v18  ;;  %v497_v47 = vadd.f32 %v496_v39, %v495_v43 }
 0x12b   : > { %v453_v37 = vadd.f32 %v452_v23, %v451_v27  ;;  %v499_v51 = vadd.f32 %v498_v46, %v497_v47 }
 0x12d   : > { %v455_v44 = vadd.f32 %v454_v34, %v453_v37  ;;  %v501_v54 = vadd.f32 %v500_v50, %v499_v51 }
 0x12f   : > { %v457_v48 = vadd.f32 %v456_v41, %v455_v44  ;;  %v503_v57 = vadd.f32 %v502_v53, %v501_v54 }
 0x131   : > { %v458_v52 = vrot.slane %v457_v48, 4  ;;  %v505_v59 = vadd.f32 %v504_v56, %v503_v57 }
 0x133   : > { %v459_v55 = vadd.f32 %v458_v52, %v457_v48  ;;  %v506_v61 = vrot.slane %v505_v59, 4 }
 0x135   : > { %v460_v58 = vrot.slane %v459_v55, 2  ;;  %v507_v0 = vadd.f32 %v506_v61, %v505_v59 }
 0x137   : > { %v461_v60 = vadd.f32 %v460_v58, %v459_v55  ;;  %v508_v2 = vrot.slane %v507_v0, 2 }
 0x139   : > { %v462_v62 = vrot.slane %v461_v60, 1  ;;  %v509_v4 = vadd.f32 %v508_v2, %v507_v0 }
 0x13b   : > { %v463_v1 = vadd.f32 %v462_v62, %v461_v60  ;;  %v510_v5 = vrot.slane %v509_v4, 1 }
 0x13d   : > { %v464_v3 = vadd.f32 %v463_v1, %v431_v63  ;;  %v511_v7 = vadd.f32 %v510_v5, %v509_v4 }
 0x13f   : > { %466 = vst.msk [vmem:[#allocation2] sm:$0x1] %vm465_vm3, %v464_v3  ;;  %v512_v8 = vadd.f32 %v511_v7, %v467_v6 }
 0x141   : > { %513 = vst.msk [vmem:[#allocation3] sm:$0x1] %vm465_vm3, %v512_v8 }
 0x142 PF: > { %p797_p6 = scmp.ne.s32.totalorder %s964_s15, 1 }
 0x143   : > { %v526_v14 = vlaneseq (!%p797_p6)  ;;  %vm697_vm4 = vcmask (!%p797_p6), 125952  }
 0x144   : > { %517 = sbr.rel (%p797_p6) target bundleno = 378 (0x17a), region = 48 }
 0x145   : > { %v527_v19 = vshrl.u32 (!%p797_p6), %v526_v14, 7 }
 0x146   : > { %v518_v9 = vld [vmem:[#allocation2] sm:$0x1] (!%p797_p6) }
 0x147   : > { %v519_v11 = vmul.f32 (!%p797_p6), 0.010204081, %v518_v9  ;;  %v528_v23 = vsub.s32 (!%p797_p6), 0, %v527_v19 }
 0x148   : > { %v520_v10 = vld [vmem:[#allocation3] sm:$0x1] (!%p797_p6) }
 0x149   : > { %v521_v12 = vmul.f32 (!%p797_p6), 0.010204081, %v520_v10  ;;  %v522_v13 = vmul.f32 (!%p797_p6), %v519_v11, %v519_v11  ;;  %v1170_v26 = vrot.slane (!%p797_p6), %v519_v11, %v528_v23 }
 0x14b   : > { %v523_v15 = vsub.f32 %v521_v12, %v522_v13  ;;  %v531_v27 = vsub.f32 %v1075_v16, %v1170_v26  ;;  %v532_v30 = vsub.f32 %v1079_v20, %v1170_v26  ;;  %v533_v31 = vsub.f32 %v1083_v24, %v1170_v26 }
 0x14c   : > { %v534_v34 = vsub.f32 %v1087_v28, %v1170_v26  ;;  %v535_v37 = vsub.f32 %v1091_v32, %v1170_v26  ;;  %v536_v38 = vsub.f32 %v1095_v36, %v1170_v26  ;;  %v537_v39 = vsub.f32 %v1097_v40, %v1170_v26  ;;  %v1195_v28 = vld [vmem:[%s1321_s2] ss:$0 sm:$0xff] }
 0x14d   : > { %v524_v18 = vmax.f32 %v523_v15, 0.0  ;;  %v538_v16 = vsub.f32 %v1099_v42, %v1170_v26  ;;  %v539_v24 = vsub.f32 %v1077_v17, %v1170_v26  ;;  %v540_v32 = vsub.f32 %v1081_v21, %v1170_v26  ;;  %v1212_v21 = vld [vmem:[%s1322_s3] ss:$0 sm:$0xff] }
 0x14e   : > { %v541_v36 = vsub.f32 %v1085_v25, %v1170_v26  ;;  %v542_v40 = vsub.f32 %v1089_v29, %v1170_v26  ;;  %v543_v42 = vsub.f32 %v1093_v33, %v1170_v26 }
 0x14f   : > { %v544_v22 = vadd.f32 1e-05, %v524_v18 }
 0x151   : > { %948 = vrsqrt.f32 %v544_v22 }
 0x15b   : > { %v949_v35 = vpop.eup %948 }
 0x15c   : > { %v1188_v20 = vrot.slane %v949_v35, %v528_v23 }
 0x15e   : > { %v552_v41 = vmul.f32 %v1188_v20, %v531_v27  ;;  %v553_v17 = vmul.f32 %v1188_v20, %v532_v30  ;;  %v554_v43 = vmul.f32 %v1188_v20, %v533_v31  ;;  %v555_v44 = vmul.f32 %v1188_v20, %v534_v34 }
 0x15f   : > { %v556_v45 = vmul.f32 %v1188_v20, %v535_v37  ;;  %v557_v46 = vmul.f32 %v1188_v20, %v536_v38  ;;  %v558_v47 = vmul.f32 %v1188_v20, %v537_v39  ;;  %v559_v48 = vmul.f32 %v1188_v20, %v538_v16 }
 0x160   : > { %v572_v49 = vmul.f32 %v1195_v28, %v552_v41  ;;  %v573_v50 = vmul.f32 %v1195_v28, %v553_v17  ;;  %v574_v51 = vmul.f32 %v1195_v28, %v554_v43  ;;  %v575_v52 = vmul.f32 %v1195_v28, %v555_v44 }
 0x161   : > { %v576_v53 = vmul.f32 %v1195_v28, %v556_v45  ;;  %v577_v54 = vmul.f32 %v1195_v28, %v557_v46  ;;  %v578_v55 = vmul.f32 %v1195_v28, %v558_v47  ;;  %v579_v56 = vmul.f32 %v1195_v28, %v559_v48 }
 0x162   : > { %v592_v57 = vadd.f32 %v1212_v21, %v572_v49  ;;  %v593_v58 = vadd.f32 %v1212_v21, %v573_v50  ;;  %v594_v59 = vadd.f32 %v1212_v21, %v574_v51  ;;  %v595_v60 = vadd.f32 %v1212_v21, %v575_v52 }
 0x163   : > { %v596_v61 = vadd.f32 %v1212_v21, %v576_v53  ;;  %v597_v62 = vadd.f32 %v1212_v21, %v577_v54  ;;  %v598_v63 = vadd.f32 %v1212_v21, %v578_v55  ;;  %v599_v0 = vadd.f32 %v1212_v21, %v579_v56 }
 0x164   : > { %vm605_vm5 = vcmp.gt.f32.partialorder %v592_v57, 0.0  ;;  %v618_v1 = vmul.f32 0.2, %v592_v57  ;;  %vm606_vm6 = vcmp.gt.f32.partialorder %v593_v58, 0.0  ;;  %v619_v2 = vmul.f32 0.2, %v593_v58 }
 0x165   : > { %vm607_vm7 = vcmp.gt.f32.partialorder %v594_v59, 0.0  ;;  %v620_v3 = vmul.f32 0.2, %v594_v59  ;;  %vm608_vm8 = vcmp.gt.f32.partialorder %v595_v60, 0.0  ;;  %v621_v4 = vmul.f32 0.2, %v595_v60 }
 0x166   : > { %v631_v5 = vsel %vm605_vm5, %v592_v57, %v618_v1  ;;  %v632_v6 = vsel %vm606_vm6, %v593_v58, %v619_v2  ;;  %vm609_vm9 = vcmp.gt.f32.partialorder %v596_v61, 0.0  ;;  %v622_v7 = vmul.f32 0.2, %v596_v61 }
 0x167   : > { %v818_v8 = vpack.c.bf16 %v631_v5, %v631_v5  ;;  %v819_v9 = vpack.c.bf16 %v632_v6, %v632_v6  ;;  %v633_v10 = vsel %vm607_vm7, %v594_v59, %v620_v3  ;;  %v634_v11 = vsel %vm608_vm8, %v595_v60, %v621_v4 }
 0x168   : > { %v820_v12 = vpack.c.bf16 %v633_v10, %v633_v10  ;;  %v821_v13 = vpack.c.bf16 %v634_v11, %v634_v11  ;;  %v635_v14 = vsel %vm609_vm9, %v596_v61, %v622_v7  ;;  %vm610_vm10 = vcmp.gt.f32.partialorder %v597_v62, 0.0 }
 0x169   : > { %698 = vst.msk [vmem:[%s1323_s4] sm:$0xf] %vm697_vm4, %v818_v8  ;;  %699 = vst.msk [vmem:[%s1323_s4 + $0x4] sm:$0xf] %vm697_vm4, %v819_v9  ;;  %v822_v15 = vpack.c.bf16 %v635_v14, %v635_v14  ;;  %v623_v18 = vmul.f32 0.2, %v597_v62  ;;  %v560_v23 = vmul.f32 %v1188_v20, %v539_v24  ;;  %v561_v27 = vmul.f32 %v1188_v20, %v540_v32 }
 0x16a   : > { %vm611_vm11 = vcmp.gt.f32.partialorder %v598_v63, 0.0  ;;  %v624_v19 = vmul.f32 0.2, %v598_v63  ;;  %700 = vst.msk [vmem:[%s1323_s4 + $0x8] sm:$0xf] %vm697_vm4, %v820_v12  ;;  %vm612_vm12 = vcmp.gt.f32.partialorder %v599_v0, 0.0  ;;  %v562_v34 = vmul.f32 %v1188_v20, %v541_v36 }
 0x16b   : > { %701 = vst.msk [vmem:[%s1323_s4 + $0xc] sm:$0xf] %vm697_vm4, %v821_v13  ;;  %v625_v22 = vmul.f32 0.2, %v599_v0  ;;  %702 = vst.msk [vmem:[%s1323_s4 + $0x10] sm:$0xf] %vm697_vm4, %v822_v15  ;;  %v636_v30 = vsel %vm610_vm10, %v597_v62, %v623_v18  ;;  %v563_v35 = vmul.f32 %v1188_v20, %v542_v40  ;;  %v580_v16 = vmul.f32 %v1195_v28, %v560_v23 }
 0x16c   : > { %v637_v31 = vsel %vm611_vm11, %v598_v63, %v624_v19  ;;  %v823_v37 = vpack.c.bf16 %v636_v30, %v636_v30  ;;  %v581_v32 = vmul.f32 %v1195_v28, %v561_v27  ;;  %v582_v41 = vmul.f32 %v1195_v28, %v562_v34 }
 0x16d   : > { %v824_v38 = vpack.c.bf16 %v637_v31, %v637_v31  ;;  %v638_v39 = vsel %vm612_vm12, %v599_v0, %v625_v22  ;;  %v583_v17 = vmul.f32 %v1195_v28, %v563_v35  ;;  %v600_v25 = vadd.f32 %v1212_v21, %v580_v16 }
 0x16e   : > { %v825_v24 = vpack.c.bf16 %v638_v39, %v638_v39  ;;  %703 = vst.msk [vmem:[%s1323_s4 + $0x14] sm:$0xf] %vm697_vm4, %v823_v37  ;;  %v564_v29 = vmul.f32 %v1188_v20, %v543_v42  ;;  %v601_v36 = vadd.f32 %v1212_v21, %v581_v32  ;;  %v602_v40 = vadd.f32 %v1212_v21, %v582_v41 }
 0x16f   : > { %704 = vst.msk [vmem:[%s1323_s4 + $0x18] sm:$0xf] %vm697_vm4, %v824_v38  ;;  %v603_v43 = vadd.f32 %v1212_v21, %v583_v17  ;;  %vm613_vm13 = vcmp.gt.f32.partialorder %v600_v25, 0.0  ;;  %v626_v44 = vmul.f32 0.2, %v600_v25 }
 0x170   : > { %705 = vst.msk [vmem:[%s1323_s4 + $0x1c] sm:$0xf] %vm697_vm4, %v825_v24  ;;  %v584_v45 = vmul.f32 %v1195_v28, %v564_v29  ;;  %vm614_vm14 = vcmp.gt.f32.partialorder %v601_v36, 0.0  ;;  %v627_v46 = vmul.f32 0.2, %v601_v36  ;;  %vm615_vm15 = vcmp.gt.f32.partialorder %v602_v40, 0.0 }
 0x171   : > { %v628_v33 = vmul.f32 0.2, %v602_v40  ;;  %v639_v26 = vsel %vm613_vm13, %v600_v25, %v626_v44  ;;  %vm616_vm0 = vcmp.gt.f32.partialorder %v603_v43, 0.0  ;;  %v629_v20 = vmul.f32 0.2, %v603_v43 }
 0x172   : > { %v604_v42 = vadd.f32 %v1212_v21, %v584_v45  ;;  %v826_v47 = vpack.c.bf16 %v639_v26, %v639_v26  ;;  %v640_v48 = vsel %vm614_vm14, %v601_v36, %v627_v46 }
 0x173   : > { %v641_v49 = vsel %vm615_vm15, %v602_v40, %v628_v33  ;;  %v827_v50 = vpack.c.bf16 %v640_v48, %v640_v48  ;;  %v642_v52 = vsel %vm616_vm0, %v603_v43, %v629_v20 }
 0x174   : > { %v828_v51 = vpack.c.bf16 %v641_v49, %v641_v49  ;;  %vm617_vm1 = vcmp.gt.f32.partialorder %v604_v42, 0.0  ;;  %706 = vst.msk [vmem:[%s1323_s4 + $0x20] sm:$0xf] %vm697_vm4, %v826_v47  ;;  %v829_v28 = vpack.c.bf16 %v642_v52, %v642_v52  ;;  %v630_v53 = vmul.f32 0.2, %v604_v42 }
 0x175   : > { %707 = vst.msk [vmem:[%s1323_s4 + $0x24] sm:$0xf] %vm697_vm4, %v827_v50 }
 0x176   : > { %708 = vst.msk [vmem:[%s1323_s4 + $0x28] sm:$0xf] %vm697_vm4, %v828_v51  ;;  %709 = vst.msk [vmem:[%s1323_s4 + $0x2c] sm:$0xf] %vm697_vm4, %v829_v28  ;;  %v643_v21 = vsel %vm617_vm1, %v604_v42, %v630_v53 }
 0x177   : > { %v830_v54 = vpack.c.bf16 %v643_v21, %v643_v21 }
 0x179   : > { %710 = vst.msk [vmem:[%s1323_s4 + $0x30] sm:$0xf] %vm697_vm4, %v830_v54 }
 0x17a PF: > { %s14_s17 = sadd.s32 1, %s972_s17   ;;  %s1324_s15 = smov %s968_s16 }
 0x17b   : > { %p11_p7 = scmp.ge.s32.totalorder %s14_s17, 4   ;;  %s1325_s16 = smov %s1327_s18 }
 0x17d   :  { %13 = sbr.rel (!%p11_p7) target bundleno = 2 (0x2), region = 78 }

// kernel: conv_vae_forward.10
= control target key start
LH: loop header
LB: loop body
LE: loop exit
PB: predicated region body
PF: predicated region fallthrough
CT: control target
= control target key end

     0   :  { %s719_s15 = smov 0   ;;  %s721_s16 = smov 0   ;;  %s832_s0 = inlined_call_operand.vmem [shape: bf16[32,144], index: 0, kind: input, shape index: {}]   ;;  %s833_s1 = inlined_call_operand.vmem [shape: bf16[144,32], index: 1, kind: input, shape index: {}]   ;;  %s834_s2 = inlined_call_operand.vmem [shape: f32[1,32], index: 2, kind: input, shape index: {}]   ;;  %s835_s3 = inlined_call_operand.vmem [shape: f32[1,32], index: 3, kind: input, shape index: {}]   ;;  %s836_s4 = inlined_call_operand.vmem [shape: bf16[32,32], index: 4, kind: output, shape index: {}]  }
   0x1   :  { %s723_s17 = smov 0  }
   0x2 LB: > { %s26_s18 = sadd.s32 1, %s686_s16  ;;  %p573_p0 = scmp.ge.s32.totalorder %s690_s17, 1  ;;  %s690_s17 = sphi %s723_s17, %s14_s17   ;;  %s686_s16 = sphi %s721_s16, %s838_s16   ;;  %s682_s15 = sphi %s719_s15, %s837_s15  }
   0x3   : > { %p28_p1 = scmp.ge.s32.totalorder %s26_s18, 2  ;;  %p176_p2 = scmp.lt.s32.totalorder %s690_s17, 3 }
   0x5   : > { %s840_s18 = smov (%p28_p1, %s26_s18), 0  ;;  %p177_p3 = pnand %p573_p0, %p176_p2 }
   0x6   : > { %v651_v0 = vld [vmem:[%s833_s1] sm:$0xff] (!%p177_p3)   ;;  %v692_v1 = vmov (!%p177_p3), 0   ;;  %v652_v2 = vld [vmem:[%s833_s1 + $0x8] sm:$0xff] (!%p177_p3)   ;;  %v653_v3 = vld [vmem:[%s833_s1 + $0x10] sm:$0xff] (!%p177_p3)   ;;  %vm311_vm0 = vcmask (!%p177_p3), 130048   ;;  %p367_p4 = scmp.eq.s32.totalorder (!%p177_p3), %s682_s15, 0 }
   0x7   : > { %180 = sbr.rel (%p177_p3) target bundleno = 325 (0x145), region = 36  ;;  %318 = vmatprep.subr.bf16.mxu0 (!%p177_p3), %v692_v1  ;;  %607 = vmatprep.subr.bf16.mxu1 (!%p177_p3), %v692_v1  ;;  %v654_v4 = vld [vmem:[%s833_s1 + $0x18] sm:$0xff] (!%p177_p3)   ;;  %v662_v5 = vld [vmem:[%s832_s0 + $0x4] ss:$8 sps:$4 sm:$0xff] (!%p177_p3)   ;;  %v657_v9 = vld [vmem:[%s833_s1 + $0x30] sm:$0xff] (!%p177_p3)  }
   0x8   : > { %319 = vmatpush1.bf16.msra.mxu0 (!%p177_p3), %v651_v0  ;;  %616 = vmatpush1.bf16.msra.mxu1 (!%p177_p3), %v651_v0  ;;  %v665_v6 = vld [vmem:[%s832_s0 + $0x14] ss:$8 sps:$4 sm:$0xff] (!%p177_p3)   ;;  %v655_v7 = vld [vmem:[%s833_s1 + $0x20] sm:$0xff] (!%p177_p3)   ;;  %v656_v8 = vld [vmem:[%s833_s1 + $0x28] sm:$0xff] (!%p177_p3)  }
   0x9   : > { %320 = vmatprep.subr.bf16.mxu0 (!%p177_p3), %v692_v1  ;;  %608 = vmatprep.subr.bf16.mxu1 (!%p177_p3), %v692_v1  ;;  %v658_v10 = vld [vmem:[%s833_s1 + $0x38] sm:$0xff] (!%p177_p3)   ;;  %v659_v11 = vld [vmem:[%s833_s1 + $0x40] sm:$0xff] (!%p177_p3)  }
   0xa   : > { %587 = vmatprep.mubr.msk.bf16.mxu0 (!%p177_p3), %vm311_vm0, %v662_v5  ;;  %588 = vmatprep.mubr.msk.bf16.mxu1 (!%p177_p3), %vm311_vm0, %v665_v6  ;;  %v660_v12 = vld [vmem:[%s832_s0] ss:$8 sps:$4 sm:$0xff] (!%p177_p3)   ;;  %v663_v13 = vld [vmem:[%s832_s0 + $0x10] ss:$8 sps:$4 sm:$0xff] (!%p177_p3)  }
   0xc   : > { %321 = vmatpush1.bf16.msra.mxu0 (!%p177_p3), %v652_v2  ;;  %617 = vmatpush1.bf16.msra.mxu1 (!%p177_p3), %v652_v2 }
   0xd   : > { %322 = vmatprep.subr.bf16.mxu0 (!%p177_p3), %v692_v1  ;;  %609 = vmatprep.subr.bf16.mxu1 (!%p177_p3), %v692_v1 }
   0xe   : > { %vm373_vm1 = vcmask (%p367_p4), 253952   ;;  %v693_v22 = vmov (%p367_p4), 0.0  }
   0xf   : > { %374 = vst.msk [vmem:[#allocation2] sm:$0x1] (%p367_p4), %vm373_vm1, %v693_v22  ;;  %375 = vst.msk [vmem:[#allocation3] sm:$0x1] (%p367_p4), %vm373_vm1, %v693_v22 }
  0x10   : > { %323 = vmatpush1.bf16.msra.mxu0 %v653_v3  ;;  %618 = vmatpush1.bf16.msra.mxu1 %v653_v3 }
  0x11   : > { %324 = vmatprep.subr.bf16.mxu0 %v692_v1  ;;  %610 = vmatprep.subr.bf16.mxu1 %v692_v1 }
  0x14   : > { %325 = vmatpush1.bf16.msra.mxu0 %v654_v4  ;;  %619 = vmatpush1.bf16.msra.mxu1 %v654_v4 }
  0x15   : > { %326 = vmatprep.subr.bf16.mxu0 %v692_v1  ;;  %611 = vmatprep.subr.bf16.mxu1 %v692_v1 }
  0x18   : > { %327 = vmatpush1.bf16.msra.mxu0 %v655_v7  ;;  %620 = vmatpush1.bf16.msra.mxu1 %v655_v7 }
  0x19   : > { %328 = vmatprep.subr.bf16.mxu0 %v692_v1  ;;  %612 = vmatprep.subr.bf16.mxu1 %v692_v1 }
  0x1c   : > { %329 = vmatpush1.bf16.msra.mxu0 %v656_v8  ;;  %621 = vmatpush1.bf16.msra.mxu1 %v656_v8 }
  0x1d   : > { %330 = vmatprep.subr.bf16.mxu0 %v692_v1  ;;  %613 = vmatprep.subr.bf16.mxu1 %v692_v1 }
  0x20   : > { %331 = vmatpush1.bf16.msra.mxu0 %v657_v9  ;;  %622 = vmatpush1.bf16.msra.mxu1 %v657_v9 }
  0x21   : > { %332 = vmatprep.subr.bf16.mxu0 %v692_v1  ;;  %614 = vmatprep.subr.bf16.mxu1 %v692_v1 }
  0x24   : > { %333 = vmatpush1.bf16.msra.mxu0 %v658_v10  ;;  %623 = vmatpush1.bf16.msra.mxu1 %v658_v10 }
  0x25   : > { %334 = vmatprep.subr.bf16.mxu0 %v692_v1  ;;  %615 = vmatprep.subr.bf16.mxu1 %v692_v1 }
  0x28   : > { %335 = vmatpush1.bf16.msra.mxu0 %v659_v11  ;;  %624 = vmatpush1.bf16.msra.mxu1 %v659_v11 }
  0x2b   : > { %351 = vmatmul.mubr.bf16.vlgmr.msra.gmra.mrb[0].mxu0 %v660_v12  ;;  %359 = vmatmul.mubr.bf16.vlgmr.msra.gmra.mrb[0].mxu1 %v663_v13 }
  0xfb   : > { %372 = sbr.rel (!%p367_p4) target bundleno = 258 (0x102), region = 40 }
  0xfe   : > { %v779_v14 = vpop.f32.mrb[0].mxu0  ;;  %v781_v15 = vpop.f32.mrb[0].mxu1 }
  0xff   : > { %v354_v16 = vpop.f32.mrb[1].mxu0  ;;  %v362_v17 = vpop.f32.mrb[1].mxu1 }
 0x100   : > { %v783_v18 = vpop.f32.mrb[2].mxu0  ;;  %v785_v19 = vpop.f32.mrb[2].mxu1 }
 0x101   : > { %v357_v20 = vpop.f32.mrb[3].mxu0  ;;  %v365_v21 = vpop.f32.mrb[3].mxu1 }
 0x102 PF: > { %p590_p5 = scmp.ne.s32.totalorder %s682_s15, 0 }
 0x103   : > { %vm380_vm2 = vcmask (!%p590_p5), 261120   ;;  %v398_v23 = vmul.f32 (!%p590_p5), %v779_v14, %v779_v14  ;;  %v399_v24 = vmul.f32 (!%p590_p5), %v783_v18, %v783_v18  ;;  %v400_v29 = vmul.f32 (!%p590_p5), %v781_v15, %v781_v15  ;;  %v379_v50 = vld [vmem:[#allocation2] sm:$0x1] (!%p590_p5)  ;;  %v397_v53 = vld [vmem:[#allocation3] sm:$0x1] (!%p590_p5) }
 0x104   : > { %378 = sbr.rel (%p590_p5) target bundleno = 283 (0x11b), region = 44  ;;  %v381_v25 = vsel (!%p590_p5), %vm380_vm2, %v779_v14, 0.0  ;;  %v382_v26 = vsel (!%p590_p5), %vm380_vm2, %v783_v18, 0.0  ;;  %v384_v27 = vsel (!%p590_p5), %vm380_vm2, %v781_v15, 0.0  ;;  %v401_v30 = vmul.f32 (!%p590_p5), %v785_v19, %v785_v19 }
 0x105   : > { %v383_v28 = vadd.f32 (!%p590_p5), %v382_v26, %v381_v25  ;;  %v402_v31 = vsel (!%p590_p5), %vm380_vm2, %v398_v23, 0.0  ;;  %v386_v32 = vsel (!%p590_p5), %vm380_vm2, %v785_v19, 0.0  ;;  %v403_v33 = vsel (!%p590_p5), %vm380_vm2, %v399_v24, 0.0 }
 0x106   : > { %v404_v35 = vadd.f32 (!%p590_p5), %v403_v33, %v402_v31  ;;  %v405_v36 = vsel (!%p590_p5), %vm380_vm2, %v400_v29, 0.0  ;;  %v407_v37 = vsel (!%p590_p5), %vm380_vm2, %v401_v30, 0.0  ;;  %vm395_vm3 = vcmask (!%p590_p5), 253952  }
 0x107   : > { %v385_v34 = vadd.f32 (!%p590_p5), %v384_v27, %v383_v28 }
 0x108   : > { %v406_v39 = vadd.f32 (!%p590_p5), %v405_v36, %v404_v35 }
 0x109   : > { %v387_v38 = vadd.f32 (!%p590_p5), %v386_v32, %v385_v34 }
 0x10a   : > { %v408_v41 = vadd.f32 (!%p590_p5), %v407_v37, %v406_v39 }
 0x10b   : > { %v388_v40 = vrot.slane %v387_v38, 4 }
 0x10c   : > { %v409_v43 = vrot.slane %v408_v41, 4 }
 0x10d   : > { %v389_v42 = vadd.f32 %v388_v40, %v387_v38 }
 0x10e   : > { %v410_v45 = vadd.f32 %v409_v43, %v408_v41 }
 0x10f   : > { %v390_v44 = vrot.slane %v389_v42, 2 }
 0x110   : > { %v411_v47 = vrot.slane %v410_v45, 2 }
 0x111   : > { %v391_v46 = vadd.f32 %v390_v44, %v389_v42 }
 0x112   : > { %v412_v49 = vadd.f32 %v411_v47, %v410_v45 }
 0x113   : > { %v392_v48 = vrot.slane %v391_v46, 1 }
 0x114   : > { %v413_v52 = vrot.slane %v412_v49, 1 }
 0x115   : > { %v393_v51 = vadd.f32 %v392_v48, %v391_v46 }
 0x116   : > { %v414_v55 = vadd.f32 %v413_v52, %v412_v49 }
 0x117   : > { %v394_v54 = vadd.f32 %v393_v51, %v379_v50 }
 0x118   : > { %v415_v56 = vadd.f32 %v414_v55, %v397_v53 }
 0x119   : > { %396 = vst.msk [vmem:[#allocation2] sm:$0x1] %vm395_vm3, %v394_v54 }
 0x11a   : > { %416 = vst.msk [vmem:[#allocation3] sm:$0x1] %vm395_vm3, %v415_v56 }
 0x11b PF: > { %p591_p6 = scmp.ne.s32.totalorder %s682_s15, 1 }
 0x11c   : > { %v429_v62 = vlaneseq (!%p591_p6)  ;;  %v592_v11 = vld [vmem:[%s834_s2] ss:$0 sm:$0xff] (!%p591_p6)  ;;  %vm500_vm8 = vcmask (!%p591_p6), 257024  }
 0x11d   : > { %420 = sbr.rel (%p591_p6) target bundleno = 325 (0x145), region = 48 }
 0x11e   : > { %v430_v1 = vshrl.u32 (!%p591_p6), %v429_v62, 7 }
 0x120   : > { %v421_v57 = vld [vmem:[#allocation2] sm:$0x1] (!%p591_p6)  ;;  %v431_v3 = vsub.s32 (!%p591_p6), 0, %v430_v1 }
 0x121   : > { %v423_v58 = vld [vmem:[#allocation3] sm:$0x1] (!%p591_p6)  ;;  %v422_v59 = vmul.f32 (!%p591_p6), 0.03125, %v421_v57 }
 0x122   : > { %v424_v60 = vmul.f32 (!%p591_p6), 0.03125, %v423_v58 }
 0x123   : > { %v425_v61 = vmul.f32 (!%p591_p6), %v422_v59, %v422_v59  ;;  %v432_v4 = vrot.slane (!%p591_p6), %v422_v59, %v431_v3 }
 0x125   : > { %v426_v63 = vsub.f32 %v424_v60, %v425_v61  ;;  %v434_v5 = vsub.f32 %v779_v14, %v432_v4  ;;  %v435_v6 = vsub.f32 %v783_v18, %v432_v4  ;;  %v436_v7 = vsub.f32 %v781_v15, %v432_v4  ;;  %v593_v14 = vld [vmem:[%s835_s3] ss:$0 sm:$0xff] }
 0x126   : > { %v437_v8 = vsub.f32 %v785_v19, %v432_v4 }
 0x127   : > { %v427_v0 = vmax.f32 %v426_v63, 0.0 }
 0x129   : > { %v438_v2 = vadd.f32 1e-05, %v427_v0 }
 0x12b   : > { %666 = vrsqrt.f32 %v438_v2 }
 0x135   : > { %v667_v9 = vpop.eup %666 }
 0x136   : > { %v444_v10 = vrot.slane %v667_v9, %v431_v3 }
 0x138   : > { %v446_v12 = vmul.f32 %v444_v10, %v434_v5  ;;  %v447_v13 = vmul.f32 %v444_v10, %v435_v6  ;;  %v448_v16 = vmul.f32 %v444_v10, %v436_v7  ;;  %v449_v17 = vmul.f32 %v444_v10, %v437_v8 }
 0x13a   : > { %v457_v20 = vmul.f32 %v592_v11, %v446_v12  ;;  %v458_v18 = vmul.f32 %v592_v11, %v447_v13  ;;  %v459_v21 = vmul.f32 %v592_v11, %v448_v16  ;;  %v460_v15 = vmul.f32 %v592_v11, %v449_v17 }
 0x13c   : > { %v468_v22 = vadd.f32 %v593_v14, %v457_v20  ;;  %v469_v19 = vadd.f32 %v593_v14, %v458_v18  ;;  %v470_v23 = vadd.f32 %v593_v14, %v459_v21  ;;  %v471_v24 = vadd.f32 %v593_v14, %v460_v15 }
 0x13e   : > { %vm472_vm4 = vcmp.gt.f32.partialorder %v468_v22, 0.0  ;;  %v476_v25 = vmul.f32 0.2, %v468_v22  ;;  %vm473_vm5 = vcmp.gt.f32.partialorder %v469_v19, 0.0  ;;  %v477_v26 = vmul.f32 0.2, %v469_v19 }
 0x13f   : > { %vm474_vm6 = vcmp.gt.f32.partialorder %v470_v23, 0.0  ;;  %v478_v27 = vmul.f32 0.2, %v470_v23  ;;  %vm475_vm7 = vcmp.gt.f32.partialorder %v471_v24, 0.0  ;;  %v479_v28 = vmul.f32 0.2, %v471_v24 }
 0x140   : > { %v480_v29 = vsel %vm472_vm4, %v468_v22, %v476_v25  ;;  %v481_v30 = vsel %vm473_vm5, %v469_v19, %v477_v26 }
 0x141   : > { %v603_v31 = vpack.c.bf16 %v480_v29, %v480_v29  ;;  %v604_v32 = vpack.c.bf16 %v481_v30, %v481_v30  ;;  %v482_v33 = vsel %vm474_vm6, %v470_v23, %v478_v27  ;;  %v483_v34 = vsel %vm475_vm7, %v471_v24, %v479_v28 }
 0x142   : > { %v605_v35 = vpack.c.bf16 %v482_v33, %v482_v33  ;;  %v606_v36 = vpack.c.bf16 %v483_v34, %v483_v34 }
 0x143   : > { %501 = vst.msk [vmem:[%s836_s4] sm:$0xf] %vm500_vm8, %v603_v31  ;;  %502 = vst.msk [vmem:[%s836_s4 + $0x4] sm:$0xf] %vm500_vm8, %v604_v32 }
 0x144   : > { %503 = vst.msk [vmem:[%s836_s4 + $0x8] sm:$0xf] %vm500_vm8, %v605_v35  ;;  %504 = vst.msk [vmem:[%s836_s4 + $0xc] sm:$0xf] %vm500_vm8, %v606_v36 }
 0x145 PF: > { %s14_s17 = sadd.s32 1, %s690_s17   ;;  %s837_s15 = smov %s686_s16 }
 0x146   : > { %p11_p7 = scmp.ge.s32.totalorder %s14_s17, 4   ;;  %s838_s16 = smov %s840_s18 }
 0x148   :  { %13 = sbr.rel (!%p11_p7) target bundleno = 2 (0x2), region = 78 }

// kernel: conv_vae_forward.12
= control target key start
LH: loop header
LB: loop body
LE: loop exit
PB: predicated region body
PF: predicated region fallthrough
CT: control target
= control target key end

     0   :  { %v354_v1 = vmov 0   ;;  %vm22_vm0 = vcmask 523264   ;;  %vm284_vm1 = vcmask 261120   ;;  %s488_s3 = inlined_call_operand.vmem [shape: bf16[64,288], index: 3, kind: input, shape index: {}]   ;;  %s489_s0 = inlined_call_operand.vmem [shape: f32[32,64], index: 0, kind: input, shape index: {}]   ;;  %s490_s1 = inlined_call_operand.vmem [shape: f32[1,64], index: 1, kind: input, shape index: {}]   ;;  %s491_s2 = inlined_call_operand.vmem [shape: f32[1,64], index: 2, kind: input, shape index: {}]   ;;  %s492_s4 = inlined_call_operand.vmem [shape: f32[32,288], index: 4, kind: output, shape index: {}]  }
   0x1   :  { %v336_v0 = vld [vmem:[%s488_s3 + $0x4] ss:$12 sps:$4 sm:$0xff]   ;;  %212 = vmatprep.mubr.bf16.mxu0 %v354_v1  ;;  %v338_v2 = vld [vmem:[%s488_s3] ss:$12 sps:$4 sm:$0xff]   ;;  %v339_v3 = vld [vmem:[%s488_s3 + $0x1c] ss:$12 sps:$4 sm:$0xff]  }
   0x2   :  { %180 = vmatprep.subr.bf16.mxu0 %v336_v0  ;;  %v341_v4 = vld [vmem:[%s488_s3 + $0x18] ss:$12 sps:$4 sm:$0xff]   ;;  %v342_v5 = vld [vmem:[%s488_s3 + $0x8] ss:$12 sps:$4 sm:$0xff]   ;;  %v346_v7 = vld [vmem:[%s488_s3 + $0x20] ss:$12 sps:$4 sm:$0xff]  }
   0x3   :  { %181 = vmatpush1.bf16.msra.mxu0 %v338_v2  ;;  %v343_v6 = vld [vmem:[%s488_s3 + $0x34] ss:$12 sps:$4 sm:$0xff]   ;;  %323 = vmatprep.subr.bf16.mxu1 %v342_v5  ;;  %v345_v8 = vld [vmem:[%s488_s3 + $0x30] ss:$12 sps:$4 sm:$0xff]   ;;  %v347_v9 = vld [vmem:[%s488_s3 + $0x4c] ss:$12 sps:$4 sm:$0xff]  }
   0x4   :  { %182 = vmatprep.subr.bf16.mxu0 %v339_v3  ;;  %324 = vmatpush3.bf16.msra.mxu1 %v342_v5  ;;  %v350_v10 = vld [vmem:[%s488_s3 + $0x38] ss:$12 sps:$4 sm:$0xff]   ;;  %v19_v12 = vld [vmem:[%s489_s0 + $0x8] sm:$0xff]  ;;  %v20_v13 = vld [vmem:[%s489_s0 + $0x10] sm:$0xff] }
   0x5   :  { %325 = vmatprep.subr.bf16.mxu1 %v346_v7  ;;  %v18_v11 = vld [vmem:[%s489_s0] sm:$0xff]  ;;  %v21_v14 = vld [vmem:[%s489_s0 + $0x18] sm:$0xff]  ;;  %v24_v16 = vsel %vm22_vm0, %v19_v12, 0.0  ;;  %v349_v17 = vld [vmem:[%s488_s3 + $0x48] ss:$12 sps:$4 sm:$0xff]   ;;  %v26_v19 = vsel %vm22_vm0, %v20_v13, 0.0 }
   0x6   :  { %v23_v15 = vsel %vm22_vm0, %v18_v11, 0.0  ;;  %v28_v20 = vsel %vm22_vm0, %v21_v14, 0.0  ;;  %v351_v21 = vld [vmem:[%s488_s3 + $0x50] ss:$12 sps:$4 sm:$0xff]   ;;  %v299_v55 = vld [vmem:[%s490_s1] ss:$0 sm:$0xff] }
   0x7   :  { %183 = vmatpush1.bf16.msra.mxu0 %v341_v4  ;;  %v25_v18 = vadd.f32 %v24_v16, %v23_v15  ;;  %v300_v60 = vld [vmem:[%s491_s2] ss:$0 sm:$0xff] }
   0x8   :  { %184 = vmatprep.subr.bf16.mxu0 %v343_v6  ;;  %326 = vmatpush3.bf16.msra.mxu1 %v346_v7 }
   0x9   :  { %327 = vmatprep.subr.bf16.mxu1 %v350_v10  ;;  %v27_v22 = vadd.f32 %v26_v19, %v25_v18 }
   0xb   :  { %185 = vmatpush1.bf16.msra.mxu0 %v345_v8  ;;  %v29_v23 = vadd.f32 %v28_v20, %v27_v22 }
   0xc   :  { %186 = vmatprep.subr.bf16.mxu0 %v347_v9  ;;  %328 = vmatpush3.bf16.msra.mxu1 %v350_v10 }
   0xd   :  { %329 = vmatprep.subr.bf16.mxu1 %v351_v21  ;;  %v30_v24 = vrot.slane %v29_v23, 4 }
   0xf   :  { %187 = vmatpush1.bf16.msra.mxu0 %v349_v17  ;;  %v31_v25 = vadd.f32 %v30_v24, %v29_v23 }
  0x10   :  { %330 = vmatpush3.bf16.msra.mxu1 %v351_v21 }
  0x11   :  { %v32_v26 = vrot.slane %v31_v25, 2 }
  0x13   :  { %v33_v27 = vadd.f32 %v32_v26, %v31_v25 }
  0x15   :  { %v34_v28 = vrot.slane %v33_v27, 1 }
  0x17   :  { %v35_v29 = vadd.f32 %v34_v28, %v33_v27 }
  0x19   :  { %v37_v30 = vmul.f32 0.03125, %v35_v29 }
  0x1b   :  { %v38_v31 = vsub.f32 %v18_v11, %v37_v30  ;;  %v39_v32 = vsub.f32 %v19_v12, %v37_v30  ;;  %v40_v33 = vsub.f32 %v20_v13, %v37_v30  ;;  %v41_v34 = vsub.f32 %v21_v14, %v37_v30 }
  0x1d   :  { %v42_v35 = vmul.f32 %v38_v31, %v38_v31  ;;  %v43_v36 = vmul.f32 %v39_v32, %v39_v32  ;;  %v44_v37 = vmul.f32 %v40_v33, %v40_v33  ;;  %v45_v38 = vmul.f32 %v41_v34, %v41_v34 }
  0x1f   :  { %v46_v39 = vsel %vm22_vm0, %v42_v35, 0.0  ;;  %v47_v40 = vsel %vm22_vm0, %v43_v36, 0.0  ;;  %v49_v41 = vsel %vm22_vm0, %v44_v37, 0.0  ;;  %v51_v43 = vsel %vm22_vm0, %v45_v38, 0.0 }
  0x20   :  { %v48_v42 = vadd.f32 %v47_v40, %v46_v39 }
  0x22   :  { %v50_v44 = vadd.f32 %v49_v41, %v48_v42 }
  0x24   :  { %v52_v45 = vadd.f32 %v51_v43, %v50_v44 }
  0x26   :  { %v53_v46 = vrot.slane %v52_v45, 4 }
  0x28   :  { %v54_v47 = vadd.f32 %v53_v46, %v52_v45 }
  0x2a   :  { %v55_v48 = vrot.slane %v54_v47, 2 }
  0x2c   :  { %v56_v49 = vadd.f32 %v55_v48, %v54_v47 }
  0x2e   :  { %v57_v50 = vrot.slane %v56_v49, 1 }
  0x30   :  { %v58_v51 = vadd.f32 %v57_v50, %v56_v49 }
  0x32   :  { %v59_v52 = vmul.f32 0.03125, %v58_v51 }
  0x34   :  { %v60_v53 = vadd.f32 1e-05, %v59_v52 }
  0x36   :  { %352 = vrsqrt.f32 %v60_v53 }
  0x40   :  { %v353_v54 = vpop.eup %352 }
  0x41   :  { %v62_v56 = vmul.f32 %v353_v54, %v38_v31  ;;  %v63_v57 = vmul.f32 %v353_v54, %v39_v32  ;;  %v64_v58 = vmul.f32 %v353_v54, %v40_v33  ;;  %v65_v59 = vmul.f32 %v353_v54, %v41_v34 }
  0x43   :  { %v73_v61 = vmul.f32 %v299_v55, %v62_v56  ;;  %v74_v62 = vmul.f32 %v299_v55, %v63_v57  ;;  %v75_v63 = vmul.f32 %v299_v55, %v64_v58  ;;  %v76_v0 = vmul.f32 %v299_v55, %v65_v59 }
  0x45   :  { %v84_v2 = vadd.f32 %v300_v60, %v73_v61  ;;  %v85_v3 = vadd.f32 %v300_v60, %v74_v62  ;;  %v86_v4 = vadd.f32 %v300_v60, %v75_v63  ;;  %v87_v5 = vadd.f32 %v300_v60, %v76_v0 }
  0x47   :  { %v88_v6 = vmax.f32 %v84_v2, 0.0  ;;  %v89_v7 = vmax.f32 %v85_v3, 0.0  ;;  %v90_v8 = vmax.f32 %v86_v4, 0.0  ;;  %v91_v9 = vmax.f32 %v87_v5, 0.0 }
  0x49   :  { %v92_v10 = vpack.c.bf16 %v89_v7, %v88_v6  ;;  %v93_v11 = vpack.c.bf16 %v91_v9, %v90_v8 }
  0x4b   :  { %313 = vmatmul.mubr.msk.bf16.vlgmr.msra.gmra.mrb[0].mxu0 %vm22_vm0, %v92_v10  ;;  %331 = vmatprep.mubr.msk.bf16.mxu1 %vm22_vm0, %v92_v10 }
  0x4c   :  { %332 = vmatmul.mubr.msk.bf16.vlgmr.msra.gmra.mrb[0].mxu1 %vm22_vm0, %v93_v11  ;;  %222 = vmatprep.mubr.bf16.mxu0 %v354_v1 }
  0x53   :  { %314 = vmatmul.mubr.msk.bf16.gmra.mrb[4].mxu0 %vm22_vm0, %v93_v11 }
 0x11e   :  { %v214_v12 = vpop.f32.mrb[0].mxu0 }
 0x11f   :  { %282 = vst [vmem:[%s492_s4] sm:$0xff] %v214_v12  ;;  %v216_v13 = vpop.f32.mrb[1].mxu0  ;;  %v333_v14 = vpop.f32.mrb[0].mxu1 }
 0x120   :  { %283 = vst [vmem:[%s492_s4 + $0x8] sm:$0xff] %v216_v13  ;;  %v218_v15 = vpop.f32.mrb[2].mxu0  ;;  %291 = vst.msk [vmem:[%s492_s4 + $0x40] sm:$0xff] %vm284_vm1, %v333_v14  ;;  %v267_v1 = vpop.f32.mrb[1].mxu1 }
 0x121   :  { %286 = vst [vmem:[%s492_s4 + $0x18] sm:$0xff] %v218_v15  ;;  %v220_v16 = vpop.f32.mrb[3].mxu0  ;;  %285 = vst.msk [vmem:[%s492_s4 + $0x10] sm:$0xff] %vm284_vm1, %v267_v1  ;;  %v334_v17 = vpop.f32.mrb[2].mxu1 }
 0x122   :  { %287 = vst [vmem:[%s492_s4 + $0x20] sm:$0xff] %v220_v16  ;;  %294 = vst.msk [vmem:[%s492_s4 + $0x58] sm:$0xff] %vm284_vm1, %v334_v17  ;;  %v270_v18 = vpop.f32.mrb[3].mxu1 }
 0x123   :  { %288 = vst.msk [vmem:[%s492_s4 + $0x28] sm:$0xff] %vm284_vm1, %v270_v18 }
 0x126   :  { %v224_v19 = vpop.f32.mrb[4].mxu0 }
 0x127   :  { %289 = vst [vmem:[%s492_s4 + $0x30] sm:$0xff] %v224_v19  ;;  %v226_v20 = vpop.f32.mrb[5].mxu0 }
 0x128   :  { %290 = vst [vmem:[%s492_s4 + $0x38] sm:$0xff] %v226_v20  ;;  %v228_v21 = vpop.f32.mrb[6].mxu0 }
 0x129   :  { %292 = vst [vmem:[%s492_s4 + $0x48] sm:$0xff] %v228_v21  ;;  %v230_v22 = vpop.f32.mrb[7].mxu0 }
 0x12a   :  { %293 = vst [vmem:[%s492_s4 + $0x50] sm:$0xff] %v230_v22 }

// kernel: conv_vae_forward.13
= control target key start
LH: loop header
LB: loop body
LE: loop exit
PB: predicated region body
PF: predicated region fallthrough
CT: control target
= control target key end

     0   :  { %v401_v1 = vmov 0   ;;  %vm31_vm0 = vcmask 261120   ;;  %vm55_vm1 = vcmask 254976   ;;  %s647_s3 = inlined_call_operand.vmem [shape: bf16[32,256], index: 3, kind: input, shape index: {}]   ;;  %s648_s0 = inlined_call_operand.vmem [shape: f32[98,32], index: 0, kind: input, shape index: {}]   ;;  %s649_s1 = inlined_call_operand.vmem [shape: f32[1,32], index: 1, kind: input, shape index: {}]   ;;  %s650_s2 = inlined_call_operand.vmem [shape: f32[1,32], index: 2, kind: input, shape index: {}]   ;;  %s651_s4 = inlined_call_operand.vmem [shape: f32[98,256], index: 4, kind: output, shape index: {}]  }
   0x1   :  { %v393_v0 = vld [vmem:[%s647_s3 + $0x4] ss:$8 sps:$4 sm:$0xff]   ;;  %276 = vmatprep.mubr.bf16.mxu0 %v401_v1  ;;  %316 = vmatprep.mubr.bf16.mxu1 %v401_v1  ;;  %v395_v2 = vld [vmem:[%s647_s3] ss:$8 sps:$4 sm:$0xff]   ;;  %v396_v3 = vld [vmem:[%s647_s3 + $0x14] ss:$8 sps:$4 sm:$0xff]  }
   0x2   :  { %244 = vmatprep.subr.bf16.mxu0 %v393_v0  ;;  %v398_v4 = vld [vmem:[%s647_s3 + $0x10] ss:$8 sps:$4 sm:$0xff]   ;;  %388 = vmatprep.subr.bf16.mxu1 %v393_v0  ;;  %v18_v5 = vld [vmem:[%s648_s0] sm:$0xff]  ;;  %v19_v6 = vld [vmem:[%s648_s0 + $0x8] sm:$0xff] }
   0x3   :  { %245 = vmatpush1.bf16.msra.mxu0 %v395_v2  ;;  %390 = vmatpush1.bf16.msra.mxu1 %v395_v2  ;;  %v20_v7 = vld [vmem:[%s648_s0 + $0x10] sm:$0xff]  ;;  %v21_v8 = vld [vmem:[%s648_s0 + $0x18] sm:$0xff]  ;;  %v32_v9 = vsel %vm31_vm0, %v18_v5, 0.0  ;;  %v33_v10 = vsel %vm31_vm0, %v19_v6, 0.0  ;;  %v22_v12 = vld [vmem:[%s648_s0 + $0x20] sm:$0xff] }
   0x4   :  { %246 = vmatprep.subr.bf16.mxu0 %v396_v3  ;;  %v35_v11 = vsel %vm31_vm0, %v20_v7, 0.0  ;;  %389 = vmatprep.subr.bf16.mxu1 %v396_v3  ;;  %v34_v13 = vadd.f32 %v33_v10, %v32_v9  ;;  %v37_v14 = vsel %vm31_vm0, %v21_v8, 0.0  ;;  %v23_v15 = vld [vmem:[%s648_s0 + $0x28] sm:$0xff]  ;;  %v39_v17 = vsel %vm31_vm0, %v22_v12, 0.0  ;;  %v24_v18 = vld [vmem:[%s648_s0 + $0x30] sm:$0xff]  ;;  %v25_v21 = vld [vmem:[%s648_s0 + $0x38] sm:$0xff] }
   0x5   :  { %v41_v20 = vsel %vm31_vm0, %v23_v15, 0.0  ;;  %v43_v23 = vsel %vm31_vm0, %v24_v18, 0.0  ;;  %v26_v24 = vld [vmem:[%s648_s0 + $0x40] sm:$0xff]  ;;  %v45_v26 = vsel %vm31_vm0, %v25_v21, 0.0  ;;  %v27_v27 = vld [vmem:[%s648_s0 + $0x48] sm:$0xff]  ;;  %v28_v30 = vld [vmem:[%s648_s0 + $0x50] sm:$0xff] }
   0x6   :  { %v36_v16 = vadd.f32 %v35_v11, %v34_v13  ;;  %v47_v29 = vsel %vm31_vm0, %v26_v24, 0.0  ;;  %v49_v32 = vsel %vm31_vm0, %v27_v27, 0.0  ;;  %v29_v33 = vld [vmem:[%s648_s0 + $0x58] sm:$0xff]  ;;  %v51_v35 = vsel %vm31_vm0, %v28_v30, 0.0  ;;  %v30_v36 = vld [vmem:[%s648_s0 + $0x60] sm:$0x3] }
   0x7   :  { %247 = vmatpush1.bf16.msra.mxu0 %v398_v4  ;;  %391 = vmatpush1.bf16.msra.mxu1 %v398_v4  ;;  %v53_v38 = vsel %vm31_vm0, %v29_v33, 0.0  ;;  %v56_v40 = vsel %vm55_vm1, %v30_v36, 0.0 }
   0x8   :  { %v38_v19 = vadd.f32 %v37_v14, %v36_v16 }
   0xa   :  { %v40_v22 = vadd.f32 %v39_v17, %v38_v19 }
   0xc   :  { %v42_v25 = vadd.f32 %v41_v20, %v40_v22 }
   0xe   :  { %v44_v28 = vadd.f32 %v43_v23, %v42_v25 }
  0x10   :  { %v46_v31 = vadd.f32 %v45_v26, %v44_v28 }
  0x12   :  { %v48_v34 = vadd.f32 %v47_v29, %v46_v31 }
  0x14   :  { %v50_v37 = vadd.f32 %v49_v32, %v48_v34 }
  0x16   :  { %v52_v39 = vadd.f32 %v51_v35, %v50_v37 }
  0x18   :  { %v54_v41 = vadd.f32 %v53_v38, %v52_v39 }
  0x1a   :  { %v57_v42 = vadd.f32 %v56_v40, %v54_v41 }
  0x1c   :  { %v58_v43 = vrot.slane %v57_v42, 4 }
  0x1e   :  { %v59_v44 = vadd.f32 %v58_v43, %v57_v42 }
  0x20   :  { %v60_v45 = vrot.slane %v59_v44, 2 }
  0x22   :  { %v61_v46 = vadd.f32 %v60_v45, %v59_v44 }
  0x24   :  { %v62_v47 = vrot.slane %v61_v46, 1 }
  0x26   :  { %v63_v48 = vadd.f32 %v62_v47, %v61_v46  ;;  %v375_v47 = vld [vmem:[%s649_s1] ss:$0 sm:$0xff] }
  0x28   :  { %v65_v49 = vmul.f32 0.010204081, %v63_v48 }
  0x2a   :  { %v493_v50 = vsub.f32 %v18_v5, %v65_v49  ;;  %v495_v51 = vsub.f32 %v19_v6, %v65_v49  ;;  %v497_v52 = vsub.f32 %v20_v7, %v65_v49  ;;  %v499_v53 = vsub.f32 %v21_v8, %v65_v49 }
  0x2b   :  { %v501_v54 = vsub.f32 %v22_v12, %v65_v49  ;;  %v509_v58 = vsub.f32 %v23_v15, %v65_v49  ;;  %v513_v60 = vsub.f32 %v24_v18, %v65_v49  ;;  %v520_v3 = vsub.f32 %v25_v21, %v65_v49 }
  0x2c   :  { %v79_v55 = vmul.f32 %v493_v50, %v493_v50  ;;  %v80_v56 = vmul.f32 %v495_v51, %v495_v51  ;;  %v81_v57 = vmul.f32 %v497_v52, %v497_v52  ;;  %v82_v59 = vmul.f32 %v499_v53, %v499_v53 }
  0x2d   :  { %v83_v61 = vmul.f32 %v501_v54, %v501_v54  ;;  %v84_v4 = vmul.f32 %v509_v58, %v509_v58  ;;  %v74_v7 = vsub.f32 %v26_v24, %v65_v49  ;;  %v85_v8 = vmul.f32 %v513_v60, %v513_v60 }
  0x2e   :  { %v92_v62 = vsel %vm31_vm0, %v79_v55, 0.0  ;;  %v93_v63 = vsel %vm31_vm0, %v80_v56, 0.0  ;;  %v95_v2 = vsel %vm31_vm0, %v81_v57, 0.0  ;;  %v97_v5 = vsel %vm31_vm0, %v82_v59, 0.0  ;;  %v376_v57 = vld [vmem:[%s650_s2] ss:$0 sm:$0xff] }
  0x2f   :  { %v94_v0 = vadd.f32 %v93_v63, %v92_v62  ;;  %v99_v9 = vsel %vm31_vm0, %v83_v61, 0.0  ;;  %v75_v11 = vsub.f32 %v27_v27, %v65_v49  ;;  %v86_v12 = vmul.f32 %v520_v3, %v520_v3 }
  0x30   :  { %v101_v13 = vsel %vm31_vm0, %v84_v4, 0.0  ;;  %v76_v15 = vsub.f32 %v28_v30, %v65_v49  ;;  %v87_v16 = vmul.f32 %v74_v7, %v74_v7  ;;  %v103_v17 = vsel %vm31_vm0, %v85_v8, 0.0 }
  0x31   :  { %v96_v6 = vadd.f32 %v95_v2, %v94_v0  ;;  %v77_v19 = vsub.f32 %v29_v33, %v65_v49  ;;  %v88_v20 = vmul.f32 %v75_v11, %v75_v11  ;;  %v105_v21 = vsel %vm31_vm0, %v86_v12, 0.0 }
  0x32   :  { %v533_v23 = vsub.f32 %v30_v36, %v65_v49  ;;  %v89_v24 = vmul.f32 %v76_v15, %v76_v15  ;;  %v107_v25 = vsel %vm31_vm0, %v87_v16, 0.0 }
  0x33   :  { %v98_v10 = vadd.f32 %v97_v5, %v96_v6  ;;  %v90_v27 = vmul.f32 %v77_v19, %v77_v19  ;;  %v109_v28 = vsel %vm31_vm0, %v88_v20, 0.0 }
  0x34   :  { %v91_v30 = vmul.f32 %v533_v23, %v533_v23  ;;  %v111_v31 = vsel %vm31_vm0, %v89_v24, 0.0 }
  0x35   :  { %v100_v14 = vadd.f32 %v99_v9, %v98_v10  ;;  %v113_v33 = vsel %vm31_vm0, %v90_v27, 0.0 }
  0x36   :  { %v115_v35 = vsel %vm55_vm1, %v91_v30, 0.0 }
  0x37   :  { %v102_v18 = vadd.f32 %v101_v13, %v100_v14 }
  0x39   :  { %v104_v22 = vadd.f32 %v103_v17, %v102_v18 }
  0x3b   :  { %v106_v26 = vadd.f32 %v105_v21, %v104_v22 }
  0x3d   :  { %v108_v29 = vadd.f32 %v107_v25, %v106_v26 }
  0x3f   :  { %v110_v32 = vadd.f32 %v109_v28, %v108_v29 }
  0x41   :  { %v112_v34 = vadd.f32 %v111_v31, %v110_v32 }
  0x43   :  { %v114_v36 = vadd.f32 %v113_v33, %v112_v34 }
  0x45   :  { %v116_v37 = vadd.f32 %v115_v35, %v114_v36 }
  0x47   :  { %v117_v38 = vrot.slane %v116_v37, 4 }
  0x49   :  { %v118_v39 = vadd.f32 %v117_v38, %v116_v37 }
  0x4b   :  { %v119_v40 = vrot.slane %v118_v39, 2 }
  0x4d   :  { %v120_v41 = vadd.f32 %v119_v40, %v118_v39 }
  0x4f   :  { %v121_v42 = vrot.slane %v120_v41, 1 }
  0x51   :  { %v122_v43 = vadd.f32 %v121_v42, %v120_v41 }
  0x53   :  { %v123_v44 = vmul.f32 0.010204081, %v122_v43 }
  0x55   :  { %v124_v45 = vadd.f32 1e-05, %v123_v44 }
  0x57   :  { %399 = vrsqrt.f32 %v124_v45 }
  0x61   :  { %v400_v46 = vpop.eup %399 }
  0x62   :  { %v126_v48 = vmul.f32 %v400_v46, %v493_v50  ;;  %v127_v49 = vmul.f32 %v400_v46, %v495_v51  ;;  %v134_v55 = vmul.f32 %v400_v46, %v74_v7  ;;  %v135_v56 = vmul.f32 %v400_v46, %v75_v11 }
  0x63   :  { %v128_v59 = vmul.f32 %v400_v46, %v497_v52  ;;  %v129_v61 = vmul.f32 %v400_v46, %v499_v53  ;;  %v136_v62 = vmul.f32 %v400_v46, %v76_v15  ;;  %v137_v63 = vmul.f32 %v400_v46, %v77_v19 }
  0x64   :  { %v146_v0 = vmul.f32 %v375_v47, %v126_v48  ;;  %v147_v2 = vmul.f32 %v375_v47, %v127_v49  ;;  %v154_v4 = vmul.f32 %v375_v47, %v134_v55  ;;  %v155_v5 = vmul.f32 %v375_v47, %v135_v56 }
  0x65   :  { %v148_v6 = vmul.f32 %v375_v47, %v128_v59  ;;  %v149_v50 = vmul.f32 %v375_v47, %v129_v61  ;;  %v156_v8 = vmul.f32 %v375_v47, %v136_v62  ;;  %v157_v51 = vmul.f32 %v375_v47, %v137_v63 }
  0x66   :  { %v166_v7 = vadd.f32 %v376_v57, %v146_v0  ;;  %v167_v9 = vadd.f32 %v376_v57, %v147_v2  ;;  %v174_v10 = vadd.f32 %v376_v57, %v154_v4  ;;  %v175_v11 = vadd.f32 %v376_v57, %v155_v5 }
  0x67   :  { %v168_v12 = vadd.f32 %v376_v57, %v148_v6  ;;  %v169_v13 = vadd.f32 %v376_v57, %v149_v50  ;;  %v176_v14 = vadd.f32 %v376_v57, %v156_v8  ;;  %v177_v52 = vadd.f32 %v376_v57, %v157_v51 }
  0x68   :  { %v179_v16 = vmax.f32 %v166_v7, 0.0  ;;  %v180_v53 = vmax.f32 %v167_v9, 0.0  ;;  %v187_v15 = vmax.f32 %v174_v10, 0.0  ;;  %v188_v17 = vmax.f32 %v175_v11, 0.0 }
  0x69   :  { %v181_v18 = vmax.f32 %v168_v12, 0.0  ;;  %v182_v19 = vmax.f32 %v169_v13, 0.0  ;;  %v130_v22 = vmul.f32 %v400_v46, %v501_v54  ;;  %v131_v24 = vmul.f32 %v400_v46, %v509_v58 }
  0x6a   :  { %v192_v20 = vpack.c.bf16 %v180_v53, %v179_v16  ;;  %v196_v21 = vpack.c.bf16 %v188_v17, %v187_v15  ;;  %v189_v25 = vmax.f32 %v176_v14, 0.0  ;;  %v190_v26 = vmax.f32 %v177_v52, 0.0 }
  0x6b   :  { %v138_v27 = vmul.f32 %v400_v46, %v533_v23  ;;  %v132_v28 = vmul.f32 %v400_v46, %v513_v60  ;;  %v150_v29 = vmul.f32 %v375_v47, %v130_v22  ;;  %v151_v30 = vmul.f32 %v375_v47, %v131_v24 }
  0x6c   :  { %381 = vmatmul.mubr.msk.bf16.vlgmr.msra.gmra.mrb[0].mxu0 %vm31_vm0, %v192_v20  ;;  %385 = vmatmul.mubr.msk.bf16.vlgmr.msra.gmra.mrb[0].mxu1 %vm31_vm0, %v196_v21  ;;  %v133_v31 = vmul.f32 %v400_v46, %v520_v3  ;;  %v193_v33 = vpack.c.bf16 %v182_v19, %v181_v18  ;;  %v197_v34 = vpack.c.bf16 %v190_v26, %v189_v25 }
  0x6d   :  { %286 = vmatprep.mubr.bf16.mxu0 %v401_v1  ;;  %326 = vmatprep.mubr.bf16.mxu1 %v401_v1  ;;  %v158_v54 = vmul.f32 %v375_v47, %v138_v27  ;;  %v152_v58 = vmul.f32 %v375_v47, %v132_v28  ;;  %v170_v35 = vadd.f32 %v376_v57, %v150_v29 }
  0x6e   :  { %v153_v32 = vmul.f32 %v375_v47, %v133_v31  ;;  %v171_v60 = vadd.f32 %v376_v57, %v151_v30 }
  0x6f   :  { %v172_v23 = vadd.f32 %v376_v57, %v152_v58  ;;  %v178_v36 = vadd.f32 %v376_v57, %v158_v54  ;;  %v183_v3 = vmax.f32 %v170_v35, 0.0 }
  0x70   :  { %v173_v37 = vadd.f32 %v376_v57, %v153_v32  ;;  %v184_v40 = vmax.f32 %v171_v60, 0.0 }
  0x71   :  { %v185_v38 = vmax.f32 %v172_v23, 0.0  ;;  %v191_v41 = vmax.f32 %v178_v36, 0.0 }
  0x72   :  { %v186_v39 = vmax.f32 %v173_v37, 0.0  ;;  %v194_v43 = vpack.c.bf16 %v184_v40, %v183_v3 }
  0x73   :  { %v198_v44 = vpack.c.bf16 %v191_v41, %v191_v41 }
  0x74   :  { %382 = vmatmul.mubr.msk.bf16.gmra.mrb[4].mxu0 %vm31_vm0, %v193_v33  ;;  %386 = vmatmul.mubr.msk.bf16.gmra.mrb[4].mxu1 %vm31_vm0, %v197_v34  ;;  %v195_v42 = vpack.c.bf16 %v186_v39, %v185_v38 }
  0x75   :  { %296 = vmatprep.mubr.bf16.mxu0 %v401_v1  ;;  %336 = vmatprep.mubr.bf16.mxu1 %v401_v1 }
  0x7c   :  { %383 = vmatmul.mubr.msk.bf16.gmra.mrb[8].mxu0 %vm31_vm0, %v194_v43  ;;  %387 = vmatmul.mubr.msk.bf16.gmra.mrb[8].mxu1 %vm31_vm0, %v198_v44 }
  0x7d   :  { %306 = vmatprep.mubr.bf16.mxu0 %v401_v1 }
  0x84   :  { %384 = vmatmul.mubr.msk.bf16.gmra.mrb[12].mxu0 %vm31_vm0, %v195_v42 }
 0x13f   :  { %v278_v45 = vpop.f32.mrb[0].mxu0  ;;  %v318_v46 = vpop.f32.mrb[0].mxu1 }
 0x140   :  { %345 = vst [vmem:[%s651_s4] sm:$0xff] %v278_v45  ;;  %v280_v47 = vpop.f32.mrb[1].mxu0  ;;  %361 = vst [vmem:[%s651_s4 + $0x80] sm:$0xff] %v318_v46  ;;  %v320_v48 = vpop.f32.mrb[1].mxu1 }
 0x141   :  { %346 = vst [vmem:[%s651_s4 + $0x8] sm:$0xff] %v280_v47  ;;  %v282_v49 = vpop.f32.mrb[2].mxu0  ;;  %362 = vst [vmem:[%s651_s4 + $0x88] sm:$0xff] %v320_v48  ;;  %v322_v1 = vpop.f32.mrb[2].mxu1 }
 0x142   :  { %347 = vst [vmem:[%s651_s4 + $0x10] sm:$0xff] %v282_v49  ;;  %v284_v55 = vpop.f32.mrb[3].mxu0  ;;  %363 = vst [vmem:[%s651_s4 + $0x90] sm:$0xff] %v322_v1  ;;  %v324_v56 = vpop.f32.mrb[3].mxu1 }
 0x143   :  { %348 = vst [vmem:[%s651_s4 + $0x18] sm:$0xff] %v284_v55  ;;  %364 = vst [vmem:[%s651_s4 + $0x98] sm:$0xff] %v324_v56 }
 0x147   :  { %v288_v57 = vpop.f32.mrb[4].mxu0  ;;  %v328_v59 = vpop.f32.mrb[4].mxu1 }
 0x148   :  { %349 = vst [vmem:[%s651_s4 + $0x20] sm:$0xff] %v288_v57  ;;  %v290_v61 = vpop.f32.mrb[5].mxu0  ;;  %365 = vst [vmem:[%s651_s4 + $0xa0] sm:$0xff] %v328_v59  ;;  %v330_v62 = vpop.f32.mrb[5].mxu1 }
 0x149   :  { %350 = vst [vmem:[%s651_s4 + $0x28] sm:$0xff] %v290_v61  ;;  %v292_v63 = vpop.f32.mrb[6].mxu0  ;;  %366 = vst [vmem:[%s651_s4 + $0xa8] sm:$0xff] %v330_v62  ;;  %v332_v0 = vpop.f32.mrb[6].mxu1 }
 0x14a   :  { %351 = vst [vmem:[%s651_s4 + $0x30] sm:$0xff] %v292_v63  ;;  %v294_v2 = vpop.f32.mrb[7].mxu0  ;;  %367 = vst [vmem:[%s651_s4 + $0xb0] sm:$0xff] %v332_v0  ;;  %v334_v4 = vpop.f32.mrb[7].mxu1 }
 0x14b   :  { %352 = vst [vmem:[%s651_s4 + $0x38] sm:$0xff] %v294_v2  ;;  %368 = vst [vmem:[%s651_s4 + $0xb8] sm:$0xff] %v334_v4 }
 0x14f   :  { %v298_v5 = vpop.f32.mrb[8].mxu0  ;;  %v338_v6 = vpop.f32.mrb[8].mxu1 }
 0x150   :  { %353 = vst [vmem:[%s651_s4 + $0x40] sm:$0xff] %v298_v5  ;;  %v300_v50 = vpop.f32.mrb[9].mxu0  ;;  %369 = vst [vmem:[%s651_s4 + $0xc0] sm:$0x3] %v338_v6  ;;  %v340_v8 = vpop.f32.mrb[9].mxu1 }
 0x151   :  { %354 = vst [vmem:[%s651_s4 + $0x48] sm:$0xff] %v300_v50  ;;  %v302_v51 = vpop.f32.mrb[10].mxu0  ;;  %370 = vst [vmem:[%s651_s4 + $0xc8] sm:$0x3] %v340_v8  ;;  %v342_v7 = vpop.f32.mrb[10].mxu1 }
 0x152   :  { %355 = vst [vmem:[%s651_s4 + $0x50] sm:$0xff] %v302_v51  ;;  %v304_v9 = vpop.f32.mrb[11].mxu0  ;;  %v343_v10 = vpop.f32.mrb[11].mxu1 }
 0x153   :  { %356 = vst [vmem:[%s651_s4 + $0x58] sm:$0xff] %v304_v9 }
 0x157   :  { %v308_v11 = vpop.f32.mrb[12].mxu0 }
 0x158   :  { %357 = vst [vmem:[%s651_s4 + $0x60] sm:$0xff] %v308_v11  ;;  %v310_v12 = vpop.f32.mrb[13].mxu0 }
 0x159   :  { %358 = vst [vmem:[%s651_s4 + $0x68] sm:$0xff] %v310_v12  ;;  %v312_v13 = vpop.f32.mrb[14].mxu0 }
 0x15a   :  { %359 = vst [vmem:[%s651_s4 + $0x70] sm:$0xff] %v312_v13  ;;  %v314_v14 = vpop.f32.mrb[15].mxu0 }
 0x15b   :  { %360 = vst [vmem:[%s651_s4 + $0x78] sm:$0xff] %v314_v14 }

// kernel: conv_vae_forward.11
= control target key start
LH: loop header
LB: loop body
LE: loop exit
PB: predicated region body
PF: predicated region fallthrough
CT: control target
= control target key end

     0   :  { %v11994_v35 = vmov 1966171168   ;;  %v313_v37 = vlaneseq  ;;  %vm4203_vm8 = vcmask 254976   ;;  %vm4286_vm10 = vcmask 261120   ;;  %s16240_s1 = inlined_call_operand.vmem [shape: bf16[512,1024], index: 1, kind: input, shape index: {}]   ;;  %s16241_s0 = inlined_call_operand.vmem [shape: bf16[2,512], index: 0, kind: input, shape index: {}]   ;;  %s16242_s2 = inlined_call_operand.vmem [shape: bf16[1024,512], index: 2, kind: input, shape index: {}]   ;;  %s16243_s4 = inlined_call_operand.vmem [shape: bf16[512,32], index: 4, kind: input, shape index: {}]   ;;  %s16244_s3 = inlined_call_operand.vmem [shape: f32[1,512], index: 3, kind: input, shape index: {}]   ;;  %s16245_s6 = inlined_call_operand.vmem [shape: bf16[32,512], index: 6, kind: input, shape index: {}]   ;;  %s16246_s8 = inlined_call_operand.vmem [shape: bf16[512,1024], index: 8, kind: input, shape index: {}]   ;;  %s16247_s5 = inlined_call_operand.vmem [shape: f32[1,32], index: 5, kind: input, shape index: {}]   ;;  %s16248_s12 = inlined_call_operand.vmem [shape: f32[2,32], index: 12, kind: output, shape index: {0}]   ;;  %s16249_s11 = inlined_call_operand.vmem [shape: f32[2,32], index: 11, kind: input, shape index: {}]   ;;  %s16250_s7 = inlined_call_operand.vmem [shape: f32[1,512], index: 7, kind: input, shape index: {}]   ;;  %s16251_s10 = inlined_call_operand.vmem [shape: bf16[1024,1024], index: 10, kind: input, shape index: {}]   ;;  %s16252_s9 = inlined_call_operand.vmem [shape: f32[1,1024], index: 9, kind: input, shape index: {}]   ;;  %s16253_s13 = inlined_call_operand.vmem [shape: f32[2,1024], index: 13, kind: output, shape index: {1}]  }
   0x1   :  { %v45_v0 = vld [vmem:[%s16240_s1] sm:$0xff]  ;;  %v46_v2 = vld [vmem:[%s16240_s1 + $0x8] sm:$0xff]  ;;  %v311_v36 = vunpack.c.l.s4 %v11994_v35 }
   0x2   :  { %v49_v1 = vld [vmem:[%s16240_s1 + $0x20] sm:$0xff]  ;;  %v50_v4 = vld [vmem:[%s16240_s1 + $0x28] sm:$0xff]  ;;  %v12140_v47 = vshrl.u32 %v313_v37, 7 }
   0x3   :  { %v10078_v3 = vcombine.high %v45_v0, %v49_v1  ;;  %v10077_v5 = vcombine.low %v45_v0, %v49_v1  ;;  %v53_v6 = vld [vmem:[%s16240_s1 + $0x40] sm:$0xff]  ;;  %v10080_v8 = vcombine.high %v46_v2, %v50_v4  ;;  %v10079_v9 = vcombine.low %v46_v2, %v50_v4  ;;  %v54_v11 = vld [vmem:[%s16240_s1 + $0x48] sm:$0xff] }
   0x4   :  { %v57_v7 = vld [vmem:[%s16240_s1 + $0x60] sm:$0xff]  ;;  %v58_v12 = vld [vmem:[%s16240_s1 + $0x68] sm:$0xff]  ;;  %v312_v46 = vunpack.c.0.s8 %v311_v36 }
   0x5   :  { %v10086_v10 = vcombine.high %v53_v6, %v57_v7  ;;  %v61_v13 = vld [vmem:[%s16240_s1 + $0x80] sm:$0xff]  ;;  %1610 = vmatprep.subr.bf16.mxu0 %v10078_v3  ;;  %v10088_v14 = vcombine.high %v54_v11, %v58_v12  ;;  %v62_v16 = vld [vmem:[%s16240_s1 + $0x88] sm:$0xff]  ;;  %1692 = vmatprep.subr.bf16.mxu1 %v10080_v8  ;;  %v10085_v18 = vcombine.low %v53_v6, %v57_v7 }
   0x6   :  { %v65_v15 = vld [vmem:[%s16240_s1 + $0xa0] sm:$0xff]  ;;  %v66_v17 = vld [vmem:[%s16240_s1 + $0xa8] sm:$0xff]  ;;  %1611 = vmatpush1.bf16.msra.mxu0 %v10077_v5  ;;  %1693 = vmatpush1.bf16.msra.mxu1 %v10079_v9  ;;  %v10087_v19 = vcombine.low %v54_v11, %v58_v12  ;;  %v12155_v56 = vsub.s32 %v312_v46, %v12140_v47 }
   0x7   :  { %1612 = vmatprep.subr.bf16.mxu0 %v10086_v10  ;;  %v10094_v20 = vcombine.high %v61_v13, %v65_v15  ;;  %1694 = vmatprep.subr.bf16.mxu1 %v10088_v14  ;;  %v10096_v21 = vcombine.high %v62_v16, %v66_v17  ;;  %v69_v22 = vld [vmem:[%s16240_s1 + $0xc0] sm:$0xff]  ;;  %v70_v24 = vld [vmem:[%s16240_s1 + $0xc8] sm:$0xff]  ;;  %v10093_v26 = vcombine.low %v61_v13, %v65_v15 }
   0x8   :  { %v73_v23 = vld [vmem:[%s16240_s1 + $0xe0] sm:$0xff]  ;;  %v74_v25 = vld [vmem:[%s16240_s1 + $0xe8] sm:$0xff]  ;;  %v10095_v27 = vcombine.low %v62_v16, %v66_v17 }
   0x9   :  { %v10102_v28 = vcombine.high %v69_v22, %v73_v23  ;;  %v10104_v29 = vcombine.high %v70_v24, %v74_v25  ;;  %v77_v30 = vld [vmem:[%s16240_s1 + $0x100] sm:$0xff]  ;;  %v78_v32 = vld [vmem:[%s16240_s1 + $0x108] sm:$0xff]  ;;  %v10101_v34 = vcombine.low %v69_v22, %v73_v23  ;;  %v10103_v38 = vcombine.low %v70_v24, %v74_v25 }
   0xa   :  { %1613 = vmatpush1.bf16.msra.mxu0 %v10085_v18  ;;  %1695 = vmatpush1.bf16.msra.mxu1 %v10087_v19  ;;  %v81_v31 = vld [vmem:[%s16240_s1 + $0x120] sm:$0xff]  ;;  %v82_v33 = vld [vmem:[%s16240_s1 + $0x128] sm:$0xff] }
   0xb   :  { %1614 = vmatprep.subr.bf16.mxu0 %v10094_v20  ;;  %1696 = vmatprep.subr.bf16.mxu1 %v10096_v21  ;;  %v10110_v39 = vcombine.high %v77_v30, %v81_v31  ;;  %v10112_v40 = vcombine.high %v78_v32, %v82_v33  ;;  %v85_v41 = vld [vmem:[%s16240_s1 + $0x140] sm:$0xff]  ;;  %v86_v43 = vld [vmem:[%s16240_s1 + $0x148] sm:$0xff]  ;;  %v10109_v45 = vcombine.low %v77_v30, %v81_v31 }
   0xc   :  { %v89_v42 = vld [vmem:[%s16240_s1 + $0x160] sm:$0xff]  ;;  %v90_v44 = vld [vmem:[%s16240_s1 + $0x168] sm:$0xff]  ;;  %v10111_v48 = vcombine.low %v78_v32, %v82_v33 }
   0xd   :  { %v10118_v49 = vcombine.high %v85_v41, %v89_v42  ;;  %v10120_v50 = vcombine.high %v86_v43, %v90_v44  ;;  %v93_v51 = vld [vmem:[%s16240_s1 + $0x180] sm:$0xff]  ;;  %v94_v53 = vld [vmem:[%s16240_s1 + $0x188] sm:$0xff]  ;;  %v10117_v55 = vcombine.low %v85_v41, %v89_v42  ;;  %v10119_v57 = vcombine.low %v86_v43, %v90_v44 }
   0xe   :  { %1615 = vmatpush1.bf16.msra.mxu0 %v10093_v26  ;;  %1697 = vmatpush1.bf16.msra.mxu1 %v10095_v27  ;;  %v97_v52 = vld [vmem:[%s16240_s1 + $0x1a0] sm:$0xff]  ;;  %v98_v54 = vld [vmem:[%s16240_s1 + $0x1a8] sm:$0xff] }
   0xf   :  { %1616 = vmatprep.subr.bf16.mxu0 %v10102_v28  ;;  %1698 = vmatprep.subr.bf16.mxu1 %v10104_v29  ;;  %v10126_v58 = vcombine.high %v93_v51, %v97_v52  ;;  %v12160_v59 = vld.sshfl [vmem:[%s16241_s0] sm:$0x33 pattern:$0x75316420]  ;;  %v10128_v60 = vcombine.high %v94_v53, %v98_v54  ;;  %v102_v0 = vld [vmem:[%s16240_s1 + $0x1c8] sm:$0xff]  ;;  %v10125_v2 = vcombine.low %v93_v51, %v97_v52 }
  0x10   :  { %v101_v61 = vld [vmem:[%s16240_s1 + $0x1c0] sm:$0xff]  ;;  %v309_v63 = vcombine.high %v12160_v59, %v12160_v59  ;;  %v106_v1 = vld [vmem:[%s16240_s1 + $0x1e8] sm:$0xff]  ;;  %v10127_v4 = vcombine.low %v94_v53, %v98_v54 }
  0x11   :  { %v105_v62 = vld [vmem:[%s16240_s1 + $0x1e0] sm:$0xff]  ;;  %v10136_v6 = vcombine.high %v102_v0, %v106_v1  ;;  %v110_v9 = vld [vmem:[%s16240_s1 + $0x208] sm:$0xff]  ;;  %v10135_v12 = vcombine.low %v102_v0, %v106_v1 }
  0x12   :  { %1617 = vmatpush1.bf16.msra.mxu0 %v10101_v34  ;;  %1699 = vmatpush1.bf16.msra.mxu1 %v10103_v38  ;;  %v12177_v3 = vrot.slane %v309_v63, %v12155_v56  ;;  %v10134_v5 = vcombine.high %v101_v61, %v105_v62  ;;  %v109_v7 = vld [vmem:[%s16240_s1 + $0x200] sm:$0xff]  ;;  %v114_v10 = vld [vmem:[%s16240_s1 + $0x228] sm:$0xff]  ;;  %v10133_v11 = vcombine.low %v101_v61, %v105_v62 }
  0x13   :  { %1618 = vmatprep.subr.bf16.mxu0 %v10110_v39  ;;  %1700 = vmatprep.subr.bf16.mxu1 %v10112_v40  ;;  %v113_v8 = vld [vmem:[%s16240_s1 + $0x220] sm:$0xff]  ;;  %v10144_v14 = vcombine.high %v110_v9, %v114_v10  ;;  %v118_v17 = vld [vmem:[%s16240_s1 + $0x248] sm:$0xff]  ;;  %v10143_v20 = vcombine.low %v110_v9, %v114_v10 }
  0x14   :  { %1642 = vmatprep.mubr.bf16.mxu0 %v12177_v3  ;;  %1724 = vmatprep.mubr.bf16.mxu1 %v12177_v3  ;;  %v10142_v13 = vcombine.high %v109_v7, %v113_v8  ;;  %v117_v15 = vld [vmem:[%s16240_s1 + $0x240] sm:$0xff]  ;;  %v122_v18 = vld [vmem:[%s16240_s1 + $0x268] sm:$0xff]  ;;  %v10141_v19 = vcombine.low %v109_v7, %v113_v8 }
  0x15   :  { %v121_v16 = vld [vmem:[%s16240_s1 + $0x260] sm:$0xff]  ;;  %v10152_v22 = vcombine.high %v118_v17, %v122_v18  ;;  %v126_v25 = vld [vmem:[%s16240_s1 + $0x288] sm:$0xff]  ;;  %v10151_v28 = vcombine.low %v118_v17, %v122_v18 }
  0x16   :  { %1619 = vmatpush1.bf16.msra.mxu0 %v10109_v45  ;;  %1701 = vmatpush1.bf16.msra.mxu1 %v10111_v48  ;;  %v10150_v21 = vcombine.high %v117_v15, %v121_v16  ;;  %v125_v23 = vld [vmem:[%s16240_s1 + $0x280] sm:$0xff]  ;;  %v130_v26 = vld [vmem:[%s16240_s1 + $0x2a8] sm:$0xff]  ;;  %v10149_v27 = vcombine.low %v117_v15, %v121_v16 }
  0x17   :  { %1620 = vmatprep.subr.bf16.mxu0 %v10118_v49  ;;  %1702 = vmatprep.subr.bf16.mxu1 %v10120_v50  ;;  %v129_v24 = vld [vmem:[%s16240_s1 + $0x2a0] sm:$0xff]  ;;  %v10160_v30 = vcombine.high %v126_v25, %v130_v26  ;;  %v134_v33 = vld [vmem:[%s16240_s1 + $0x2c8] sm:$0xff]  ;;  %v10159_v36 = vcombine.low %v126_v25, %v130_v26 }
  0x18   :  { %v10158_v29 = vcombine.high %v125_v23, %v129_v24  ;;  %v133_v31 = vld [vmem:[%s16240_s1 + $0x2c0] sm:$0xff]  ;;  %v138_v34 = vld [vmem:[%s16240_s1 + $0x2e8] sm:$0xff]  ;;  %v10157_v35 = vcombine.low %v125_v23, %v129_v24 }
  0x19   :  { %v137_v32 = vld [vmem:[%s16240_s1 + $0x2e0] sm:$0xff]  ;;  %v10168_v39 = vcombine.high %v134_v33, %v138_v34  ;;  %v142_v42 = vld [vmem:[%s16240_s1 + $0x308] sm:$0xff]  ;;  %v10167_v45 = vcombine.low %v134_v33, %v138_v34 }
  0x1a   :  { %1621 = vmatpush1.bf16.msra.mxu0 %v10117_v55  ;;  %1703 = vmatpush1.bf16.msra.mxu1 %v10119_v57  ;;  %v10166_v38 = vcombine.high %v133_v31, %v137_v32  ;;  %v141_v40 = vld [vmem:[%s16240_s1 + $0x300] sm:$0xff]  ;;  %v146_v43 = vld [vmem:[%s16240_s1 + $0x328] sm:$0xff]  ;;  %v10165_v44 = vcombine.low %v133_v31, %v137_v32 }
  0x1b   :  { %1622 = vmatprep.subr.bf16.mxu0 %v10126_v58  ;;  %1704 = vmatprep.subr.bf16.mxu1 %v10128_v60  ;;  %v145_v41 = vld [vmem:[%s16240_s1 + $0x320] sm:$0xff]  ;;  %v10176_v48 = vcombine.high %v142_v42, %v146_v43  ;;  %v150_v51 = vld [vmem:[%s16240_s1 + $0x348] sm:$0xff]  ;;  %v10175_v54 = vcombine.low %v142_v42, %v146_v43 }
  0x1c   :  { %v10174_v46 = vcombine.high %v141_v40, %v145_v41  ;;  %v149_v49 = vld [vmem:[%s16240_s1 + $0x340] sm:$0xff]  ;;  %v154_v52 = vld [vmem:[%s16240_s1 + $0x368] sm:$0xff]  ;;  %v10173_v53 = vcombine.low %v141_v40, %v145_v41 }
  0x1d   :  { %v153_v50 = vld [vmem:[%s16240_s1 + $0x360] sm:$0xff]  ;;  %v10184_v57 = vcombine.high %v150_v51, %v154_v52  ;;  %v158_v61 = vld [vmem:[%s16240_s1 + $0x388] sm:$0xff]  ;;  %v10183_v0 = vcombine.low %v150_v51, %v154_v52 }
  0x1e   :  { %1623 = vmatpush1.bf16.msra.mxu0 %v10125_v2  ;;  %1705 = vmatpush1.bf16.msra.mxu1 %v10127_v4  ;;  %v10182_v55 = vcombine.high %v149_v49, %v153_v50  ;;  %v157_v58 = vld [vmem:[%s16240_s1 + $0x380] sm:$0xff]  ;;  %v162_v62 = vld [vmem:[%s16240_s1 + $0x3a8] sm:$0xff]  ;;  %v10181_v63 = vcombine.low %v149_v49, %v153_v50 }
  0x1f   :  { %1624 = vmatprep.subr.bf16.mxu0 %v10134_v5  ;;  %1706 = vmatprep.subr.bf16.mxu1 %v10136_v6  ;;  %v161_v60 = vld [vmem:[%s16240_s1 + $0x3a0] sm:$0xff]  ;;  %v10192_v2 = vcombine.high %v158_v61, %v162_v62  ;;  %v166_v6 = vld [vmem:[%s16240_s1 + $0x3c8] sm:$0xff]  ;;  %v10191_v9 = vcombine.low %v158_v61, %v162_v62 }
  0x20   :  { %v10190_v1 = vcombine.high %v157_v58, %v161_v60  ;;  %v165_v4 = vld [vmem:[%s16240_s1 + $0x3c0] sm:$0xff]  ;;  %v170_v7 = vld [vmem:[%s16240_s1 + $0x3e8] sm:$0xff]  ;;  %v10189_v8 = vcombine.low %v157_v58, %v161_v60 }
  0x21   :  { %v169_v5 = vld [vmem:[%s16240_s1 + $0x3e0] sm:$0xff]  ;;  %v178_v15 = vld [vmem:[%s16240_s1 + $0x428] sm:$0xff]  ;;  %v10199_v17 = vcombine.low %v166_v6, %v170_v7 }
  0x22   :  { %1625 = vmatpush1.bf16.msra.mxu0 %v10133_v11  ;;  %1707 = vmatpush1.bf16.msra.mxu1 %v10135_v12  ;;  %v10198_v10 = vcombine.high %v165_v4, %v169_v5  ;;  %v10200_v11 = vcombine.high %v166_v6, %v170_v7  ;;  %v173_v12 = vld [vmem:[%s16240_s1 + $0x400] sm:$0xff]  ;;  %v10197_v16 = vcombine.low %v165_v4, %v169_v5  ;;  %v182_v23 = vld [vmem:[%s16240_s1 + $0x448] sm:$0xff] }
  0x23   :  { %1626 = vmatprep.subr.bf16.mxu0 %v10142_v13  ;;  %1708 = vmatprep.subr.bf16.mxu1 %v10144_v14  ;;  %v177_v13 = vld [vmem:[%s16240_s1 + $0x420] sm:$0xff]  ;;  %v174_v14 = vld [vmem:[%s16240_s1 + $0x408] sm:$0xff] }
  0x24   :  { %v10206_v18 = vcombine.high %v173_v12, %v177_v13  ;;  %v186_v24 = vld [vmem:[%s16240_s1 + $0x468] sm:$0xff]  ;;  %v10205_v25 = vcombine.low %v173_v12, %v177_v13  ;;  %v10207_v26 = vcombine.low %v174_v14, %v178_v15 }
  0x25   :  { %v194_v31 = vld [vmem:[%s16240_s1 + $0x4a8] sm:$0xff]  ;;  %v10215_v33 = vcombine.low %v182_v23, %v186_v24 }
  0x26   :  { %1627 = vmatpush1.bf16.msra.mxu0 %v10141_v19  ;;  %1709 = vmatpush1.bf16.msra.mxu1 %v10143_v20  ;;  %v10208_v19 = vcombine.high %v174_v14, %v178_v15  ;;  %v181_v20 = vld [vmem:[%s16240_s1 + $0x440] sm:$0xff]  ;;  %v202_v40 = vld [vmem:[%s16240_s1 + $0x4e8] sm:$0xff] }
  0x27   :  { %1628 = vmatprep.subr.bf16.mxu0 %v10150_v21  ;;  %1710 = vmatprep.subr.bf16.mxu1 %v10152_v22  ;;  %v185_v21 = vld [vmem:[%s16240_s1 + $0x460] sm:$0xff]  ;;  %v12297_v22 = vrot.slane %v12160_v59, %v12155_v56  ;;  %v210_v49 = vld [vmem:[%s16240_s1 + $0x528] sm:$0xff] }
  0x28   :  { %v189_v56 = vld [vmem:[%s16240_s1 + $0x480] sm:$0xff]  ;;  %v10213_v32 = vcombine.low %v181_v20, %v185_v21  ;;  %v218_v58 = vld [vmem:[%s16240_s1 + $0x568] sm:$0xff] }
  0x29   :  { %v193_v59 = vld [vmem:[%s16240_s1 + $0x4a0] sm:$0xff]  ;;  %v226_v4 = vld [vmem:[%s16240_s1 + $0x5a8] sm:$0xff] }
  0x2a   :  { %1629 = vmatpush1.bf16.msra.mxu0 %v10149_v27  ;;  %1711 = vmatpush1.bf16.msra.mxu1 %v10151_v28  ;;  %v10214_v27 = vcombine.high %v181_v20, %v185_v21  ;;  %v10216_v28 = vcombine.high %v182_v23, %v186_v24  ;;  %v10222_v34 = vcombine.high %v189_v56, %v193_v59  ;;  %v234_v12 = vld [vmem:[%s16240_s1 + $0x5e8] sm:$0xff] }
  0x2b   :  { %1630 = vmatprep.subr.bf16.mxu0 %v10158_v29  ;;  %1712 = vmatprep.subr.bf16.mxu1 %v10160_v30  ;;  %v12313_v29 = vcombine.high %v12177_v3, %v12177_v3  ;;  %v190_v30 = vld [vmem:[%s16240_s1 + $0x488] sm:$0xff]  ;;  %v10221_v41 = vcombine.low %v189_v56, %v193_v59 }
  0x2c   :  { %v10223_v42 = vcombine.low %v190_v30, %v194_v31  ;;  %v242_v20 = vld [vmem:[%s16240_s1 + $0x628] sm:$0xff] }
  0x2d   :  { %v250_v56 = vld [vmem:[%s16240_s1 + $0x668] sm:$0xff] }
  0x2e   :  { %1631 = vmatpush1.bf16.msra.mxu0 %v10157_v35  ;;  %1713 = vmatpush1.bf16.msra.mxu1 %v10159_v36  ;;  %v10224_v35 = vcombine.high %v190_v30, %v194_v31  ;;  %v197_v36 = vld [vmem:[%s16240_s1 + $0x4c0] sm:$0xff] }
  0x2f   :  { %1632 = vmatprep.subr.bf16.mxu0 %v10166_v38  ;;  %1714 = vmatprep.subr.bf16.mxu1 %v10168_v39  ;;  %v201_v38 = vld [vmem:[%s16240_s1 + $0x4e0] sm:$0xff]  ;;  %v198_v39 = vld [vmem:[%s16240_s1 + $0x4c8] sm:$0xff] }
  0x30   :  { %v10230_v43 = vcombine.high %v197_v36, %v201_v38  ;;  %v10229_v50 = vcombine.low %v197_v36, %v201_v38  ;;  %v10231_v51 = vcombine.low %v198_v39, %v202_v40  ;;  %v258_v36 = vld [vmem:[%s16240_s1 + $0x6a8] sm:$0xff] }
  0x32   :  { %1633 = vmatpush1.bf16.msra.mxu0 %v10165_v44  ;;  %1715 = vmatpush1.bf16.msra.mxu1 %v10167_v45  ;;  %v10232_v44 = vcombine.high %v198_v39, %v202_v40  ;;  %v205_v45 = vld [vmem:[%s16240_s1 + $0x500] sm:$0xff] }
  0x33   :  { %1634 = vmatprep.subr.bf16.mxu0 %v10174_v46  ;;  %1716 = vmatprep.subr.bf16.mxu1 %v10176_v48  ;;  %v209_v46 = vld [vmem:[%s16240_s1 + $0x520] sm:$0xff]  ;;  %v206_v48 = vld [vmem:[%s16240_s1 + $0x508] sm:$0xff] }
  0x34   :  { %v10238_v52 = vcombine.high %v205_v45, %v209_v46  ;;  %v10237_v60 = vcombine.low %v205_v45, %v209_v46  ;;  %v10239_v61 = vcombine.low %v206_v48, %v210_v49  ;;  %v266_v45 = vld [vmem:[%s16240_s1 + $0x6e8] sm:$0xff] }
  0x36   :  { %1635 = vmatpush1.bf16.msra.mxu0 %v10173_v53  ;;  %1717 = vmatpush1.bf16.msra.mxu1 %v10175_v54  ;;  %v10240_v53 = vcombine.high %v206_v48, %v210_v49  ;;  %v213_v54 = vld [vmem:[%s16240_s1 + $0x540] sm:$0xff] }
  0x37   :  { %1636 = vmatprep.subr.bf16.mxu0 %v10182_v55  ;;  %1718 = vmatprep.subr.bf16.mxu1 %v10184_v57  ;;  %v217_v55 = vld [vmem:[%s16240_s1 + $0x560] sm:$0xff]  ;;  %v214_v57 = vld [vmem:[%s16240_s1 + $0x548] sm:$0xff] }
  0x38   :  { %v10246_v62 = vcombine.high %v213_v54, %v217_v55  ;;  %v10245_v5 = vcombine.low %v213_v54, %v217_v55  ;;  %v10247_v6 = vcombine.low %v214_v57, %v218_v58  ;;  %v274_v54 = vld [vmem:[%s16240_s1 + $0x728] sm:$0xff] }
  0x3a   :  { %1637 = vmatpush1.bf16.msra.mxu0 %v10181_v63  ;;  %1719 = vmatpush1.bf16.msra.mxu1 %v10183_v0  ;;  %v10248_v63 = vcombine.high %v214_v57, %v218_v58  ;;  %v221_v0 = vld [vmem:[%s16240_s1 + $0x580] sm:$0xff] }
  0x3b   :  { %1638 = vmatprep.subr.bf16.mxu0 %v10190_v1  ;;  %1720 = vmatprep.subr.bf16.mxu1 %v10192_v2  ;;  %v225_v1 = vld [vmem:[%s16240_s1 + $0x5a0] sm:$0xff]  ;;  %v222_v2 = vld [vmem:[%s16240_s1 + $0x588] sm:$0xff] }
  0x3c   :  { %v10254_v7 = vcombine.high %v221_v0, %v225_v1  ;;  %v10253_v13 = vcombine.low %v221_v0, %v225_v1  ;;  %v10255_v14 = vcombine.low %v222_v2, %v226_v4  ;;  %v282_v0 = vld [vmem:[%s16240_s1 + $0x768] sm:$0xff] }
  0x3e   :  { %1639 = vmatpush1.bf16.msra.mxu0 %v10189_v8  ;;  %1721 = vmatpush1.bf16.msra.mxu1 %v10191_v9  ;;  %v10256_v8 = vcombine.high %v222_v2, %v226_v4  ;;  %v229_v9 = vld [vmem:[%s16240_s1 + $0x5c0] sm:$0xff] }
  0x3f   :  { %1640 = vmatprep.subr.bf16.mxu0 %v10198_v10  ;;  %1722 = vmatprep.subr.bf16.mxu1 %v10200_v11  ;;  %v233_v10 = vld [vmem:[%s16240_s1 + $0x5e0] sm:$0xff]  ;;  %v230_v11 = vld [vmem:[%s16240_s1 + $0x5c8] sm:$0xff] }
  0x40   :  { %v10262_v15 = vcombine.high %v229_v9, %v233_v10  ;;  %v10261_v21 = vcombine.low %v229_v9, %v233_v10  ;;  %v10263_v23 = vcombine.low %v230_v11, %v234_v12  ;;  %v290_v9 = vld [vmem:[%s16240_s1 + $0x7a8] sm:$0xff] }
  0x42   :  { %1641 = vmatpush1.bf16.msra.mxu0 %v10197_v16  ;;  %1723 = vmatpush1.bf16.msra.mxu1 %v10199_v17  ;;  %v10264_v16 = vcombine.high %v230_v11, %v234_v12  ;;  %v237_v17 = vld [vmem:[%s16240_s1 + $0x600] sm:$0xff] }
  0x43   :  { %1651 = vmatprep.subr.bf16.mxu0 %v10206_v18  ;;  %1733 = vmatprep.subr.bf16.mxu1 %v10208_v19  ;;  %v241_v18 = vld [vmem:[%s16240_s1 + $0x620] sm:$0xff]  ;;  %v238_v19 = vld [vmem:[%s16240_s1 + $0x608] sm:$0xff] }
  0x44   :  { %v10270_v24 = vcombine.high %v237_v17, %v241_v18  ;;  %v10269_v59 = vcombine.low %v237_v17, %v241_v18  ;;  %v10271_v30 = vcombine.low %v238_v19, %v242_v20  ;;  %v298_v17 = vld [vmem:[%s16240_s1 + $0x7e8] sm:$0xff] }
  0x45   :  { %1643 = vmatmul.mubr.bf16.vlgmr.msra.gmra.mrb[0].mxu0 %v12297_v22  ;;  %1725 = vmatmul.mubr.bf16.vlgmr.msra.gmra.mrb[0].mxu1 %v12297_v22 }
  0x46   :  { %1652 = vmatpush1.bf16.msra.mxu0 %v10205_v25  ;;  %1734 = vmatpush1.bf16.msra.mxu1 %v10207_v26  ;;  %v10272_v25 = vcombine.high %v238_v19, %v242_v20  ;;  %v245_v26 = vld [vmem:[%s16240_s1 + $0x640] sm:$0xff] }
  0x47   :  { %1653 = vmatprep.subr.bf16.mxu0 %v10214_v27  ;;  %1735 = vmatprep.subr.bf16.mxu1 %v10216_v28  ;;  %v249_v27 = vld [vmem:[%s16240_s1 + $0x660] sm:$0xff]  ;;  %v246_v28 = vld [vmem:[%s16240_s1 + $0x648] sm:$0xff] }
  0x48   :  { %1683 = vmatprep.mubr.bf16.mxu0 %v12313_v29  ;;  %1765 = vmatprep.mubr.bf16.mxu1 %v12313_v29  ;;  %v10278_v31 = vcombine.high %v245_v26, %v249_v27  ;;  %v10277_v38 = vcombine.low %v245_v26, %v249_v27  ;;  %v10279_v39 = vcombine.low %v246_v28, %v250_v56  ;;  %v52_v26 = vld [vmem:[%s16240_s1 + $0x38] sm:$0xff] }
  0x4a   :  { %1654 = vmatpush1.bf16.msra.mxu0 %v10213_v32  ;;  %1736 = vmatpush1.bf16.msra.mxu1 %v10215_v33  ;;  %v10280_v32 = vcombine.high %v246_v28, %v250_v56  ;;  %v253_v33 = vld [vmem:[%s16240_s1 + $0x680] sm:$0xff] }
  0x4b   :  { %1655 = vmatprep.subr.bf16.mxu0 %v10222_v34  ;;  %1737 = vmatprep.subr.bf16.mxu1 %v10224_v35  ;;  %v257_v34 = vld [vmem:[%s16240_s1 + $0x6a0] sm:$0xff]  ;;  %v254_v35 = vld [vmem:[%s16240_s1 + $0x688] sm:$0xff] }
  0x4c   :  { %v10286_v40 = vcombine.high %v253_v33, %v257_v34  ;;  %v10285_v46 = vcombine.low %v253_v33, %v257_v34  ;;  %v10287_v48 = vcombine.low %v254_v35, %v258_v36  ;;  %v56_v33 = vld [vmem:[%s16240_s1 + $0x58] sm:$0xff] }
  0x4d   :  { %v60_v34 = vld [vmem:[%s16240_s1 + $0x78] sm:$0xff] }
  0x4e   :  { %1656 = vmatpush1.bf16.msra.mxu0 %v10221_v41  ;;  %1738 = vmatpush1.bf16.msra.mxu1 %v10223_v42  ;;  %v10288_v41 = vcombine.high %v254_v35, %v258_v36  ;;  %v261_v42 = vld [vmem:[%s16240_s1 + $0x6c0] sm:$0xff] }
  0x4f   :  { %1657 = vmatprep.subr.bf16.mxu0 %v10230_v43  ;;  %1739 = vmatprep.subr.bf16.mxu1 %v10232_v44  ;;  %v265_v43 = vld [vmem:[%s16240_s1 + $0x6e0] sm:$0xff]  ;;  %v262_v44 = vld [vmem:[%s16240_s1 + $0x6c8] sm:$0xff] }
  0x50   :  { %v10294_v49 = vcombine.high %v261_v42, %v265_v43  ;;  %v10293_v55 = vcombine.low %v261_v42, %v265_v43  ;;  %v10295_v57 = vcombine.low %v262_v44, %v266_v45  ;;  %v64_v42 = vld [vmem:[%s16240_s1 + $0x98] sm:$0xff] }
  0x51   :  { %v68_v43 = vld [vmem:[%s16240_s1 + $0xb8] sm:$0xff] }
  0x52   :  { %1658 = vmatpush1.bf16.msra.mxu0 %v10229_v50  ;;  %1740 = vmatpush1.bf16.msra.mxu1 %v10231_v51  ;;  %v10296_v50 = vcombine.high %v262_v44, %v266_v45  ;;  %v269_v51 = vld [vmem:[%s16240_s1 + $0x700] sm:$0xff]  ;;  %v10091_v45 = vcombine.low %v56_v33, %v60_v34 }
  0x53   :  { %1659 = vmatprep.subr.bf16.mxu0 %v10238_v52  ;;  %1741 = vmatprep.subr.bf16.mxu1 %v10240_v53  ;;  %v273_v52 = vld [vmem:[%s16240_s1 + $0x720] sm:$0xff]  ;;  %v270_v53 = vld [vmem:[%s16240_s1 + $0x708] sm:$0xff] }
  0x54   :  { %v10302_v58 = vcombine.high %v269_v51, %v273_v52  ;;  %v10301_v1 = vcombine.low %v269_v51, %v273_v52  ;;  %v10303_v2 = vcombine.low %v270_v53, %v274_v54  ;;  %v72_v51 = vld [vmem:[%s16240_s1 + $0xd8] sm:$0xff] }
  0x55   :  { %v76_v52 = vld [vmem:[%s16240_s1 + $0xf8] sm:$0xff] }
  0x56   :  { %1660 = vmatpush1.bf16.msra.mxu0 %v10237_v60  ;;  %1742 = vmatpush1.bf16.msra.mxu1 %v10239_v61  ;;  %v10304_v60 = vcombine.high %v270_v53, %v274_v54  ;;  %v277_v61 = vld [vmem:[%s16240_s1 + $0x740] sm:$0xff]  ;;  %v10099_v54 = vcombine.low %v64_v42, %v68_v43 }
  0x57   :  { %1661 = vmatprep.subr.bf16.mxu0 %v10246_v62  ;;  %1743 = vmatprep.subr.bf16.mxu1 %v10248_v63  ;;  %v281_v62 = vld [vmem:[%s16240_s1 + $0x760] sm:$0xff]  ;;  %v278_v63 = vld [vmem:[%s16240_s1 + $0x748] sm:$0xff] }
  0x58   :  { %v10310_v4 = vcombine.high %v277_v61, %v281_v62  ;;  %v10309_v10 = vcombine.low %v277_v61, %v281_v62  ;;  %v10311_v11 = vcombine.low %v278_v63, %v282_v0  ;;  %v84_v61 = vld [vmem:[%s16240_s1 + $0x138] sm:$0xff] }
  0x5a   :  { %1662 = vmatpush1.bf16.msra.mxu0 %v10245_v5  ;;  %1744 = vmatpush1.bf16.msra.mxu1 %v10247_v6  ;;  %v10312_v5 = vcombine.high %v278_v63, %v282_v0  ;;  %v285_v6 = vld [vmem:[%s16240_s1 + $0x780] sm:$0xff]  ;;  %v10107_v63 = vcombine.low %v72_v51, %v76_v52 }
  0x5b   :  { %1663 = vmatprep.subr.bf16.mxu0 %v10254_v7  ;;  %1745 = vmatprep.subr.bf16.mxu1 %v10256_v8  ;;  %v289_v7 = vld [vmem:[%s16240_s1 + $0x7a0] sm:$0xff]  ;;  %v286_v8 = vld [vmem:[%s16240_s1 + $0x788] sm:$0xff] }
  0x5c   :  { %v10318_v12 = vcombine.high %v285_v6, %v289_v7  ;;  %v10317_v18 = vcombine.low %v285_v6, %v289_v7  ;;  %v10319_v19 = vcombine.low %v286_v8, %v290_v9  ;;  %v92_v6 = vld [vmem:[%s16240_s1 + $0x178] sm:$0xff] }
  0x5e   :  { %1664 = vmatpush1.bf16.msra.mxu0 %v10253_v13  ;;  %1746 = vmatpush1.bf16.msra.mxu1 %v10255_v14  ;;  %v10320_v13 = vcombine.high %v286_v8, %v290_v9  ;;  %v293_v14 = vld [vmem:[%s16240_s1 + $0x7c0] sm:$0xff] }
  0x5f   :  { %1665 = vmatprep.subr.bf16.mxu0 %v10262_v15  ;;  %1747 = vmatprep.subr.bf16.mxu1 %v10264_v16  ;;  %v297_v15 = vld [vmem:[%s16240_s1 + $0x7e0] sm:$0xff]  ;;  %v294_v16 = vld [vmem:[%s16240_s1 + $0x7c8] sm:$0xff] }
  0x60   :  { %v10326_v20 = vcombine.high %v293_v14, %v297_v15  ;;  %v10325_v27 = vcombine.low %v293_v14, %v297_v15  ;;  %v10327_v28 = vcombine.low %v294_v16, %v298_v17  ;;  %v100_v14 = vld [vmem:[%s16240_s1 + $0x1b8] sm:$0xff] }
  0x62   :  { %1666 = vmatpush1.bf16.msra.mxu0 %v10261_v21  ;;  %1748 = vmatpush1.bf16.msra.mxu1 %v10263_v23  ;;  %v10328_v21 = vcombine.high %v294_v16, %v298_v17  ;;  %v47_v23 = vld [vmem:[%s16240_s1 + $0x10] sm:$0xff] }
  0x63   :  { %1667 = vmatprep.subr.bf16.mxu0 %v10270_v24  ;;  %1749 = vmatprep.subr.bf16.mxu1 %v10272_v25  ;;  %v51_v24 = vld [vmem:[%s16240_s1 + $0x30] sm:$0xff]  ;;  %v48_v25 = vld [vmem:[%s16240_s1 + $0x18] sm:$0xff] }
  0x64   :  { %v10082_v56 = vcombine.high %v47_v23, %v51_v24  ;;  %v10081_v35 = vcombine.low %v47_v23, %v51_v24  ;;  %v10083_v36 = vcombine.low %v48_v25, %v52_v26  ;;  %v108_v23 = vld [vmem:[%s16240_s1 + $0x1f8] sm:$0xff] }
  0x66   :  { %1668 = vmatpush1.bf16.msra.mxu0 %v10269_v59  ;;  %1750 = vmatpush1.bf16.msra.mxu1 %v10271_v30  ;;  %v10084_v59 = vcombine.high %v48_v25, %v52_v26  ;;  %v55_v30 = vld [vmem:[%s16240_s1 + $0x50] sm:$0xff] }
  0x67   :  { %1669 = vmatprep.subr.bf16.mxu0 %v10278_v31  ;;  %1751 = vmatprep.subr.bf16.mxu1 %v10280_v32  ;;  %v59_v31 = vld [vmem:[%s16240_s1 + $0x70] sm:$0xff]  ;;  %v12501_v32 = vcombine.high %v12297_v22, %v12297_v22 }
  0x68   :  { %v10089_v44 = vcombine.low %v55_v30, %v59_v31 }
  0x6a   :  { %1670 = vmatpush1.bf16.msra.mxu0 %v10277_v38  ;;  %1752 = vmatpush1.bf16.msra.mxu1 %v10279_v39  ;;  %v10090_v38 = vcombine.high %v55_v30, %v59_v31  ;;  %v10092_v39 = vcombine.high %v56_v33, %v60_v34  ;;  %v116_v30 = vld [vmem:[%s16240_s1 + $0x238] sm:$0xff] }
  0x6b   :  { %1671 = vmatprep.subr.bf16.mxu0 %v10286_v40  ;;  %1753 = vmatprep.subr.bf16.mxu1 %v10288_v41  ;;  %v63_v40 = vld [vmem:[%s16240_s1 + $0x90] sm:$0xff] }
  0x6c   :  { %v67_v41 = vld [vmem:[%s16240_s1 + $0xb0] sm:$0xff] }
  0x6d   :  { %v10097_v53 = vcombine.low %v63_v40, %v67_v41 }
  0x6e   :  { %1672 = vmatpush1.bf16.msra.mxu0 %v10285_v46  ;;  %1754 = vmatpush1.bf16.msra.mxu1 %v10287_v48  ;;  %v10098_v46 = vcombine.high %v63_v40, %v67_v41  ;;  %v71_v48 = vld [vmem:[%s16240_s1 + $0xd0] sm:$0xff]  ;;  %v124_v40 = vld [vmem:[%s16240_s1 + $0x278] sm:$0xff] }
  0x6f   :  { %1673 = vmatprep.subr.bf16.mxu0 %v10294_v49  ;;  %1755 = vmatprep.subr.bf16.mxu1 %v10296_v50  ;;  %v10100_v49 = vcombine.high %v64_v42, %v68_v43  ;;  %v75_v50 = vld [vmem:[%s16240_s1 + $0xf0] sm:$0xff] }
  0x70   :  { %v10105_v62 = vcombine.low %v71_v48, %v75_v50 }
  0x72   :  { %1674 = vmatpush1.bf16.msra.mxu0 %v10293_v55  ;;  %1756 = vmatpush1.bf16.msra.mxu1 %v10295_v57  ;;  %v10106_v55 = vcombine.high %v71_v48, %v75_v50  ;;  %v79_v57 = vld [vmem:[%s16240_s1 + $0x110] sm:$0xff] }
  0x73   :  { %1675 = vmatprep.subr.bf16.mxu0 %v10302_v58  ;;  %1757 = vmatprep.subr.bf16.mxu1 %v10304_v60  ;;  %v10108_v58 = vcombine.high %v72_v51, %v76_v52  ;;  %v83_v60 = vld [vmem:[%s16240_s1 + $0x130] sm:$0xff] }
  0x74   :  { %v10114_v0 = vcombine.high %v79_v57, %v83_v60  ;;  %v10113_v7 = vcombine.low %v79_v57, %v83_v60 }
  0x76   :  { %1676 = vmatpush1.bf16.msra.mxu0 %v10301_v1  ;;  %1758 = vmatpush1.bf16.msra.mxu1 %v10303_v2  ;;  %v87_v1 = vld [vmem:[%s16240_s1 + $0x150] sm:$0xff] }
  0x77   :  { %1677 = vmatprep.subr.bf16.mxu0 %v10310_v4  ;;  %1759 = vmatprep.subr.bf16.mxu1 %v10312_v5  ;;  %v91_v4 = vld [vmem:[%s16240_s1 + $0x170] sm:$0xff]  ;;  %v88_v5 = vld [vmem:[%s16240_s1 + $0x158] sm:$0xff] }
  0x78   :  { %v10122_v9 = vcombine.high %v87_v1, %v91_v4  ;;  %v10121_v15 = vcombine.low %v87_v1, %v91_v4  ;;  %v10123_v16 = vcombine.low %v88_v5, %v92_v6 }
  0x7a   :  { %1678 = vmatpush1.bf16.msra.mxu0 %v10309_v10  ;;  %1760 = vmatpush1.bf16.msra.mxu1 %v10311_v11  ;;  %v95_v10 = vld [vmem:[%s16240_s1 + $0x190] sm:$0xff] }
  0x7b   :  { %1679 = vmatprep.subr.bf16.mxu0 %v10318_v12  ;;  %1761 = vmatprep.subr.bf16.mxu1 %v10320_v13  ;;  %v99_v11 = vld [vmem:[%s16240_s1 + $0x1b0] sm:$0xff]  ;;  %v96_v12 = vld [vmem:[%s16240_s1 + $0x198] sm:$0xff]  ;;  %v10124_v13 = vcombine.high %v88_v5, %v92_v6 }
  0x7c   :  { %v10130_v17 = vcombine.high %v95_v10, %v99_v11  ;;  %v10129_v24 = vcombine.low %v95_v10, %v99_v11  ;;  %v10131_v25 = vcombine.low %v96_v12, %v100_v14  ;;  %v156_v11 = vld [vmem:[%s16240_s1 + $0x378] sm:$0xff] }
  0x7e   :  { %1680 = vmatpush1.bf16.msra.mxu0 %v10317_v18  ;;  %1762 = vmatpush1.bf16.msra.mxu1 %v10319_v19  ;;  %v103_v18 = vld [vmem:[%s16240_s1 + $0x1d0] sm:$0xff] }
  0x7f   :  { %1681 = vmatprep.subr.bf16.mxu0 %v10326_v20  ;;  %1763 = vmatprep.subr.bf16.mxu1 %v10328_v21  ;;  %v107_v19 = vld [vmem:[%s16240_s1 + $0x1f0] sm:$0xff]  ;;  %v104_v20 = vld [vmem:[%s16240_s1 + $0x1d8] sm:$0xff]  ;;  %v10132_v21 = vcombine.high %v96_v12, %v100_v14 }
  0x80   :  { %v10138_v26 = vcombine.high %v103_v18, %v107_v19  ;;  %v10137_v31 = vcombine.low %v103_v18, %v107_v19  ;;  %v10139_v33 = vcombine.low %v104_v20, %v108_v23  ;;  %v164_v19 = vld [vmem:[%s16240_s1 + $0x3b8] sm:$0xff] }
  0x82   :  { %1682 = vmatpush1.bf16.msra.mxu0 %v10325_v27  ;;  %1764 = vmatpush1.bf16.msra.mxu1 %v10327_v28  ;;  %v111_v27 = vld [vmem:[%s16240_s1 + $0x210] sm:$0xff] }
  0x83   :  { %1774 = vmatprep.subr.bf16.mxu0 %v10082_v56  ;;  %1856 = vmatprep.subr.bf16.mxu1 %v10084_v59  ;;  %v115_v28 = vld [vmem:[%s16240_s1 + $0x230] sm:$0xff]  ;;  %v112_v56 = vld [vmem:[%s16240_s1 + $0x218] sm:$0xff]  ;;  %v10140_v59 = vcombine.high %v104_v20, %v108_v23 }
  0x84   :  { %v10146_v34 = vcombine.high %v111_v27, %v115_v28  ;;  %v10145_v41 = vcombine.low %v111_v27, %v115_v28  ;;  %v10147_v42 = vcombine.low %v112_v56, %v116_v30  ;;  %v172_v28 = vld [vmem:[%s16240_s1 + $0x3f8] sm:$0xff] }
  0x85   :  { %1684 = vmatmul.mubr.bf16.vlgmr.msra.gmra.mrb[0].mxu0 %v12501_v32  ;;  %1766 = vmatmul.mubr.bf16.vlgmr.msra.gmra.mrb[0].mxu1 %v12501_v32 }
  0x86   :  { %1775 = vmatpush1.bf16.msra.mxu0 %v10081_v35  ;;  %1857 = vmatpush1.bf16.msra.mxu1 %v10083_v36  ;;  %v119_v35 = vld [vmem:[%s16240_s1 + $0x250] sm:$0xff] }
  0x87   :  { %1776 = vmatprep.subr.bf16.mxu0 %v10090_v38  ;;  %1858 = vmatprep.subr.bf16.mxu1 %v10092_v39  ;;  %v123_v36 = vld [vmem:[%s16240_s1 + $0x270] sm:$0xff]  ;;  %v120_v38 = vld [vmem:[%s16240_s1 + $0x258] sm:$0xff]  ;;  %v10148_v39 = vcombine.high %v112_v56, %v116_v30 }
  0x88   :  { %1806 = vmatprep.mubr.bf16.mxu0 %v12177_v3  ;;  %1888 = vmatprep.mubr.bf16.mxu1 %v12177_v3  ;;  %v80_v3 = vld [vmem:[%s16240_s1 + $0x118] sm:$0xff]  ;;  %v10154_v43 = vcombine.high %v119_v35, %v123_v36  ;;  %v10156_v48 = vcombine.high %v120_v38, %v124_v40  ;;  %v10153_v50 = vcombine.low %v119_v35, %v123_v36 }
  0x89   :  { %v10116_v2 = vcombine.high %v80_v3, %v84_v61  ;;  %v10115_v8 = vcombine.low %v80_v3, %v84_v61  ;;  %v10155_v51 = vcombine.low %v120_v38, %v124_v40  ;;  %v180_v36 = vld [vmem:[%s16240_s1 + $0x438] sm:$0xff]  ;;  %v187_v40 = vld [vmem:[%s16240_s1 + $0x470] sm:$0xff] }
  0x8a   :  { %1777 = vmatpush1.bf16.msra.mxu0 %v10089_v44  ;;  %1859 = vmatpush1.bf16.msra.mxu1 %v10091_v45  ;;  %v127_v44 = vld [vmem:[%s16240_s1 + $0x290] sm:$0xff] }
  0x8b   :  { %1778 = vmatprep.subr.bf16.mxu0 %v10098_v46  ;;  %1860 = vmatprep.subr.bf16.mxu1 %v10100_v49  ;;  %v131_v45 = vld [vmem:[%s16240_s1 + $0x2b0] sm:$0xff]  ;;  %v128_v46 = vld [vmem:[%s16240_s1 + $0x298] sm:$0xff] }
  0x8c   :  { %v132_v49 = vld [vmem:[%s16240_s1 + $0x2b8] sm:$0xff]  ;;  %v10162_v52 = vcombine.high %v127_v44, %v131_v45  ;;  %v10161_v60 = vcombine.low %v127_v44, %v131_v45 }
  0x8d   :  { %v10164_v57 = vcombine.high %v128_v46, %v132_v49  ;;  %v10163_v3 = vcombine.low %v128_v46, %v132_v49  ;;  %v188_v44 = vld [vmem:[%s16240_s1 + $0x478] sm:$0xff]  ;;  %v195_v49 = vld [vmem:[%s16240_s1 + $0x4b0] sm:$0xff] }
  0x8e   :  { %1779 = vmatpush1.bf16.msra.mxu0 %v10097_v53  ;;  %1861 = vmatpush1.bf16.msra.mxu1 %v10099_v54  ;;  %v135_v53 = vld [vmem:[%s16240_s1 + $0x2d0] sm:$0xff] }
  0x8f   :  { %1780 = vmatprep.subr.bf16.mxu0 %v10106_v55  ;;  %1862 = vmatprep.subr.bf16.mxu1 %v10108_v58  ;;  %v139_v54 = vld [vmem:[%s16240_s1 + $0x2f0] sm:$0xff]  ;;  %v136_v55 = vld [vmem:[%s16240_s1 + $0x2d8] sm:$0xff] }
  0x90   :  { %v140_v58 = vld [vmem:[%s16240_s1 + $0x2f8] sm:$0xff]  ;;  %v10170_v61 = vcombine.high %v135_v53, %v139_v54  ;;  %v10169_v4 = vcombine.low %v135_v53, %v139_v54 }
  0x91   :  { %v10172_v1 = vcombine.high %v136_v55, %v140_v58  ;;  %v10171_v5 = vcombine.low %v136_v55, %v140_v58  ;;  %v196_v53 = vld [vmem:[%s16240_s1 + $0x4b8] sm:$0xff]  ;;  %v203_v58 = vld [vmem:[%s16240_s1 + $0x4f0] sm:$0xff] }
  0x92   :  { %1781 = vmatpush1.bf16.msra.mxu0 %v10105_v62  ;;  %1863 = vmatpush1.bf16.msra.mxu1 %v10107_v63  ;;  %v143_v62 = vld [vmem:[%s16240_s1 + $0x310] sm:$0xff] }
  0x93   :  { %1782 = vmatprep.subr.bf16.mxu0 %v10114_v0  ;;  %1864 = vmatprep.subr.bf16.mxu1 %v10116_v2  ;;  %v147_v63 = vld [vmem:[%s16240_s1 + $0x330] sm:$0xff]  ;;  %v144_v0 = vld [vmem:[%s16240_s1 + $0x318] sm:$0xff] }
  0x94   :  { %v148_v2 = vld [vmem:[%s16240_s1 + $0x338] sm:$0xff]  ;;  %v10178_v6 = vcombine.high %v143_v62, %v147_v63  ;;  %v10177_v12 = vcombine.low %v143_v62, %v147_v63 }
  0x95   :  { %v10180_v10 = vcombine.high %v144_v0, %v148_v2 }
  0x96   :  { %1783 = vmatpush1.bf16.msra.mxu0 %v10113_v7  ;;  %1865 = vmatpush1.bf16.msra.mxu1 %v10115_v8  ;;  %v151_v7 = vld [vmem:[%s16240_s1 + $0x350] sm:$0xff] }
  0x97   :  { %1784 = vmatprep.subr.bf16.mxu0 %v10122_v9  ;;  %1866 = vmatprep.subr.bf16.mxu1 %v10124_v13  ;;  %v155_v8 = vld [vmem:[%s16240_s1 + $0x370] sm:$0xff]  ;;  %v152_v9 = vld [vmem:[%s16240_s1 + $0x358] sm:$0xff]  ;;  %v10179_v13 = vcombine.low %v144_v0, %v148_v2 }
  0x98   :  { %v10186_v14 = vcombine.high %v151_v7, %v155_v8  ;;  %v10188_v18 = vcombine.high %v152_v9, %v156_v11  ;;  %v10185_v20 = vcombine.low %v151_v7, %v155_v8  ;;  %v207_v0 = vld [vmem:[%s16240_s1 + $0x510] sm:$0xff] }
  0x99   :  { %v215_v8 = vld [vmem:[%s16240_s1 + $0x550] sm:$0xff] }
  0x9a   :  { %1785 = vmatpush1.bf16.msra.mxu0 %v10121_v15  ;;  %1867 = vmatpush1.bf16.msra.mxu1 %v10123_v16  ;;  %v159_v15 = vld [vmem:[%s16240_s1 + $0x390] sm:$0xff] }
  0x9b   :  { %1786 = vmatprep.subr.bf16.mxu0 %v10130_v17  ;;  %1868 = vmatprep.subr.bf16.mxu1 %v10132_v21  ;;  %v163_v16 = vld [vmem:[%s16240_s1 + $0x3b0] sm:$0xff]  ;;  %v160_v17 = vld [vmem:[%s16240_s1 + $0x398] sm:$0xff]  ;;  %v10187_v21 = vcombine.low %v152_v9, %v156_v11 }
  0x9c   :  { %v10194_v23 = vcombine.high %v159_v15, %v163_v16  ;;  %v10196_v27 = vcombine.high %v160_v17, %v164_v19  ;;  %v10193_v56 = vcombine.low %v159_v15, %v163_v16  ;;  %v219_v9 = vld [vmem:[%s16240_s1 + $0x570] sm:$0xff] }
  0x9d   :  { %v223_v16 = vld [vmem:[%s16240_s1 + $0x590] sm:$0xff] }
  0x9e   :  { %1787 = vmatpush1.bf16.msra.mxu0 %v10129_v24  ;;  %1869 = vmatpush1.bf16.msra.mxu1 %v10131_v25  ;;  %v167_v24 = vld [vmem:[%s16240_s1 + $0x3d0] sm:$0xff] }
  0x9f   :  { %1788 = vmatprep.subr.bf16.mxu0 %v10138_v26  ;;  %1870 = vmatprep.subr.bf16.mxu1 %v10140_v59  ;;  %v171_v25 = vld [vmem:[%s16240_s1 + $0x3f0] sm:$0xff]  ;;  %v168_v26 = vld [vmem:[%s16240_s1 + $0x3d8] sm:$0xff]  ;;  %v10195_v59 = vcombine.low %v160_v17, %v164_v19  ;;  %v10250_v19 = vcombine.high %v215_v8, %v219_v9 }
  0xa0   :  { %v10202_v30 = vcombine.high %v167_v24, %v171_v25  ;;  %v10204_v35 = vcombine.high %v168_v26, %v172_v28  ;;  %v10201_v38 = vcombine.low %v167_v24, %v171_v25  ;;  %v227_v17 = vld [vmem:[%s16240_s1 + $0x5b0] sm:$0xff]  ;;  %v10249_v24 = vcombine.low %v215_v8, %v219_v9  ;;  %v272_v8 = vld [vmem:[%s16240_s1 + $0x718] sm:$0xff] }
  0xa1   :  { %v231_v25 = vld [vmem:[%s16240_s1 + $0x5d0] sm:$0xff]  ;;  %v276_v9 = vld [vmem:[%s16240_s1 + $0x738] sm:$0xff] }
  0xa2   :  { %1789 = vmatpush1.bf16.msra.mxu0 %v10137_v31  ;;  %1871 = vmatpush1.bf16.msra.mxu1 %v10139_v33  ;;  %v175_v31 = vld [vmem:[%s16240_s1 + $0x410] sm:$0xff] }
  0xa3   :  { %1790 = vmatprep.subr.bf16.mxu0 %v10146_v34  ;;  %1872 = vmatprep.subr.bf16.mxu1 %v10148_v39  ;;  %v179_v33 = vld [vmem:[%s16240_s1 + $0x430] sm:$0xff]  ;;  %v176_v34 = vld [vmem:[%s16240_s1 + $0x418] sm:$0xff] }
  0xa4   :  { %v183_v39 = vld [vmem:[%s16240_s1 + $0x450] sm:$0xff]  ;;  %v10212_v45 = vcombine.high %v176_v34, %v180_v36  ;;  %v10209_v46 = vcombine.low %v175_v31, %v179_v33 }
  0xa5   :  { %v10217_v55 = vcombine.low %v183_v39, %v187_v40 }
  0xa6   :  { %1791 = vmatpush1.bf16.msra.mxu0 %v10145_v41  ;;  %1873 = vmatpush1.bf16.msra.mxu1 %v10147_v42  ;;  %v10203_v41 = vcombine.low %v168_v26, %v172_v28  ;;  %v10210_v42 = vcombine.high %v175_v31, %v179_v33  ;;  %v235_v26 = vld [vmem:[%s16240_s1 + $0x5f0] sm:$0xff]  ;;  %v10258_v28 = vcombine.high %v223_v16, %v227_v17 }
  0xa7   :  { %1792 = vmatprep.subr.bf16.mxu0 %v10154_v43  ;;  %1874 = vmatprep.subr.bf16.mxu1 %v10156_v48  ;;  %v184_v43 = vld [vmem:[%s16240_s1 + $0x458] sm:$0xff]  ;;  %v191_v48 = vld [vmem:[%s16240_s1 + $0x490] sm:$0xff]  ;;  %v10257_v31 = vcombine.low %v223_v16, %v227_v17 }
  0xa8   :  { %v10220_v54 = vcombine.high %v184_v43, %v188_v44  ;;  %v10225_v63 = vcombine.low %v191_v48, %v195_v49  ;;  %v280_v16 = vld [vmem:[%s16240_s1 + $0x758] sm:$0xff] }
  0xa9   :  { %v284_v17 = vld [vmem:[%s16240_s1 + $0x778] sm:$0xff] }
  0xaa   :  { %1793 = vmatpush1.bf16.msra.mxu0 %v10153_v50  ;;  %1875 = vmatpush1.bf16.msra.mxu1 %v10155_v51  ;;  %v10211_v50 = vcombine.low %v176_v34, %v180_v36  ;;  %v10218_v51 = vcombine.high %v183_v39, %v187_v40  ;;  %v10266_v34 = vcombine.high %v231_v25, %v235_v26  ;;  %v239_v36 = vld [vmem:[%s16240_s1 + $0x610] sm:$0xff]  ;;  %v240_v39 = vld [vmem:[%s16240_s1 + $0x618] sm:$0xff] }
  0xab   :  { %1794 = vmatprep.subr.bf16.mxu0 %v10162_v52  ;;  %1876 = vmatprep.subr.bf16.mxu1 %v10164_v57  ;;  %v192_v52 = vld [vmem:[%s16240_s1 + $0x498] sm:$0xff]  ;;  %v199_v57 = vld [vmem:[%s16240_s1 + $0x4d0] sm:$0xff] }
  0xac   :  { %v10228_v62 = vcombine.high %v192_v52, %v196_v53  ;;  %v10227_v2 = vcombine.low %v192_v52, %v196_v53  ;;  %v10233_v7 = vcombine.low %v199_v57, %v203_v58  ;;  %v244_v40 = vld [vmem:[%s16240_s1 + $0x638] sm:$0xff]  ;;  %v255_v53 = vld [vmem:[%s16240_s1 + $0x690] sm:$0xff] }
  0xae   :  { %1795 = vmatpush1.bf16.msra.mxu0 %v10161_v60  ;;  %1877 = vmatpush1.bf16.msra.mxu1 %v10163_v3  ;;  %v10219_v60 = vcombine.low %v184_v43, %v188_v44  ;;  %v10226_v3 = vcombine.high %v191_v48, %v195_v49  ;;  %v10276_v44 = vcombine.high %v240_v39, %v244_v40  ;;  %v248_v48 = vld [vmem:[%s16240_s1 + $0x658] sm:$0xff] }
  0xaf   :  { %1796 = vmatprep.subr.bf16.mxu0 %v10170_v61  ;;  %1878 = vmatprep.subr.bf16.mxu1 %v10172_v1  ;;  %v200_v61 = vld [vmem:[%s16240_s1 + $0x4d8] sm:$0xff]  ;;  %v211_v1 = vld [vmem:[%s16240_s1 + $0x530] sm:$0xff] }
  0xb0   :  { %v10242_v11 = vcombine.high %v207_v0, %v211_v1  ;;  %v10241_v15 = vcombine.low %v207_v0, %v211_v1  ;;  %v252_v49 = vld [vmem:[%s16240_s1 + $0x678] sm:$0xff] }
  0xb1   :  { %v264_v0 = vld [vmem:[%s16240_s1 + $0x6d8] sm:$0xff] }
  0xb2   :  { %1797 = vmatpush1.bf16.msra.mxu0 %v10169_v4  ;;  %1879 = vmatpush1.bf16.msra.mxu1 %v10171_v5  ;;  %v10234_v4 = vcombine.high %v199_v57, %v203_v58  ;;  %v208_v5 = vld [vmem:[%s16240_s1 + $0x518] sm:$0xff] }
  0xb3   :  { %1798 = vmatprep.subr.bf16.mxu0 %v10178_v6  ;;  %1880 = vmatprep.subr.bf16.mxu1 %v10180_v10  ;;  %v256_v57 = vld [vmem:[%s16240_s1 + $0x698] sm:$0xff] }
  0xb4   :  { %v260_v58 = vld [vmem:[%s16240_s1 + $0x6b8] sm:$0xff] }
  0xb5   :  { %v268_v1 = vld [vmem:[%s16240_s1 + $0x6f8] sm:$0xff] }
  0xb6   :  { %1799 = vmatpush1.bf16.msra.mxu0 %v10177_v12  ;;  %1881 = vmatpush1.bf16.msra.mxu1 %v10179_v13  ;;  %v216_v12 = vld [vmem:[%s16240_s1 + $0x558] sm:$0xff] }
  0xb7   :  { %1800 = vmatprep.subr.bf16.mxu0 %v10186_v14  ;;  %1882 = vmatprep.subr.bf16.mxu1 %v10188_v18  ;;  %v220_v13 = vld [vmem:[%s16240_s1 + $0x578] sm:$0xff] }
  0xba   :  { %1801 = vmatpush1.bf16.msra.mxu0 %v10185_v20  ;;  %1883 = vmatpush1.bf16.msra.mxu1 %v10187_v21  ;;  %v224_v20 = vld [vmem:[%s16240_s1 + $0x598] sm:$0xff] }
  0xbb   :  { %1802 = vmatprep.subr.bf16.mxu0 %v10194_v23  ;;  %1884 = vmatprep.subr.bf16.mxu1 %v10196_v27  ;;  %v228_v21 = vld [vmem:[%s16240_s1 + $0x5b8] sm:$0xff]  ;;  %v10252_v23 = vcombine.high %v216_v12, %v220_v13  ;;  %v10251_v27 = vcombine.low %v216_v12, %v220_v13  ;;  %v283_v12 = vld [vmem:[%s16240_s1 + $0x770] sm:$0xff]  ;;  %v10299_v13 = vcombine.low %v264_v0, %v268_v1 }
  0xbc   :  { %v10259_v33 = vcombine.low %v224_v20, %v228_v21 }
  0xbe   :  { %1803 = vmatpush1.bf16.msra.mxu0 %v10193_v56  ;;  %1885 = vmatpush1.bf16.msra.mxu1 %v10195_v59  ;;  %v232_v56 = vld [vmem:[%s16240_s1 + $0x5d8] sm:$0xff] }
  0xbf   :  { %1804 = vmatprep.subr.bf16.mxu0 %v10202_v30  ;;  %1886 = vmatprep.subr.bf16.mxu1 %v10204_v35  ;;  %v236_v59 = vld [vmem:[%s16240_s1 + $0x5f8] sm:$0xff]  ;;  %v10260_v30 = vcombine.high %v224_v20, %v228_v21  ;;  %v291_v20 = vld [vmem:[%s16240_s1 + $0x7b0] sm:$0xff]  ;;  %v10307_v21 = vcombine.low %v272_v8, %v276_v9 }
  0xc0   :  { %v10268_v35 = vcombine.high %v232_v56, %v236_v59 }
  0xc2   :  { %1805 = vmatpush1.bf16.msra.mxu0 %v10201_v38  ;;  %1887 = vmatpush1.bf16.msra.mxu1 %v10203_v41  ;;  %v243_v38 = vld [vmem:[%s16240_s1 + $0x630] sm:$0xff]  ;;  %v10265_v41 = vcombine.low %v231_v25, %v235_v26  ;;  %v288_v25 = vld [vmem:[%s16240_s1 + $0x798] sm:$0xff] }
  0xc3   :  { %1815 = vmatprep.subr.bf16.mxu0 %v10210_v42  ;;  %1897 = vmatprep.subr.bf16.mxu1 %v10212_v45  ;;  %v10267_v42 = vcombine.low %v232_v56, %v236_v59  ;;  %v10274_v43 = vcombine.high %v239_v36, %v243_v38  ;;  %v247_v45 = vld [vmem:[%s16240_s1 + $0x650] sm:$0xff]  ;;  %v292_v26 = vld [vmem:[%s16240_s1 + $0x7b8] sm:$0xff]  ;;  %v10315_v59 = vcombine.low %v280_v16, %v284_v17 }
  0xc4   :  { %v299_v56 = vld [vmem:[%s16240_s1 + $0x7f0] sm:$0xff] }
  0xc5   :  { %1807 = vmatmul.mubr.bf16.vlgmr.msra.gmra.mrb[4].mxu0 %v12297_v22  ;;  %1889 = vmatmul.mubr.bf16.vlgmr.msra.gmra.mrb[4].mxu1 %v12297_v22  ;;  %v204_v22 = vld [vmem:[%s16240_s1 + $0x4f8] sm:$0xff] }
  0xc6   :  { %1816 = vmatpush1.bf16.msra.mxu0 %v10209_v46  ;;  %1898 = vmatpush1.bf16.msra.mxu1 %v10211_v50  ;;  %v10236_v6 = vcombine.high %v200_v61, %v204_v22  ;;  %v10235_v10 = vcombine.low %v200_v61, %v204_v22  ;;  %v251_v46 = vld [vmem:[%s16240_s1 + $0x670] sm:$0xff]  ;;  %v10273_v50 = vcombine.low %v239_v36, %v243_v38 }
  0xc7   :  { %1817 = vmatprep.subr.bf16.mxu0 %v10218_v51  ;;  %1899 = vmatprep.subr.bf16.mxu1 %v10220_v54  ;;  %v10275_v51 = vcombine.low %v240_v39, %v244_v40  ;;  %v10282_v52 = vcombine.high %v247_v45, %v251_v46  ;;  %v259_v54 = vld [vmem:[%s16240_s1 + $0x6b0] sm:$0xff]  ;;  %v10283_v22 = vcombine.low %v248_v48, %v252_v49 }
  0xc8   :  { %1847 = vmatprep.mubr.bf16.mxu0 %v12313_v29  ;;  %1929 = vmatprep.mubr.bf16.mxu1 %v12313_v29  ;;  %v212_v29 = vld [vmem:[%s16240_s1 + $0x538] sm:$0xff]  ;;  %v267_v61 = vld [vmem:[%s16240_s1 + $0x6f0] sm:$0xff]  ;;  %v10323_v36 = vcombine.low %v288_v25, %v292_v26 }
  0xc9   :  { %v10244_v14 = vcombine.high %v208_v5, %v212_v29  ;;  %v10243_v18 = vcombine.low %v208_v5, %v212_v29  ;;  %v275_v5 = vld [vmem:[%s16240_s1 + $0x730] sm:$0xff]  ;;  %v10291_v29 = vcombine.low %v256_v57, %v260_v58 }
  0xca   :  { %1818 = vmatpush1.bf16.msra.mxu0 %v10217_v55  ;;  %1900 = vmatpush1.bf16.msra.mxu1 %v10219_v60  ;;  %v10284_v55 = vcombine.high %v248_v48, %v252_v49  ;;  %v10281_v60 = vcombine.low %v247_v45, %v251_v46  ;;  %v11566_v45 = vld [vmem:[%s16242_s2 + $0x8] ss:$16 sps:$4 sm:$0xff]   ;;  %v11571_v46 = vld [vmem:[%s16242_s2 + $0x24] ss:$16 sps:$4 sm:$0xff]   ;;  %v11574_v48 = vld [vmem:[%s16242_s2 + $0x2c] ss:$16 sps:$4 sm:$0xff]  }
  0xcb   :  { %1819 = vmatprep.subr.bf16.mxu0 %v10226_v3  ;;  %1901 = vmatprep.subr.bf16.mxu1 %v10228_v62  ;;  %v263_v3 = vld [vmem:[%s16240_s1 + $0x6d0] sm:$0xff]  ;;  %v10290_v62 = vcombine.high %v255_v53, %v259_v54 }
  0xcc   :  { %v11569_v49 = vld [vmem:[%s16242_s2 + $0x20] ss:$16 sps:$4 sm:$0xff]  }
  0xce   :  { %1820 = vmatpush1.bf16.msra.mxu0 %v10225_v63  ;;  %1902 = vmatpush1.bf16.msra.mxu1 %v10227_v2  ;;  %v10292_v63 = vcombine.high %v256_v57, %v260_v58  ;;  %v10289_v2 = vcombine.low %v255_v53, %v259_v54  ;;  %v11578_v53 = vld [vmem:[%s16242_s2 + $0x48] ss:$16 sps:$4 sm:$0xff]   ;;  %v11583_v54 = vld [vmem:[%s16242_s2 + $0x64] ss:$16 sps:$4 sm:$0xff]   ;;  %v11581_v57 = vld [vmem:[%s16242_s2 + $0x60] ss:$16 sps:$4 sm:$0xff]  }
  0xcf   :  { %1821 = vmatprep.subr.bf16.mxu0 %v10234_v4  ;;  %1903 = vmatprep.subr.bf16.mxu1 %v10236_v6  ;;  %v271_v4 = vld [vmem:[%s16240_s1 + $0x710] sm:$0xff]  ;;  %v10298_v6 = vcombine.high %v263_v3, %v267_v61  ;;  %v11584_v58 = vld [vmem:[%s16242_s2 + $0x68] ss:$16 sps:$4 sm:$0xff]  }
  0xd2   :  { %1822 = vmatpush1.bf16.msra.mxu0 %v10233_v7  ;;  %1904 = vmatpush1.bf16.msra.mxu1 %v10235_v10  ;;  %v10300_v7 = vcombine.high %v264_v0, %v268_v1  ;;  %v10297_v10 = vcombine.low %v263_v3, %v267_v61  ;;  %v11592_v3 = vld [vmem:[%s16242_s2 + $0x8c] ss:$16 sps:$4 sm:$0xff]   ;;  %v11587_v61 = vld [vmem:[%s16242_s2 + $0x80] ss:$16 sps:$4 sm:$0xff]   ;;  %v11596_v1 = vld [vmem:[%s16242_s2 + $0xa8] ss:$16 sps:$4 sm:$0xff]  }
  0xd3   :  { %1823 = vmatprep.subr.bf16.mxu0 %v10242_v11  ;;  %1905 = vmatprep.subr.bf16.mxu1 %v10244_v14  ;;  %v279_v11 = vld [vmem:[%s16240_s1 + $0x750] sm:$0xff]  ;;  %v10306_v14 = vcombine.high %v271_v4, %v275_v5 }
  0xd4   :  { %v11593_v0 = vld [vmem:[%s16242_s2 + $0xa0] ss:$16 sps:$4 sm:$0xff]  }
  0xd6   :  { %1824 = vmatpush1.bf16.msra.mxu0 %v10241_v15  ;;  %1906 = vmatpush1.bf16.msra.mxu1 %v10243_v18  ;;  %v10308_v15 = vcombine.high %v272_v8, %v276_v9  ;;  %v10305_v18 = vcombine.low %v271_v4, %v275_v5  ;;  %v11604_v4 = vld [vmem:[%s16242_s2 + $0xcc] ss:$16 sps:$4 sm:$0xff]   ;;  %v11599_v5 = vld [vmem:[%s16242_s2 + $0xc0] ss:$16 sps:$4 sm:$0xff]   ;;  %v11608_v9 = vld [vmem:[%s16242_s2 + $0xe8] ss:$16 sps:$4 sm:$0xff]  }
  0xd7   :  { %1825 = vmatprep.subr.bf16.mxu0 %v10250_v19  ;;  %1907 = vmatprep.subr.bf16.mxu1 %v10252_v23  ;;  %v287_v19 = vld [vmem:[%s16240_s1 + $0x790] sm:$0xff]  ;;  %v10314_v23 = vcombine.high %v279_v11, %v283_v12 }
  0xd8   :  { %v11605_v8 = vld [vmem:[%s16242_s2 + $0xe0] ss:$16 sps:$4 sm:$0xff]  }
  0xda   :  { %1826 = vmatpush1.bf16.msra.mxu0 %v10249_v24  ;;  %1908 = vmatpush1.bf16.msra.mxu1 %v10251_v27  ;;  %v10316_v24 = vcombine.high %v280_v16, %v284_v17  ;;  %v10313_v27 = vcombine.low %v279_v11, %v283_v12  ;;  %v11616_v11 = vld [vmem:[%s16242_s2 + $0x10c] ss:$16 sps:$4 sm:$0xff]   ;;  %v11611_v12 = vld [vmem:[%s16242_s2 + $0x100] ss:$16 sps:$4 sm:$0xff]   ;;  %v11620_v17 = vld [vmem:[%s16242_s2 + $0x128] ss:$16 sps:$4 sm:$0xff]  }
  0xdb   :  { %1827 = vmatprep.subr.bf16.mxu0 %v10258_v28  ;;  %1909 = vmatprep.subr.bf16.mxu1 %v10260_v30  ;;  %v295_v28 = vld [vmem:[%s16240_s1 + $0x7d0] sm:$0xff]  ;;  %v10322_v30 = vcombine.high %v287_v19, %v291_v20 }
  0xdc   :  { %v10330_v38 = vcombine.high %v295_v28, %v299_v56  ;;  %v10329_v40 = vcombine.low %v295_v28, %v299_v56  ;;  %v11617_v16 = vld [vmem:[%s16242_s2 + $0x120] ss:$16 sps:$4 sm:$0xff]   ;;  %v11640_v28 = vld [vmem:[%s16242_s2 + $0x18c] ss:$16 sps:$4 sm:$0xff]  }
  0xdd   :  { %v11635_v56 = vld [vmem:[%s16242_s2 + $0x180] ss:$16 sps:$4 sm:$0xff]  }
  0xde   :  { %1828 = vmatpush1.bf16.msra.mxu0 %v10257_v31  ;;  %1910 = vmatpush1.bf16.msra.mxu1 %v10259_v33  ;;  %v10324_v31 = vcombine.high %v288_v25, %v292_v26  ;;  %v296_v33 = vld [vmem:[%s16240_s1 + $0x7d8] sm:$0xff]  ;;  %v11629_v25 = vld [vmem:[%s16242_s2 + $0x160] ss:$16 sps:$4 sm:$0xff]  }
  0xdf   :  { %1829 = vmatprep.subr.bf16.mxu0 %v10266_v34  ;;  %1911 = vmatprep.subr.bf16.mxu1 %v10268_v35  ;;  %v300_v34 = vld [vmem:[%s16240_s1 + $0x7f8] sm:$0xff]  ;;  %v10321_v35 = vcombine.low %v287_v19, %v291_v20  ;;  %v11623_v20 = vld [vmem:[%s16242_s2 + $0x140] ss:$16 sps:$4 sm:$0xff]  }
  0xe0   :  { %v10332_v39 = vcombine.high %v296_v33, %v300_v34  ;;  %v11628_v19 = vld [vmem:[%s16242_s2 + $0x14c] ss:$16 sps:$4 sm:$0xff]   ;;  %v11632_v26 = vld [vmem:[%s16242_s2 + $0x168] ss:$16 sps:$4 sm:$0xff]  }
  0xe2   :  { %1830 = vmatpush1.bf16.msra.mxu0 %v10265_v41  ;;  %1912 = vmatpush1.bf16.msra.mxu1 %v10267_v42  ;;  %v10331_v41 = vcombine.low %v296_v33, %v300_v34  ;;  %v11565_v42 = vld [vmem:[%s16242_s2 + $0x4] ss:$16 sps:$4 sm:$0xff]   ;;  %v11641_v33 = vld [vmem:[%s16242_s2 + $0x1a0] ss:$16 sps:$4 sm:$0xff]   ;;  %v11644_v34 = vld [vmem:[%s16242_s2 + $0x1a8] ss:$16 sps:$4 sm:$0xff]  }
  0xe3   :  { %1831 = vmatprep.subr.bf16.mxu0 %v10274_v43  ;;  %1913 = vmatprep.subr.bf16.mxu1 %v10276_v44  ;;  %v11568_v43 = vld [vmem:[%s16242_s2 + $0xc] ss:$16 sps:$4 sm:$0xff]   ;;  %v11563_v44 = vld [vmem:[%s16242_s2] ss:$16 sps:$4 sm:$0xff]  }
  0xe6   :  { %1832 = vmatpush1.bf16.msra.mxu0 %v10273_v50  ;;  %1914 = vmatpush1.bf16.msra.mxu1 %v10275_v51  ;;  %v11572_v50 = vld [vmem:[%s16242_s2 + $0x28] ss:$16 sps:$4 sm:$0xff]   ;;  %v11577_v51 = vld [vmem:[%s16242_s2 + $0x44] ss:$16 sps:$4 sm:$0xff]  }
  0xe7   :  { %1833 = vmatprep.subr.bf16.mxu0 %v10282_v52  ;;  %1915 = vmatprep.subr.bf16.mxu1 %v10284_v55  ;;  %v11575_v52 = vld [vmem:[%s16242_s2 + $0x40] ss:$16 sps:$4 sm:$0xff]   ;;  %v11586_v55 = vld [vmem:[%s16242_s2 + $0x6c] ss:$16 sps:$4 sm:$0xff]  }
  0xea   :  { %1834 = vmatpush1.bf16.msra.mxu0 %v10281_v60  ;;  %1916 = vmatpush1.bf16.msra.mxu1 %v10283_v22  ;;  %v11589_v60 = vld [vmem:[%s16242_s2 + $0x84] ss:$16 sps:$4 sm:$0xff]   ;;  %v11590_v22 = vld [vmem:[%s16242_s2 + $0x88] ss:$16 sps:$4 sm:$0xff]  }
  0xeb   :  { %1835 = vmatprep.subr.bf16.mxu0 %v10290_v62  ;;  %1917 = vmatprep.subr.bf16.mxu1 %v10292_v63  ;;  %v11595_v62 = vld [vmem:[%s16242_s2 + $0xa4] ss:$16 sps:$4 sm:$0xff]   ;;  %v11598_v63 = vld [vmem:[%s16242_s2 + $0xac] ss:$16 sps:$4 sm:$0xff]  }
  0xee   :  { %1836 = vmatpush1.bf16.msra.mxu0 %v10289_v2  ;;  %1918 = vmatpush1.bf16.msra.mxu1 %v10291_v29  ;;  %v11601_v2 = vld [vmem:[%s16242_s2 + $0xc4] ss:$16 sps:$4 sm:$0xff]   ;;  %v11602_v29 = vld [vmem:[%s16242_s2 + $0xc8] ss:$16 sps:$4 sm:$0xff]  }
  0xef   :  { %1837 = vmatprep.subr.bf16.mxu0 %v10298_v6  ;;  %1919 = vmatprep.subr.bf16.mxu1 %v10300_v7  ;;  %v11607_v6 = vld [vmem:[%s16242_s2 + $0xe4] ss:$16 sps:$4 sm:$0xff]   ;;  %v11610_v7 = vld [vmem:[%s16242_s2 + $0xec] ss:$16 sps:$4 sm:$0xff]  }
  0xf2   :  { %1838 = vmatpush1.bf16.msra.mxu0 %v10297_v10  ;;  %1920 = vmatpush1.bf16.msra.mxu1 %v10299_v13  ;;  %v11613_v10 = vld [vmem:[%s16242_s2 + $0x104] ss:$16 sps:$4 sm:$0xff]   ;;  %v11614_v13 = vld [vmem:[%s16242_s2 + $0x108] ss:$16 sps:$4 sm:$0xff]  }
  0xf3   :  { %1839 = vmatprep.subr.bf16.mxu0 %v10306_v14  ;;  %1921 = vmatprep.subr.bf16.mxu1 %v10308_v15  ;;  %v11619_v14 = vld [vmem:[%s16242_s2 + $0x124] ss:$16 sps:$4 sm:$0xff]   ;;  %v11622_v15 = vld [vmem:[%s16242_s2 + $0x12c] ss:$16 sps:$4 sm:$0xff]  }
  0xf6   :  { %1840 = vmatpush1.bf16.msra.mxu0 %v10305_v18  ;;  %1922 = vmatpush1.bf16.msra.mxu1 %v10307_v21  ;;  %v11625_v18 = vld [vmem:[%s16242_s2 + $0x144] ss:$16 sps:$4 sm:$0xff]   ;;  %v11626_v21 = vld [vmem:[%s16242_s2 + $0x148] ss:$16 sps:$4 sm:$0xff]  }
  0xf7   :  { %1841 = vmatprep.subr.bf16.mxu0 %v10314_v23  ;;  %1923 = vmatprep.subr.bf16.mxu1 %v10316_v24  ;;  %v11631_v23 = vld [vmem:[%s16242_s2 + $0x164] ss:$16 sps:$4 sm:$0xff]   ;;  %v11634_v24 = vld [vmem:[%s16242_s2 + $0x16c] ss:$16 sps:$4 sm:$0xff]  }
  0xfa   :  { %1842 = vmatpush1.bf16.msra.mxu0 %v10313_v27  ;;  %1924 = vmatpush1.bf16.msra.mxu1 %v10315_v59  ;;  %v11637_v27 = vld [vmem:[%s16242_s2 + $0x184] ss:$16 sps:$4 sm:$0xff]   ;;  %v11638_v59 = vld [vmem:[%s16242_s2 + $0x188] ss:$16 sps:$4 sm:$0xff]  }
  0xfb   :  { %1843 = vmatprep.subr.bf16.mxu0 %v10322_v30  ;;  %1925 = vmatprep.subr.bf16.mxu1 %v10324_v31  ;;  %v11643_v30 = vld [vmem:[%s16242_s2 + $0x1a4] ss:$16 sps:$4 sm:$0xff]   ;;  %v11646_v31 = vld [vmem:[%s16242_s2 + $0x1ac] ss:$16 sps:$4 sm:$0xff]  }
  0xfe   :  { %1844 = vmatpush1.bf16.msra.mxu0 %v10321_v35  ;;  %1926 = vmatpush1.bf16.msra.mxu1 %v10323_v36  ;;  %v11649_v35 = vld [vmem:[%s16242_s2 + $0x1c4] ss:$16 sps:$4 sm:$0xff]   ;;  %v11652_v36 = vld [vmem:[%s16242_s2 + $0x1cc] ss:$16 sps:$4 sm:$0xff]  }
  0xff   :  { %1845 = vmatprep.subr.bf16.mxu0 %v10330_v38  ;;  %1927 = vmatprep.subr.bf16.mxu1 %v10332_v39  ;;  %v11647_v38 = vld [vmem:[%s16242_s2 + $0x1c0] ss:$16 sps:$4 sm:$0xff]   ;;  %v11650_v39 = vld [vmem:[%s16242_s2 + $0x1c8] ss:$16 sps:$4 sm:$0xff]  }
 0x102   :  { %1846 = vmatpush1.bf16.msra.mxu0 %v10329_v40  ;;  %1928 = vmatpush1.bf16.msra.mxu1 %v10331_v41  ;;  %v11655_v40 = vld [vmem:[%s16242_s2 + $0x1e4] ss:$16 sps:$4 sm:$0xff]   ;;  %v11658_v41 = vld [vmem:[%s16242_s2 + $0x1ec] ss:$16 sps:$4 sm:$0xff]  }
 0x103   :  { %3528 = vmatprep.subr.bf16.mxu0 %v11565_v42  ;;  %3692 = vmatprep.subr.bf16.mxu1 %v11568_v43  ;;  %v11653_v42 = vld [vmem:[%s16242_s2 + $0x1e0] ss:$16 sps:$4 sm:$0xff]   ;;  %v11656_v43 = vld [vmem:[%s16242_s2 + $0x1e8] ss:$16 sps:$4 sm:$0xff]  }
 0x105   :  { %1848 = vmatmul.mubr.bf16.vlgmr.msra.gmra.mrb[4].mxu0 %v12501_v32  ;;  %1930 = vmatmul.mubr.bf16.vlgmr.msra.gmra.mrb[4].mxu1 %v12501_v32  ;;  %v11580_v32 = vld [vmem:[%s16242_s2 + $0x4c] ss:$16 sps:$4 sm:$0xff]  }
 0x106   :  { %3529 = vmatpush1.bf16.msra.mxu0 %v11563_v44  ;;  %3693 = vmatpush1.bf16.msra.mxu1 %v11566_v45  ;;  %v11661_v44 = vld [vmem:[%s16242_s2 + $0x204] ss:$16 sps:$4 sm:$0xff]   ;;  %v11664_v45 = vld [vmem:[%s16242_s2 + $0x20c] ss:$16 sps:$4 sm:$0xff]  }
 0x107   :  { %3530 = vmatprep.subr.bf16.mxu0 %v11571_v46  ;;  %3694 = vmatprep.subr.bf16.mxu1 %v11574_v48 }
 0x10a   :  { %3531 = vmatpush1.bf16.msra.mxu0 %v11569_v49  ;;  %3695 = vmatpush1.bf16.msra.mxu1 %v11572_v50 }
 0x10b   :  { %3532 = vmatprep.subr.bf16.mxu0 %v11577_v51  ;;  %3696 = vmatprep.subr.bf16.mxu1 %v11580_v32 }
 0x10e   :  { %3533 = vmatpush1.bf16.msra.mxu0 %v11575_v52  ;;  %3697 = vmatpush1.bf16.msra.mxu1 %v11578_v53 }
 0x10f   :  { %3534 = vmatprep.subr.bf16.mxu0 %v11583_v54  ;;  %3698 = vmatprep.subr.bf16.mxu1 %v11586_v55 }
 0x112   :  { %3535 = vmatpush1.bf16.msra.mxu0 %v11581_v57  ;;  %3699 = vmatpush1.bf16.msra.mxu1 %v11584_v58  ;;  %v11659_v58 = vld [vmem:[%s16242_s2 + $0x200] ss:$16 sps:$4 sm:$0xff]  }
 0x113   :  { %3536 = vmatprep.subr.bf16.mxu0 %v11589_v60  ;;  %3700 = vmatprep.subr.bf16.mxu1 %v11592_v3 }
 0x116   :  { %3537 = vmatpush1.bf16.msra.mxu0 %v11587_v61  ;;  %3701 = vmatpush1.bf16.msra.mxu1 %v11590_v22  ;;  %v11662_v22 = vld [vmem:[%s16242_s2 + $0x208] ss:$16 sps:$4 sm:$0xff]  }
 0x117   :  { %3538 = vmatprep.subr.bf16.mxu0 %v11595_v62  ;;  %3702 = vmatprep.subr.bf16.mxu1 %v11598_v63 }
 0x11a   :  { %3539 = vmatpush1.bf16.msra.mxu0 %v11593_v0  ;;  %3703 = vmatpush1.bf16.msra.mxu1 %v11596_v1  ;;  %v11667_v0 = vld [vmem:[%s16242_s2 + $0x224] ss:$16 sps:$4 sm:$0xff]   ;;  %v11670_v1 = vld [vmem:[%s16242_s2 + $0x22c] ss:$16 sps:$4 sm:$0xff]  }
 0x11b   :  { %3540 = vmatprep.subr.bf16.mxu0 %v11601_v2  ;;  %3704 = vmatprep.subr.bf16.mxu1 %v11604_v4  ;;  %v11665_v4 = vld [vmem:[%s16242_s2 + $0x220] ss:$16 sps:$4 sm:$0xff]  }
 0x11e   :  { %3541 = vmatpush1.bf16.msra.mxu0 %v11599_v5  ;;  %3705 = vmatpush1.bf16.msra.mxu1 %v11602_v29  ;;  %v11668_v5 = vld [vmem:[%s16242_s2 + $0x228] ss:$16 sps:$4 sm:$0xff]   ;;  %v11673_v29 = vld [vmem:[%s16242_s2 + $0x244] ss:$16 sps:$4 sm:$0xff]  }
 0x11f   :  { %3542 = vmatprep.subr.bf16.mxu0 %v11607_v6  ;;  %3706 = vmatprep.subr.bf16.mxu1 %v11610_v7  ;;  %v11676_v6 = vld [vmem:[%s16242_s2 + $0x24c] ss:$16 sps:$4 sm:$0xff]   ;;  %v11671_v7 = vld [vmem:[%s16242_s2 + $0x240] ss:$16 sps:$4 sm:$0xff]  }
 0x122   :  { %3543 = vmatpush1.bf16.msra.mxu0 %v11605_v8  ;;  %3707 = vmatpush1.bf16.msra.mxu1 %v11608_v9  ;;  %v11674_v8 = vld [vmem:[%s16242_s2 + $0x248] ss:$16 sps:$4 sm:$0xff]   ;;  %v11679_v9 = vld [vmem:[%s16242_s2 + $0x264] ss:$16 sps:$4 sm:$0xff]  }
 0x123   :  { %3544 = vmatprep.subr.bf16.mxu0 %v11613_v10  ;;  %3708 = vmatprep.subr.bf16.mxu1 %v11616_v11  ;;  %v11682_v10 = vld [vmem:[%s16242_s2 + $0x26c] ss:$16 sps:$4 sm:$0xff]   ;;  %v11677_v11 = vld [vmem:[%s16242_s2 + $0x260] ss:$16 sps:$4 sm:$0xff]  }
 0x126   :  { %3545 = vmatpush1.bf16.msra.mxu0 %v11611_v12  ;;  %3709 = vmatpush1.bf16.msra.mxu1 %v11614_v13  ;;  %v11680_v12 = vld [vmem:[%s16242_s2 + $0x268] ss:$16 sps:$4 sm:$0xff]   ;;  %v11685_v13 = vld [vmem:[%s16242_s2 + $0x284] ss:$16 sps:$4 sm:$0xff]  }
 0x127   :  { %3546 = vmatprep.subr.bf16.mxu0 %v11619_v14  ;;  %3710 = vmatprep.subr.bf16.mxu1 %v11622_v15  ;;  %v11688_v14 = vld [vmem:[%s16242_s2 + $0x28c] ss:$16 sps:$4 sm:$0xff]   ;;  %v11683_v15 = vld [vmem:[%s16242_s2 + $0x280] ss:$16 sps:$4 sm:$0xff]  }
 0x12a   :  { %3547 = vmatpush1.bf16.msra.mxu0 %v11617_v16  ;;  %3711 = vmatpush1.bf16.msra.mxu1 %v11620_v17  ;;  %v11686_v16 = vld [vmem:[%s16242_s2 + $0x288] ss:$16 sps:$4 sm:$0xff]   ;;  %v11691_v17 = vld [vmem:[%s16242_s2 + $0x2a4] ss:$16 sps:$4 sm:$0xff]  }
 0x12b   :  { %3548 = vmatprep.subr.bf16.mxu0 %v11625_v18  ;;  %3712 = vmatprep.subr.bf16.mxu1 %v11628_v19  ;;  %v11694_v18 = vld [vmem:[%s16242_s2 + $0x2ac] ss:$16 sps:$4 sm:$0xff]   ;;  %v11689_v19 = vld [vmem:[%s16242_s2 + $0x2a0] ss:$16 sps:$4 sm:$0xff]  }
 0x12e   :  { %3549 = vmatpush1.bf16.msra.mxu0 %v11623_v20  ;;  %3713 = vmatpush1.bf16.msra.mxu1 %v11626_v21  ;;  %v11692_v20 = vld [vmem:[%s16242_s2 + $0x2a8] ss:$16 sps:$4 sm:$0xff]   ;;  %v11697_v21 = vld [vmem:[%s16242_s2 + $0x2c4] ss:$16 sps:$4 sm:$0xff]  }
 0x12f   :  { %3550 = vmatprep.subr.bf16.mxu0 %v11631_v23  ;;  %3714 = vmatprep.subr.bf16.mxu1 %v11634_v24  ;;  %v11700_v23 = vld [vmem:[%s16242_s2 + $0x2cc] ss:$16 sps:$4 sm:$0xff]   ;;  %v11695_v24 = vld [vmem:[%s16242_s2 + $0x2c0] ss:$16 sps:$4 sm:$0xff]  }
 0x132   :  { %3551 = vmatpush1.bf16.msra.mxu0 %v11629_v25  ;;  %3715 = vmatpush1.bf16.msra.mxu1 %v11632_v26  ;;  %v11698_v25 = vld [vmem:[%s16242_s2 + $0x2c8] ss:$16 sps:$4 sm:$0xff]   ;;  %v11703_v26 = vld [vmem:[%s16242_s2 + $0x2e4] ss:$16 sps:$4 sm:$0xff]  }
 0x133   :  { %3552 = vmatprep.subr.bf16.mxu0 %v11637_v27  ;;  %3716 = vmatprep.subr.bf16.mxu1 %v11640_v28  ;;  %v11706_v27 = vld [vmem:[%s16242_s2 + $0x2ec] ss:$16 sps:$4 sm:$0xff]   ;;  %v11701_v28 = vld [vmem:[%s16242_s2 + $0x2e0] ss:$16 sps:$4 sm:$0xff]  }
 0x136   :  { %3553 = vmatpush1.bf16.msra.mxu0 %v11635_v56  ;;  %3717 = vmatpush1.bf16.msra.mxu1 %v11638_v59  ;;  %v11704_v56 = vld [vmem:[%s16242_s2 + $0x2e8] ss:$16 sps:$4 sm:$0xff]   ;;  %v11709_v59 = vld [vmem:[%s16242_s2 + $0x304] ss:$16 sps:$4 sm:$0xff]  }
 0x137   :  { %3554 = vmatprep.subr.bf16.mxu0 %v11643_v30  ;;  %3718 = vmatprep.subr.bf16.mxu1 %v11646_v31  ;;  %v11712_v30 = vld [vmem:[%s16242_s2 + $0x30c] ss:$16 sps:$4 sm:$0xff]   ;;  %v11707_v31 = vld [vmem:[%s16242_s2 + $0x300] ss:$16 sps:$4 sm:$0xff]  }
 0x13a   :  { %3555 = vmatpush1.bf16.msra.mxu0 %v11641_v33  ;;  %3719 = vmatpush1.bf16.msra.mxu1 %v11644_v34  ;;  %v11710_v33 = vld [vmem:[%s16242_s2 + $0x308] ss:$16 sps:$4 sm:$0xff]   ;;  %v11715_v34 = vld [vmem:[%s16242_s2 + $0x324] ss:$16 sps:$4 sm:$0xff]  }
 0x13b   :  { %3556 = vmatprep.subr.bf16.mxu0 %v11649_v35  ;;  %3720 = vmatprep.subr.bf16.mxu1 %v11652_v36  ;;  %v11718_v35 = vld [vmem:[%s16242_s2 + $0x32c] ss:$16 sps:$4 sm:$0xff]   ;;  %v11713_v36 = vld [vmem:[%s16242_s2 + $0x320] ss:$16 sps:$4 sm:$0xff]  }
 0x13e   :  { %3557 = vmatpush1.bf16.msra.mxu0 %v11647_v38  ;;  %3721 = vmatpush1.bf16.msra.mxu1 %v11650_v39  ;;  %v11716_v38 = vld [vmem:[%s16242_s2 + $0x328] ss:$16 sps:$4 sm:$0xff]   ;;  %v11721_v39 = vld [vmem:[%s16242_s2 + $0x344] ss:$16 sps:$4 sm:$0xff]  }
 0x13f   :  { %3558 = vmatprep.subr.bf16.mxu0 %v11655_v40  ;;  %3722 = vmatprep.subr.bf16.mxu1 %v11658_v41  ;;  %v11724_v40 = vld [vmem:[%s16242_s2 + $0x34c] ss:$16 sps:$4 sm:$0xff]   ;;  %v11719_v41 = vld [vmem:[%s16242_s2 + $0x340] ss:$16 sps:$4 sm:$0xff]  }
 0x142   :  { %3559 = vmatpush1.bf16.msra.mxu0 %v11653_v42  ;;  %3723 = vmatpush1.bf16.msra.mxu1 %v11656_v43  ;;  %v11722_v42 = vld [vmem:[%s16242_s2 + $0x348] ss:$16 sps:$4 sm:$0xff]   ;;  %v11727_v43 = vld [vmem:[%s16242_s2 + $0x364] ss:$16 sps:$4 sm:$0xff]  }
 0x143   :  { %3569 = vmatprep.subr.bf16.mxu0 %v11661_v44  ;;  %3733 = vmatprep.subr.bf16.mxu1 %v11664_v45  ;;  %v11730_v44 = vld [vmem:[%s16242_s2 + $0x36c] ss:$16 sps:$4 sm:$0xff]   ;;  %v11725_v45 = vld [vmem:[%s16242_s2 + $0x360] ss:$16 sps:$4 sm:$0xff]  }
 0x158   :  { %v1685_v46 = vpop.f32.mrb[0].mxu0  ;;  %v13077_v49 = vpop.f32.mrb[0].mxu1 }
 0x159   :  { %vm1938_vm0 = vcmp.gt.f32.partialorder %v1685_v46, 0.0  ;;  %v1946_v48 = vmul.f32 0.2, %v1685_v46  ;;  %v1687_v50 = vpop.f32.mrb[1].mxu0  ;;  %v1769_v52 = vpop.f32.mrb[1].mxu1  ;;  %vm1940_vm3 = vcmp.gt.f32.partialorder %v13077_v49, 0.0 }
 0x15a   :  { %vm1939_vm1 = vcmp.gt.f32.partialorder %v1687_v50, 0.0  ;;  %v1947_v51 = vmul.f32 0.2, %v1687_v50  ;;  %v1689_v53 = vpop.f32.mrb[2].mxu0  ;;  %vm1941_vm2 = vcmp.gt.f32.partialorder %v1769_v52, 0.0  ;;  %v1771_v55 = vpop.f32.mrb[2].mxu1 }
 0x15b   :  { %v1954_v32 = vsel %vm1938_vm0, %v1685_v46, %v1946_v48  ;;  %v1690_v57 = vpop.f32.mrb[3].mxu0  ;;  %v1949_v3 = vmul.f32 0.2, %v1769_v52  ;;  %v1772_v61 = vpop.f32.mrb[3].mxu1  ;;  %v11728_v46 = vld [vmem:[%s16242_s2 + $0x368] ss:$16 sps:$4 sm:$0xff]  }
 0x15c   :  { %v1955_v54 = vsel %vm1939_vm1, %v1687_v50, %v1947_v51  ;;  %v1962_v62 = vpack.c.bf16 %v1954_v32, %v1954_v32  ;;  %v11733_v48 = vld [vmem:[%s16242_s2 + $0x384] ss:$16 sps:$4 sm:$0xff]   ;;  %v11736_v50 = vld [vmem:[%s16242_s2 + $0x38c] ss:$16 sps:$4 sm:$0xff]   ;;  %v11731_v51 = vld [vmem:[%s16242_s2 + $0x380] ss:$16 sps:$4 sm:$0xff]  }
 0x15d   :  { %v1963_v60 = vpack.c.bf16 %v1955_v54, %v1955_v54  ;;  %v1957_v63 = vsel %vm1941_vm2, %v1769_v52, %v1949_v3  ;;  %v11734_v32 = vld [vmem:[%s16242_s2 + $0x388] ss:$16 sps:$4 sm:$0xff]   ;;  %v11739_v52 = vld [vmem:[%s16242_s2 + $0x3a4] ss:$16 sps:$4 sm:$0xff]   ;;  %v11742_v53 = vld [vmem:[%s16242_s2 + $0x3ac] ss:$16 sps:$4 sm:$0xff]  }
 0x15e   :  { %v1965_v2 = vpack.c.bf16 %v1957_v63, %v1957_v63  ;;  %v11737_v54 = vld [vmem:[%s16242_s2 + $0x3a0] ss:$16 sps:$4 sm:$0xff]   ;;  %v11740_v55 = vld [vmem:[%s16242_s2 + $0x3a8] ss:$16 sps:$4 sm:$0xff]   ;;  %v11745_v57 = vld [vmem:[%s16242_s2 + $0x3c4] ss:$16 sps:$4 sm:$0xff]  }
 0x15f   :  { %3560 = vmatprep.mubr.bf16.mxu0 %v1963_v60  ;;  %3724 = vmatprep.mubr.bf16.mxu1 %v1963_v60  ;;  %v11743_v60 = vld [vmem:[%s16242_s2 + $0x3c0] ss:$16 sps:$4 sm:$0xff]   ;;  %v11746_v3 = vld [vmem:[%s16242_s2 + $0x3c8] ss:$16 sps:$4 sm:$0xff]   ;;  %v11751_v61 = vld [vmem:[%s16242_s2 + $0x3e4] ss:$16 sps:$4 sm:$0xff]  }
 0x160   :  { %3561 = vmatmul.mubr.bf16.vlgmr.msra.gmra.mrb[8].mxu0 %v1962_v62  ;;  %3725 = vmatmul.mubr.bf16.vlgmr.msra.gmra.mrb[8].mxu1 %v1962_v62  ;;  %v1948_v62 = vmul.f32 0.2, %v13077_v49  ;;  %v11749_v63 = vld [vmem:[%s16242_s2 + $0x3e0] ss:$16 sps:$4 sm:$0xff]  }
 0x161   :  { %3570 = vmatpush1.bf16.msra.mxu0 %v11659_v58  ;;  %3734 = vmatpush1.bf16.msra.mxu1 %v11662_v22  ;;  %v11748_v58 = vld [vmem:[%s16242_s2 + $0x3cc] ss:$16 sps:$4 sm:$0xff]  }
 0x162   :  { %3601 = vmatprep.mubr.bf16.mxu0 %v1965_v2  ;;  %3765 = vmatprep.mubr.bf16.mxu1 %v1965_v2  ;;  %v11754_v22 = vld [vmem:[%s16242_s2 + $0x3ec] ss:$16 sps:$4 sm:$0xff]  }
 0x163   :  { %3571 = vmatprep.subr.bf16.mxu0 %v11667_v0  ;;  %3735 = vmatprep.subr.bf16.mxu1 %v11670_v1  ;;  %v11752_v0 = vld [vmem:[%s16242_s2 + $0x3e8] ss:$16 sps:$4 sm:$0xff]   ;;  %v11757_v1 = vld [vmem:[%s16242_s2 + $0x404] ss:$16 sps:$4 sm:$0xff]   ;;  %v11760_v2 = vld [vmem:[%s16242_s2 + $0x40c] ss:$16 sps:$4 sm:$0xff]  }
 0x165   :  { %3572 = vmatpush1.bf16.msra.mxu0 %v11665_v4  ;;  %3736 = vmatpush1.bf16.msra.mxu1 %v11668_v5  ;;  %v1956_v4 = vsel %vm1940_vm3, %v13077_v49, %v1948_v62  ;;  %v11755_v5 = vld [vmem:[%s16242_s2 + $0x400] ss:$16 sps:$4 sm:$0xff]   ;;  %v11766_v49 = vld [vmem:[%s16242_s2 + $0x42c] ss:$16 sps:$4 sm:$0xff]  }
 0x166   :  { %3573 = vmatprep.subr.bf16.mxu0 %v11673_v29  ;;  %3737 = vmatprep.subr.bf16.mxu1 %v11676_v6  ;;  %v11758_v29 = vld [vmem:[%s16242_s2 + $0x408] ss:$16 sps:$4 sm:$0xff]   ;;  %v1964_v6 = vpack.c.bf16 %v1956_v4, %v1956_v4  ;;  %v11844_v62 = vld [vmem:[%s16242_s2 + $0x5cc] ss:$16 sps:$4 sm:$0xff]   ;;  %v11845_v4 = vld [vmem:[%s16242_s2 + $0x5e0] ss:$16 sps:$4 sm:$0xff]  }
 0x169   :  { %3574 = vmatpush1.bf16.msra.mxu0 %v11671_v7  ;;  %3738 = vmatpush1.bf16.msra.mxu1 %v11674_v8  ;;  %v11763_v7 = vld [vmem:[%s16242_s2 + $0x424] ss:$16 sps:$4 sm:$0xff]   ;;  %v11761_v8 = vld [vmem:[%s16242_s2 + $0x420] ss:$16 sps:$4 sm:$0xff]  }
 0x16a   :  { %3575 = vmatprep.subr.bf16.mxu0 %v11679_v9  ;;  %3739 = vmatprep.subr.bf16.mxu1 %v11682_v10  ;;  %v11764_v9 = vld [vmem:[%s16242_s2 + $0x428] ss:$16 sps:$4 sm:$0xff]   ;;  %v11769_v10 = vld [vmem:[%s16242_s2 + $0x444] ss:$16 sps:$4 sm:$0xff]  }
 0x16d   :  { %3576 = vmatpush1.bf16.msra.mxu0 %v11677_v11  ;;  %3740 = vmatpush1.bf16.msra.mxu1 %v11680_v12  ;;  %v11772_v11 = vld [vmem:[%s16242_s2 + $0x44c] ss:$16 sps:$4 sm:$0xff]   ;;  %v11767_v12 = vld [vmem:[%s16242_s2 + $0x440] ss:$16 sps:$4 sm:$0xff]  }
 0x16e   :  { %3577 = vmatprep.subr.bf16.mxu0 %v11685_v13  ;;  %3741 = vmatprep.subr.bf16.mxu1 %v11688_v14  ;;  %v11770_v13 = vld [vmem:[%s16242_s2 + $0x448] ss:$16 sps:$4 sm:$0xff]   ;;  %v11775_v14 = vld [vmem:[%s16242_s2 + $0x464] ss:$16 sps:$4 sm:$0xff]  }
 0x171   :  { %3578 = vmatpush1.bf16.msra.mxu0 %v11683_v15  ;;  %3742 = vmatpush1.bf16.msra.mxu1 %v11686_v16  ;;  %v11778_v15 = vld [vmem:[%s16242_s2 + $0x46c] ss:$16 sps:$4 sm:$0xff]   ;;  %v11773_v16 = vld [vmem:[%s16242_s2 + $0x460] ss:$16 sps:$4 sm:$0xff]  }
 0x172   :  { %3579 = vmatprep.subr.bf16.mxu0 %v11691_v17  ;;  %3743 = vmatprep.subr.bf16.mxu1 %v11694_v18  ;;  %v11776_v17 = vld [vmem:[%s16242_s2 + $0x468] ss:$16 sps:$4 sm:$0xff]   ;;  %v11781_v18 = vld [vmem:[%s16242_s2 + $0x484] ss:$16 sps:$4 sm:$0xff]  }
 0x175   :  { %3580 = vmatpush1.bf16.msra.mxu0 %v11689_v19  ;;  %3744 = vmatpush1.bf16.msra.mxu1 %v11692_v20  ;;  %v11784_v19 = vld [vmem:[%s16242_s2 + $0x48c] ss:$16 sps:$4 sm:$0xff]   ;;  %v11779_v20 = vld [vmem:[%s16242_s2 + $0x480] ss:$16 sps:$4 sm:$0xff]  }
 0x176   :  { %3581 = vmatprep.subr.bf16.mxu0 %v11697_v21  ;;  %3745 = vmatprep.subr.bf16.mxu1 %v11700_v23  ;;  %v11782_v21 = vld [vmem:[%s16242_s2 + $0x488] ss:$16 sps:$4 sm:$0xff]   ;;  %v11787_v23 = vld [vmem:[%s16242_s2 + $0x4a4] ss:$16 sps:$4 sm:$0xff]  }
 0x179   :  { %3582 = vmatpush1.bf16.msra.mxu0 %v11695_v24  ;;  %3746 = vmatpush1.bf16.msra.mxu1 %v11698_v25  ;;  %v11790_v24 = vld [vmem:[%s16242_s2 + $0x4ac] ss:$16 sps:$4 sm:$0xff]   ;;  %v11785_v25 = vld [vmem:[%s16242_s2 + $0x4a0] ss:$16 sps:$4 sm:$0xff]  }
 0x17a   :  { %3583 = vmatprep.subr.bf16.mxu0 %v11703_v26  ;;  %3747 = vmatprep.subr.bf16.mxu1 %v11706_v27  ;;  %v11788_v26 = vld [vmem:[%s16242_s2 + $0x4a8] ss:$16 sps:$4 sm:$0xff]   ;;  %v11793_v27 = vld [vmem:[%s16242_s2 + $0x4c4] ss:$16 sps:$4 sm:$0xff]  }
 0x17d   :  { %3584 = vmatpush1.bf16.msra.mxu0 %v11701_v28  ;;  %3748 = vmatpush1.bf16.msra.mxu1 %v11704_v56  ;;  %v11796_v28 = vld [vmem:[%s16242_s2 + $0x4cc] ss:$16 sps:$4 sm:$0xff]   ;;  %v11791_v56 = vld [vmem:[%s16242_s2 + $0x4c0] ss:$16 sps:$4 sm:$0xff]  }
 0x17e   :  { %3585 = vmatprep.subr.bf16.mxu0 %v11709_v59  ;;  %3749 = vmatprep.subr.bf16.mxu1 %v11712_v30  ;;  %v11794_v59 = vld [vmem:[%s16242_s2 + $0x4c8] ss:$16 sps:$4 sm:$0xff]   ;;  %v11799_v30 = vld [vmem:[%s16242_s2 + $0x4e4] ss:$16 sps:$4 sm:$0xff]  }
 0x181   :  { %3586 = vmatpush1.bf16.msra.mxu0 %v11707_v31  ;;  %3750 = vmatpush1.bf16.msra.mxu1 %v11710_v33  ;;  %v11802_v31 = vld [vmem:[%s16242_s2 + $0x4ec] ss:$16 sps:$4 sm:$0xff]   ;;  %v11797_v33 = vld [vmem:[%s16242_s2 + $0x4e0] ss:$16 sps:$4 sm:$0xff]  }
 0x182   :  { %3587 = vmatprep.subr.bf16.mxu0 %v11715_v34  ;;  %3751 = vmatprep.subr.bf16.mxu1 %v11718_v35  ;;  %v11800_v34 = vld [vmem:[%s16242_s2 + $0x4e8] ss:$16 sps:$4 sm:$0xff]   ;;  %v11805_v35 = vld [vmem:[%s16242_s2 + $0x504] ss:$16 sps:$4 sm:$0xff]  }
 0x185   :  { %3588 = vmatpush1.bf16.msra.mxu0 %v11713_v36  ;;  %3752 = vmatpush1.bf16.msra.mxu1 %v11716_v38  ;;  %v11808_v36 = vld [vmem:[%s16242_s2 + $0x50c] ss:$16 sps:$4 sm:$0xff]   ;;  %v11803_v38 = vld [vmem:[%s16242_s2 + $0x500] ss:$16 sps:$4 sm:$0xff]  }
 0x186   :  { %3589 = vmatprep.subr.bf16.mxu0 %v11721_v39  ;;  %3753 = vmatprep.subr.bf16.mxu1 %v11724_v40  ;;  %v11806_v39 = vld [vmem:[%s16242_s2 + $0x508] ss:$16 sps:$4 sm:$0xff]   ;;  %v11811_v40 = vld [vmem:[%s16242_s2 + $0x524] ss:$16 sps:$4 sm:$0xff]  }
 0x189   :  { %3590 = vmatpush1.bf16.msra.mxu0 %v11719_v41  ;;  %3754 = vmatpush1.bf16.msra.mxu1 %v11722_v42  ;;  %v11814_v41 = vld [vmem:[%s16242_s2 + $0x52c] ss:$16 sps:$4 sm:$0xff]   ;;  %v11809_v42 = vld [vmem:[%s16242_s2 + $0x520] ss:$16 sps:$4 sm:$0xff]  }
 0x18a   :  { %3591 = vmatprep.subr.bf16.mxu0 %v11727_v43  ;;  %3755 = vmatprep.subr.bf16.mxu1 %v11730_v44  ;;  %v11812_v43 = vld [vmem:[%s16242_s2 + $0x528] ss:$16 sps:$4 sm:$0xff]   ;;  %v11817_v44 = vld [vmem:[%s16242_s2 + $0x544] ss:$16 sps:$4 sm:$0xff]  }
 0x18d   :  { %3592 = vmatpush1.bf16.msra.mxu0 %v11725_v45  ;;  %3756 = vmatpush1.bf16.msra.mxu1 %v11728_v46  ;;  %v11820_v45 = vld [vmem:[%s16242_s2 + $0x54c] ss:$16 sps:$4 sm:$0xff]   ;;  %v11815_v46 = vld [vmem:[%s16242_s2 + $0x540] ss:$16 sps:$4 sm:$0xff]  }
 0x18e   :  { %3593 = vmatprep.subr.bf16.mxu0 %v11733_v48  ;;  %3757 = vmatprep.subr.bf16.mxu1 %v11736_v50  ;;  %v11818_v48 = vld [vmem:[%s16242_s2 + $0x548] ss:$16 sps:$4 sm:$0xff]   ;;  %v11823_v50 = vld [vmem:[%s16242_s2 + $0x564] ss:$16 sps:$4 sm:$0xff]  }
 0x191   :  { %3594 = vmatpush1.bf16.msra.mxu0 %v11731_v51  ;;  %3758 = vmatpush1.bf16.msra.mxu1 %v11734_v32  ;;  %v11826_v51 = vld [vmem:[%s16242_s2 + $0x56c] ss:$16 sps:$4 sm:$0xff]   ;;  %v11821_v32 = vld [vmem:[%s16242_s2 + $0x560] ss:$16 sps:$4 sm:$0xff]  }
 0x192   :  { %3595 = vmatprep.subr.bf16.mxu0 %v11739_v52  ;;  %3759 = vmatprep.subr.bf16.mxu1 %v11742_v53  ;;  %v11824_v52 = vld [vmem:[%s16242_s2 + $0x568] ss:$16 sps:$4 sm:$0xff]   ;;  %v11829_v53 = vld [vmem:[%s16242_s2 + $0x584] ss:$16 sps:$4 sm:$0xff]  }
 0x195   :  { %3596 = vmatpush1.bf16.msra.mxu0 %v11737_v54  ;;  %3760 = vmatpush1.bf16.msra.mxu1 %v11740_v55  ;;  %v11832_v54 = vld [vmem:[%s16242_s2 + $0x58c] ss:$16 sps:$4 sm:$0xff]   ;;  %v11827_v55 = vld [vmem:[%s16242_s2 + $0x580] ss:$16 sps:$4 sm:$0xff]  }
 0x196   :  { %3597 = vmatprep.subr.bf16.mxu0 %v11745_v57  ;;  %3761 = vmatprep.subr.bf16.mxu1 %v11748_v58  ;;  %v11830_v57 = vld [vmem:[%s16242_s2 + $0x588] ss:$16 sps:$4 sm:$0xff]   ;;  %v11835_v58 = vld [vmem:[%s16242_s2 + $0x5a4] ss:$16 sps:$4 sm:$0xff]  }
 0x199   :  { %3598 = vmatpush1.bf16.msra.mxu0 %v11743_v60  ;;  %3762 = vmatpush1.bf16.msra.mxu1 %v11746_v3  ;;  %v11838_v60 = vld [vmem:[%s16242_s2 + $0x5ac] ss:$16 sps:$4 sm:$0xff]   ;;  %v11833_v3 = vld [vmem:[%s16242_s2 + $0x5a0] ss:$16 sps:$4 sm:$0xff]  }
 0x19a   :  { %3599 = vmatprep.subr.bf16.mxu0 %v11751_v61  ;;  %3763 = vmatprep.subr.bf16.mxu1 %v11754_v22  ;;  %v11836_v61 = vld [vmem:[%s16242_s2 + $0x5a8] ss:$16 sps:$4 sm:$0xff]   ;;  %v11841_v22 = vld [vmem:[%s16242_s2 + $0x5c4] ss:$16 sps:$4 sm:$0xff]  }
 0x19d   :  { %3600 = vmatpush1.bf16.msra.mxu0 %v11749_v63  ;;  %3764 = vmatpush1.bf16.msra.mxu1 %v11752_v0  ;;  %v11839_v63 = vld [vmem:[%s16242_s2 + $0x5c0] ss:$16 sps:$4 sm:$0xff]   ;;  %v11842_v0 = vld [vmem:[%s16242_s2 + $0x5c8] ss:$16 sps:$4 sm:$0xff]  }
 0x19e   :  { %3610 = vmatprep.subr.bf16.mxu0 %v11757_v1  ;;  %3774 = vmatprep.subr.bf16.mxu1 %v11760_v2  ;;  %v11847_v1 = vld [vmem:[%s16242_s2 + $0x5e4] ss:$16 sps:$4 sm:$0xff]   ;;  %v11850_v2 = vld [vmem:[%s16242_s2 + $0x5ec] ss:$16 sps:$4 sm:$0xff]  }
 0x1a0   :  { %3602 = vmatmul.mubr.bf16.vlgmr.msra.gmra.mrb[8].mxu0 %v1964_v6  ;;  %3766 = vmatmul.mubr.bf16.vlgmr.msra.gmra.mrb[8].mxu1 %v1964_v6  ;;  %v11853_v6 = vld [vmem:[%s16242_s2 + $0x604] ss:$16 sps:$4 sm:$0xff]  }
 0x1a1   :  { %3611 = vmatpush1.bf16.msra.mxu0 %v11755_v5  ;;  %3775 = vmatpush1.bf16.msra.mxu1 %v11758_v29  ;;  %v11848_v29 = vld [vmem:[%s16242_s2 + $0x5e8] ss:$16 sps:$4 sm:$0xff]  }
 0x1a2   :  { %3612 = vmatprep.subr.bf16.mxu0 %v11763_v7  ;;  %3776 = vmatprep.subr.bf16.mxu1 %v11766_v49 }
 0x1a5   :  { %3613 = vmatpush1.bf16.msra.mxu0 %v11761_v8  ;;  %3777 = vmatpush1.bf16.msra.mxu1 %v11764_v9 }
 0x1a6   :  { %3614 = vmatprep.subr.bf16.mxu0 %v11769_v10  ;;  %3778 = vmatprep.subr.bf16.mxu1 %v11772_v11  ;;  %v11856_v10 = vld [vmem:[%s16242_s2 + $0x60c] ss:$16 sps:$4 sm:$0xff]  }
 0x1a9   :  { %3615 = vmatpush1.bf16.msra.mxu0 %v11767_v12  ;;  %3779 = vmatpush1.bf16.msra.mxu1 %v11770_v13 }
 0x1aa   :  { %3616 = vmatprep.subr.bf16.mxu0 %v11775_v14  ;;  %3780 = vmatprep.subr.bf16.mxu1 %v11778_v15 }
 0x1ad   :  { %3617 = vmatpush1.bf16.msra.mxu0 %v11773_v16  ;;  %3781 = vmatpush1.bf16.msra.mxu1 %v11776_v17  ;;  %v11851_v17 = vld [vmem:[%s16242_s2 + $0x600] ss:$16 sps:$4 sm:$0xff]  }
 0x1ae   :  { %3618 = vmatprep.subr.bf16.mxu0 %v11781_v18  ;;  %3782 = vmatprep.subr.bf16.mxu1 %v11784_v19 }
 0x1b1   :  { %3619 = vmatpush1.bf16.msra.mxu0 %v11779_v20  ;;  %3783 = vmatpush1.bf16.msra.mxu1 %v11782_v21  ;;  %v11854_v21 = vld [vmem:[%s16242_s2 + $0x608] ss:$16 sps:$4 sm:$0xff]  }
 0x1b2   :  { %3620 = vmatprep.subr.bf16.mxu0 %v11787_v23  ;;  %3784 = vmatprep.subr.bf16.mxu1 %v11790_v24 }
 0x1b5   :  { %3621 = vmatpush1.bf16.msra.mxu0 %v11785_v25  ;;  %3785 = vmatpush1.bf16.msra.mxu1 %v11788_v26  ;;  %v11859_v25 = vld [vmem:[%s16242_s2 + $0x624] ss:$16 sps:$4 sm:$0xff]   ;;  %v11862_v26 = vld [vmem:[%s16242_s2 + $0x62c] ss:$16 sps:$4 sm:$0xff]  }
 0x1b6   :  { %3622 = vmatprep.subr.bf16.mxu0 %v11793_v27  ;;  %3786 = vmatprep.subr.bf16.mxu1 %v11796_v28  ;;  %v11857_v28 = vld [vmem:[%s16242_s2 + $0x620] ss:$16 sps:$4 sm:$0xff]  }
 0x1b9   :  { %3623 = vmatpush1.bf16.msra.mxu0 %v11791_v56  ;;  %3787 = vmatpush1.bf16.msra.mxu1 %v11794_v59  ;;  %v11860_v56 = vld [vmem:[%s16242_s2 + $0x628] ss:$16 sps:$4 sm:$0xff]   ;;  %v11865_v59 = vld [vmem:[%s16242_s2 + $0x644] ss:$16 sps:$4 sm:$0xff]  }
 0x1ba   :  { %3624 = vmatprep.subr.bf16.mxu0 %v11799_v30  ;;  %3788 = vmatprep.subr.bf16.mxu1 %v11802_v31  ;;  %v11868_v30 = vld [vmem:[%s16242_s2 + $0x64c] ss:$16 sps:$4 sm:$0xff]   ;;  %v11863_v31 = vld [vmem:[%s16242_s2 + $0x640] ss:$16 sps:$4 sm:$0xff]  }
 0x1bd   :  { %3625 = vmatpush1.bf16.msra.mxu0 %v11797_v33  ;;  %3789 = vmatpush1.bf16.msra.mxu1 %v11800_v34  ;;  %v11866_v33 = vld [vmem:[%s16242_s2 + $0x648] ss:$16 sps:$4 sm:$0xff]   ;;  %v11871_v34 = vld [vmem:[%s16242_s2 + $0x664] ss:$16 sps:$4 sm:$0xff]  }
 0x1be   :  { %3626 = vmatprep.subr.bf16.mxu0 %v11805_v35  ;;  %3790 = vmatprep.subr.bf16.mxu1 %v11808_v36  ;;  %v11874_v35 = vld [vmem:[%s16242_s2 + $0x66c] ss:$16 sps:$4 sm:$0xff]   ;;  %v11869_v36 = vld [vmem:[%s16242_s2 + $0x660] ss:$16 sps:$4 sm:$0xff]  }
 0x1c1   :  { %3627 = vmatpush1.bf16.msra.mxu0 %v11803_v38  ;;  %3791 = vmatpush1.bf16.msra.mxu1 %v11806_v39  ;;  %v11872_v38 = vld [vmem:[%s16242_s2 + $0x668] ss:$16 sps:$4 sm:$0xff]   ;;  %v11877_v39 = vld [vmem:[%s16242_s2 + $0x684] ss:$16 sps:$4 sm:$0xff]  }
 0x1c2   :  { %3628 = vmatprep.subr.bf16.mxu0 %v11811_v40  ;;  %3792 = vmatprep.subr.bf16.mxu1 %v11814_v41  ;;  %v11880_v40 = vld [vmem:[%s16242_s2 + $0x68c] ss:$16 sps:$4 sm:$0xff]   ;;  %v11875_v41 = vld [vmem:[%s16242_s2 + $0x680] ss:$16 sps:$4 sm:$0xff]  }
 0x1c5   :  { %3629 = vmatpush1.bf16.msra.mxu0 %v11809_v42  ;;  %3793 = vmatpush1.bf16.msra.mxu1 %v11812_v43  ;;  %v11878_v42 = vld [vmem:[%s16242_s2 + $0x688] ss:$16 sps:$4 sm:$0xff]   ;;  %v11883_v43 = vld [vmem:[%s16242_s2 + $0x6a4] ss:$16 sps:$4 sm:$0xff]  }
 0x1c6   :  { %3630 = vmatprep.subr.bf16.mxu0 %v11817_v44  ;;  %3794 = vmatprep.subr.bf16.mxu1 %v11820_v45  ;;  %v11886_v44 = vld [vmem:[%s16242_s2 + $0x6ac] ss:$16 sps:$4 sm:$0xff]   ;;  %v11881_v45 = vld [vmem:[%s16242_s2 + $0x6a0] ss:$16 sps:$4 sm:$0xff]  }
 0x1c9   :  { %3631 = vmatpush1.bf16.msra.mxu0 %v11815_v46  ;;  %3795 = vmatpush1.bf16.msra.mxu1 %v11818_v48  ;;  %v11884_v46 = vld [vmem:[%s16242_s2 + $0x6a8] ss:$16 sps:$4 sm:$0xff]   ;;  %v11889_v48 = vld [vmem:[%s16242_s2 + $0x6c4] ss:$16 sps:$4 sm:$0xff]  }
 0x1ca   :  { %3632 = vmatprep.subr.bf16.mxu0 %v11823_v50  ;;  %3796 = vmatprep.subr.bf16.mxu1 %v11826_v51  ;;  %v11892_v50 = vld [vmem:[%s16242_s2 + $0x6cc] ss:$16 sps:$4 sm:$0xff]   ;;  %v11887_v51 = vld [vmem:[%s16242_s2 + $0x6c0] ss:$16 sps:$4 sm:$0xff]  }
 0x1cd   :  { %3633 = vmatpush1.bf16.msra.mxu0 %v11821_v32  ;;  %3797 = vmatpush1.bf16.msra.mxu1 %v11824_v52  ;;  %v11890_v32 = vld [vmem:[%s16242_s2 + $0x6c8] ss:$16 sps:$4 sm:$0xff]   ;;  %v11895_v52 = vld [vmem:[%s16242_s2 + $0x6e4] ss:$16 sps:$4 sm:$0xff]  }
 0x1ce   :  { %3634 = vmatprep.subr.bf16.mxu0 %v11829_v53  ;;  %3798 = vmatprep.subr.bf16.mxu1 %v11832_v54  ;;  %v11898_v53 = vld [vmem:[%s16242_s2 + $0x6ec] ss:$16 sps:$4 sm:$0xff]   ;;  %v11893_v54 = vld [vmem:[%s16242_s2 + $0x6e0] ss:$16 sps:$4 sm:$0xff]  }
 0x1d1   :  { %3635 = vmatpush1.bf16.msra.mxu0 %v11827_v55  ;;  %3799 = vmatpush1.bf16.msra.mxu1 %v11830_v57  ;;  %v11896_v55 = vld [vmem:[%s16242_s2 + $0x6e8] ss:$16 sps:$4 sm:$0xff]   ;;  %v11901_v57 = vld [vmem:[%s16242_s2 + $0x704] ss:$16 sps:$4 sm:$0xff]  }
 0x1d2   :  { %3636 = vmatprep.subr.bf16.mxu0 %v11835_v58  ;;  %3800 = vmatprep.subr.bf16.mxu1 %v11838_v60  ;;  %v11904_v58 = vld [vmem:[%s16242_s2 + $0x70c] ss:$16 sps:$4 sm:$0xff]   ;;  %v11899_v60 = vld [vmem:[%s16242_s2 + $0x700] ss:$16 sps:$4 sm:$0xff]  }
 0x1d5   :  { %3637 = vmatpush1.bf16.msra.mxu0 %v11833_v3  ;;  %3801 = vmatpush1.bf16.msra.mxu1 %v11836_v61  ;;  %v11902_v3 = vld [vmem:[%s16242_s2 + $0x708] ss:$16 sps:$4 sm:$0xff]   ;;  %v11907_v61 = vld [vmem:[%s16242_s2 + $0x724] ss:$16 sps:$4 sm:$0xff]  }
 0x1d6   :  { %3638 = vmatprep.subr.bf16.mxu0 %v11841_v22  ;;  %3802 = vmatprep.subr.bf16.mxu1 %v11844_v62  ;;  %v11910_v22 = vld [vmem:[%s16242_s2 + $0x72c] ss:$16 sps:$4 sm:$0xff]   ;;  %v11905_v62 = vld [vmem:[%s16242_s2 + $0x720] ss:$16 sps:$4 sm:$0xff]  }
 0x1d8   :  { %v1849_v5 = vpop.f32.mrb[4].mxu0  ;;  %v13463_v49 = vpop.f32.mrb[4].mxu1 }
 0x1d9   :  { %vm1942_vm4 = vcmp.gt.f32.partialorder %v1849_v5, 0.0  ;;  %v1950_v7 = vmul.f32 0.2, %v1849_v5  ;;  %3639 = vmatpush1.bf16.msra.mxu0 %v11839_v63  ;;  %3803 = vmatpush1.bf16.msra.mxu1 %v11842_v0  ;;  %v1851_v8 = vpop.f32.mrb[5].mxu0  ;;  %v1933_v12 = vpop.f32.mrb[5].mxu1  ;;  %vm1944_vm7 = vcmp.gt.f32.partialorder %v13463_v49, 0.0 }
 0x1da   :  { %vm1943_vm5 = vcmp.gt.f32.partialorder %v1851_v8, 0.0  ;;  %v1951_v9 = vmul.f32 0.2, %v1851_v8  ;;  %3640 = vmatprep.subr.bf16.mxu0 %v11847_v1  ;;  %3804 = vmatprep.subr.bf16.mxu1 %v11850_v2  ;;  %v1853_v13 = vpop.f32.mrb[6].mxu0  ;;  %vm1945_vm6 = vcmp.gt.f32.partialorder %v1933_v12, 0.0  ;;  %v1935_v15 = vpop.f32.mrb[6].mxu1 }
 0x1db   :  { %v1958_v11 = vsel %vm1942_vm4, %v1849_v5, %v1950_v7  ;;  %v1854_v16 = vpop.f32.mrb[7].mxu0  ;;  %v1953_v19 = vmul.f32 0.2, %v1933_v12  ;;  %v1936_v20 = vpop.f32.mrb[7].mxu1  ;;  %v11908_v63 = vld [vmem:[%s16242_s2 + $0x728] ss:$16 sps:$4 sm:$0xff]  }
 0x1dc   :  { %v1959_v14 = vsel %vm1943_vm5, %v1851_v8, %v1951_v9  ;;  %v1966_v23 = vpack.c.bf16 %v1958_v11, %v1958_v11  ;;  %v11913_v0 = vld [vmem:[%s16242_s2 + $0x744] ss:$16 sps:$4 sm:$0xff]   ;;  %v11916_v1 = vld [vmem:[%s16242_s2 + $0x74c] ss:$16 sps:$4 sm:$0xff]   ;;  %v11911_v2 = vld [vmem:[%s16242_s2 + $0x740] ss:$16 sps:$4 sm:$0xff]  }
 0x1dd   :  { %v1967_v18 = vpack.c.bf16 %v1959_v14, %v1959_v14  ;;  %3641 = vmatpush1.bf16.msra.mxu0 %v11845_v4  ;;  %3805 = vmatpush1.bf16.msra.mxu1 %v11848_v29  ;;  %v1961_v24 = vsel %vm1945_vm6, %v1933_v12, %v1953_v19  ;;  %v11914_v4 = vld [vmem:[%s16242_s2 + $0x748] ss:$16 sps:$4 sm:$0xff]   ;;  %v11919_v5 = vld [vmem:[%s16242_s2 + $0x764] ss:$16 sps:$4 sm:$0xff]   ;;  %v11922_v29 = vld [vmem:[%s16242_s2 + $0x76c] ss:$16 sps:$4 sm:$0xff]  }
 0x1de   :  { %3651 = vmatprep.subr.bf16.mxu0 %v11853_v6  ;;  %3815 = vmatprep.subr.bf16.mxu1 %v11856_v10  ;;  %v1969_v27 = vpack.c.bf16 %v1961_v24, %v1961_v24  ;;  %v11917_v6 = vld [vmem:[%s16242_s2 + $0x760] ss:$16 sps:$4 sm:$0xff]   ;;  %v11920_v7 = vld [vmem:[%s16242_s2 + $0x768] ss:$16 sps:$4 sm:$0xff]   ;;  %v11925_v8 = vld [vmem:[%s16242_s2 + $0x784] ss:$16 sps:$4 sm:$0xff]  }
 0x1df   :  { %3642 = vmatprep.mubr.bf16.mxu0 %v1967_v18  ;;  %3806 = vmatprep.mubr.bf16.mxu1 %v1967_v18  ;;  %v11928_v9 = vld [vmem:[%s16242_s2 + $0x78c] ss:$16 sps:$4 sm:$0xff]   ;;  %v11923_v10 = vld [vmem:[%s16242_s2 + $0x780] ss:$16 sps:$4 sm:$0xff]   ;;  %v11926_v11 = vld [vmem:[%s16242_s2 + $0x788] ss:$16 sps:$4 sm:$0xff]  }
 0x1e0   :  { %3643 = vmatmul.mubr.bf16.vlgmr.msra.gmra.mrb[8].mxu0 %v1966_v23  ;;  %3807 = vmatmul.mubr.bf16.vlgmr.msra.gmra.mrb[8].mxu1 %v1966_v23  ;;  %v11931_v12 = vld [vmem:[%s16242_s2 + $0x7a4] ss:$16 sps:$4 sm:$0xff]   ;;  %v11934_v13 = vld [vmem:[%s16242_s2 + $0x7ac] ss:$16 sps:$4 sm:$0xff]   ;;  %v11929_v14 = vld [vmem:[%s16242_s2 + $0x7a0] ss:$16 sps:$4 sm:$0xff]  }
 0x1e1   :  { %3652 = vmatpush1.bf16.msra.mxu0 %v11851_v17  ;;  %3816 = vmatpush1.bf16.msra.mxu1 %v11854_v21  ;;  %v11932_v15 = vld [vmem:[%s16242_s2 + $0x7a8] ss:$16 sps:$4 sm:$0xff]   ;;  %v11937_v16 = vld [vmem:[%s16242_s2 + $0x7c4] ss:$16 sps:$4 sm:$0xff]   ;;  %v11940_v17 = vld [vmem:[%s16242_s2 + $0x7cc] ss:$16 sps:$4 sm:$0xff]  }
 0x1e2   :  { %3683 = vmatprep.mubr.bf16.mxu0 %v1969_v27  ;;  %3847 = vmatprep.mubr.bf16.mxu1 %v1969_v27  ;;  %v11935_v18 = vld [vmem:[%s16242_s2 + $0x7c0] ss:$16 sps:$4 sm:$0xff]   ;;  %v11938_v19 = vld [vmem:[%s16242_s2 + $0x7c8] ss:$16 sps:$4 sm:$0xff]   ;;  %v11943_v20 = vld [vmem:[%s16242_s2 + $0x7e4] ss:$16 sps:$4 sm:$0xff]  }
 0x1e3   :  { %3653 = vmatprep.subr.bf16.mxu0 %v11859_v25  ;;  %3817 = vmatprep.subr.bf16.mxu1 %v11862_v26  ;;  %v11946_v21 = vld [vmem:[%s16242_s2 + $0x7ec] ss:$16 sps:$4 sm:$0xff]   ;;  %v1952_v23 = vmul.f32 0.2, %v13463_v49  ;;  %v11941_v24 = vld [vmem:[%s16242_s2 + $0x7e0] ss:$16 sps:$4 sm:$0xff]  }
 0x1e4   :  { %v11944_v25 = vld [vmem:[%s16242_s2 + $0x7e8] ss:$16 sps:$4 sm:$0xff]   ;;  %v11947_v26 = vld [vmem:[%s16243_s4 + $0x40] sm:$0xff]  }
 0x1e5   :  { %3654 = vmatpush1.bf16.msra.mxu0 %v11857_v28  ;;  %3818 = vmatpush1.bf16.msra.mxu1 %v11860_v56  ;;  %v11948_v27 = vld [vmem:[%s16243_s4 + $0xc0] sm:$0xff]   ;;  %v1960_v28 = vsel %vm1944_vm7, %v13463_v49, %v1952_v23  ;;  %v11952_v49 = vld [vmem:[%s16243_s4 + $0xc8] sm:$0xff]  }
 0x1e6   :  { %3655 = vmatprep.subr.bf16.mxu0 %v11865_v59  ;;  %3819 = vmatprep.subr.bf16.mxu1 %v11868_v30  ;;  %v11949_v56 = vld [vmem:[%s16243_s4] sm:$0xff]   ;;  %v1968_v30 = vpack.c.bf16 %v1960_v28, %v1960_v28  ;;  %v11990_v28 = vld [vmem:[%s16245_s6 + $0x2c] ss:$16 sps:$4 sm:$0xff]  }
 0x1e7   :  { %v11950_v59 = vld [vmem:[%s16243_s4 + $0x80] sm:$0xff]  }
 0x1e8   :  { %v11981_v23 = vld [vmem:[%s16245_s6 + $0x4] ss:$16 sps:$4 sm:$0xff]  }
 0x1e9   :  { %3656 = vmatpush1.bf16.msra.mxu0 %v11863_v31  ;;  %3820 = vmatpush1.bf16.msra.mxu1 %v11866_v33  ;;  %v11951_v31 = vld [vmem:[%s16243_s4 + $0x48] sm:$0xff]  }
 0x1ea   :  { %3657 = vmatprep.subr.bf16.mxu0 %v11871_v34  ;;  %3821 = vmatprep.subr.bf16.mxu1 %v11874_v35  ;;  %v11953_v33 = vld [vmem:[%s16243_s4 + $0x8] sm:$0xff]   ;;  %v11955_v35 = vld [vmem:[%s16243_s4 + $0x50] sm:$0xff]  }
 0x1eb   :  { %v11954_v34 = vld [vmem:[%s16243_s4 + $0x88] sm:$0xff]  }
 0x1ed   :  { %3658 = vmatpush1.bf16.msra.mxu0 %v11869_v36  ;;  %3822 = vmatpush1.bf16.msra.mxu1 %v11872_v38  ;;  %v11956_v36 = vld [vmem:[%s16243_s4 + $0xd0] sm:$0xff]  }
 0x1ee   :  { %3659 = vmatprep.subr.bf16.mxu0 %v11877_v39  ;;  %3823 = vmatprep.subr.bf16.mxu1 %v11880_v40  ;;  %v11957_v38 = vld [vmem:[%s16243_s4 + $0x10] sm:$0xff]   ;;  %v11959_v40 = vld [vmem:[%s16243_s4 + $0x58] sm:$0xff]  }
 0x1ef   :  { %v11958_v39 = vld [vmem:[%s16243_s4 + $0x90] sm:$0xff]  }
 0x1f1   :  { %3660 = vmatpush1.bf16.msra.mxu0 %v11875_v41  ;;  %3824 = vmatpush1.bf16.msra.mxu1 %v11878_v42  ;;  %v11960_v41 = vld [vmem:[%s16243_s4 + $0xd8] sm:$0xff]  }
 0x1f2   :  { %3661 = vmatprep.subr.bf16.mxu0 %v11883_v43  ;;  %3825 = vmatprep.subr.bf16.mxu1 %v11886_v44  ;;  %v11961_v42 = vld [vmem:[%s16243_s4 + $0x18] sm:$0xff]   ;;  %v11963_v44 = vld [vmem:[%s16243_s4 + $0x60] sm:$0xff]  }
 0x1f3   :  { %v11962_v43 = vld [vmem:[%s16243_s4 + $0x98] sm:$0xff]  }
 0x1f5   :  { %3662 = vmatpush1.bf16.msra.mxu0 %v11881_v45  ;;  %3826 = vmatpush1.bf16.msra.mxu1 %v11884_v46  ;;  %v11964_v45 = vld [vmem:[%s16243_s4 + $0xe0] sm:$0xff]  }
 0x1f6   :  { %3663 = vmatprep.subr.bf16.mxu0 %v11889_v48  ;;  %3827 = vmatprep.subr.bf16.mxu1 %v11892_v50  ;;  %v11965_v46 = vld [vmem:[%s16243_s4 + $0x20] sm:$0xff]   ;;  %v11967_v50 = vld [vmem:[%s16243_s4 + $0x68] sm:$0xff]  }
 0x1f7   :  { %v11966_v48 = vld [vmem:[%s16243_s4 + $0xa0] sm:$0xff]  }
 0x1f9   :  { %3664 = vmatpush1.bf16.msra.mxu0 %v11887_v51  ;;  %3828 = vmatpush1.bf16.msra.mxu1 %v11890_v32  ;;  %v11968_v51 = vld [vmem:[%s16243_s4 + $0xe8] sm:$0xff]  }
 0x1fa   :  { %3665 = vmatprep.subr.bf16.mxu0 %v11895_v52  ;;  %3829 = vmatprep.subr.bf16.mxu1 %v11898_v53  ;;  %v11969_v32 = vld [vmem:[%s16243_s4 + $0x28] sm:$0xff]   ;;  %v11971_v53 = vld [vmem:[%s16243_s4 + $0x70] sm:$0xff]  }
 0x1fb   :  { %v11970_v52 = vld [vmem:[%s16243_s4 + $0xa8] sm:$0xff]  }
 0x1fd   :  { %3666 = vmatpush1.bf16.msra.mxu0 %v11893_v54  ;;  %3830 = vmatpush1.bf16.msra.mxu1 %v11896_v55  ;;  %v11972_v54 = vld [vmem:[%s16243_s4 + $0xf0] sm:$0xff]  }
 0x1fe   :  { %3667 = vmatprep.subr.bf16.mxu0 %v11901_v57  ;;  %3831 = vmatprep.subr.bf16.mxu1 %v11904_v58  ;;  %v11973_v55 = vld [vmem:[%s16243_s4 + $0x30] sm:$0xff]   ;;  %v11975_v58 = vld [vmem:[%s16243_s4 + $0x78] sm:$0xff]  }
 0x1ff   :  { %v11974_v57 = vld [vmem:[%s16243_s4 + $0xb0] sm:$0xff]  }
 0x201   :  { %3668 = vmatpush1.bf16.msra.mxu0 %v11899_v60  ;;  %3832 = vmatpush1.bf16.msra.mxu1 %v11902_v3  ;;  %v11976_v60 = vld [vmem:[%s16243_s4 + $0xf8] sm:$0xff]  }
 0x202   :  { %3669 = vmatprep.subr.bf16.mxu0 %v11907_v61  ;;  %3833 = vmatprep.subr.bf16.mxu1 %v11910_v22  ;;  %v11977_v3 = vld [vmem:[%s16243_s4 + $0x38] sm:$0xff]   ;;  %v13754_v22 = vsub.s32 0, %v12140_v47 }
 0x203   :  { %v11978_v61 = vld [vmem:[%s16243_s4 + $0xb8] sm:$0xff]  }
 0x205   :  { %3670 = vmatpush1.bf16.msra.mxu0 %v11905_v62  ;;  %3834 = vmatpush1.bf16.msra.mxu1 %v11908_v63  ;;  %v13757_v62 = vsub.s32 2, %v12140_v47  ;;  %v2226_v63 = vld [vmem:[%s16244_s3] sm:$0xf] }
 0x206   :  { %3671 = vmatprep.subr.bf16.mxu0 %v11913_v0  ;;  %3835 = vmatprep.subr.bf16.mxu1 %v11916_v1  ;;  %v13763_v0 = vsub.s32 1, %v12140_v47  ;;  %v13766_v1 = vsub.s32 3, %v12140_v47 }
 0x209   :  { %3672 = vmatpush1.bf16.msra.mxu0 %v11911_v2  ;;  %3836 = vmatpush1.bf16.msra.mxu1 %v11914_v4  ;;  %v2231_v2 = vrot.slane %v2226_v63, %v13754_v22  ;;  %v2239_v4 = vrot.slane %v2226_v63, %v13757_v62 }
 0x20a   :  { %3673 = vmatprep.subr.bf16.mxu0 %v11919_v5  ;;  %3837 = vmatprep.subr.bf16.mxu1 %v11922_v29  ;;  %v2235_v5 = vrot.slane %v2226_v63, %v13763_v0  ;;  %v2243_v29 = vrot.slane %v2226_v63, %v13766_v1 }
 0x20d   :  { %3674 = vmatpush1.bf16.msra.mxu0 %v11917_v6  ;;  %3838 = vmatpush1.bf16.msra.mxu1 %v11920_v7 }
 0x20e   :  { %3675 = vmatprep.subr.bf16.mxu0 %v11925_v8  ;;  %3839 = vmatprep.subr.bf16.mxu1 %v11928_v9 }
 0x211   :  { %3676 = vmatpush1.bf16.msra.mxu0 %v11923_v10  ;;  %3840 = vmatpush1.bf16.msra.mxu1 %v11926_v11 }
 0x212   :  { %3677 = vmatprep.subr.bf16.mxu0 %v11931_v12  ;;  %3841 = vmatprep.subr.bf16.mxu1 %v11934_v13 }
 0x215   :  { %3678 = vmatpush1.bf16.msra.mxu0 %v11929_v14  ;;  %3842 = vmatpush1.bf16.msra.mxu1 %v11932_v15 }
 0x216   :  { %3679 = vmatprep.subr.bf16.mxu0 %v11937_v16  ;;  %3843 = vmatprep.subr.bf16.mxu1 %v11940_v17 }
 0x219   :  { %3680 = vmatpush1.bf16.msra.mxu0 %v11935_v18  ;;  %3844 = vmatpush1.bf16.msra.mxu1 %v11938_v19 }
 0x21a   :  { %3681 = vmatprep.subr.bf16.mxu0 %v11943_v20  ;;  %3845 = vmatprep.subr.bf16.mxu1 %v11946_v21 }
 0x21d   :  { %3682 = vmatpush1.bf16.msra.mxu0 %v11941_v24  ;;  %3846 = vmatpush1.bf16.msra.mxu1 %v11944_v25  ;;  %v11979_v24 = vld [vmem:[%s16245_s6] ss:$16 sps:$4 sm:$0xff]   ;;  %v11982_v25 = vld [vmem:[%s16245_s6 + $0x8] ss:$16 sps:$4 sm:$0xff]  }
 0x21e   :  { %11400 = vmatprep.subr.bf16.mxu0 %v11947_v26  ;;  %11422 = vmatprep.subr.bf16.mxu1 %v11948_v27  ;;  %v11984_v26 = vld [vmem:[%s16245_s6 + $0xc] ss:$16 sps:$4 sm:$0xff]   ;;  %v11987_v27 = vld [vmem:[%s16245_s6 + $0x24] ss:$16 sps:$4 sm:$0xff]  }
 0x220   :  { %3684 = vmatmul.mubr.bf16.vlgmr.msra.gmra.mrb[8].mxu0 %v1968_v30  ;;  %3848 = vmatmul.mubr.bf16.vlgmr.msra.gmra.mrb[8].mxu1 %v1968_v30  ;;  %v11995_v30 = vmov 0  }
 0x221   :  { %11401 = vmatpush3.bf16.msra.mxu0 %v11949_v56  ;;  %11423 = vmatpush3.bf16.msra.mxu1 %v11950_v59  ;;  %v11985_v56 = vld [vmem:[%s16245_s6 + $0x20] ss:$16 sps:$4 sm:$0xff]   ;;  %v11988_v59 = vld [vmem:[%s16245_s6 + $0x28] ss:$16 sps:$4 sm:$0xff]  }
 0x222   :  { %11402 = vmatprep.subr.bf16.mxu0 %v11951_v31  ;;  %11424 = vmatprep.subr.bf16.mxu1 %v11952_v49  ;;  %v4380_v31 = vld [vmem:[%s16246_s8] sm:$0xff] }
 0x223   :  { %v4384_v49 = vld [vmem:[%s16246_s8 + $0x20] sm:$0xff] }
 0x225   :  { %11403 = vmatpush3.bf16.msra.mxu0 %v11953_v33  ;;  %11425 = vmatpush3.bf16.msra.mxu1 %v11954_v34  ;;  %v4381_v33 = vld [vmem:[%s16246_s8 + $0x8] sm:$0xff]  ;;  %v10632_v34 = vcombine.low %v4380_v31, %v4384_v49 }
 0x226   :  { %11404 = vmatprep.subr.bf16.mxu0 %v11955_v35  ;;  %11426 = vmatprep.subr.bf16.mxu1 %v11956_v36  ;;  %v10633_v35 = vcombine.high %v4380_v31, %v4384_v49  ;;  %v4385_v36 = vld [vmem:[%s16246_s8 + $0x28] sm:$0xff]  ;;  %v4420_v49 = vld [vmem:[%s16246_s8 + $0x140] sm:$0xff] }
 0x229   :  { %11405 = vmatpush3.bf16.msra.mxu0 %v11957_v38  ;;  %11427 = vmatpush3.bf16.msra.mxu1 %v11958_v39  ;;  %v10634_v38 = vcombine.low %v4381_v33, %v4385_v36  ;;  %v10635_v39 = vcombine.high %v4381_v33, %v4385_v36  ;;  %v4424_v33 = vld [vmem:[%s16246_s8 + $0x160] sm:$0xff] }
 0x22a   :  { %11406 = vmatprep.subr.bf16.mxu0 %v11959_v40  ;;  %11428 = vmatprep.subr.bf16.mxu1 %v11960_v41 }
 0x22d   :  { %11407 = vmatpush3.bf16.msra.mxu0 %v11961_v42  ;;  %11429 = vmatpush3.bf16.msra.mxu1 %v11962_v43  ;;  %v10589_v42 = vld [vmem:[%s16247_s5] ss:$0 sm:$0xff] }
 0x22e   :  { %11408 = vmatprep.subr.bf16.mxu0 %v11963_v44  ;;  %11430 = vmatprep.subr.bf16.mxu1 %v11964_v45 }
 0x231   :  { %11409 = vmatpush3.bf16.msra.mxu0 %v11965_v46  ;;  %11431 = vmatpush3.bf16.msra.mxu1 %v11966_v48 }
 0x232   :  { %11410 = vmatprep.subr.bf16.mxu0 %v11967_v50  ;;  %11432 = vmatprep.subr.bf16.mxu1 %v11968_v51 }
 0x235   :  { %11411 = vmatpush3.bf16.msra.mxu0 %v11969_v32  ;;  %11433 = vmatpush3.bf16.msra.mxu1 %v11970_v52 }
 0x236   :  { %11412 = vmatprep.subr.bf16.mxu0 %v11971_v53  ;;  %11434 = vmatprep.subr.bf16.mxu1 %v11972_v54 }
 0x239   :  { %11413 = vmatpush3.bf16.msra.mxu0 %v11973_v55  ;;  %11435 = vmatpush3.bf16.msra.mxu1 %v11974_v57  ;;  %v4206_v57 = vand.u32 127, %v313_v37  ;;  %v4389_v37 = vld [vmem:[%s16246_s8 + $0x48] sm:$0xff] }
 0x23a   :  { %11414 = vmatprep.subr.bf16.mxu0 %v11975_v58  ;;  %11436 = vmatprep.subr.bf16.mxu1 %v11976_v60  ;;  %v4209_v58 = vld [vmem:[%s16249_s11] sm:$0x3] }
 0x23b   :  { %vm4207_vm9 = vcmp.lt.s32.totalorder %v4206_v57, 16 }
 0x23d   :  { %11415 = vmatpush3.bf16.msra.mxu0 %v11977_v3  ;;  %11437 = vmatpush3.bf16.msra.mxu1 %v11978_v61  ;;  %v4388_v61 = vld [vmem:[%s16246_s8 + $0x40] sm:$0xff] }
 0x23e   :  { %4290 = vmatprep.subr.bf16.mxu0 %v11981_v23  ;;  %4331 = vmatprep.subr.bf16.mxu1 %v11984_v26  ;;  %v4416_v26 = vld [vmem:[%s16246_s8 + $0x120] sm:$0xff] }
 0x2f3   :  { %v3685_v6 = vpop.f32.mrb[8].mxu0  ;;  %v3849_v7 = vpop.f32.mrb[8].mxu1 }
 0x2f4   :  { %v11444_v8 = vadd.f32 %v3685_v6, %v2231_v2  ;;  %v11446_v9 = vadd.f32 %v3849_v7, %v2239_v4  ;;  %v3687_v10 = vpop.f32.mrb[9].mxu0  ;;  %v3851_v11 = vpop.f32.mrb[9].mxu1  ;;  %v4392_v2 = vld [vmem:[%s16246_s8 + $0x60] sm:$0xff]  ;;  %v4393_v4 = vld [vmem:[%s16246_s8 + $0x68] sm:$0xff] }
 0x2f5   :  { %v11445_v12 = vadd.f32 %v3687_v10, %v2235_v5  ;;  %v11447_v13 = vadd.f32 %v3851_v11, %v2243_v29  ;;  %v3689_v14 = vpop.f32.mrb[10].mxu0  ;;  %v3853_v15 = vpop.f32.mrb[10].mxu1  ;;  %v10641_v6 = vcombine.high %v4388_v61, %v4392_v2  ;;  %v10643_v7 = vcombine.high %v4389_v37, %v4393_v4  ;;  %v4397_v10 = vld [vmem:[%s16246_s8 + $0x88] sm:$0xff] }
 0x2f6   :  { %v3690_v16 = vpop.f32.mrb[11].mxu0  ;;  %v3854_v17 = vpop.f32.mrb[11].mxu1  ;;  %v3856_v20 = vpack.c.bf16 %v11444_v8, %v11444_v8  ;;  %v3858_v21 = vpack.c.bf16 %v11446_v9, %v11446_v9  ;;  %v4396_v8 = vld [vmem:[%s16246_s8 + $0x80] sm:$0xff]  ;;  %v4401_v11 = vld [vmem:[%s16246_s8 + $0xa8] sm:$0xff] }
 0x2f7   :  { %v3857_v18 = vpack.c.bf16 %v11445_v12, %v11445_v12  ;;  %v3859_v19 = vpack.c.bf16 %v11447_v13, %v11447_v13  ;;  %v4400_v9 = vld [vmem:[%s16246_s8 + $0xa0] sm:$0xff]  ;;  %v10640_v12 = vcombine.low %v4388_v61, %v4392_v2  ;;  %v10642_v13 = vcombine.low %v4389_v37, %v4393_v4  ;;  %v4445_v61 = vld [vmem:[%s16246_s8 + $0x208] sm:$0xff] }
 0x2f8   :  { %v10649_v14 = vcombine.high %v4396_v8, %v4400_v9  ;;  %v10651_v15 = vcombine.high %v4397_v10, %v4401_v11  ;;  %v4404_v16 = vld [vmem:[%s16246_s8 + $0xc0] sm:$0xff] }
 0x2f9   :  { %4155 = vmatprep.mubr.bf16.mxu0 %v3857_v18  ;;  %4195 = vmatprep.mubr.bf16.mxu1 %v3859_v19  ;;  %v4408_v17 = vld [vmem:[%s16246_s8 + $0xe0] sm:$0xff]  ;;  %v4405_v18 = vld [vmem:[%s16246_s8 + $0xc8] sm:$0xff] }
 0x2fa   :  { %4156 = vmatmul.mubr.bf16.vlgmr.msra.gmra.mrb[12].mxu0 %v3856_v20  ;;  %4196 = vmatmul.mubr.bf16.vlgmr.msra.gmra.mrb[12].mxu1 %v3858_v21  ;;  %v4409_v19 = vld [vmem:[%s16246_s8 + $0xe8] sm:$0xff]  ;;  %v10648_v20 = vcombine.low %v4396_v8, %v4400_v9  ;;  %v10650_v21 = vcombine.low %v4397_v10, %v4401_v11  ;;  %v10657_v23 = vcombine.high %v4404_v16, %v4408_v17 }
 0x2fb   :  { %4291 = vmatpush1.bf16.msra.mxu0 %v11979_v24  ;;  %4332 = vmatpush1.bf16.msra.mxu1 %v11982_v25  ;;  %v10659_v24 = vcombine.high %v4405_v18, %v4409_v19  ;;  %v4412_v25 = vld [vmem:[%s16246_s8 + $0x100] sm:$0xff]  ;;  %v4457_v8 = vld [vmem:[%s16246_s8 + $0x268] sm:$0xff] }
 0x2fc   :  { %4292 = vmatprep.subr.bf16.mxu0 %v11987_v27  ;;  %4333 = vmatprep.subr.bf16.mxu1 %v11990_v28  ;;  %v4413_v27 = vld [vmem:[%s16246_s8 + $0x108] sm:$0xff]  ;;  %v10664_v36 = vcombine.low %v4412_v25, %v4416_v26 }
 0x2fd   :  { %4322 = vmatprep.mubr.bf16.mxu0 %v11995_v30  ;;  %4363 = vmatprep.mubr.bf16.mxu1 %v11995_v30  ;;  %v4417_v28 = vld [vmem:[%s16246_s8 + $0x128] sm:$0xff]  ;;  %v10665_v30 = vcombine.high %v4412_v25, %v4416_v26 }
 0x2fe   :  { %v10667_v31 = vcombine.high %v4413_v27, %v4417_v28  ;;  %v4473_v25 = vld [vmem:[%s16246_s8 + $0x2e8] sm:$0xff] }
 0x2ff   :  { %4293 = vmatpush1.bf16.msra.mxu0 %v11985_v56  ;;  %4334 = vmatpush1.bf16.msra.mxu1 %v11988_v59  ;;  %v10656_v56 = vcombine.low %v4404_v16, %v4408_v17  ;;  %v10658_v59 = vcombine.low %v4405_v18, %v4409_v19  ;;  %v4465_v16 = vld [vmem:[%s16246_s8 + $0x2a8] sm:$0xff] }
 0x300   :  { %5958 = vmatprep.subr.bf16.mxu0 %v10633_v35  ;;  %6040 = vmatprep.subr.bf16.mxu1 %v10635_v39  ;;  %v4425_v35 = vld [vmem:[%s16246_s8 + $0x168] sm:$0xff]  ;;  %v10673_v39 = vcombine.high %v4420_v49, %v4424_v33 }
 0x3cd   :  { %v11416_v40 = vpop.f32.mrb[12].mxu0  ;;  %v11438_v41 = vpop.f32.mrb[12].mxu1 }
 0x3ce   :  { %v11417_v43 = vpop.f32.mrb[13].mxu0  ;;  %v11439_v44 = vpop.f32.mrb[13].mxu1 }
 0x3cf   :  { %v11418_v45 = vadd.f32 %v11417_v43, %v11416_v40  ;;  %v11440_v46 = vadd.f32 %v11439_v44, %v11438_v41  ;;  %v11419_v48 = vpop.f32.mrb[14].mxu0  ;;  %v11441_v50 = vpop.f32.mrb[14].mxu1  ;;  %v4428_v41 = vld [vmem:[%s16246_s8 + $0x180] sm:$0xff]  ;;  %v4429_v43 = vld [vmem:[%s16246_s8 + $0x188] sm:$0xff] }
 0x3d0   :  { %v11420_v51 = vpop.f32.mrb[15].mxu0  ;;  %v11442_v32 = vpop.f32.mrb[15].mxu1  ;;  %v4433_v44 = vld [vmem:[%s16246_s8 + $0x1a8] sm:$0xff] }
 0x3d1   :  { %v4158_v52 = vadd.f32 %v11418_v45, %v10589_v42  ;;  %v4432_v42 = vld [vmem:[%s16246_s8 + $0x1a0] sm:$0xff]  ;;  %v10672_v45 = vcombine.low %v4420_v49, %v4424_v33  ;;  %v10683_v50 = vcombine.high %v4429_v43, %v4433_v44  ;;  %v4481_v49 = vld [vmem:[%s16246_s8 + $0x328] sm:$0xff] }
 0x3d2   :  { %v10681_v48 = vcombine.high %v4428_v41, %v4432_v42  ;;  %v4436_v51 = vld [vmem:[%s16246_s8 + $0x1c0] sm:$0xff] }
 0x3d3   :  { %v4198_v53 = vadd.f32 %v11440_v46, %v4158_v52  ;;  %v4440_v32 = vld [vmem:[%s16246_s8 + $0x1e0] sm:$0xff]  ;;  %v4437_v52 = vld [vmem:[%s16246_s8 + $0x1c8] sm:$0xff] }
 0x3d4   :  { %v10689_v57 = vcombine.high %v4436_v51, %v4440_v32  ;;  %v10688_v2 = vcombine.low %v4436_v51, %v4440_v32  ;;  %v4496_v51 = vld [vmem:[%s16246_s8 + $0x3a0] sm:$0xff]  ;;  %v4493_v32 = vld [vmem:[%s16246_s8 + $0x388] sm:$0xff] }
 0x3d5   :  { %4204 = vst.msk [vmem:[%s16248_s12] sm:$0x3] %vm4203_vm8, %v4198_v53  ;;  %v4210_v54 = vmul.f32 0.5, %v4198_v53  ;;  %v4208_v63 = vsel %vm4207_vm9, %v4198_v53, 0.0  ;;  %v4441_v53 = vld [vmem:[%s16246_s8 + $0x1e8] sm:$0xff] }
 0x3d6   :  { %v10690_v37 = vcombine.low %v4437_v52, %v4441_v53 }
 0x3d7   :  { %v4211_v55 = vmul.f32 1.442695, %v4210_v54  ;;  %v10680_v54 = vcombine.low %v4428_v41, %v4432_v42  ;;  %v4489_v41 = vld [vmem:[%s16246_s8 + $0x368] sm:$0xff] }
 0x3d9   :  { %11991 = vpow2.f32 %v4211_v55  ;;  %v10682_v55 = vcombine.low %v4429_v43, %v4433_v44 }
 0x3e3   :  { %v11992_v60 = vpop.eup %11991 }
 0x3e4   :  { %v4213_v3 = vmul.f32 %v11992_v60, %v4209_v58  ;;  %v10691_v58 = vcombine.high %v4437_v52, %v4441_v53  ;;  %v4444_v60 = vld [vmem:[%s16246_s8 + $0x200] sm:$0xff]  ;;  %v4497_v53 = vld [vmem:[%s16246_s8 + $0x3a8] sm:$0xff] }
 0x3e6   :  { %v4214_v5 = vadd.f32 %v4213_v3, %v4208_v63  ;;  %v4448_v3 = vld [vmem:[%s16246_s8 + $0x220] sm:$0xff]  ;;  %v4449_v63 = vld [vmem:[%s16246_s8 + $0x228] sm:$0xff] }
 0x3e7   :  { %v10697_v4 = vcombine.high %v4444_v60, %v4448_v3  ;;  %v10696_v9 = vcombine.low %v4444_v60, %v4448_v3  ;;  %v10698_v10 = vcombine.low %v4445_v61, %v4449_v63  ;;  %v4504_v60 = vld [vmem:[%s16246_s8 + $0x3e0] sm:$0xff]  ;;  %v4501_v3 = vld [vmem:[%s16246_s8 + $0x3c8] sm:$0xff] }
 0x3e8   :  { %v4215_v29 = vpack.c.bf16 %v4214_v5, %v4214_v5  ;;  %v10699_v5 = vcombine.high %v4445_v61, %v4449_v63  ;;  %v4505_v63 = vld [vmem:[%s16246_s8 + $0x3e8] sm:$0xff] }
 0x3ea   :  { %10630 = vmatmul.mubr.msk.bf16.vlgmr.msra.gmra.mrb[16].mxu0 %vm4286_vm10, %v4215_v29  ;;  %10631 = vmatmul.mubr.msk.bf16.vlgmr.msra.gmra.mrb[16].mxu1 %vm4286_vm10, %v4215_v29  ;;  %v4452_v29 = vld [vmem:[%s16246_s8 + $0x240] sm:$0xff] }
 0x3eb   :  { %5959 = vmatpush1.bf16.msra.mxu0 %v10632_v34  ;;  %6041 = vmatpush1.bf16.msra.mxu1 %v10634_v38  ;;  %v4421_v34 = vld [vmem:[%s16246_s8 + $0x148] sm:$0xff]  ;;  %v10666_v38 = vcombine.low %v4413_v27, %v4417_v28 }
 0x3ec   :  { %5960 = vmatprep.subr.bf16.mxu0 %v10641_v6  ;;  %6042 = vmatprep.subr.bf16.mxu1 %v10643_v7  ;;  %v10675_v40 = vcombine.high %v4421_v34, %v4425_v35  ;;  %v10674_v46 = vcombine.low %v4421_v34, %v4425_v35  ;;  %v4456_v6 = vld [vmem:[%s16246_s8 + $0x260] sm:$0xff]  ;;  %v4453_v7 = vld [vmem:[%s16246_s8 + $0x248] sm:$0xff] }
 0x3ed   :  { %v10705_v11 = vcombine.high %v4452_v29, %v4456_v6  ;;  %v10704_v17 = vcombine.low %v4452_v29, %v4456_v6  ;;  %v10706_v18 = vcombine.low %v4453_v7, %v4457_v8  ;;  %v4512_v29 = vld [vmem:[%s16246_s8 + $0x420] sm:$0xff]  ;;  %v4509_v6 = vld [vmem:[%s16246_s8 + $0x408] sm:$0xff] }
 0x3ef   :  { %5961 = vmatpush1.bf16.msra.mxu0 %v10640_v12  ;;  %6043 = vmatpush1.bf16.msra.mxu1 %v10642_v13  ;;  %v10707_v12 = vcombine.high %v4453_v7, %v4457_v8  ;;  %v4460_v13 = vld [vmem:[%s16246_s8 + $0x280] sm:$0xff] }
 0x3f0   :  { %5962 = vmatprep.subr.bf16.mxu0 %v10649_v14  ;;  %6044 = vmatprep.subr.bf16.mxu1 %v10651_v15  ;;  %v4464_v14 = vld [vmem:[%s16246_s8 + $0x2a0] sm:$0xff]  ;;  %v4461_v15 = vld [vmem:[%s16246_s8 + $0x288] sm:$0xff] }
 0x3f1   :  { %v10713_v19 = vcombine.high %v4460_v13, %v4464_v14  ;;  %v10712_v26 = vcombine.low %v4460_v13, %v4464_v14  ;;  %v10714_v27 = vcombine.low %v4461_v15, %v4465_v16 }
 0x3f3   :  { %5963 = vmatpush1.bf16.msra.mxu0 %v10648_v20  ;;  %6045 = vmatpush1.bf16.msra.mxu1 %v10650_v21  ;;  %v10715_v20 = vcombine.high %v4461_v15, %v4465_v16  ;;  %v4468_v21 = vld [vmem:[%s16246_s8 + $0x2c0] sm:$0xff] }
 0x3f4   :  { %5964 = vmatprep.subr.bf16.mxu0 %v10657_v23  ;;  %6046 = vmatprep.subr.bf16.mxu1 %v10659_v24  ;;  %v4472_v23 = vld [vmem:[%s16246_s8 + $0x2e0] sm:$0xff]  ;;  %v4469_v24 = vld [vmem:[%s16246_s8 + $0x2c8] sm:$0xff] }
 0x3f5   :  { %v10721_v28 = vcombine.high %v4468_v21, %v4472_v23  ;;  %v10720_v33 = vcombine.low %v4468_v21, %v4472_v23  ;;  %v10722_v34 = vcombine.low %v4469_v24, %v4473_v25 }
 0x3f7   :  { %5965 = vmatpush1.bf16.msra.mxu0 %v10656_v56  ;;  %6047 = vmatpush1.bf16.msra.mxu1 %v10658_v59  ;;  %v10723_v56 = vcombine.high %v4469_v24, %v4473_v25  ;;  %v4476_v59 = vld [vmem:[%s16246_s8 + $0x300] sm:$0xff] }
 0x3f8   :  { %5966 = vmatprep.subr.bf16.mxu0 %v10665_v30  ;;  %6048 = vmatprep.subr.bf16.mxu1 %v10667_v31  ;;  %v4480_v30 = vld [vmem:[%s16246_s8 + $0x320] sm:$0xff]  ;;  %v4477_v31 = vld [vmem:[%s16246_s8 + $0x308] sm:$0xff] }
 0x3f9   :  { %v10729_v35 = vcombine.high %v4476_v59, %v4480_v30  ;;  %v10728_v42 = vcombine.low %v4476_v59, %v4480_v30  ;;  %v10730_v43 = vcombine.low %v4477_v31, %v4481_v49  ;;  %v4516_v59 = vld [vmem:[%s16246_s8 + $0x440] sm:$0xff] }
 0x3fb   :  { %5967 = vmatpush1.bf16.msra.mxu0 %v10664_v36  ;;  %6049 = vmatpush1.bf16.msra.mxu1 %v10666_v38  ;;  %v10731_v36 = vcombine.high %v4477_v31, %v4481_v49  ;;  %v4484_v38 = vld [vmem:[%s16246_s8 + $0x340] sm:$0xff]  ;;  %v4517_v49 = vld [vmem:[%s16246_s8 + $0x448] sm:$0xff] }
 0x3fc   :  { %5968 = vmatprep.subr.bf16.mxu0 %v10673_v39  ;;  %6050 = vmatprep.subr.bf16.mxu1 %v10675_v40  ;;  %v4488_v39 = vld [vmem:[%s16246_s8 + $0x360] sm:$0xff]  ;;  %v4485_v40 = vld [vmem:[%s16246_s8 + $0x348] sm:$0xff] }
 0x3fd   :  { %v10737_v44 = vcombine.high %v4484_v38, %v4488_v39  ;;  %v4520_v31 = vld [vmem:[%s16246_s8 + $0x460] sm:$0xff] }
 0x3ff   :  { %5969 = vmatpush1.bf16.msra.mxu0 %v10672_v45  ;;  %6051 = vmatpush1.bf16.msra.mxu1 %v10674_v46  ;;  %v10739_v45 = vcombine.high %v4485_v40, %v4489_v41  ;;  %v10736_v46 = vcombine.low %v4484_v38, %v4488_v39  ;;  %v10769_v38 = vcombine.high %v4516_v59, %v4520_v31 }
 0x400   :  { %5970 = vmatprep.subr.bf16.mxu0 %v10681_v48  ;;  %6052 = vmatprep.subr.bf16.mxu1 %v10683_v50  ;;  %v10738_v48 = vcombine.low %v4485_v40, %v4489_v41  ;;  %v4492_v50 = vld [vmem:[%s16246_s8 + $0x380] sm:$0xff]  ;;  %v4525_v41 = vld [vmem:[%s16246_s8 + $0x488] sm:$0xff] }
 0x401   :  { %v10745_v52 = vcombine.high %v4492_v50, %v4496_v51  ;;  %v4528_v40 = vld [vmem:[%s16246_s8 + $0x4a0] sm:$0xff] }
 0x403   :  { %5971 = vmatpush1.bf16.msra.mxu0 %v10680_v54  ;;  %6053 = vmatpush1.bf16.msra.mxu1 %v10682_v55  ;;  %v10744_v54 = vcombine.low %v4492_v50, %v4496_v51  ;;  %v10746_v55 = vcombine.low %v4493_v32, %v4497_v53  ;;  %v4532_v50 = vld [vmem:[%s16246_s8 + $0x4c0] sm:$0xff] }
 0x404   :  { %5972 = vmatprep.subr.bf16.mxu0 %v10689_v57  ;;  %6054 = vmatprep.subr.bf16.mxu1 %v10691_v58  ;;  %v10747_v57 = vcombine.high %v4493_v32, %v4497_v53  ;;  %v4500_v58 = vld [vmem:[%s16246_s8 + $0x3c0] sm:$0xff]  ;;  %v4533_v32 = vld [vmem:[%s16246_s8 + $0x4c8] sm:$0xff] }
 0x405   :  { %v10753_v61 = vcombine.high %v4500_v58, %v4504_v60  ;;  %v4536_v51 = vld [vmem:[%s16246_s8 + $0x4e0] sm:$0xff] }
 0x407   :  { %5973 = vmatpush1.bf16.msra.mxu0 %v10688_v2  ;;  %6055 = vmatpush1.bf16.msra.mxu1 %v10690_v37  ;;  %v10752_v2 = vcombine.low %v4500_v58, %v4504_v60  ;;  %v10754_v37 = vcombine.low %v4501_v3, %v4505_v63  ;;  %v4540_v58 = vld [vmem:[%s16246_s8 + $0x500] sm:$0xff] }
 0x408   :  { %5974 = vmatprep.subr.bf16.mxu0 %v10697_v4  ;;  %6056 = vmatprep.subr.bf16.mxu1 %v10699_v5  ;;  %v10755_v4 = vcombine.high %v4501_v3, %v4505_v63  ;;  %v4508_v5 = vld [vmem:[%s16246_s8 + $0x400] sm:$0xff]  ;;  %v4541_v3 = vld [vmem:[%s16246_s8 + $0x508] sm:$0xff]  ;;  %v10784_v63 = vcombine.low %v4532_v50, %v4536_v51 }
 0x409   :  { %v10760_v7 = vcombine.low %v4508_v5, %v4512_v29  ;;  %v10761_v8 = vcombine.high %v4508_v5, %v4512_v29  ;;  %v4544_v60 = vld [vmem:[%s16246_s8 + $0x520] sm:$0xff] }
 0x40a   :  { %v4548_v5 = vld [vmem:[%s16246_s8 + $0x540] sm:$0xff] }
 0x40b   :  { %5975 = vmatpush1.bf16.msra.mxu0 %v10696_v9  ;;  %6057 = vmatpush1.bf16.msra.mxu1 %v10698_v10  ;;  %v4513_v9 = vld [vmem:[%s16246_s8 + $0x428] sm:$0xff]  ;;  %v4552_v29 = vld [vmem:[%s16246_s8 + $0x560] sm:$0xff] }
 0x40c   :  { %5976 = vmatprep.subr.bf16.mxu0 %v10705_v11  ;;  %6058 = vmatprep.subr.bf16.mxu1 %v10707_v12  ;;  %v10762_v10 = vcombine.low %v4509_v6, %v4513_v9  ;;  %v10763_v11 = vcombine.high %v4509_v6, %v4513_v9  ;;  %v14013_v12 = vld [vmem:[%s16250_s7] sm:$0xf]  ;;  %v4549_v6 = vld [vmem:[%s16246_s8 + $0x548] sm:$0xff] }
 0x40d   :  { %v4229_v13 = vrot.slane %v14013_v12, %v13754_v22  ;;  %v4233_v14 = vrot.slane %v14013_v12, %v13763_v0  ;;  %v4241_v15 = vrot.slane %v14013_v12, %v13766_v1 }
 0x40f   :  { %5977 = vmatpush1.bf16.msra.mxu0 %v10704_v17  ;;  %6059 = vmatpush1.bf16.msra.mxu1 %v10706_v18 }
 0x410   :  { %5978 = vmatprep.subr.bf16.mxu0 %v10713_v19  ;;  %6060 = vmatprep.subr.bf16.mxu1 %v10715_v20 }
 0x413   :  { %5979 = vmatpush1.bf16.msra.mxu0 %v10712_v26  ;;  %6061 = vmatpush1.bf16.msra.mxu1 %v10714_v27 }
 0x414   :  { %5980 = vmatprep.subr.bf16.mxu0 %v10721_v28  ;;  %6062 = vmatprep.subr.bf16.mxu1 %v10723_v56 }
 0x417   :  { %5981 = vmatpush1.bf16.msra.mxu0 %v10720_v33  ;;  %6063 = vmatpush1.bf16.msra.mxu1 %v10722_v34  ;;  %v4521_v33 = vld [vmem:[%s16246_s8 + $0x468] sm:$0xff] }
 0x418   :  { %5982 = vmatprep.subr.bf16.mxu0 %v10729_v35  ;;  %6064 = vmatprep.subr.bf16.mxu1 %v10731_v36  ;;  %v4524_v36 = vld [vmem:[%s16246_s8 + $0x480] sm:$0xff]  ;;  %v10771_v39 = vcombine.high %v4517_v49, %v4521_v33 }
 0x419   :  { %v10776_v53 = vcombine.low %v4524_v36, %v4528_v40 }
 0x41b   :  { %5983 = vmatpush1.bf16.msra.mxu0 %v10728_v42  ;;  %6065 = vmatpush1.bf16.msra.mxu1 %v10730_v43  ;;  %v4529_v42 = vld [vmem:[%s16246_s8 + $0x4a8] sm:$0xff] }
 0x41c   :  { %5984 = vmatprep.subr.bf16.mxu0 %v10737_v44  ;;  %6066 = vmatprep.subr.bf16.mxu1 %v10739_v45  ;;  %v10768_v44 = vcombine.low %v4516_v59, %v4520_v31  ;;  %v10770_v45 = vcombine.low %v4517_v49, %v4521_v33  ;;  %v4576_v31 = vld [vmem:[%s16246_s8 + $0x620] sm:$0xff]  ;;  %v4573_v49 = vld [vmem:[%s16246_s8 + $0x608] sm:$0xff] }
 0x41d   :  { %v4577_v33 = vld [vmem:[%s16246_s8 + $0x628] sm:$0xff] }
 0x41f   :  { %5985 = vmatpush1.bf16.msra.mxu0 %v10736_v46  ;;  %6067 = vmatpush1.bf16.msra.mxu1 %v10738_v48  ;;  %v10777_v46 = vcombine.high %v4524_v36, %v4528_v40  ;;  %v10779_v48 = vcombine.high %v4525_v41, %v4529_v42  ;;  %v10827_v40 = vcombine.high %v4573_v49, %v4577_v33 }
 0x420   :  { %5986 = vmatprep.subr.bf16.mxu0 %v10745_v52  ;;  %6068 = vmatprep.subr.bf16.mxu1 %v10747_v57  ;;  %v4537_v52 = vld [vmem:[%s16246_s8 + $0x4e8] sm:$0xff] }
 0x421   :  { %v10787_v57 = vcombine.high %v4533_v32, %v4537_v52 }
 0x423   :  { %5987 = vmatpush1.bf16.msra.mxu0 %v10744_v54  ;;  %6069 = vmatpush1.bf16.msra.mxu1 %v10746_v55  ;;  %v10778_v54 = vcombine.low %v4525_v41, %v4529_v42  ;;  %v10785_v55 = vcombine.high %v4532_v50, %v4536_v51  ;;  %v4580_v41 = vld [vmem:[%s16246_s8 + $0x640] sm:$0xff] }
 0x424   :  { %5988 = vmatprep.subr.bf16.mxu0 %v10753_v61  ;;  %6070 = vmatprep.subr.bf16.mxu1 %v10755_v4  ;;  %v4545_v61 = vld [vmem:[%s16246_s8 + $0x528] sm:$0xff]  ;;  %v4584_v42 = vld [vmem:[%s16246_s8 + $0x660] sm:$0xff] }
 0x425   :  { %v10795_v4 = vcombine.high %v4541_v3, %v4545_v61  ;;  %v10794_v9 = vcombine.low %v4541_v3, %v4545_v61  ;;  %v10833_v50 = vcombine.high %v4580_v41, %v4584_v42  ;;  %v4596_v3 = vld [vmem:[%s16246_s8 + $0x6c0] sm:$0xff] }
 0x426   :  { %v4600_v61 = vld [vmem:[%s16246_s8 + $0x6e0] sm:$0xff] }
 0x427   :  { %5989 = vmatpush1.bf16.msra.mxu0 %v10752_v2  ;;  %6071 = vmatpush1.bf16.msra.mxu1 %v10754_v37  ;;  %v10786_v2 = vcombine.low %v4533_v32, %v4537_v52  ;;  %v10793_v37 = vcombine.high %v4540_v58, %v4544_v60  ;;  %v4588_v32 = vld [vmem:[%s16246_s8 + $0x680] sm:$0xff] }
 0x428   :  { %5999 = vmatprep.subr.bf16.mxu0 %v10761_v8  ;;  %6081 = vmatprep.subr.bf16.mxu1 %v10763_v11  ;;  %v10792_v8 = vcombine.low %v4540_v58, %v4544_v60  ;;  %v4592_v52 = vld [vmem:[%s16246_s8 + $0x6a0] sm:$0xff] }
 0x429   :  { %v10841_v58 = vcombine.high %v4588_v32, %v4592_v52 }
 0x4bd   :  { %v4324_v16 = vpop.f32.mrb[16].mxu0  ;;  %v14021_v17 = vpop.f32.mrb[16].mxu1 }
 0x4be   :  { %v4325_v18 = vadd.f32 %v4324_v16, %v4229_v13  ;;  %v4326_v19 = vpop.f32.mrb[17].mxu0  ;;  %v4367_v20 = vpop.f32.mrb[17].mxu1  ;;  %v4556_v13 = vld [vmem:[%s16246_s8 + $0x580] sm:$0xff]  ;;  %v4561_v16 = vld [vmem:[%s16246_s8 + $0x5a8] sm:$0xff] }
 0x4bf   :  { %v4327_v21 = vadd.f32 %v4326_v19, %v4233_v14  ;;  %v4368_v23 = vadd.f32 %v4367_v20, %v4241_v15  ;;  %v4328_v24 = vpop.f32.mrb[18].mxu0  ;;  %v4369_v25 = vpop.f32.mrb[18].mxu1  ;;  %v4560_v14 = vld [vmem:[%s16246_s8 + $0x5a0] sm:$0xff]  ;;  %v4557_v15 = vld [vmem:[%s16246_s8 + $0x588] sm:$0xff] }
 0x4c0   :  { %v4372_v26 = vmax.f32 %v4325_v18, 0.0  ;;  %v4329_v27 = vpop.f32.mrb[19].mxu0  ;;  %v4370_v28 = vpop.f32.mrb[19].mxu1  ;;  %v10800_v18 = vcombine.low %v4548_v5, %v4552_v29  ;;  %v10809_v20 = vcombine.high %v4556_v13, %v4560_v14  ;;  %v4568_v24 = vld [vmem:[%s16246_s8 + $0x5e0] sm:$0xff]  ;;  %v4565_v25 = vld [vmem:[%s16246_s8 + $0x5c8] sm:$0xff] }
 0x4c1   :  { %v4373_v56 = vmax.f32 %v4327_v21, 0.0  ;;  %v4375_v30 = vmax.f32 %v4368_v23, 0.0  ;;  %v10811_v21 = vcombine.high %v4557_v15, %v4561_v16  ;;  %v4564_v23 = vld [vmem:[%s16246_s8 + $0x5c0] sm:$0xff]  ;;  %v10808_v27 = vcombine.low %v4556_v13, %v4560_v14 }
 0x4c2   :  { %v14037_v35 = vpack.c.bf16 %v4372_v26, %v4372_v26  ;;  %v4569_v26 = vld [vmem:[%s16246_s8 + $0x5e8] sm:$0xff]  ;;  %v10810_v28 = vcombine.low %v4557_v15, %v4561_v16  ;;  %v10816_v36 = vcombine.low %v4564_v23, %v4568_v24  ;;  %v4612_v15 = vld [vmem:[%s16246_s8 + $0x740] sm:$0xff] }
 0x4c3   :  { %v14035_v34 = vpack.c.bf16 %v4373_v56, %v4373_v56  ;;  %v14053_v43 = vpack.c.bf16 %v4375_v30, %v4375_v30  ;;  %v10817_v56 = vcombine.high %v4564_v23, %v4568_v24  ;;  %v10819_v59 = vcombine.high %v4565_v25, %v4569_v26  ;;  %v4572_v30 = vld [vmem:[%s16246_s8 + $0x600] sm:$0xff] }
 0x4c4   :  { %v4616_v16 = vld [vmem:[%s16246_s8 + $0x760] sm:$0xff] }
 0x4c5   :  { %5990 = vmatprep.mubr.bf16.mxu0 %v14035_v34  ;;  %6072 = vmatprep.mubr.bf16.mxu1 %v14035_v34  ;;  %v10865_v23 = vcombine.high %v4612_v15, %v4616_v16 }
 0x4c6   :  { %5991 = vmatmul.mubr.bf16.vlgmr.msra.gmra.mrb[20].mxu0 %v14037_v35  ;;  %6073 = vmatmul.mubr.bf16.vlgmr.msra.gmra.mrb[20].mxu1 %v14037_v35 }
 0x4c7   :  { %6000 = vmatpush1.bf16.msra.mxu0 %v10760_v7  ;;  %6082 = vmatpush1.bf16.msra.mxu1 %v10762_v10  ;;  %v4553_v7 = vld [vmem:[%s16246_s8 + $0x568] sm:$0xff]  ;;  %v10801_v10 = vcombine.high %v4548_v5, %v4552_v29  ;;  %v10849_v5 = vcombine.high %v4596_v3, %v4600_v61 }
 0x4c8   :  { %6031 = vmatprep.mubr.bf16.mxu0 %v14053_v43  ;;  %6113 = vmatprep.mubr.bf16.mxu1 %v14053_v43  ;;  %v10803_v11 = vcombine.high %v4549_v6, %v4553_v7  ;;  %v10802_v19 = vcombine.low %v4549_v6, %v4553_v7  ;;  %v4604_v6 = vld [vmem:[%s16246_s8 + $0x700] sm:$0xff] }
 0x4c9   :  { %6001 = vmatprep.subr.bf16.mxu0 %v10769_v38  ;;  %6083 = vmatprep.subr.bf16.mxu1 %v10771_v39  ;;  %v10818_v38 = vcombine.low %v4565_v25, %v4569_v26  ;;  %v10825_v39 = vcombine.high %v4572_v30, %v4576_v31  ;;  %v4608_v7 = vld [vmem:[%s16246_s8 + $0x720] sm:$0xff] }
 0x4ca   :  { %v10857_v13 = vcombine.high %v4604_v6, %v4608_v7  ;;  %v4620_v25 = vld [vmem:[%s16246_s8 + $0x780] sm:$0xff] }
 0x4cb   :  { %6002 = vmatpush1.bf16.msra.mxu0 %v10768_v44  ;;  %6084 = vmatpush1.bf16.msra.mxu1 %v10770_v45  ;;  %v4581_v44 = vld [vmem:[%s16246_s8 + $0x648] sm:$0xff]  ;;  %v4624_v26 = vld [vmem:[%s16246_s8 + $0x7a0] sm:$0xff] }
 0x4cc   :  { %6003 = vmatprep.subr.bf16.mxu0 %v10777_v46  ;;  %6085 = vmatprep.subr.bf16.mxu1 %v10779_v48  ;;  %v4585_v45 = vld [vmem:[%s16246_s8 + $0x668] sm:$0xff]  ;;  %v10824_v46 = vcombine.low %v4572_v30, %v4576_v31  ;;  %v10826_v48 = vcombine.low %v4573_v49, %v4577_v33  ;;  %v4237_v30 = vrot.slane %v14013_v12, %v13757_v62  ;;  %v4628_v33 = vld [vmem:[%s16246_s8 + $0x7c0] sm:$0xff] }
 0x4cd   :  { %v10835_v51 = vcombine.high %v4581_v44, %v4585_v45  ;;  %v10873_v31 = vcombine.high %v4620_v25, %v4624_v26  ;;  %v4633_v12 = vld [vmem:[%s16246_s8 + $0x7e8] sm:$0xff] }
 0x4cf   :  { %6004 = vmatpush1.bf16.msra.mxu0 %v10776_v53  ;;  %6086 = vmatpush1.bf16.msra.mxu1 %v10778_v54  ;;  %v4589_v53 = vld [vmem:[%s16246_s8 + $0x688] sm:$0xff] }
 0x4d0   :  { %6005 = vmatprep.subr.bf16.mxu0 %v10785_v55  ;;  %6087 = vmatprep.subr.bf16.mxu1 %v10787_v57  ;;  %v4593_v54 = vld [vmem:[%s16246_s8 + $0x6a8] sm:$0xff]  ;;  %v10832_v55 = vcombine.low %v4580_v41, %v4584_v42  ;;  %v10834_v57 = vcombine.low %v4581_v44, %v4585_v45  ;;  %v4366_v41 = vadd.f32 %v14021_v17, %v4237_v30  ;;  %v4382_v45 = vld [vmem:[%s16246_s8 + $0x10] sm:$0xff]  ;;  %v4387_v17 = vld [vmem:[%s16246_s8 + $0x38] sm:$0xff] }
 0x4d1   :  { %v10843_v60 = vcombine.high %v4589_v53, %v4593_v54  ;;  %v4427_v30 = vld [vmem:[%s16246_s8 + $0x178] sm:$0xff] }
 0x4d3   :  { %6006 = vmatpush1.bf16.msra.mxu0 %v10784_v63  ;;  %6088 = vmatpush1.bf16.msra.mxu1 %v10786_v2  ;;  %v4597_v63 = vld [vmem:[%s16246_s8 + $0x6c8] sm:$0xff] }
 0x4d4   :  { %6007 = vmatprep.subr.bf16.mxu0 %v10793_v37  ;;  %6089 = vmatprep.subr.bf16.mxu1 %v10795_v4  ;;  %v4601_v2 = vld [vmem:[%s16246_s8 + $0x6e8] sm:$0xff]  ;;  %v10840_v37 = vcombine.low %v4588_v32, %v4592_v52  ;;  %v10842_v4 = vcombine.low %v4589_v53, %v4593_v54  ;;  %v4374_v32 = vmax.f32 %v4366_v41, 0.0  ;;  %v4390_v54 = vld [vmem:[%s16246_s8 + $0x50] sm:$0xff] }
 0x4d5   :  { %v10851_v29 = vcombine.high %v4597_v63, %v4601_v2 }
 0x4d7   :  { %6008 = vmatpush1.bf16.msra.mxu0 %v10792_v8  ;;  %6090 = vmatpush1.bf16.msra.mxu1 %v10794_v9  ;;  %v4605_v8 = vld [vmem:[%s16246_s8 + $0x708] sm:$0xff] }
 0x4d8   :  { %6009 = vmatprep.subr.bf16.mxu0 %v10801_v10  ;;  %6091 = vmatprep.subr.bf16.mxu1 %v10803_v11  ;;  %v4609_v9 = vld [vmem:[%s16246_s8 + $0x728] sm:$0xff]  ;;  %v10848_v10 = vcombine.low %v4596_v3, %v4600_v61  ;;  %v10850_v11 = vcombine.low %v4597_v63, %v4601_v2  ;;  %v14242_v3 = vpack.c.bf16 %v4374_v32, %v4374_v32 }
 0x4d9   :  { %v10859_v14 = vcombine.high %v4605_v8, %v4609_v9 }
 0x4db   :  { %6010 = vmatpush1.bf16.msra.mxu0 %v10800_v18  ;;  %6092 = vmatpush1.bf16.msra.mxu1 %v10802_v19  ;;  %v4613_v18 = vld [vmem:[%s16246_s8 + $0x748] sm:$0xff] }
 0x4dc   :  { %6011 = vmatprep.subr.bf16.mxu0 %v10809_v20  ;;  %6093 = vmatprep.subr.bf16.mxu1 %v10811_v21  ;;  %v4617_v19 = vld [vmem:[%s16246_s8 + $0x768] sm:$0xff]  ;;  %v10856_v20 = vcombine.low %v4604_v6, %v4608_v7  ;;  %v10858_v21 = vcombine.low %v4605_v8, %v4609_v9 }
 0x4dd   :  { %v10867_v24 = vcombine.high %v4613_v18, %v4617_v19 }
 0x4df   :  { %6012 = vmatpush1.bf16.msra.mxu0 %v10808_v27  ;;  %6094 = vmatpush1.bf16.msra.mxu1 %v10810_v28  ;;  %v4621_v27 = vld [vmem:[%s16246_s8 + $0x788] sm:$0xff] }
 0x4e0   :  { %6013 = vmatprep.subr.bf16.mxu0 %v10817_v56  ;;  %6095 = vmatprep.subr.bf16.mxu1 %v10819_v59  ;;  %v4625_v28 = vld [vmem:[%s16246_s8 + $0x7a8] sm:$0xff]  ;;  %v10864_v56 = vcombine.low %v4612_v15, %v4616_v16  ;;  %v10866_v59 = vcombine.low %v4613_v18, %v4617_v19  ;;  %v4414_v19 = vld [vmem:[%s16246_s8 + $0x110] sm:$0xff] }
 0x4e1   :  { %v10875_v49 = vcombine.high %v4621_v27, %v4625_v28 }
 0x4e3   :  { %6014 = vmatpush1.bf16.msra.mxu0 %v10816_v36  ;;  %6096 = vmatpush1.bf16.msra.mxu1 %v10818_v38  ;;  %v4632_v36 = vld [vmem:[%s16246_s8 + $0x7e0] sm:$0xff]  ;;  %v4629_v38 = vld [vmem:[%s16246_s8 + $0x7c8] sm:$0xff] }
 0x4e4   :  { %6015 = vmatprep.subr.bf16.mxu0 %v10825_v39  ;;  %6097 = vmatprep.subr.bf16.mxu1 %v10827_v40  ;;  %v10872_v39 = vcombine.low %v4620_v25, %v4624_v26  ;;  %v10874_v40 = vcombine.low %v4621_v27, %v4625_v28  ;;  %v10881_v42 = vcombine.high %v4628_v33, %v4632_v36  ;;  %v4422_v28 = vld [vmem:[%s16246_s8 + $0x150] sm:$0xff] }
 0x4e5   :  { %v10883_v44 = vcombine.high %v4629_v38, %v4633_v12 }
 0x4e7   :  { %6016 = vmatpush1.bf16.msra.mxu0 %v10824_v46  ;;  %6098 = vmatpush1.bf16.msra.mxu1 %v10826_v48  ;;  %v4386_v46 = vld [vmem:[%s16246_s8 + $0x30] sm:$0xff]  ;;  %v4383_v48 = vld [vmem:[%s16246_s8 + $0x18] sm:$0xff] }
 0x4e8   :  { %6017 = vmatprep.subr.bf16.mxu0 %v10833_v50  ;;  %6099 = vmatprep.subr.bf16.mxu1 %v10835_v51  ;;  %v10880_v50 = vcombine.low %v4628_v33, %v4632_v36  ;;  %v10882_v51 = vcombine.low %v4629_v38, %v4633_v12  ;;  %v10637_v52 = vcombine.high %v4382_v45, %v4386_v46  ;;  %v4430_v38 = vld [vmem:[%s16246_s8 + $0x190] sm:$0xff] }
 0x4e9   :  { %v10639_v53 = vcombine.high %v4383_v48, %v4387_v17  ;;  %v10638_v61 = vcombine.low %v4383_v48, %v4387_v17  ;;  %v4434_v12 = vld [vmem:[%s16246_s8 + $0x1b0] sm:$0xff]  ;;  %v4439_v17 = vld [vmem:[%s16246_s8 + $0x1d8] sm:$0xff] }
 0x4ea   :  { %v4442_v48 = vld [vmem:[%s16246_s8 + $0x1f0] sm:$0xff] }
 0x4eb   :  { %6018 = vmatpush1.bf16.msra.mxu0 %v10832_v55  ;;  %6100 = vmatpush1.bf16.msra.mxu1 %v10834_v57  ;;  %v4394_v55 = vld [vmem:[%s16246_s8 + $0x70] sm:$0xff]  ;;  %v4391_v57 = vld [vmem:[%s16246_s8 + $0x58] sm:$0xff] }
 0x4ec   :  { %6019 = vmatprep.subr.bf16.mxu0 %v10841_v58  ;;  %6101 = vmatprep.subr.bf16.mxu1 %v10843_v60  ;;  %v4395_v58 = vld [vmem:[%s16246_s8 + $0x78] sm:$0xff]  ;;  %v10636_v60 = vcombine.low %v4382_v45, %v4386_v46  ;;  %v10645_v63 = vcombine.high %v4390_v54, %v4394_v55  ;;  %v10644_v6 = vcombine.low %v4390_v54, %v4394_v55  ;;  %v4438_v46 = vld [vmem:[%s16246_s8 + $0x1d0] sm:$0xff] }
 0x4ed   :  { %v10647_v2 = vcombine.high %v4391_v57, %v4395_v58  ;;  %v10646_v7 = vcombine.low %v4391_v57, %v4395_v58  ;;  %v4446_v54 = vld [vmem:[%s16246_s8 + $0x210] sm:$0xff]  ;;  %v4447_v57 = vld [vmem:[%s16246_s8 + $0x218] sm:$0xff] }
 0x4ee   :  { %v4450_v55 = vld [vmem:[%s16246_s8 + $0x230] sm:$0xff]  ;;  %v4451_v58 = vld [vmem:[%s16246_s8 + $0x238] sm:$0xff] }
 0x4ef   :  { %6020 = vmatpush1.bf16.msra.mxu0 %v10840_v37  ;;  %6102 = vmatpush1.bf16.msra.mxu1 %v10842_v4  ;;  %v4398_v37 = vld [vmem:[%s16246_s8 + $0x90] sm:$0xff] }
 0x4f0   :  { %6021 = vmatprep.subr.bf16.mxu0 %v10849_v5  ;;  %6103 = vmatprep.subr.bf16.mxu1 %v10851_v29  ;;  %v4402_v4 = vld [vmem:[%s16246_s8 + $0xb0] sm:$0xff]  ;;  %v4399_v5 = vld [vmem:[%s16246_s8 + $0x98] sm:$0xff] }
 0x4f1   :  { %v4403_v29 = vld [vmem:[%s16246_s8 + $0xb8] sm:$0xff]  ;;  %v10653_v8 = vcombine.high %v4398_v37, %v4402_v4 }
 0x4f2   :  { %v10655_v9 = vcombine.high %v4399_v5, %v4403_v29  ;;  %v10654_v15 = vcombine.low %v4399_v5, %v4403_v29  ;;  %v4455_v5 = vld [vmem:[%s16246_s8 + $0x258] sm:$0xff] }
 0x4f3   :  { %6022 = vmatpush1.bf16.msra.mxu0 %v10848_v10  ;;  %6104 = vmatpush1.bf16.msra.mxu1 %v10850_v11  ;;  %v4406_v10 = vld [vmem:[%s16246_s8 + $0xd0] sm:$0xff]  ;;  %v4459_v29 = vld [vmem:[%s16246_s8 + $0x278] sm:$0xff] }
 0x4f4   :  { %6023 = vmatprep.subr.bf16.mxu0 %v10857_v13  ;;  %6105 = vmatprep.subr.bf16.mxu1 %v10859_v14  ;;  %v4410_v11 = vld [vmem:[%s16246_s8 + $0xf0] sm:$0xff]  ;;  %v4407_v13 = vld [vmem:[%s16246_s8 + $0xd8] sm:$0xff]  ;;  %v10652_v14 = vcombine.low %v4398_v37, %v4402_v4 }
 0x4f5   :  { %v10661_v16 = vcombine.high %v4406_v10, %v4410_v11  ;;  %v4454_v37 = vld [vmem:[%s16246_s8 + $0x250] sm:$0xff] }
 0x4f6   :  { %v4458_v4 = vld [vmem:[%s16246_s8 + $0x270] sm:$0xff] }
 0x4f7   :  { %6024 = vmatpush1.bf16.msra.mxu0 %v10856_v20  ;;  %6106 = vmatpush1.bf16.msra.mxu1 %v10858_v21  ;;  %v4418_v20 = vld [vmem:[%s16246_s8 + $0x130] sm:$0xff]  ;;  %v4415_v21 = vld [vmem:[%s16246_s8 + $0x118] sm:$0xff] }
 0x4f8   :  { %6025 = vmatprep.subr.bf16.mxu0 %v10865_v23  ;;  %6107 = vmatprep.subr.bf16.mxu1 %v10867_v24  ;;  %v4419_v23 = vld [vmem:[%s16246_s8 + $0x138] sm:$0xff]  ;;  %v10660_v24 = vcombine.low %v4406_v10, %v4410_v11  ;;  %v10669_v26 = vcombine.high %v4414_v19, %v4418_v20  ;;  %v4462_v10 = vld [vmem:[%s16246_s8 + $0x290] sm:$0xff] }
 0x4f9   :  { %v10671_v27 = vcombine.high %v4415_v21, %v4419_v23  ;;  %v4466_v11 = vld [vmem:[%s16246_s8 + $0x2b0] sm:$0xff] }
 0x4fb   :  { %6026 = vmatpush1.bf16.msra.mxu0 %v10864_v56  ;;  %6108 = vmatpush1.bf16.msra.mxu1 %v10866_v59  ;;  %v4426_v56 = vld [vmem:[%s16246_s8 + $0x170] sm:$0xff]  ;;  %v4423_v59 = vld [vmem:[%s16246_s8 + $0x158] sm:$0xff] }
 0x4fc   :  { %6027 = vmatprep.subr.bf16.mxu0 %v10873_v31  ;;  %6109 = vmatprep.subr.bf16.mxu1 %v10875_v49  ;;  %v10668_v31 = vcombine.low %v4414_v19, %v4418_v20  ;;  %v10670_v49 = vcombine.low %v4415_v21, %v4419_v23  ;;  %v10677_v33 = vcombine.high %v4422_v28, %v4426_v56  ;;  %v4470_v19 = vld [vmem:[%s16246_s8 + $0x2d0] sm:$0xff]  ;;  %v4471_v21 = vld [vmem:[%s16246_s8 + $0x2d8] sm:$0xff] }
 0x4fd   :  { %v10679_v36 = vcombine.high %v4423_v59, %v4427_v30  ;;  %v10676_v41 = vcombine.low %v4422_v28, %v4426_v56  ;;  %v4474_v20 = vld [vmem:[%s16246_s8 + $0x2f0] sm:$0xff]  ;;  %v4475_v23 = vld [vmem:[%s16246_s8 + $0x2f8] sm:$0xff] }
 0x4fe   :  { %v4478_v28 = vld [vmem:[%s16246_s8 + $0x310] sm:$0xff] }
 0x4ff   :  { %6028 = vmatpush1.bf16.msra.mxu0 %v10872_v39  ;;  %6110 = vmatpush1.bf16.msra.mxu1 %v10874_v40  ;;  %v4431_v39 = vld [vmem:[%s16246_s8 + $0x198] sm:$0xff]  ;;  %v4482_v56 = vld [vmem:[%s16246_s8 + $0x330] sm:$0xff] }
 0x500   :  { %6029 = vmatprep.subr.bf16.mxu0 %v10881_v42  ;;  %6111 = vmatprep.subr.bf16.mxu1 %v10883_v44  ;;  %v4435_v40 = vld [vmem:[%s16246_s8 + $0x1b8] sm:$0xff]  ;;  %v10678_v42 = vcombine.low %v4423_v59, %v4427_v30  ;;  %v10685_v44 = vcombine.high %v4430_v38, %v4434_v12 }
 0x501   :  { %v10687_v45 = vcombine.high %v4431_v39, %v4435_v40  ;;  %v10686_v32 = vcombine.low %v4431_v39, %v4435_v40  ;;  %v4479_v59 = vld [vmem:[%s16246_s8 + $0x318] sm:$0xff] }
 0x502   :  { %v4483_v30 = vld [vmem:[%s16246_s8 + $0x338] sm:$0xff] }
 0x503   :  { %6030 = vmatpush1.bf16.msra.mxu0 %v10880_v50  ;;  %6112 = vmatpush1.bf16.msra.mxu1 %v10882_v51  ;;  %v4443_v50 = vld [vmem:[%s16246_s8 + $0x1f8] sm:$0xff]  ;;  %v10684_v51 = vcombine.low %v4430_v38, %v4434_v12  ;;  %v4486_v38 = vld [vmem:[%s16246_s8 + $0x350] sm:$0xff] }
 0x504   :  { %6122 = vmatprep.subr.bf16.mxu0 %v10637_v52  ;;  %6204 = vmatprep.subr.bf16.mxu1 %v10639_v53  ;;  %v10693_v52 = vcombine.high %v4438_v46, %v4442_v48  ;;  %v10695_v53 = vcombine.high %v4439_v17, %v4443_v50  ;;  %v4490_v12 = vld [vmem:[%s16246_s8 + $0x370] sm:$0xff]  ;;  %v4487_v39 = vld [vmem:[%s16246_s8 + $0x358] sm:$0xff] }
 0x505   :  { %v4491_v40 = vld [vmem:[%s16246_s8 + $0x378] sm:$0xff] }
 0x506   :  { %6032 = vmatmul.mubr.bf16.vlgmr.msra.gmra.mrb[20].mxu0 %v14242_v3  ;;  %6114 = vmatmul.mubr.bf16.vlgmr.msra.gmra.mrb[20].mxu1 %v14242_v3 }
 0x507   :  { %6123 = vmatpush1.bf16.msra.mxu0 %v10636_v60  ;;  %6154 = vmatprep.mubr.bf16.mxu0 %v14035_v34  ;;  %v10692_v60 = vcombine.low %v4438_v46, %v4442_v48  ;;  %v4494_v46 = vld [vmem:[%s16246_s8 + $0x390] sm:$0xff] }
 0x508   :  { %6205 = vmatpush1.bf16.msra.mxu1 %v10638_v61  ;;  %6236 = vmatprep.mubr.bf16.mxu1 %v14035_v34  ;;  %v4411_v34 = vld [vmem:[%s16246_s8 + $0xf8] sm:$0xff]  ;;  %v10694_v61 = vcombine.low %v4439_v17, %v4443_v50  ;;  %v4498_v48 = vld [vmem:[%s16246_s8 + $0x3b0] sm:$0xff] }
 0x509   :  { %6124 = vmatprep.subr.bf16.mxu0 %v10645_v63  ;;  %6206 = vmatprep.subr.bf16.mxu1 %v10647_v2  ;;  %v10663_v18 = vcombine.high %v4407_v13, %v4411_v34  ;;  %v10662_v25 = vcombine.low %v4407_v13, %v4411_v34  ;;  %v10701_v63 = vcombine.high %v4446_v54, %v4450_v55  ;;  %v4463_v13 = vld [vmem:[%s16246_s8 + $0x298] sm:$0xff] }
 0x50a   :  { %v10703_v2 = vcombine.high %v4447_v57, %v4451_v58  ;;  %v4467_v34 = vld [vmem:[%s16246_s8 + $0x2b8] sm:$0xff] }
 0x50b   :  { %6125 = vmatpush1.bf16.msra.mxu0 %v10644_v6  ;;  %v10700_v6 = vcombine.low %v4446_v54, %v4450_v55  ;;  %v4495_v17 = vld [vmem:[%s16246_s8 + $0x398] sm:$0xff]  ;;  %v4502_v54 = vld [vmem:[%s16246_s8 + $0x3d0] sm:$0xff] }
 0x50c   :  { %6207 = vmatpush1.bf16.msra.mxu1 %v10646_v7  ;;  %6126 = vmatprep.subr.bf16.mxu0 %v10653_v8  ;;  %v10702_v7 = vcombine.low %v4447_v57, %v4451_v58  ;;  %v10709_v8 = vcombine.high %v4454_v37, %v4458_v4  ;;  %v4499_v50 = vld [vmem:[%s16246_s8 + $0x3b8] sm:$0xff]  ;;  %v4506_v55 = vld [vmem:[%s16246_s8 + $0x3f0] sm:$0xff] }
 0x50d   :  { %6208 = vmatprep.subr.bf16.mxu1 %v10655_v9  ;;  %v10711_v9 = vcombine.high %v4455_v5, %v4459_v29  ;;  %v4503_v57 = vld [vmem:[%s16246_s8 + $0x3d8] sm:$0xff] }
 0x50e   :  { %v4507_v58 = vld [vmem:[%s16246_s8 + $0x3f8] sm:$0xff] }
 0x50f   :  { %6127 = vmatpush1.bf16.msra.mxu0 %v10652_v14  ;;  %v10708_v14 = vcombine.low %v4454_v37, %v4458_v4  ;;  %v4510_v37 = vld [vmem:[%s16246_s8 + $0x410] sm:$0xff] }
 0x510   :  { %6209 = vmatpush1.bf16.msra.mxu1 %v10654_v15  ;;  %6128 = vmatprep.subr.bf16.mxu0 %v10661_v16  ;;  %v10710_v15 = vcombine.low %v4455_v5, %v4459_v29  ;;  %v10717_v16 = vcombine.high %v4462_v10, %v4466_v11  ;;  %v4514_v4 = vld [vmem:[%s16246_s8 + $0x430] sm:$0xff]  ;;  %v4511_v5 = vld [vmem:[%s16246_s8 + $0x418] sm:$0xff] }
 0x511   :  { %6210 = vmatprep.subr.bf16.mxu1 %v10663_v18  ;;  %v10719_v18 = vcombine.high %v4463_v13, %v4467_v34  ;;  %v4515_v29 = vld [vmem:[%s16246_s8 + $0x438] sm:$0xff] }
 0x513   :  { %6129 = vmatpush1.bf16.msra.mxu0 %v10660_v24  ;;  %v10716_v24 = vcombine.low %v4462_v10, %v4466_v11  ;;  %v4518_v10 = vld [vmem:[%s16246_s8 + $0x450] sm:$0xff] }
 0x514   :  { %6211 = vmatpush1.bf16.msra.mxu1 %v10662_v25  ;;  %6130 = vmatprep.subr.bf16.mxu0 %v10669_v26  ;;  %v10718_v25 = vcombine.low %v4463_v13, %v4467_v34  ;;  %v10725_v26 = vcombine.high %v4470_v19, %v4474_v20  ;;  %v4522_v11 = vld [vmem:[%s16246_s8 + $0x470] sm:$0xff]  ;;  %v10764_v13 = vcombine.low %v4510_v37, %v4514_v4  ;;  %v4519_v34 = vld [vmem:[%s16246_s8 + $0x458] sm:$0xff] }
 0x515   :  { %6212 = vmatprep.subr.bf16.mxu1 %v10671_v27  ;;  %v10727_v27 = vcombine.high %v4471_v21, %v4475_v23 }
 0x517   :  { %6131 = vmatpush1.bf16.msra.mxu0 %v10668_v31  ;;  %v10724_v31 = vcombine.low %v4470_v19, %v4474_v20  ;;  %v4530_v19 = vld [vmem:[%s16246_s8 + $0x4b0] sm:$0xff] }
 0x518   :  { %6213 = vmatpush1.bf16.msra.mxu1 %v10670_v49  ;;  %6132 = vmatprep.subr.bf16.mxu0 %v10677_v33  ;;  %v10726_v49 = vcombine.low %v4471_v21, %v4475_v23  ;;  %v10733_v33 = vcombine.high %v4478_v28, %v4482_v56  ;;  %v4527_v21 = vld [vmem:[%s16246_s8 + $0x498] sm:$0xff] }
 0x519   :  { %6214 = vmatprep.subr.bf16.mxu1 %v10679_v36  ;;  %v10735_v36 = vcombine.high %v4479_v59, %v4483_v30  ;;  %v4531_v23 = vld [vmem:[%s16246_s8 + $0x4b8] sm:$0xff] }
 0x51b   :  { %6133 = vmatpush1.bf16.msra.mxu0 %v10676_v41  ;;  %v10732_v41 = vcombine.low %v4478_v28, %v4482_v56  ;;  %v4534_v28 = vld [vmem:[%s16246_s8 + $0x4d0] sm:$0xff] }
 0x51c   :  { %6215 = vmatpush1.bf16.msra.mxu1 %v10678_v42  ;;  %6134 = vmatprep.subr.bf16.mxu0 %v10685_v44  ;;  %v10734_v42 = vcombine.low %v4479_v59, %v4483_v30  ;;  %v10741_v44 = vcombine.high %v4486_v38, %v4490_v12  ;;  %v4538_v56 = vld [vmem:[%s16246_s8 + $0x4f0] sm:$0xff]  ;;  %v4539_v59 = vld [vmem:[%s16246_s8 + $0x4f8] sm:$0xff]  ;;  %v10782_v30 = vcombine.low %v4527_v21, %v4531_v23 }
 0x51d   :  { %6216 = vmatprep.subr.bf16.mxu1 %v10687_v45  ;;  %v10743_v45 = vcombine.high %v4487_v39, %v4491_v40 }
 0x51f   :  { %6135 = vmatpush1.bf16.msra.mxu0 %v10684_v51  ;;  %v10740_v51 = vcombine.low %v4486_v38, %v4490_v12  ;;  %v4543_v38 = vld [vmem:[%s16246_s8 + $0x518] sm:$0xff] }
 0x520   :  { %6217 = vmatpush1.bf16.msra.mxu1 %v10686_v32  ;;  %6136 = vmatprep.subr.bf16.mxu0 %v10693_v52  ;;  %v10742_v32 = vcombine.low %v4487_v39, %v4491_v40  ;;  %v10749_v52 = vcombine.high %v4494_v46, %v4498_v48  ;;  %v4547_v12 = vld [vmem:[%s16246_s8 + $0x538] sm:$0xff]  ;;  %v10788_v39 = vcombine.low %v4534_v28, %v4538_v56 }
 0x521   :  { %6218 = vmatprep.subr.bf16.mxu1 %v10695_v53  ;;  %v10751_v53 = vcombine.high %v4495_v17, %v4499_v50 }
 0x523   :  { %6137 = vmatpush1.bf16.msra.mxu0 %v10692_v60  ;;  %v10748_v60 = vcombine.low %v4494_v46, %v4498_v48  ;;  %v4551_v46 = vld [vmem:[%s16246_s8 + $0x558] sm:$0xff] }
 0x524   :  { %6219 = vmatpush1.bf16.msra.mxu1 %v10694_v61  ;;  %6138 = vmatprep.subr.bf16.mxu0 %v10701_v63  ;;  %v10750_v61 = vcombine.low %v4495_v17, %v4499_v50  ;;  %v10757_v63 = vcombine.high %v4502_v54, %v4506_v55  ;;  %v4555_v48 = vld [vmem:[%s16246_s8 + $0x578] sm:$0xff]  ;;  %v10798_v50 = vcombine.low %v4543_v38, %v4547_v12 }
 0x525   :  { %6220 = vmatprep.subr.bf16.mxu1 %v10703_v2  ;;  %v10759_v2 = vcombine.high %v4503_v57, %v4507_v58 }
 0x527   :  { %6139 = vmatpush1.bf16.msra.mxu0 %v10700_v6  ;;  %v10756_v6 = vcombine.low %v4502_v54, %v4506_v55  ;;  %v4559_v54 = vld [vmem:[%s16246_s8 + $0x598] sm:$0xff] }
 0x528   :  { %6221 = vmatpush1.bf16.msra.mxu1 %v10702_v7  ;;  %6140 = vmatprep.subr.bf16.mxu0 %v10709_v8  ;;  %v10758_v7 = vcombine.low %v4503_v57, %v4507_v58  ;;  %v10765_v8 = vcombine.high %v4510_v37, %v4514_v4  ;;  %v4563_v55 = vld [vmem:[%s16246_s8 + $0x5b8] sm:$0xff]  ;;  %v10806_v58 = vcombine.low %v4551_v46, %v4555_v48 }
 0x529   :  { %6222 = vmatprep.subr.bf16.mxu1 %v10711_v9  ;;  %v10767_v9 = vcombine.high %v4511_v5, %v4515_v29  ;;  %v4567_v37 = vld [vmem:[%s16246_s8 + $0x5d8] sm:$0xff] }
 0x52a   :  { %v4571_v4 = vld [vmem:[%s16246_s8 + $0x5f8] sm:$0xff] }
 0x52b   :  { %6141 = vmatpush1.bf16.msra.mxu0 %v10708_v14  ;;  %v4523_v14 = vld [vmem:[%s16246_s8 + $0x478] sm:$0xff] }
 0x52c   :  { %6223 = vmatpush1.bf16.msra.mxu1 %v10710_v15  ;;  %6142 = vmatprep.subr.bf16.mxu0 %v10717_v16  ;;  %v10766_v15 = vcombine.low %v4511_v5, %v4515_v29  ;;  %v10773_v16 = vcombine.high %v4518_v10, %v4522_v11  ;;  %v10775_v20 = vcombine.high %v4519_v34, %v4523_v14 }
 0x52d   :  { %6224 = vmatprep.subr.bf16.mxu1 %v10719_v18  ;;  %v4526_v18 = vld [vmem:[%s16246_s8 + $0x490] sm:$0xff]  ;;  %v10814_v29 = vcombine.low %v4559_v54, %v4563_v55 }
 0x52f   :  { %6143 = vmatpush1.bf16.msra.mxu0 %v10716_v24  ;;  %v10772_v24 = vcombine.low %v4518_v10, %v4522_v11  ;;  %v4575_v10 = vld [vmem:[%s16246_s8 + $0x618] sm:$0xff] }
 0x530   :  { %6225 = vmatpush1.bf16.msra.mxu1 %v10718_v25  ;;  %6144 = vmatprep.subr.bf16.mxu0 %v10725_v26  ;;  %v10774_v25 = vcombine.low %v4519_v34, %v4523_v14  ;;  %v10781_v26 = vcombine.high %v4526_v18, %v4530_v19  ;;  %v4579_v11 = vld [vmem:[%s16246_s8 + $0x638] sm:$0xff]  ;;  %v10822_v34 = vcombine.low %v4567_v37, %v4571_v4 }
 0x531   :  { %6226 = vmatprep.subr.bf16.mxu1 %v10727_v27  ;;  %v10783_v27 = vcombine.high %v4527_v21, %v4531_v23  ;;  %v10830_v23 = vcombine.low %v4575_v10, %v4579_v11 }
 0x533   :  { %6145 = vmatpush1.bf16.msra.mxu0 %v10724_v31  ;;  %v10789_v31 = vcombine.high %v4534_v28, %v4538_v56  ;;  %v4591_v28 = vld [vmem:[%s16246_s8 + $0x698] sm:$0xff] }
 0x534   :  { %6227 = vmatpush1.bf16.msra.mxu1 %v10726_v49  ;;  %6146 = vmatprep.subr.bf16.mxu0 %v10733_v33  ;;  %v4542_v33 = vld [vmem:[%s16246_s8 + $0x510] sm:$0xff]  ;;  %v4595_v56 = vld [vmem:[%s16246_s8 + $0x6b8] sm:$0xff] }
 0x535   :  { %6228 = vmatprep.subr.bf16.mxu1 %v10735_v36  ;;  %v4546_v36 = vld [vmem:[%s16246_s8 + $0x530] sm:$0xff] }
 0x536   :  { %v10796_v17 = vcombine.low %v4542_v33, %v4546_v36 }
 0x537   :  { %6147 = vmatpush1.bf16.msra.mxu0 %v10732_v41  ;;  %v10797_v41 = vcombine.high %v4542_v33, %v4546_v36  ;;  %v4599_v33 = vld [vmem:[%s16246_s8 + $0x6d8] sm:$0xff] }
 0x538   :  { %6229 = vmatpush1.bf16.msra.mxu1 %v10734_v42  ;;  %6148 = vmatprep.subr.bf16.mxu0 %v10741_v44  ;;  %v10799_v42 = vcombine.high %v4543_v38, %v4547_v12  ;;  %v4550_v44 = vld [vmem:[%s16246_s8 + $0x550] sm:$0xff]  ;;  %v4603_v36 = vld [vmem:[%s16246_s8 + $0x6f8] sm:$0xff]  ;;  %v10846_v12 = vcombine.low %v4591_v28, %v4595_v56 }
 0x539   :  { %6230 = vmatprep.subr.bf16.mxu1 %v10743_v45  ;;  %v4554_v45 = vld [vmem:[%s16246_s8 + $0x570] sm:$0xff] }
 0x53a   :  { %v10804_v57 = vcombine.low %v4550_v44, %v4554_v45 }
 0x53b   :  { %6149 = vmatpush1.bf16.msra.mxu0 %v10740_v51  ;;  %v10805_v51 = vcombine.high %v4550_v44, %v4554_v45  ;;  %v4607_v44 = vld [vmem:[%s16246_s8 + $0x718] sm:$0xff] }
 0x53c   :  { %6231 = vmatpush1.bf16.msra.mxu1 %v10742_v32  ;;  %6150 = vmatprep.subr.bf16.mxu0 %v10749_v52  ;;  %v10807_v32 = vcombine.high %v4551_v46, %v4555_v48  ;;  %v4558_v52 = vld [vmem:[%s16246_s8 + $0x590] sm:$0xff]  ;;  %v4611_v45 = vld [vmem:[%s16246_s8 + $0x738] sm:$0xff]  ;;  %v10854_v48 = vcombine.low %v4599_v33, %v4603_v36 }
 0x53d   :  { %6232 = vmatprep.subr.bf16.mxu1 %v10751_v53  ;;  %v4562_v53 = vld [vmem:[%s16246_s8 + $0x5b0] sm:$0xff] }
 0x53e   :  { %v10812_v5 = vcombine.low %v4558_v52, %v4562_v53 }
 0x53f   :  { %6151 = vmatpush1.bf16.msra.mxu0 %v10748_v60  ;;  %v10813_v60 = vcombine.high %v4558_v52, %v4562_v53  ;;  %v4615_v52 = vld [vmem:[%s16246_s8 + $0x758] sm:$0xff] }
 0x540   :  { %6233 = vmatpush1.bf16.msra.mxu1 %v10750_v61  ;;  %6152 = vmatprep.subr.bf16.mxu0 %v10757_v63  ;;  %v10815_v61 = vcombine.high %v4559_v54, %v4563_v55  ;;  %v4566_v63 = vld [vmem:[%s16246_s8 + $0x5d0] sm:$0xff]  ;;  %v4619_v53 = vld [vmem:[%s16246_s8 + $0x778] sm:$0xff]  ;;  %v10862_v55 = vcombine.low %v4607_v44, %v4611_v45 }
 0x541   :  { %6234 = vmatprep.subr.bf16.mxu1 %v10759_v2  ;;  %v4570_v2 = vld [vmem:[%s16246_s8 + $0x5f0] sm:$0xff] }
 0x543   :  { %6153 = vmatpush1.bf16.msra.mxu0 %v10756_v6  ;;  %v10821_v6 = vcombine.high %v4566_v63, %v4570_v2 }
 0x544   :  { %6235 = vmatpush1.bf16.msra.mxu1 %v10758_v7  ;;  %6163 = vmatprep.subr.bf16.mxu0 %v10765_v8  ;;  %v10823_v7 = vcombine.high %v4567_v37, %v4571_v4  ;;  %v4574_v8 = vld [vmem:[%s16246_s8 + $0x610] sm:$0xff]  ;;  %v10870_v4 = vcombine.low %v4615_v52, %v4619_v53 }
 0x545   :  { %6245 = vmatprep.subr.bf16.mxu1 %v10767_v9  ;;  %v4578_v9 = vld [vmem:[%s16246_s8 + $0x630] sm:$0xff] }
 0x546   :  { %6155 = vmatmul.mubr.bf16.vlgmr.msra.gmra.mrb[24].mxu0 %v14037_v35  ;;  %v10829_v14 = vcombine.high %v4574_v8, %v4578_v9  ;;  %v10828_v21 = vcombine.low %v4574_v8, %v4578_v9  ;;  %v4631_v8 = vld [vmem:[%s16246_s8 + $0x7d8] sm:$0xff] }
 0x547   :  { %6237 = vmatmul.mubr.bf16.vlgmr.msra.gmra.mrb[24].mxu1 %v14037_v35  ;;  %6164 = vmatpush1.bf16.msra.mxu0 %v10764_v13  ;;  %v4535_v35 = vld [vmem:[%s16246_s8 + $0x4d8] sm:$0xff]  ;;  %v10820_v13 = vcombine.low %v4566_v63, %v4570_v2 }
 0x548   :  { %6195 = vmatprep.mubr.bf16.mxu0 %v14053_v43  ;;  %6246 = vmatpush1.bf16.msra.mxu1 %v10766_v15  ;;  %v10791_v49 = vcombine.high %v4535_v35, %v4539_v59  ;;  %v10790_v40 = vcombine.low %v4535_v35, %v4539_v59  ;;  %v10831_v15 = vcombine.high %v4575_v10, %v4579_v11  ;;  %v4623_v63 = vld [vmem:[%s16246_s8 + $0x798] sm:$0xff] }
 0x549   :  { %6277 = vmatprep.mubr.bf16.mxu1 %v14053_v43  ;;  %6165 = vmatprep.subr.bf16.mxu0 %v10773_v16  ;;  %v10780_v43 = vcombine.low %v4526_v18, %v4530_v19  ;;  %v4582_v16 = vld [vmem:[%s16246_s8 + $0x650] sm:$0xff]  ;;  %v4583_v19 = vld [vmem:[%s16246_s8 + $0x658] sm:$0xff] }
 0x54a   :  { %6247 = vmatprep.subr.bf16.mxu1 %v10775_v20  ;;  %v4586_v18 = vld [vmem:[%s16246_s8 + $0x670] sm:$0xff]  ;;  %v4587_v20 = vld [vmem:[%s16246_s8 + $0x678] sm:$0xff] }
 0x54b   :  { %6166 = vmatpush1.bf16.msra.mxu0 %v10772_v24  ;;  %v10837_v24 = vcombine.high %v4582_v16, %v4586_v18  ;;  %v10836_v35 = vcombine.low %v4582_v16, %v4586_v18  ;;  %v10838_v59 = vcombine.low %v4583_v19, %v4587_v20  ;;  %v4627_v2 = vld [vmem:[%s16246_s8 + $0x7b8] sm:$0xff]  ;;  %v6295_v16 = vld [vmem:[%s16251_s10 + $0x8] sm:$0xff] }
 0x54c   :  { %6248 = vmatpush1.bf16.msra.mxu1 %v10774_v25  ;;  %6167 = vmatprep.subr.bf16.mxu0 %v10781_v26  ;;  %v10839_v25 = vcombine.high %v4583_v19, %v4587_v20  ;;  %v4590_v26 = vld [vmem:[%s16246_s8 + $0x690] sm:$0xff]  ;;  %v4635_v9 = vld [vmem:[%s16246_s8 + $0x7f8] sm:$0xff]  ;;  %v10878_v11 = vcombine.low %v4623_v63, %v4627_v2  ;;  %v6299_v18 = vld [vmem:[%s16251_s10 + $0x28] sm:$0xff] }
 0x54d   :  { %6249 = vmatprep.subr.bf16.mxu1 %v10783_v27  ;;  %v4594_v27 = vld [vmem:[%s16246_s8 + $0x6b0] sm:$0xff]  ;;  %v10886_v20 = vcombine.low %v4631_v8, %v4635_v9 }
 0x54e   :  { %v10844_v38 = vcombine.low %v4590_v26, %v4594_v27 }
 0x54f   :  { %6168 = vmatpush1.bf16.msra.mxu0 %v10780_v43  ;;  %v10845_v43 = vcombine.high %v4590_v26, %v4594_v27  ;;  %v6303_v26 = vld [vmem:[%s16251_s10 + $0x48] sm:$0xff] }
 0x550   :  { %6250 = vmatpush1.bf16.msra.mxu1 %v10782_v30  ;;  %6169 = vmatprep.subr.bf16.mxu0 %v10789_v31  ;;  %v10847_v30 = vcombine.high %v4591_v28, %v4595_v56  ;;  %v4598_v31 = vld [vmem:[%s16246_s8 + $0x6d0] sm:$0xff]  ;;  %v6307_v27 = vld [vmem:[%s16251_s10 + $0x68] sm:$0xff]  ;;  %v10890_v56 = vcombine.low %v6295_v16, %v6299_v18 }
 0x551   :  { %6251 = vmatprep.subr.bf16.mxu1 %v10791_v49  ;;  %v4602_v49 = vld [vmem:[%s16246_s8 + $0x6f0] sm:$0xff] }
 0x552   :  { %v10852_v46 = vcombine.low %v4598_v31, %v4602_v49 }
 0x553   :  { %6170 = vmatpush1.bf16.msra.mxu0 %v10788_v39  ;;  %v10853_v39 = vcombine.high %v4598_v31, %v4602_v49  ;;  %v6311_v31 = vld [vmem:[%s16251_s10 + $0x88] sm:$0xff] }
 0x554   :  { %6252 = vmatpush1.bf16.msra.mxu1 %v10790_v40  ;;  %6171 = vmatprep.subr.bf16.mxu0 %v10797_v41  ;;  %v10855_v40 = vcombine.high %v4599_v33, %v4603_v36  ;;  %v4606_v41 = vld [vmem:[%s16246_s8 + $0x710] sm:$0xff]  ;;  %v6315_v49 = vld [vmem:[%s16251_s10 + $0xa8] sm:$0xff]  ;;  %v10898_v36 = vcombine.low %v6303_v26, %v6307_v27 }
 0x555   :  { %6253 = vmatprep.subr.bf16.mxu1 %v10799_v42  ;;  %v4610_v42 = vld [vmem:[%s16246_s8 + $0x730] sm:$0xff] }
 0x556   :  { %v10860_v54 = vcombine.low %v4606_v41, %v4610_v42 }
 0x557   :  { %6172 = vmatpush1.bf16.msra.mxu0 %v10796_v17  ;;  %v10861_v17 = vcombine.high %v4606_v41, %v4610_v42  ;;  %v6323_v41 = vld [vmem:[%s16251_s10 + $0xe8] sm:$0xff] }
 0x558   :  { %6254 = vmatpush1.bf16.msra.mxu1 %v10798_v50  ;;  %6173 = vmatprep.subr.bf16.mxu0 %v10805_v51  ;;  %v10863_v50 = vcombine.high %v4607_v44, %v4611_v45  ;;  %v4614_v51 = vld [vmem:[%s16246_s8 + $0x750] sm:$0xff]  ;;  %v10906_v44 = vcombine.low %v6311_v31, %v6315_v49 }
 0x559   :  { %6255 = vmatprep.subr.bf16.mxu1 %v10807_v32  ;;  %v4618_v32 = vld [vmem:[%s16246_s8 + $0x770] sm:$0xff] }
 0x55a   :  { %v10868_v37 = vcombine.low %v4614_v51, %v4618_v32 }
 0x55b   :  { %6174 = vmatpush1.bf16.msra.mxu0 %v10804_v57  ;;  %v10869_v57 = vcombine.high %v4614_v51, %v4618_v32  ;;  %v6331_v51 = vld [vmem:[%s16251_s10 + $0x128] sm:$0xff] }
 0x55c   :  { %6256 = vmatpush1.bf16.msra.mxu1 %v10806_v58  ;;  %6175 = vmatprep.subr.bf16.mxu0 %v10813_v60  ;;  %v10871_v58 = vcombine.high %v4615_v52, %v4619_v53  ;;  %v4622_v60 = vld [vmem:[%s16246_s8 + $0x790] sm:$0xff] }
 0x55d   :  { %6257 = vmatprep.subr.bf16.mxu1 %v10815_v61  ;;  %v4626_v61 = vld [vmem:[%s16246_s8 + $0x7b0] sm:$0xff] }
 0x55e   :  { %v10876_v10 = vcombine.low %v4622_v60, %v4626_v61 }
 0x55f   :  { %6176 = vmatpush1.bf16.msra.mxu0 %v10812_v5  ;;  %v10877_v5 = vcombine.high %v4622_v60, %v4626_v61  ;;  %v6339_v60 = vld [vmem:[%s16251_s10 + $0x168] sm:$0xff] }
 0x560   :  { %6258 = vmatpush1.bf16.msra.mxu1 %v10814_v29  ;;  %6177 = vmatprep.subr.bf16.mxu0 %v10821_v6  ;;  %v10879_v29 = vcombine.high %v4623_v63, %v4627_v2  ;;  %v4630_v6 = vld [vmem:[%s16246_s8 + $0x7d0] sm:$0xff] }
 0x561   :  { %6259 = vmatprep.subr.bf16.mxu1 %v10823_v7  ;;  %v4634_v7 = vld [vmem:[%s16246_s8 + $0x7f0] sm:$0xff] }
 0x562   :  { %v10884_v19 = vcombine.low %v4630_v6, %v4634_v7 }
 0x563   :  { %6178 = vmatpush1.bf16.msra.mxu0 %v10820_v13  ;;  %v10885_v13 = vcombine.high %v4630_v6, %v4634_v7  ;;  %v6347_v6 = vld [vmem:[%s16251_s10 + $0x1a8] sm:$0xff] }
 0x564   :  { %6260 = vmatpush1.bf16.msra.mxu1 %v10822_v34  ;;  %6179 = vmatprep.subr.bf16.mxu0 %v10829_v14  ;;  %v10887_v34 = vcombine.high %v4631_v8, %v4635_v9  ;;  %v6294_v14 = vld [vmem:[%s16251_s10] sm:$0xff] }
 0x565   :  { %6261 = vmatprep.subr.bf16.mxu1 %v10831_v15  ;;  %v6298_v15 = vld [vmem:[%s16251_s10 + $0x20] sm:$0xff] }
 0x566   :  { %v10888_v28 = vcombine.low %v6294_v14, %v6298_v15 }
 0x567   :  { %6180 = vmatpush1.bf16.msra.mxu0 %v10828_v21  ;;  %v10889_v21 = vcombine.high %v6294_v14, %v6298_v15  ;;  %v6355_v14 = vld [vmem:[%s16251_s10 + $0x1e8] sm:$0xff] }
 0x568   :  { %6262 = vmatpush1.bf16.msra.mxu1 %v10830_v23  ;;  %6181 = vmatprep.subr.bf16.mxu0 %v10837_v24  ;;  %v10891_v23 = vcombine.high %v6295_v16, %v6299_v18  ;;  %v6302_v24 = vld [vmem:[%s16251_s10 + $0x40] sm:$0xff] }
 0x569   :  { %6263 = vmatprep.subr.bf16.mxu1 %v10839_v25  ;;  %v6306_v25 = vld [vmem:[%s16251_s10 + $0x60] sm:$0xff] }
 0x56a   :  { %v10896_v33 = vcombine.low %v6302_v24, %v6306_v25 }
 0x56b   :  { %6182 = vmatpush1.bf16.msra.mxu0 %v10836_v35  ;;  %v10897_v35 = vcombine.high %v6302_v24, %v6306_v25  ;;  %v6363_v24 = vld [vmem:[%s16251_s10 + $0x228] sm:$0xff] }
 0x56c   :  { %6264 = vmatpush1.bf16.msra.mxu1 %v10838_v59  ;;  %6183 = vmatprep.subr.bf16.mxu0 %v10845_v43  ;;  %v10899_v59 = vcombine.high %v6303_v26, %v6307_v27  ;;  %v6310_v43 = vld [vmem:[%s16251_s10 + $0x80] sm:$0xff] }
 0x56d   :  { %6265 = vmatprep.subr.bf16.mxu1 %v10847_v30  ;;  %v6314_v30 = vld [vmem:[%s16251_s10 + $0xa0] sm:$0xff] }
 0x56e   :  { %v10904_v42 = vcombine.low %v6310_v43, %v6314_v30 }
 0x56f   :  { %6184 = vmatpush1.bf16.msra.mxu0 %v10844_v38  ;;  %v10905_v38 = vcombine.high %v6310_v43, %v6314_v30  ;;  %v6371_v43 = vld [vmem:[%s16251_s10 + $0x268] sm:$0xff] }
 0x570   :  { %6266 = vmatpush1.bf16.msra.mxu1 %v10846_v12  ;;  %6185 = vmatprep.subr.bf16.mxu0 %v10853_v39  ;;  %v10907_v12 = vcombine.high %v6311_v31, %v6315_v49  ;;  %v6318_v39 = vld [vmem:[%s16251_s10 + $0xc0] sm:$0xff] }
 0x571   :  { %6267 = vmatprep.subr.bf16.mxu1 %v10855_v40  ;;  %v6322_v40 = vld [vmem:[%s16251_s10 + $0xe0] sm:$0xff] }
 0x572   :  { %v10913_v45 = vcombine.high %v6318_v39, %v6322_v40  ;;  %v10912_v32 = vcombine.low %v6318_v39, %v6322_v40  ;;  %v6379_v39 = vld [vmem:[%s16251_s10 + $0x2a8] sm:$0xff] }
 0x573   :  { %6186 = vmatpush1.bf16.msra.mxu0 %v10852_v46 }
 0x574   :  { %6268 = vmatpush1.bf16.msra.mxu1 %v10854_v48  ;;  %6187 = vmatprep.subr.bf16.mxu0 %v10861_v17  ;;  %v6326_v48 = vld [vmem:[%s16251_s10 + $0x100] sm:$0xff] }
 0x575   :  { %6269 = vmatprep.subr.bf16.mxu1 %v10863_v50  ;;  %v6330_v17 = vld [vmem:[%s16251_s10 + $0x120] sm:$0xff]  ;;  %v6327_v50 = vld [vmem:[%s16251_s10 + $0x108] sm:$0xff] }
 0x576   :  { %v10921_v53 = vcombine.high %v6326_v48, %v6330_v17  ;;  %v10920_v61 = vcombine.low %v6326_v48, %v6330_v17  ;;  %v10922_v63 = vcombine.low %v6327_v50, %v6331_v51  ;;  %v6387_v48 = vld [vmem:[%s16251_s10 + $0x2e8] sm:$0xff] }
 0x577   :  { %6188 = vmatpush1.bf16.msra.mxu0 %v10860_v54  ;;  %v10923_v54 = vcombine.high %v6327_v50, %v6331_v51 }
 0x578   :  { %6270 = vmatpush1.bf16.msra.mxu1 %v10862_v55  ;;  %6189 = vmatprep.subr.bf16.mxu0 %v10869_v57  ;;  %v6334_v55 = vld [vmem:[%s16251_s10 + $0x140] sm:$0xff] }
 0x579   :  { %6271 = vmatprep.subr.bf16.mxu1 %v10871_v58  ;;  %v6338_v57 = vld [vmem:[%s16251_s10 + $0x160] sm:$0xff]  ;;  %v6335_v58 = vld [vmem:[%s16251_s10 + $0x148] sm:$0xff] }
 0x57a   :  { %v10929_v2 = vcombine.high %v6334_v55, %v6338_v57  ;;  %v10928_v7 = vcombine.low %v6334_v55, %v6338_v57  ;;  %v10930_v8 = vcombine.low %v6335_v58, %v6339_v60  ;;  %v6395_v55 = vld [vmem:[%s16251_s10 + $0x328] sm:$0xff] }
 0x57b   :  { %6190 = vmatpush1.bf16.msra.mxu0 %v10868_v37  ;;  %v10931_v37 = vcombine.high %v6335_v58, %v6339_v60 }
 0x57c   :  { %6272 = vmatpush1.bf16.msra.mxu1 %v10870_v4  ;;  %6191 = vmatprep.subr.bf16.mxu0 %v10877_v5  ;;  %v6342_v4 = vld [vmem:[%s16251_s10 + $0x180] sm:$0xff] }
 0x57d   :  { %6273 = vmatprep.subr.bf16.mxu1 %v10879_v29  ;;  %v6346_v5 = vld [vmem:[%s16251_s10 + $0x1a0] sm:$0xff]  ;;  %v6343_v29 = vld [vmem:[%s16251_s10 + $0x188] sm:$0xff] }
 0x57e   :  { %v10937_v9 = vcombine.high %v6342_v4, %v6346_v5  ;;  %v10936_v15 = vcombine.low %v6342_v4, %v6346_v5  ;;  %v10938_v16 = vcombine.low %v6343_v29, %v6347_v6  ;;  %v6403_v4 = vld [vmem:[%s16251_s10 + $0x368] sm:$0xff] }
 0x57f   :  { %6192 = vmatpush1.bf16.msra.mxu0 %v10876_v10  ;;  %v10939_v10 = vcombine.high %v6343_v29, %v6347_v6 }
 0x580   :  { %6274 = vmatpush1.bf16.msra.mxu1 %v10878_v11  ;;  %6193 = vmatprep.subr.bf16.mxu0 %v10885_v13  ;;  %v6350_v11 = vld [vmem:[%s16251_s10 + $0x1c0] sm:$0xff] }
 0x581   :  { %6275 = vmatprep.subr.bf16.mxu1 %v10887_v34  ;;  %v6354_v13 = vld [vmem:[%s16251_s10 + $0x1e0] sm:$0xff]  ;;  %v6351_v34 = vld [vmem:[%s16251_s10 + $0x1c8] sm:$0xff] }
 0x582   :  { %v10945_v18 = vcombine.high %v6350_v11, %v6354_v13  ;;  %v10944_v25 = vcombine.low %v6350_v11, %v6354_v13  ;;  %v10946_v26 = vcombine.low %v6351_v34, %v6355_v14  ;;  %v6411_v11 = vld [vmem:[%s16251_s10 + $0x3a8] sm:$0xff] }
 0x583   :  { %6194 = vmatpush1.bf16.msra.mxu0 %v10884_v19  ;;  %v10947_v19 = vcombine.high %v6351_v34, %v6355_v14 }
 0x584   :  { %6276 = vmatpush1.bf16.msra.mxu1 %v10886_v20  ;;  %9366 = vmatprep.subr.bf16.mxu0 %v10889_v21  ;;  %v6358_v20 = vld [vmem:[%s16251_s10 + $0x200] sm:$0xff] }
 0x585   :  { %9530 = vmatprep.subr.bf16.mxu1 %v10891_v23  ;;  %v6362_v21 = vld [vmem:[%s16251_s10 + $0x220] sm:$0xff]  ;;  %v6359_v23 = vld [vmem:[%s16251_s10 + $0x208] sm:$0xff] }
 0x586   :  { %6196 = vmatmul.mubr.bf16.vlgmr.msra.gmra.mrb[24].mxu0 %v14242_v3  ;;  %v10953_v27 = vcombine.high %v6358_v20, %v6362_v21  ;;  %v10952_v30 = vcombine.low %v6358_v20, %v6362_v21  ;;  %v10954_v31 = vcombine.low %v6359_v23, %v6363_v24  ;;  %v6419_v20 = vld [vmem:[%s16251_s10 + $0x3e8] sm:$0xff] }
 0x587   :  { %6278 = vmatmul.mubr.bf16.vlgmr.msra.gmra.mrb[24].mxu1 %v14242_v3  ;;  %9367 = vmatpush1.bf16.msra.mxu0 %v10888_v28  ;;  %v6319_v3 = vld [vmem:[%s16251_s10 + $0xc8] sm:$0xff]  ;;  %v10955_v28 = vcombine.high %v6359_v23, %v6363_v24 }
 0x588   :  { %9531 = vmatpush1.bf16.msra.mxu1 %v10890_v56  ;;  %9368 = vmatprep.subr.bf16.mxu0 %v10897_v35  ;;  %v10915_v46 = vcombine.high %v6319_v3, %v6323_v41  ;;  %v10914_v52 = vcombine.low %v6319_v3, %v6323_v41  ;;  %v6366_v56 = vld [vmem:[%s16251_s10 + $0x240] sm:$0xff] }
 0x589   :  { %9532 = vmatprep.subr.bf16.mxu1 %v10899_v59  ;;  %v6370_v35 = vld [vmem:[%s16251_s10 + $0x260] sm:$0xff]  ;;  %v6367_v59 = vld [vmem:[%s16251_s10 + $0x248] sm:$0xff] }
 0x58a   :  { %v10961_v49 = vcombine.high %v6366_v56, %v6370_v35  ;;  %v10960_v40 = vcombine.low %v6366_v56, %v6370_v35  ;;  %v10962_v3 = vcombine.low %v6367_v59, %v6371_v43  ;;  %v6427_v56 = vld [vmem:[%s16251_s10 + $0x428] sm:$0xff] }
 0x58b   :  { %9369 = vmatpush1.bf16.msra.mxu0 %v10896_v33  ;;  %v10963_v33 = vcombine.high %v6367_v59, %v6371_v43 }
 0x58c   :  { %9533 = vmatpush1.bf16.msra.mxu1 %v10898_v36  ;;  %9370 = vmatprep.subr.bf16.mxu0 %v10905_v38  ;;  %v6374_v36 = vld [vmem:[%s16251_s10 + $0x280] sm:$0xff] }
 0x58d   :  { %9534 = vmatprep.subr.bf16.mxu1 %v10907_v12  ;;  %v6378_v38 = vld [vmem:[%s16251_s10 + $0x2a0] sm:$0xff]  ;;  %v6375_v12 = vld [vmem:[%s16251_s10 + $0x288] sm:$0xff] }
 0x58e   :  { %v10969_v41 = vcombine.high %v6374_v36, %v6378_v38  ;;  %v10968_v17 = vcombine.low %v6374_v36, %v6378_v38  ;;  %v10970_v50 = vcombine.low %v6375_v12, %v6379_v39 }
 0x58f   :  { %9371 = vmatpush1.bf16.msra.mxu0 %v10904_v42  ;;  %v10971_v42 = vcombine.high %v6375_v12, %v6379_v39 }
 0x590   :  { %9535 = vmatpush1.bf16.msra.mxu1 %v10906_v44  ;;  %9372 = vmatprep.subr.bf16.mxu0 %v10913_v45  ;;  %v6382_v44 = vld [vmem:[%s16251_s10 + $0x2c0] sm:$0xff] }
 0x591   :  { %9536 = vmatprep.subr.bf16.mxu1 %v10915_v46  ;;  %v6386_v45 = vld [vmem:[%s16251_s10 + $0x2e0] sm:$0xff]  ;;  %v6383_v46 = vld [vmem:[%s16251_s10 + $0x2c8] sm:$0xff] }
 0x592   :  { %v10977_v51 = vcombine.high %v6382_v44, %v6386_v45  ;;  %v10976_v57 = vcombine.low %v6382_v44, %v6386_v45  ;;  %v10978_v58 = vcombine.low %v6383_v46, %v6387_v48  ;;  %v6430_v45 = vld [vmem:[%s16251_s10 + $0x440] sm:$0xff] }
 0x593   :  { %9373 = vmatpush1.bf16.msra.mxu0 %v10912_v32  ;;  %v10979_v32 = vcombine.high %v6383_v46, %v6387_v48 }
 0x594   :  { %9537 = vmatpush1.bf16.msra.mxu1 %v10914_v52  ;;  %9374 = vmatprep.subr.bf16.mxu0 %v10921_v53  ;;  %v6390_v52 = vld [vmem:[%s16251_s10 + $0x300] sm:$0xff] }
 0x595   :  { %9538 = vmatprep.subr.bf16.mxu1 %v10923_v54  ;;  %v6394_v53 = vld [vmem:[%s16251_s10 + $0x320] sm:$0xff]  ;;  %v6391_v54 = vld [vmem:[%s16251_s10 + $0x308] sm:$0xff] }
 0x596   :  { %v10985_v60 = vcombine.high %v6390_v52, %v6394_v53  ;;  %v10984_v5 = vcombine.low %v6390_v52, %v6394_v53  ;;  %v10986_v29 = vcombine.low %v6391_v54, %v6395_v55  ;;  %v6438_v53 = vld [vmem:[%s16251_s10 + $0x480] sm:$0xff] }
 0x597   :  { %9375 = vmatpush1.bf16.msra.mxu0 %v10920_v61  ;;  %v10987_v61 = vcombine.high %v6391_v54, %v6395_v55 }
 0x598   :  { %9539 = vmatpush1.bf16.msra.mxu1 %v10922_v63  ;;  %9376 = vmatprep.subr.bf16.mxu0 %v10929_v2  ;;  %v6398_v63 = vld [vmem:[%s16251_s10 + $0x340] sm:$0xff] }
 0x599   :  { %9540 = vmatprep.subr.bf16.mxu1 %v10931_v37  ;;  %v6402_v2 = vld [vmem:[%s16251_s10 + $0x360] sm:$0xff]  ;;  %v6399_v37 = vld [vmem:[%s16251_s10 + $0x348] sm:$0xff] }
 0x59a   :  { %v10993_v6 = vcombine.high %v6398_v63, %v6402_v2  ;;  %v10992_v13 = vcombine.low %v6398_v63, %v6402_v2  ;;  %v10994_v34 = vcombine.low %v6399_v37, %v6403_v4 }
 0x59b   :  { %9377 = vmatpush1.bf16.msra.mxu0 %v10928_v7  ;;  %v10995_v7 = vcombine.high %v6399_v37, %v6403_v4 }
 0x59c   :  { %9541 = vmatpush1.bf16.msra.mxu1 %v10930_v8  ;;  %9378 = vmatprep.subr.bf16.mxu0 %v10937_v9  ;;  %v6406_v8 = vld [vmem:[%s16251_s10 + $0x380] sm:$0xff] }
 0x59d   :  { %9542 = vmatprep.subr.bf16.mxu1 %v10939_v10  ;;  %v6410_v9 = vld [vmem:[%s16251_s10 + $0x3a0] sm:$0xff]  ;;  %v6407_v10 = vld [vmem:[%s16251_s10 + $0x388] sm:$0xff] }
 0x59e   :  { %v11001_v14 = vcombine.high %v6406_v8, %v6410_v9  ;;  %v11000_v21 = vcombine.low %v6406_v8, %v6410_v9  ;;  %v11002_v23 = vcombine.low %v6407_v10, %v6411_v11 }
 0x59f   :  { %9379 = vmatpush1.bf16.msra.mxu0 %v10936_v15  ;;  %v11003_v15 = vcombine.high %v6407_v10, %v6411_v11 }
 0x5a0   :  { %9543 = vmatpush1.bf16.msra.mxu1 %v10938_v16  ;;  %9380 = vmatprep.subr.bf16.mxu0 %v10945_v18  ;;  %v6414_v16 = vld [vmem:[%s16251_s10 + $0x3c0] sm:$0xff] }
 0x5a1   :  { %9544 = vmatprep.subr.bf16.mxu1 %v10947_v19  ;;  %v6418_v18 = vld [vmem:[%s16251_s10 + $0x3e0] sm:$0xff]  ;;  %v6415_v19 = vld [vmem:[%s16251_s10 + $0x3c8] sm:$0xff] }
 0x5a2   :  { %v11009_v24 = vcombine.high %v6414_v16, %v6418_v18  ;;  %v11008_v35 = vcombine.low %v6414_v16, %v6418_v18  ;;  %v11010_v59 = vcombine.low %v6415_v19, %v6419_v20 }
 0x5a3   :  { %9381 = vmatpush1.bf16.msra.mxu0 %v10944_v25  ;;  %v11011_v25 = vcombine.high %v6415_v19, %v6419_v20 }
 0x5a4   :  { %9545 = vmatpush1.bf16.msra.mxu1 %v10946_v26  ;;  %9382 = vmatprep.subr.bf16.mxu0 %v10953_v27  ;;  %v6422_v26 = vld [vmem:[%s16251_s10 + $0x400] sm:$0xff] }
 0x5a5   :  { %9546 = vmatprep.subr.bf16.mxu1 %v10955_v28  ;;  %v6426_v27 = vld [vmem:[%s16251_s10 + $0x420] sm:$0xff]  ;;  %v6423_v28 = vld [vmem:[%s16251_s10 + $0x408] sm:$0xff] }
 0x5a6   :  { %v11017_v43 = vcombine.high %v6422_v26, %v6426_v27 }
 0x5a7   :  { %9383 = vmatpush1.bf16.msra.mxu0 %v10952_v30  ;;  %v11019_v30 = vcombine.high %v6423_v28, %v6427_v56 }
 0x5a8   :  { %9547 = vmatpush1.bf16.msra.mxu1 %v10954_v31  ;;  %9384 = vmatprep.subr.bf16.mxu0 %v10961_v49  ;;  %v14821_v31 = vld [vmem:[%s16252_s9] sm:$0xff] }
 0x5a9   :  { %9548 = vmatprep.subr.bf16.mxu1 %v10963_v33  ;;  %v4641_v49 = vrot.slane %v14821_v31, %v13754_v22  ;;  %v4645_v33 = vrot.slane %v14821_v31, %v13763_v0  ;;  %v4653_v36 = vrot.slane %v14821_v31, %v13766_v1  ;;  %v6434_v0 = vld [vmem:[%s16251_s10 + $0x460] sm:$0xff]  ;;  %v6431_v1 = vld [vmem:[%s16251_s10 + $0x448] sm:$0xff] }
 0x5aa   :  { %v11025_v54 = vcombine.high %v6430_v45, %v6434_v0  ;;  %v11024_v63 = vcombine.low %v6430_v45, %v6434_v0  ;;  %v6487_v0 = vld [vmem:[%s16251_s10 + $0x608] sm:$0xff] }
 0x5ab   :  { %9385 = vmatpush1.bf16.msra.mxu0 %v10960_v40 }
 0x5ac   :  { %9549 = vmatpush1.bf16.msra.mxu1 %v10962_v3  ;;  %9386 = vmatprep.subr.bf16.mxu0 %v10969_v41 }
 0x5ad   :  { %9550 = vmatprep.subr.bf16.mxu1 %v10971_v42 }
 0x5af   :  { %9387 = vmatpush1.bf16.msra.mxu0 %v10968_v17  ;;  %v6435_v17 = vld [vmem:[%s16251_s10 + $0x468] sm:$0xff] }
 0x5b0   :  { %9551 = vmatpush1.bf16.msra.mxu1 %v10970_v50  ;;  %9388 = vmatprep.subr.bf16.mxu0 %v10977_v51  ;;  %v11016_v51 = vcombine.low %v6422_v26, %v6426_v27  ;;  %v11027_v55 = vcombine.high %v6431_v1, %v6435_v17  ;;  %v11026_v2 = vcombine.low %v6431_v1, %v6435_v17  ;;  %v6491_v1 = vld [vmem:[%s16251_s10 + $0x628] sm:$0xff] }
 0x5b1   :  { %9552 = vmatprep.subr.bf16.mxu1 %v10979_v32  ;;  %v11018_v32 = vcombine.low %v6423_v28, %v6427_v56 }
 0x5b3   :  { %9389 = vmatpush1.bf16.msra.mxu0 %v10976_v57  ;;  %v6442_v57 = vld [vmem:[%s16251_s10 + $0x4a0] sm:$0xff] }
 0x5b4   :  { %9553 = vmatpush1.bf16.msra.mxu1 %v10978_v58  ;;  %9390 = vmatprep.subr.bf16.mxu0 %v10985_v60  ;;  %v6439_v58 = vld [vmem:[%s16251_s10 + $0x488] sm:$0xff]  ;;  %v11033_v37 = vcombine.high %v6438_v53, %v6442_v57  ;;  %v11032_v8 = vcombine.low %v6438_v53, %v6442_v57  ;;  %v11083_v53 = vcombine.high %v6487_v0, %v6491_v1 }
 0x5b5   :  { %9554 = vmatprep.subr.bf16.mxu1 %v10987_v61  ;;  %v6443_v60 = vld [vmem:[%s16251_s10 + $0x4a8] sm:$0xff] }
 0x5b6   :  { %v11035_v4 = vcombine.high %v6439_v58, %v6443_v60  ;;  %v11034_v9 = vcombine.low %v6439_v58, %v6443_v60  ;;  %v6495_v57 = vld [vmem:[%s16251_s10 + $0x648] sm:$0xff] }
 0x5b7   :  { %9391 = vmatpush1.bf16.msra.mxu0 %v10984_v5  ;;  %v6446_v5 = vld [vmem:[%s16251_s10 + $0x4c0] sm:$0xff]  ;;  %v6499_v58 = vld [vmem:[%s16251_s10 + $0x668] sm:$0xff] }
 0x5b8   :  { %9555 = vmatpush1.bf16.msra.mxu1 %v10986_v29  ;;  %9392 = vmatprep.subr.bf16.mxu0 %v10993_v6  ;;  %v6450_v29 = vld [vmem:[%s16251_s10 + $0x4e0] sm:$0xff]  ;;  %v6447_v6 = vld [vmem:[%s16251_s10 + $0x4c8] sm:$0xff] }
 0x5b9   :  { %9556 = vmatprep.subr.bf16.mxu1 %v10995_v7  ;;  %v6451_v7 = vld [vmem:[%s16251_s10 + $0x4e8] sm:$0xff]  ;;  %v11041_v10 = vcombine.high %v6446_v5, %v6450_v29  ;;  %v11040_v16 = vcombine.low %v6446_v5, %v6450_v29  ;;  %v6506_v5 = vld [vmem:[%s16251_s10 + $0x6a0] sm:$0xff] }
 0x5ba   :  { %v11043_v11 = vcombine.high %v6447_v6, %v6451_v7  ;;  %v11042_v18 = vcombine.low %v6447_v6, %v6451_v7  ;;  %v6503_v29 = vld [vmem:[%s16251_s10 + $0x688] sm:$0xff] }
 0x5bb   :  { %9393 = vmatpush1.bf16.msra.mxu0 %v10992_v13  ;;  %v6454_v13 = vld [vmem:[%s16251_s10 + $0x500] sm:$0xff]  ;;  %v6507_v6 = vld [vmem:[%s16251_s10 + $0x6a8] sm:$0xff] }
 0x5bc   :  { %9557 = vmatpush1.bf16.msra.mxu1 %v10994_v34  ;;  %9394 = vmatprep.subr.bf16.mxu0 %v11001_v14  ;;  %v6458_v34 = vld [vmem:[%s16251_s10 + $0x520] sm:$0xff]  ;;  %v6455_v14 = vld [vmem:[%s16251_s10 + $0x508] sm:$0xff] }
 0x5bd   :  { %9558 = vmatprep.subr.bf16.mxu1 %v11003_v15  ;;  %v6459_v15 = vld [vmem:[%s16251_s10 + $0x528] sm:$0xff]  ;;  %v11049_v19 = vcombine.high %v6454_v13, %v6458_v34  ;;  %v11048_v26 = vcombine.low %v6454_v13, %v6458_v34  ;;  %v6514_v13 = vld [vmem:[%s16251_s10 + $0x6e0] sm:$0xff] }
 0x5be   :  { %v11051_v20 = vcombine.high %v6455_v14, %v6459_v15  ;;  %v11050_v27 = vcombine.low %v6455_v14, %v6459_v15  ;;  %v6511_v34 = vld [vmem:[%s16251_s10 + $0x6c8] sm:$0xff] }
 0x5bf   :  { %9395 = vmatpush1.bf16.msra.mxu0 %v11000_v21  ;;  %v6462_v21 = vld [vmem:[%s16251_s10 + $0x540] sm:$0xff]  ;;  %v6515_v14 = vld [vmem:[%s16251_s10 + $0x6e8] sm:$0xff] }
 0x5c0   :  { %9559 = vmatpush1.bf16.msra.mxu1 %v11002_v23  ;;  %9396 = vmatprep.subr.bf16.mxu0 %v11009_v24  ;;  %v6466_v23 = vld [vmem:[%s16251_s10 + $0x560] sm:$0xff]  ;;  %v6463_v24 = vld [vmem:[%s16251_s10 + $0x548] sm:$0xff] }
 0x5c1   :  { %9560 = vmatprep.subr.bf16.mxu1 %v11011_v25  ;;  %v6467_v25 = vld [vmem:[%s16251_s10 + $0x568] sm:$0xff]  ;;  %v11057_v28 = vcombine.high %v6462_v21, %v6466_v23 }
 0x5c2   :  { %v11059_v56 = vcombine.high %v6463_v24, %v6467_v25 }
 0x5c3   :  { %9397 = vmatpush1.bf16.msra.mxu0 %v11008_v35  ;;  %v6470_v35 = vld [vmem:[%s16251_s10 + $0x580] sm:$0xff] }
 0x5c4   :  { %9561 = vmatpush1.bf16.msra.mxu1 %v11010_v59  ;;  %9407 = vmatprep.subr.bf16.mxu0 %v11017_v43  ;;  %v6474_v59 = vld [vmem:[%s16251_s10 + $0x5a0] sm:$0xff]  ;;  %v6471_v43 = vld [vmem:[%s16251_s10 + $0x588] sm:$0xff] }
 0x5c5   :  { %9571 = vmatprep.subr.bf16.mxu1 %v11019_v30  ;;  %v6475_v30 = vld [vmem:[%s16251_s10 + $0x5a8] sm:$0xff] }
 0x5d9   :  { %v6033_v38 = vpop.f32.mrb[20].mxu0  ;;  %v14829_v12 = vpop.f32.mrb[20].mxu1 }
 0x5da   :  { %v11448_v39 = vadd.f32 %v6033_v38, %v4641_v49  ;;  %v6035_v40 = vpop.f32.mrb[21].mxu0  ;;  %v6117_v3 = vpop.f32.mrb[21].mxu1  ;;  %v11056_v49 = vcombine.low %v6462_v21, %v6466_v23  ;;  %v11067_v38 = vcombine.high %v6471_v43, %v6475_v30  ;;  %v6522_v21 = vld [vmem:[%s16251_s10 + $0x720] sm:$0xff]  ;;  %v6519_v23 = vld [vmem:[%s16251_s10 + $0x708] sm:$0xff] }
 0x5db   :  { %v11449_v41 = vadd.f32 %v6035_v40, %v4645_v33  ;;  %v6037_v42 = vpop.f32.mrb[22].mxu0  ;;  %v6119_v44 = vpop.f32.mrb[22].mxu1  ;;  %v11451_v22 = vadd.f32 %v6117_v3, %v4653_v36  ;;  %v11058_v33 = vcombine.low %v6463_v24, %v6467_v25  ;;  %v11065_v36 = vcombine.high %v6470_v35, %v6474_v59  ;;  %v6482_v40 = vld [vmem:[%s16251_s10 + $0x5e0] sm:$0xff]  ;;  %v6479_v3 = vld [vmem:[%s16251_s10 + $0x5c8] sm:$0xff] }
 0x5dc   :  { %v6038_v46 = vpop.f32.mrb[23].mxu0  ;;  %v6120_v48 = vpop.f32.mrb[23].mxu1  ;;  %v14845_v52 = vpack.c.bf16 %v11448_v39, %v11448_v39  ;;  %v6478_v39 = vld [vmem:[%s16251_s10 + $0x5c0] sm:$0xff]  ;;  %v11064_v42 = vcombine.low %v6470_v35, %v6474_v59  ;;  %v11066_v44 = vcombine.low %v6471_v43, %v6475_v30  ;;  %v6523_v24 = vld [vmem:[%s16251_s10 + $0x728] sm:$0xff] }
 0x5dd   :  { %v14843_v50 = vpack.c.bf16 %v11449_v41, %v11449_v41  ;;  %v14861_v61 = vpack.c.bf16 %v11451_v22, %v11451_v22  ;;  %v6483_v41 = vld [vmem:[%s16251_s10 + $0x5e8] sm:$0xff]  ;;  %v11073_v45 = vcombine.high %v6478_v39, %v6482_v40  ;;  %v6486_v46 = vld [vmem:[%s16251_s10 + $0x600] sm:$0xff]  ;;  %v11072_v17 = vcombine.low %v6478_v39, %v6482_v40 }
 0x5de   :  { %v11075_v22 = vcombine.high %v6479_v3, %v6483_v41  ;;  %v6490_v48 = vld [vmem:[%s16251_s10 + $0x620] sm:$0xff]  ;;  %v6527_v59 = vld [vmem:[%s16251_s10 + $0x748] sm:$0xff] }
 0x5df   :  { %9398 = vmatprep.mubr.bf16.mxu0 %v14843_v50  ;;  %9562 = vmatprep.mubr.bf16.mxu1 %v14843_v50  ;;  %v11080_v60 = vcombine.low %v6486_v46, %v6490_v48  ;;  %v6530_v35 = vld [vmem:[%s16251_s10 + $0x760] sm:$0xff]  ;;  %v6531_v43 = vld [vmem:[%s16251_s10 + $0x768] sm:$0xff] }
 0x5e0   :  { %9399 = vmatmul.mubr.bf16.vlgmr.msra.gmra.mrb[28].mxu0 %v14845_v52  ;;  %9563 = vmatmul.mubr.bf16.vlgmr.msra.gmra.mrb[28].mxu1 %v14845_v52  ;;  %v6538_v39 = vld [vmem:[%s16251_s10 + $0x7a0] sm:$0xff]  ;;  %v6535_v40 = vld [vmem:[%s16251_s10 + $0x788] sm:$0xff] }
 0x5e1   :  { %9408 = vmatpush1.bf16.msra.mxu0 %v11016_v51  ;;  %9572 = vmatpush1.bf16.msra.mxu1 %v11018_v32  ;;  %v11074_v51 = vcombine.low %v6479_v3, %v6483_v41  ;;  %v11081_v32 = vcombine.high %v6486_v46, %v6490_v48  ;;  %v6539_v3 = vld [vmem:[%s16251_s10 + $0x7a8] sm:$0xff]  ;;  %v6546_v46 = vld [vmem:[%s16251_s10 + $0x7e0] sm:$0xff] }
 0x5e2   :  { %9439 = vmatprep.mubr.bf16.mxu0 %v14861_v61  ;;  %9603 = vmatprep.mubr.bf16.mxu1 %v14861_v61  ;;  %v6543_v48 = vld [vmem:[%s16251_s10 + $0x7c8] sm:$0xff] }
 0x5e3   :  { %9409 = vmatprep.subr.bf16.mxu0 %v11025_v54  ;;  %9573 = vmatprep.subr.bf16.mxu1 %v11027_v55  ;;  %v6494_v54 = vld [vmem:[%s16251_s10 + $0x640] sm:$0xff] }
 0x5e4   :  { %v6498_v55 = vld [vmem:[%s16251_s10 + $0x660] sm:$0xff] }
 0x5e5   :  { %9410 = vmatpush1.bf16.msra.mxu0 %v11024_v63  ;;  %9574 = vmatpush1.bf16.msra.mxu1 %v11026_v2  ;;  %v11082_v63 = vcombine.low %v6487_v0, %v6491_v1  ;;  %v11089_v2 = vcombine.high %v6494_v54, %v6498_v55  ;;  %v11088_v7 = vcombine.low %v6494_v54, %v6498_v55  ;;  %v6547_v0 = vld [vmem:[%s16251_s10 + $0x7e8] sm:$0xff]  ;;  %v6550_v54 = vld [vmem:[%s16251_s10 + $0x800] sm:$0xff] }
 0x5e6   :  { %9411 = vmatprep.subr.bf16.mxu0 %v11033_v37  ;;  %9575 = vmatprep.subr.bf16.mxu1 %v11035_v4  ;;  %v11091_v37 = vcombine.high %v6495_v57, %v6499_v58  ;;  %v6502_v4 = vld [vmem:[%s16251_s10 + $0x680] sm:$0xff] }
 0x5e7   :  { %v11096_v15 = vcombine.low %v6502_v4, %v6506_v5  ;;  %v6554_v55 = vld [vmem:[%s16251_s10 + $0x820] sm:$0xff] }
 0x5e9   :  { %9412 = vmatpush1.bf16.msra.mxu0 %v11032_v8  ;;  %9576 = vmatpush1.bf16.msra.mxu1 %v11034_v9  ;;  %v11090_v8 = vcombine.low %v6495_v57, %v6499_v58  ;;  %v11097_v9 = vcombine.high %v6502_v4, %v6506_v5  ;;  %v6551_v57 = vld [vmem:[%s16251_s10 + $0x808] sm:$0xff]  ;;  %v6558_v4 = vld [vmem:[%s16251_s10 + $0x840] sm:$0xff] }
 0x5ea   :  { %9413 = vmatprep.subr.bf16.mxu0 %v11041_v10  ;;  %9577 = vmatprep.subr.bf16.mxu1 %v11043_v11  ;;  %v11099_v10 = vcombine.high %v6503_v29, %v6507_v6  ;;  %v6510_v11 = vld [vmem:[%s16251_s10 + $0x6c0] sm:$0xff] }
 0x5eb   :  { %v11104_v25 = vcombine.low %v6510_v11, %v6514_v13  ;;  %v6562_v5 = vld [vmem:[%s16251_s10 + $0x860] sm:$0xff] }
 0x5ed   :  { %9414 = vmatpush1.bf16.msra.mxu0 %v11040_v16  ;;  %9578 = vmatpush1.bf16.msra.mxu1 %v11042_v18  ;;  %v11098_v16 = vcombine.low %v6503_v29, %v6507_v6  ;;  %v11105_v18 = vcombine.high %v6510_v11, %v6514_v13  ;;  %v6559_v29 = vld [vmem:[%s16251_s10 + $0x848] sm:$0xff]  ;;  %v11144_v6 = vcombine.low %v6550_v54, %v6554_v55  ;;  %v6566_v11 = vld [vmem:[%s16251_s10 + $0x880] sm:$0xff] }
 0x5ee   :  { %9415 = vmatprep.subr.bf16.mxu0 %v11049_v19  ;;  %9579 = vmatprep.subr.bf16.mxu1 %v11051_v20  ;;  %v11107_v19 = vcombine.high %v6511_v34, %v6515_v14  ;;  %v6518_v20 = vld [vmem:[%s16251_s10 + $0x700] sm:$0xff] }
 0x5ef   :  { %v11112_v30 = vcombine.low %v6518_v20, %v6522_v21  ;;  %v6570_v13 = vld [vmem:[%s16251_s10 + $0x8a0] sm:$0xff] }
 0x5f1   :  { %9416 = vmatpush1.bf16.msra.mxu0 %v11048_v26  ;;  %9580 = vmatpush1.bf16.msra.mxu1 %v11050_v27  ;;  %v11106_v26 = vcombine.low %v6511_v34, %v6515_v14  ;;  %v11113_v27 = vcombine.high %v6518_v20, %v6522_v21  ;;  %v6567_v34 = vld [vmem:[%s16251_s10 + $0x888] sm:$0xff]  ;;  %v6574_v20 = vld [vmem:[%s16251_s10 + $0x8c0] sm:$0xff] }
 0x5f2   :  { %9417 = vmatprep.subr.bf16.mxu0 %v11057_v28  ;;  %9581 = vmatprep.subr.bf16.mxu1 %v11059_v56  ;;  %v11115_v28 = vcombine.high %v6519_v23, %v6523_v24  ;;  %v6526_v56 = vld [vmem:[%s16251_s10 + $0x740] sm:$0xff]  ;;  %v6571_v14 = vld [vmem:[%s16251_s10 + $0x8a8] sm:$0xff] }
 0x5f3   :  { %v11120_v41 = vcombine.low %v6526_v56, %v6530_v35  ;;  %v6578_v21 = vld [vmem:[%s16251_s10 + $0x8e0] sm:$0xff] }
 0x5f5   :  { %9418 = vmatpush1.bf16.msra.mxu0 %v11056_v49  ;;  %9582 = vmatpush1.bf16.msra.mxu1 %v11058_v33  ;;  %v11114_v49 = vcombine.low %v6519_v23, %v6523_v24  ;;  %v11121_v33 = vcombine.high %v6526_v56, %v6530_v35  ;;  %v6575_v23 = vld [vmem:[%s16251_s10 + $0x8c8] sm:$0xff]  ;;  %v6582_v56 = vld [vmem:[%s16251_s10 + $0x900] sm:$0xff] }
 0x5f6   :  { %9419 = vmatprep.subr.bf16.mxu0 %v11065_v36  ;;  %9583 = vmatprep.subr.bf16.mxu1 %v11067_v38  ;;  %v11123_v36 = vcombine.high %v6527_v59, %v6531_v43  ;;  %v6534_v38 = vld [vmem:[%s16251_s10 + $0x780] sm:$0xff]  ;;  %v6579_v24 = vld [vmem:[%s16251_s10 + $0x8e8] sm:$0xff] }
 0x5f7   :  { %v11128_v1 = vcombine.low %v6534_v38, %v6538_v39  ;;  %v6586_v35 = vld [vmem:[%s16251_s10 + $0x920] sm:$0xff] }
 0x5f9   :  { %9420 = vmatpush1.bf16.msra.mxu0 %v11064_v42  ;;  %9584 = vmatpush1.bf16.msra.mxu1 %v11066_v44  ;;  %v11122_v42 = vcombine.low %v6527_v59, %v6531_v43  ;;  %v11129_v44 = vcombine.high %v6534_v38, %v6538_v39  ;;  %v6583_v59 = vld [vmem:[%s16251_s10 + $0x908] sm:$0xff]  ;;  %v6590_v38 = vld [vmem:[%s16251_s10 + $0x940] sm:$0xff] }
 0x5fa   :  { %9421 = vmatprep.subr.bf16.mxu0 %v11073_v45  ;;  %9585 = vmatprep.subr.bf16.mxu1 %v11075_v22  ;;  %v11131_v45 = vcombine.high %v6535_v40, %v6539_v3  ;;  %v6542_v22 = vld [vmem:[%s16251_s10 + $0x7c0] sm:$0xff]  ;;  %v6587_v43 = vld [vmem:[%s16251_s10 + $0x928] sm:$0xff] }
 0x5fb   :  { %v11136_v58 = vcombine.low %v6542_v22, %v6546_v46  ;;  %v6594_v39 = vld [vmem:[%s16251_s10 + $0x960] sm:$0xff] }
 0x5fd   :  { %9422 = vmatpush1.bf16.msra.mxu0 %v11072_v17  ;;  %9586 = vmatpush1.bf16.msra.mxu1 %v11074_v51  ;;  %v11130_v17 = vcombine.low %v6535_v40, %v6539_v3  ;;  %v4649_v51 = vrot.slane %v14821_v31, %v13757_v62  ;;  %v6555_v62 = vld [vmem:[%s16251_s10 + $0x828] sm:$0xff] }
 0x5fe   :  { %9423 = vmatprep.subr.bf16.mxu0 %v11081_v32  ;;  %9587 = vmatprep.subr.bf16.mxu1 %v11083_v53  ;;  %v11137_v32 = vcombine.high %v6542_v22, %v6546_v46  ;;  %v11139_v53 = vcombine.high %v6543_v48, %v6547_v0  ;;  %v6591_v40 = vld [vmem:[%s16251_s10 + $0x948] sm:$0xff]  ;;  %v6598_v22 = vld [vmem:[%s16251_s10 + $0x980] sm:$0xff] }
 0x5ff   :  { %v6595_v3 = vld [vmem:[%s16251_s10 + $0x968] sm:$0xff]  ;;  %v6602_v46 = vld [vmem:[%s16251_s10 + $0x9a0] sm:$0xff] }
 0x601   :  { %9424 = vmatpush1.bf16.msra.mxu0 %v11080_v60  ;;  %9588 = vmatpush1.bf16.msra.mxu1 %v11082_v63  ;;  %v11138_v60 = vcombine.low %v6543_v48, %v6547_v0  ;;  %v11450_v63 = vadd.f32 %v14829_v12, %v4649_v51  ;;  %v6563_v12 = vld [vmem:[%s16251_s10 + $0x868] sm:$0xff]  ;;  %v11193_v51 = vcombine.high %v6598_v22, %v6602_v46 }
 0x602   :  { %9425 = vmatprep.subr.bf16.mxu0 %v11089_v2  ;;  %9589 = vmatprep.subr.bf16.mxu1 %v11091_v37  ;;  %v11145_v2 = vcombine.high %v6550_v54, %v6554_v55  ;;  %v11147_v37 = vcombine.high %v6551_v57, %v6555_v62  ;;  %v6599_v48 = vld [vmem:[%s16251_s10 + $0x988] sm:$0xff]  ;;  %v6610_v54 = vld [vmem:[%s16251_s10 + $0x9e0] sm:$0xff] }
 0x603   :  { %v6603_v0 = vld [vmem:[%s16251_s10 + $0x9a8] sm:$0xff] }
 0x604   :  { %v6607_v55 = vld [vmem:[%s16251_s10 + $0x9c8] sm:$0xff] }
 0x605   :  { %9426 = vmatpush1.bf16.msra.mxu0 %v11088_v7  ;;  %9590 = vmatpush1.bf16.msra.mxu1 %v11090_v8  ;;  %v11146_v7 = vcombine.low %v6551_v57, %v6555_v62  ;;  %v15050_v8 = vpack.c.bf16 %v11450_v63, %v11450_v63  ;;  %v6611_v57 = vld [vmem:[%s16251_s10 + $0x9e8] sm:$0xff]  ;;  %v11192_v62 = vcombine.low %v6598_v22, %v6602_v46 }
 0x606   :  { %9427 = vmatprep.subr.bf16.mxu0 %v11097_v9  ;;  %9591 = vmatprep.subr.bf16.mxu1 %v11099_v10  ;;  %v11153_v9 = vcombine.high %v6558_v4, %v6562_v5  ;;  %v11155_v10 = vcombine.high %v6559_v29, %v6563_v12  ;;  %v11203_v63 = vcombine.high %v6607_v55, %v6611_v57  ;;  %v6655_v22 = vld [vmem:[%s16251_s10 + $0xb48] sm:$0xff] }
 0x607   :  { %v6659_v46 = vld [vmem:[%s16251_s10 + $0xb68] sm:$0xff] }
 0x609   :  { %9428 = vmatpush1.bf16.msra.mxu0 %v11096_v15  ;;  %9592 = vmatpush1.bf16.msra.mxu1 %v11098_v16  ;;  %v11152_v15 = vcombine.low %v6558_v4, %v6562_v5  ;;  %v11154_v16 = vcombine.low %v6559_v29, %v6563_v12  ;;  %v6615_v4 = vld [vmem:[%s16251_s10 + $0xa08] sm:$0xff]  ;;  %v11202_v12 = vcombine.low %v6607_v55, %v6611_v57 }
 0x60a   :  { %9429 = vmatprep.subr.bf16.mxu0 %v11105_v18  ;;  %9593 = vmatprep.subr.bf16.mxu1 %v11107_v19  ;;  %v11161_v18 = vcombine.high %v6566_v11, %v6570_v13  ;;  %v11163_v19 = vcombine.high %v6567_v34, %v6571_v14  ;;  %v6619_v5 = vld [vmem:[%s16251_s10 + $0xa28] sm:$0xff]  ;;  %v11250_v57 = vcombine.low %v6655_v22, %v6659_v46 }
 0x60d   :  { %9430 = vmatpush1.bf16.msra.mxu0 %v11104_v25  ;;  %9594 = vmatpush1.bf16.msra.mxu1 %v11106_v26  ;;  %v11160_v25 = vcombine.low %v6566_v11, %v6570_v13  ;;  %v11162_v26 = vcombine.low %v6567_v34, %v6571_v14  ;;  %v6623_v11 = vld [vmem:[%s16251_s10 + $0xa48] sm:$0xff]  ;;  %v11210_v14 = vcombine.low %v6615_v4, %v6619_v5 }
 0x60e   :  { %9431 = vmatprep.subr.bf16.mxu0 %v11113_v27  ;;  %9595 = vmatprep.subr.bf16.mxu1 %v11115_v28  ;;  %v11169_v27 = vcombine.high %v6574_v20, %v6578_v21  ;;  %v11171_v28 = vcombine.high %v6575_v23, %v6579_v24  ;;  %v6627_v13 = vld [vmem:[%s16251_s10 + $0xa68] sm:$0xff] }
 0x611   :  { %9432 = vmatpush1.bf16.msra.mxu0 %v11112_v30  ;;  %9596 = vmatpush1.bf16.msra.mxu1 %v11114_v49  ;;  %v11168_v30 = vcombine.low %v6574_v20, %v6578_v21  ;;  %v11170_v49 = vcombine.low %v6575_v23, %v6579_v24  ;;  %v6631_v20 = vld [vmem:[%s16251_s10 + $0xa88] sm:$0xff]  ;;  %v11218_v24 = vcombine.low %v6623_v11, %v6627_v13 }
 0x612   :  { %9433 = vmatprep.subr.bf16.mxu0 %v11121_v33  ;;  %9597 = vmatprep.subr.bf16.mxu1 %v11123_v36  ;;  %v11177_v33 = vcombine.high %v6582_v56, %v6586_v35  ;;  %v11179_v36 = vcombine.high %v6583_v59, %v6587_v43  ;;  %v6635_v21 = vld [vmem:[%s16251_s10 + $0xaa8] sm:$0xff] }
 0x615   :  { %9434 = vmatpush1.bf16.msra.mxu0 %v11120_v41  ;;  %9598 = vmatpush1.bf16.msra.mxu1 %v11122_v42  ;;  %v11176_v41 = vcombine.low %v6582_v56, %v6586_v35  ;;  %v11178_v42 = vcombine.low %v6583_v59, %v6587_v43  ;;  %v6639_v56 = vld [vmem:[%s16251_s10 + $0xac8] sm:$0xff]  ;;  %v11226_v43 = vcombine.low %v6631_v20, %v6635_v21 }
 0x616   :  { %9435 = vmatprep.subr.bf16.mxu0 %v11129_v44  ;;  %9599 = vmatprep.subr.bf16.mxu1 %v11131_v45  ;;  %v11185_v44 = vcombine.high %v6590_v38, %v6594_v39  ;;  %v11187_v45 = vcombine.high %v6591_v40, %v6595_v3  ;;  %v6643_v35 = vld [vmem:[%s16251_s10 + $0xae8] sm:$0xff] }
 0x619   :  { %9436 = vmatpush1.bf16.msra.mxu0 %v11128_v1  ;;  %9600 = vmatpush1.bf16.msra.mxu1 %v11130_v17  ;;  %v11184_v1 = vcombine.low %v6590_v38, %v6594_v39  ;;  %v11186_v17 = vcombine.low %v6591_v40, %v6595_v3  ;;  %v6647_v38 = vld [vmem:[%s16251_s10 + $0xb08] sm:$0xff]  ;;  %v11234_v3 = vcombine.low %v6639_v56, %v6643_v35 }
 0x61a   :  { %9437 = vmatprep.subr.bf16.mxu0 %v11137_v32  ;;  %9601 = vmatprep.subr.bf16.mxu1 %v11139_v53  ;;  %v11195_v32 = vcombine.high %v6599_v48, %v6603_v0  ;;  %v6606_v53 = vld [vmem:[%s16251_s10 + $0x9c0] sm:$0xff]  ;;  %v6651_v39 = vld [vmem:[%s16251_s10 + $0xb28] sm:$0xff] }
 0x61b   :  { %v11200_v29 = vcombine.low %v6606_v53, %v6610_v54 }
 0x61d   :  { %9438 = vmatpush1.bf16.msra.mxu0 %v11136_v58  ;;  %9602 = vmatpush1.bf16.msra.mxu1 %v11138_v60  ;;  %v11194_v58 = vcombine.low %v6599_v48, %v6603_v0  ;;  %v11201_v60 = vcombine.high %v6606_v53, %v6610_v54  ;;  %v11242_v0 = vcombine.low %v6647_v38, %v6651_v39  ;;  %v6663_v53 = vld [vmem:[%s16251_s10 + $0xb88] sm:$0xff] }
 0x61e   :  { %9448 = vmatprep.subr.bf16.mxu0 %v11145_v2  ;;  %9612 = vmatprep.subr.bf16.mxu1 %v11147_v37  ;;  %v6614_v2 = vld [vmem:[%s16251_s10 + $0xa00] sm:$0xff]  ;;  %v6667_v54 = vld [vmem:[%s16251_s10 + $0xba8] sm:$0xff] }
 0x61f   :  { %v6618_v37 = vld [vmem:[%s16251_s10 + $0xa20] sm:$0xff] }
 0x620   :  { %9440 = vmatmul.mubr.bf16.vlgmr.msra.gmra.mrb[28].mxu0 %v15050_v8  ;;  %9604 = vmatmul.mubr.bf16.vlgmr.msra.gmra.mrb[28].mxu1 %v15050_v8  ;;  %v11208_v34 = vcombine.low %v6614_v2, %v6618_v37 }
 0x621   :  { %9449 = vmatpush1.bf16.msra.mxu0 %v11144_v6  ;;  %9613 = vmatpush1.bf16.msra.mxu1 %v11146_v7  ;;  %v11209_v6 = vcombine.high %v6614_v2, %v6618_v37  ;;  %v11211_v7 = vcombine.high %v6615_v4, %v6619_v5  ;;  %v4660_v2 = vsub.s32 5, %v12140_v47  ;;  %v6674_v37 = vld [vmem:[%s16251_s10 + $0xbe0] sm:$0xff]  ;;  %v6671_v4 = vld [vmem:[%s16251_s10 + $0xbc8] sm:$0xff] }
 0x622   :  { %9450 = vmatprep.subr.bf16.mxu0 %v11153_v9  ;;  %9614 = vmatprep.subr.bf16.mxu1 %v11155_v10  ;;  %v6622_v9 = vld [vmem:[%s16251_s10 + $0xa40] sm:$0xff]  ;;  %v6675_v5 = vld [vmem:[%s16251_s10 + $0xbe8] sm:$0xff] }
 0x623   :  { %v6626_v10 = vld [vmem:[%s16251_s10 + $0xa60] sm:$0xff] }
 0x624   :  { %v11216_v23 = vcombine.low %v6622_v9, %v6626_v10 }
 0x625   :  { %9451 = vmatpush1.bf16.msra.mxu0 %v11152_v15  ;;  %9615 = vmatpush1.bf16.msra.mxu1 %v11154_v16  ;;  %v11217_v15 = vcombine.high %v6622_v9, %v6626_v10  ;;  %v11219_v16 = vcombine.high %v6623_v11, %v6627_v13  ;;  %v11267_v10 = vcombine.high %v6671_v4, %v6675_v5  ;;  %v6678_v11 = vld [vmem:[%s16251_s10 + $0xc00] sm:$0xff] }
 0x626   :  { %9452 = vmatprep.subr.bf16.mxu0 %v11161_v18  ;;  %9616 = vmatprep.subr.bf16.mxu1 %v11163_v19  ;;  %v6630_v18 = vld [vmem:[%s16251_s10 + $0xa80] sm:$0xff]  ;;  %v4661_v13 = vrot.slane %v14821_v31, %v4660_v2 }
 0x627   :  { %v6634_v19 = vld [vmem:[%s16251_s10 + $0xaa0] sm:$0xff] }
 0x628   :  { %v11224_v59 = vcombine.low %v6630_v18, %v6634_v19  ;;  %v6714_v2 = vld [vmem:[%s16251_s10 + $0xd20] sm:$0xff] }
 0x629   :  { %9453 = vmatpush1.bf16.msra.mxu0 %v11160_v25  ;;  %9617 = vmatpush1.bf16.msra.mxu1 %v11162_v26  ;;  %v11225_v25 = vcombine.high %v6630_v18, %v6634_v19  ;;  %v11227_v26 = vcombine.high %v6631_v20, %v6635_v21  ;;  %v11266_v20 = vcombine.low %v6671_v4, %v6675_v5  ;;  %v6715_v4 = vld [vmem:[%s16251_s10 + $0xd28] sm:$0xff] }
 0x62a   :  { %9454 = vmatprep.subr.bf16.mxu0 %v11169_v27  ;;  %9618 = vmatprep.subr.bf16.mxu1 %v11171_v28  ;;  %v6638_v27 = vld [vmem:[%s16251_s10 + $0xac0] sm:$0xff] }
 0x62b   :  { %v6642_v28 = vld [vmem:[%s16251_s10 + $0xae0] sm:$0xff] }
 0x62c   :  { %v11232_v40 = vcombine.low %v6638_v27, %v6642_v28 }
 0x62d   :  { %9455 = vmatpush1.bf16.msra.mxu0 %v11168_v30  ;;  %9619 = vmatpush1.bf16.msra.mxu1 %v11170_v49  ;;  %v11233_v30 = vcombine.high %v6638_v27, %v6642_v28  ;;  %v11235_v49 = vcombine.high %v6639_v56, %v6643_v35 }
 0x62e   :  { %9456 = vmatprep.subr.bf16.mxu0 %v11177_v33  ;;  %9620 = vmatprep.subr.bf16.mxu1 %v11179_v36  ;;  %v6646_v33 = vld [vmem:[%s16251_s10 + $0xb00] sm:$0xff] }
 0x62f   :  { %v6650_v36 = vld [vmem:[%s16251_s10 + $0xb20] sm:$0xff] }
 0x630   :  { %v11240_v48 = vcombine.low %v6646_v33, %v6650_v36 }
 0x631   :  { %9457 = vmatpush1.bf16.msra.mxu0 %v11176_v41  ;;  %9621 = vmatpush1.bf16.msra.mxu1 %v11178_v42  ;;  %v11241_v41 = vcombine.high %v6646_v33, %v6650_v36  ;;  %v11243_v42 = vcombine.high %v6647_v38, %v6651_v39  ;;  %v6691_v33 = vld [vmem:[%s16251_s10 + $0xc68] sm:$0xff] }
 0x632   :  { %9458 = vmatprep.subr.bf16.mxu0 %v11185_v44  ;;  %9622 = vmatprep.subr.bf16.mxu1 %v11187_v45  ;;  %v6654_v44 = vld [vmem:[%s16251_s10 + $0xb40] sm:$0xff] }
 0x633   :  { %v6658_v45 = vld [vmem:[%s16251_s10 + $0xb60] sm:$0xff] }
 0x634   :  { %v11248_v55 = vcombine.low %v6654_v44, %v6658_v45 }
 0x635   :  { %9459 = vmatpush1.bf16.msra.mxu0 %v11184_v1  ;;  %9623 = vmatpush1.bf16.msra.mxu1 %v11186_v17  ;;  %v11249_v1 = vcombine.high %v6654_v44, %v6658_v45  ;;  %v11251_v17 = vcombine.high %v6655_v22, %v6659_v46  ;;  %v6698_v45 = vld [vmem:[%s16251_s10 + $0xca0] sm:$0xff]  ;;  %v6695_v22 = vld [vmem:[%s16251_s10 + $0xc88] sm:$0xff] }
 0x636   :  { %9460 = vmatprep.subr.bf16.mxu0 %v11193_v51  ;;  %9624 = vmatprep.subr.bf16.mxu1 %v11195_v32  ;;  %v6662_v51 = vld [vmem:[%s16251_s10 + $0xb80] sm:$0xff]  ;;  %v6699_v46 = vld [vmem:[%s16251_s10 + $0xca8] sm:$0xff] }
 0x637   :  { %v6666_v32 = vld [vmem:[%s16251_s10 + $0xba0] sm:$0xff] }
 0x639   :  { %9461 = vmatpush1.bf16.msra.mxu0 %v11192_v62  ;;  %9625 = vmatpush1.bf16.msra.mxu1 %v11194_v58  ;;  %v11257_v62 = vcombine.high %v6662_v51, %v6666_v32  ;;  %v11259_v58 = vcombine.high %v6663_v53, %v6667_v54 }
 0x63a   :  { %9462 = vmatprep.subr.bf16.mxu0 %v11201_v60  ;;  %9626 = vmatprep.subr.bf16.mxu1 %v11203_v63  ;;  %v4656_v60 = vsub.s32 4, %v12140_v47  ;;  %v6670_v63 = vld [vmem:[%s16251_s10 + $0xbc0] sm:$0xff] }
 0x63b   :  { %v11265_v9 = vcombine.high %v6670_v63, %v6674_v37  ;;  %v11264_v19 = vcombine.low %v6670_v63, %v6674_v37  ;;  %v6710_v63 = vld [vmem:[%s16251_s10 + $0xd00] sm:$0xff]  ;;  %v6711_v37 = vld [vmem:[%s16251_s10 + $0xd08] sm:$0xff] }
 0x63d   :  { %9463 = vmatpush1.bf16.msra.mxu0 %v11200_v29  ;;  %9627 = vmatpush1.bf16.msra.mxu1 %v11202_v12  ;;  %v4668_v29 = vsub.s32 7, %v12140_v47  ;;  %v11256_v12 = vcombine.low %v6662_v51, %v6666_v32  ;;  %v11291_v51 = vcombine.high %v6695_v22, %v6699_v46  ;;  %v6702_v32 = vld [vmem:[%s16251_s10 + $0xcc0] sm:$0xff] }
 0x63e   :  { %9464 = vmatprep.subr.bf16.mxu0 %v11209_v6  ;;  %9628 = vmatprep.subr.bf16.mxu1 %v11211_v7  ;;  %v11258_v6 = vcombine.low %v6663_v53, %v6667_v54  ;;  %v4657_v7 = vrot.slane %v14821_v31, %v4656_v60  ;;  %v6706_v53 = vld [vmem:[%s16251_s10 + $0xce0] sm:$0xff]  ;;  %v6703_v54 = vld [vmem:[%s16251_s10 + $0xcc8] sm:$0xff] }
 0x63f   :  { %v11296_v5 = vcombine.low %v6702_v32, %v6706_v53 }
 0x641   :  { %9465 = vmatpush1.bf16.msra.mxu0 %v11208_v34  ;;  %9629 = vmatpush1.bf16.msra.mxu1 %v11210_v14  ;;  %v6682_v34 = vld [vmem:[%s16251_s10 + $0xc20] sm:$0xff]  ;;  %v6679_v14 = vld [vmem:[%s16251_s10 + $0xc08] sm:$0xff] }
 0x642   :  { %9466 = vmatprep.subr.bf16.mxu0 %v11217_v15  ;;  %9630 = vmatprep.subr.bf16.mxu1 %v11219_v16  ;;  %v6683_v15 = vld [vmem:[%s16251_s10 + $0xc28] sm:$0xff]  ;;  %v4669_v16 = vrot.slane %v14821_v31, %v4668_v29  ;;  %v6686_v31 = vld [vmem:[%s16251_s10 + $0xc40] sm:$0xff]  ;;  %v11272_v39 = vcombine.low %v6678_v11, %v6682_v34 }
 0x645   :  { %9467 = vmatpush1.bf16.msra.mxu0 %v11216_v23  ;;  %9631 = vmatpush1.bf16.msra.mxu1 %v11218_v24 }
 0x646   :  { %9468 = vmatprep.subr.bf16.mxu0 %v11225_v25  ;;  %9632 = vmatprep.subr.bf16.mxu1 %v11227_v26  ;;  %v11273_v25 = vcombine.high %v6678_v11, %v6682_v34  ;;  %v11275_v26 = vcombine.high %v6679_v14, %v6683_v15  ;;  %v6723_v11 = vld [vmem:[%s16251_s10 + $0xd68] sm:$0xff]  ;;  %v11306_v34 = vcombine.low %v6711_v37, %v6715_v4 }
 0x649   :  { %9469 = vmatpush1.bf16.msra.mxu0 %v11224_v59  ;;  %9633 = vmatpush1.bf16.msra.mxu1 %v11226_v43 }
 0x64a   :  { %9470 = vmatprep.subr.bf16.mxu0 %v11233_v30  ;;  %9634 = vmatprep.subr.bf16.mxu1 %v11235_v49  ;;  %v6690_v30 = vld [vmem:[%s16251_s10 + $0xc60] sm:$0xff]  ;;  %v6687_v49 = vld [vmem:[%s16251_s10 + $0xc48] sm:$0xff] }
 0x64b   :  { %v11283_v44 = vcombine.high %v6687_v49, %v6691_v33 }
 0x64d   :  { %9471 = vmatpush1.bf16.msra.mxu0 %v11232_v40  ;;  %9635 = vmatpush1.bf16.msra.mxu1 %v11234_v3  ;;  %v11274_v40 = vcombine.low %v6679_v14, %v6683_v15 }
 0x64e   :  { %9472 = vmatprep.subr.bf16.mxu0 %v11241_v41  ;;  %9636 = vmatprep.subr.bf16.mxu1 %v11243_v42  ;;  %v6694_v41 = vld [vmem:[%s16251_s10 + $0xc80] sm:$0xff]  ;;  %v11281_v42 = vcombine.high %v6686_v31, %v6690_v30 }
 0x651   :  { %9473 = vmatpush1.bf16.msra.mxu0 %v11240_v48  ;;  %9637 = vmatpush1.bf16.msra.mxu1 %v11242_v0  ;;  %v11280_v0 = vcombine.low %v6686_v31, %v6690_v30  ;;  %v6739_v31 = vld [vmem:[%s16251_s10 + $0xde8] sm:$0xff] }
 0x652   :  { %9474 = vmatprep.subr.bf16.mxu0 %v11249_v1  ;;  %9638 = vmatprep.subr.bf16.mxu1 %v11251_v17  ;;  %v11282_v1 = vcombine.low %v6687_v49, %v6691_v33  ;;  %v11289_v17 = vcombine.high %v6694_v41, %v6698_v45  ;;  %v6742_v49 = vld [vmem:[%s16251_s10 + $0xe00] sm:$0xff] }
 0x653   :  { %v6746_v33 = vld [vmem:[%s16251_s10 + $0xe20] sm:$0xff] }
 0x655   :  { %9475 = vmatpush1.bf16.msra.mxu0 %v11248_v55  ;;  %9639 = vmatpush1.bf16.msra.mxu1 %v11250_v57  ;;  %v6707_v55 = vld [vmem:[%s16251_s10 + $0xce8] sm:$0xff]  ;;  %v11288_v57 = vcombine.low %v6694_v41, %v6698_v45  ;;  %v6750_v45 = vld [vmem:[%s16251_s10 + $0xe40] sm:$0xff] }
 0x656   :  { %9476 = vmatprep.subr.bf16.mxu0 %v11257_v62  ;;  %9640 = vmatprep.subr.bf16.mxu1 %v11259_v58  ;;  %v11290_v62 = vcombine.low %v6695_v22, %v6699_v46  ;;  %v11297_v58 = vcombine.high %v6702_v32, %v6706_v53  ;;  %v11299_v60 = vcombine.high %v6703_v54, %v6707_v55  ;;  %v6754_v22 = vld [vmem:[%s16251_s10 + $0xe60] sm:$0xff]  ;;  %v6751_v46 = vld [vmem:[%s16251_s10 + $0xe48] sm:$0xff] }
 0x657   :  { %v11298_v29 = vcombine.low %v6703_v54, %v6707_v55  ;;  %v6758_v53 = vld [vmem:[%s16251_s10 + $0xe80] sm:$0xff]  ;;  %v6759_v55 = vld [vmem:[%s16251_s10 + $0xe88] sm:$0xff] }
 0x658   :  { %v6762_v54 = vld [vmem:[%s16251_s10 + $0xea0] sm:$0xff] }
 0x659   :  { %9477 = vmatpush1.bf16.msra.mxu0 %v11256_v12  ;;  %9641 = vmatpush1.bf16.msra.mxu1 %v11258_v6  ;;  %v6197_v18 = vpop.f32.mrb[24].mxu0  ;;  %v11305_v12 = vcombine.high %v6710_v63, %v6714_v2  ;;  %v11307_v6 = vcombine.high %v6711_v37, %v6715_v4  ;;  %v6770_v37 = vld [vmem:[%s16251_s10 + $0xee0] sm:$0xff]  ;;  %v6767_v4 = vld [vmem:[%s16251_s10 + $0xec8] sm:$0xff] }
 0x65a   :  { %v11452_v21 = vadd.f32 %v6197_v18, %v4657_v7  ;;  %v15240_v23 = vpop.f32.mrb[24].mxu1  ;;  %v6199_v24 = vpop.f32.mrb[25].mxu0  ;;  %9478 = vmatprep.subr.bf16.mxu0 %v11265_v9  ;;  %9642 = vmatprep.subr.bf16.mxu1 %v11267_v10  ;;  %v6718_v7 = vld [vmem:[%s16251_s10 + $0xd40] sm:$0xff]  ;;  %v6719_v10 = vld [vmem:[%s16251_s10 + $0xd48] sm:$0xff] }
 0x65b   :  { %v11453_v27 = vadd.f32 %v6199_v24, %v4661_v13  ;;  %v6281_v28 = vpop.f32.mrb[25].mxu1  ;;  %v6201_v56 = vpop.f32.mrb[26].mxu0  ;;  %v6722_v9 = vld [vmem:[%s16251_s10 + $0xd60] sm:$0xff]  ;;  %v11304_v13 = vcombine.low %v6710_v63, %v6714_v2  ;;  %v11315_v15 = vcombine.high %v6719_v10, %v6723_v11  ;;  %v11314_v24 = vcombine.low %v6719_v10, %v6723_v11  ;;  %v6775_v11 = vld [vmem:[%s16251_s10 + $0xf08] sm:$0xff] }
 0x65c   :  { %v11455_v35 = vadd.f32 %v6281_v28, %v4669_v16  ;;  %v6283_v59 = vpop.f32.mrb[26].mxu1  ;;  %v6202_v43 = vpop.f32.mrb[27].mxu0  ;;  %v15256_v3 = vpack.c.bf16 %v11452_v21, %v11452_v21  ;;  %v11313_v14 = vcombine.high %v6718_v7, %v6722_v9  ;;  %v6726_v16 = vld [vmem:[%s16251_s10 + $0xd80] sm:$0xff]  ;;  %v11312_v21 = vcombine.low %v6718_v7, %v6722_v9  ;;  %v6735_v56 = vld [vmem:[%s16251_s10 + $0xdc8] sm:$0xff] }
 0x65d   :  { %v15254_v36 = vpack.c.bf16 %v11453_v27, %v11453_v27  ;;  %v6284_v38 = vpop.f32.mrb[27].mxu1  ;;  %9479 = vmatpush1.bf16.msra.mxu0 %v11264_v19  ;;  %9643 = vmatpush1.bf16.msra.mxu1 %v11266_v20  ;;  %v6730_v18 = vld [vmem:[%s16251_s10 + $0xda0] sm:$0xff]  ;;  %v6727_v19 = vld [vmem:[%s16251_s10 + $0xd88] sm:$0xff]  ;;  %v11331_v30 = vcombine.high %v6735_v56, %v6739_v31  ;;  %v11330_v41 = vcombine.low %v6735_v56, %v6739_v31 }
 0x65e   :  { %9489 = vmatprep.subr.bf16.mxu0 %v11273_v25  ;;  %9653 = vmatprep.subr.bf16.mxu1 %v11275_v26  ;;  %v15272_v48 = vpack.c.bf16 %v11455_v35, %v11455_v35  ;;  %v6731_v20 = vld [vmem:[%s16251_s10 + $0xda8] sm:$0xff]  ;;  %v11321_v25 = vcombine.high %v6726_v16, %v6730_v18  ;;  %v6734_v27 = vld [vmem:[%s16251_s10 + $0xdc0] sm:$0xff]  ;;  %v11320_v35 = vcombine.low %v6726_v16, %v6730_v18 }
 0x65f   :  { %9480 = vmatprep.mubr.bf16.mxu0 %v15254_v36  ;;  %9644 = vmatprep.mubr.bf16.mxu1 %v15254_v36  ;;  %v11323_v26 = vcombine.high %v6727_v19, %v6731_v20  ;;  %v6738_v28 = vld [vmem:[%s16251_s10 + $0xde0] sm:$0xff]  ;;  %v11322_v59 = vcombine.low %v6727_v19, %v6731_v20  ;;  %v6743_v38 = vld [vmem:[%s16251_s10 + $0xe08] sm:$0xff] }
 0x660   :  { %9481 = vmatmul.mubr.bf16.vlgmr.msra.gmra.mrb[28].mxu0 %v15256_v3  ;;  %9645 = vmatmul.mubr.bf16.vlgmr.msra.gmra.mrb[28].mxu1 %v15256_v3  ;;  %v11329_v43 = vcombine.high %v6734_v27, %v6738_v28  ;;  %v6766_v2 = vld [vmem:[%s16251_s10 + $0xec0] sm:$0xff]  ;;  %v6783_v20 = vld [vmem:[%s16251_s10 + $0xf48] sm:$0xff] }
 0x661   :  { %9490 = vmatpush1.bf16.msra.mxu0 %v11272_v39  ;;  %9654 = vmatpush1.bf16.msra.mxu1 %v11274_v40  ;;  %v6747_v39 = vld [vmem:[%s16251_s10 + $0xe28] sm:$0xff]  ;;  %v11328_v40 = vcombine.low %v6734_v27, %v6738_v28  ;;  %v6774_v9 = vld [vmem:[%s16251_s10 + $0xf00] sm:$0xff] }
 0x662   :  { %9521 = vmatprep.mubr.bf16.mxu0 %v15272_v48  ;;  %9685 = vmatprep.mubr.bf16.mxu1 %v15272_v48  ;;  %v6778_v10 = vld [vmem:[%s16251_s10 + $0xf20] sm:$0xff]  ;;  %v6791_v31 = vld [vmem:[%s16251_s10 + $0xf88] sm:$0xff] }
 0x663   :  { %9491 = vmatprep.subr.bf16.mxu0 %v11281_v42  ;;  %9655 = vmatprep.subr.bf16.mxu1 %v11283_v44  ;;  %v11337_v42 = vcombine.high %v6742_v49, %v6746_v33  ;;  %v11339_v44 = vcombine.high %v6743_v38, %v6747_v39  ;;  %v6782_v18 = vld [vmem:[%s16251_s10 + $0xf40] sm:$0xff] }
 0x664   :  { %v6786_v19 = vld [vmem:[%s16251_s10 + $0xf60] sm:$0xff] }
 0x665   :  { %9492 = vmatpush1.bf16.msra.mxu0 %v11280_v0  ;;  %9656 = vmatpush1.bf16.msra.mxu1 %v11282_v1  ;;  %v6755_v0 = vld [vmem:[%s16251_s10 + $0xe68] sm:$0xff]  ;;  %v11336_v1 = vcombine.low %v6742_v49, %v6746_v33  ;;  %v6790_v28 = vld [vmem:[%s16251_s10 + $0xf80] sm:$0xff] }
 0x666   :  { %9493 = vmatprep.subr.bf16.mxu0 %v11289_v17  ;;  %9657 = vmatprep.subr.bf16.mxu1 %v11291_v51  ;;  %v11338_v17 = vcombine.low %v6743_v38, %v6747_v39  ;;  %v11345_v51 = vcombine.high %v6750_v45, %v6754_v22  ;;  %v11347_v32 = vcombine.high %v6751_v46, %v6755_v0  ;;  %v6794_v56 = vld [vmem:[%s16251_s10 + $0xfa0] sm:$0xff] }
 0x667   :  { %v11385_v49 = vcombine.high %v6790_v28, %v6794_v56  ;;  %v6798_v38 = vld [vmem:[%s16251_s10 + $0xfc0] sm:$0xff] }
 0x668   :  { %v6802_v39 = vld [vmem:[%s16251_s10 + $0xfe0] sm:$0xff] }
 0x669   :  { %9494 = vmatpush1.bf16.msra.mxu0 %v11288_v57  ;;  %9658 = vmatpush1.bf16.msra.mxu1 %v11290_v62  ;;  %v6763_v57 = vld [vmem:[%s16251_s10 + $0xea8] sm:$0xff]  ;;  %v11344_v62 = vcombine.low %v6750_v45, %v6754_v22  ;;  %v11993_v45 = vld [vmem:[%s16252_s9] sm:$0xff] }
 0x66a   :  { %9495 = vmatprep.subr.bf16.mxu0 %v11297_v58  ;;  %9659 = vmatprep.subr.bf16.mxu1 %v11299_v60  ;;  %v11346_v58 = vcombine.low %v6751_v46, %v6755_v0  ;;  %v11353_v60 = vcombine.high %v6758_v53, %v6762_v54  ;;  %v11355_v63 = vcombine.high %v6759_v55, %v6763_v57 }
 0x66b   :  { %v11393_v46 = vcombine.high %v6798_v38, %v6802_v39 }
 0x66d   :  { %9496 = vmatpush1.bf16.msra.mxu0 %v11296_v5  ;;  %9660 = vmatpush1.bf16.msra.mxu1 %v11298_v29  ;;  %v6771_v5 = vld [vmem:[%s16251_s10 + $0xee8] sm:$0xff]  ;;  %v11352_v29 = vcombine.low %v6758_v53, %v6762_v54  ;;  %v11392_v53 = vcombine.low %v6798_v38, %v6802_v39 }
 0x66e   :  { %9497 = vmatprep.subr.bf16.mxu0 %v11305_v12  ;;  %9661 = vmatprep.subr.bf16.mxu1 %v11307_v6  ;;  %v11354_v12 = vcombine.low %v6759_v55, %v6763_v57  ;;  %v11361_v6 = vcombine.high %v6766_v2, %v6770_v37  ;;  %v11363_v7 = vcombine.high %v6767_v4, %v6771_v5 }
 0x671   :  { %9498 = vmatpush1.bf16.msra.mxu0 %v11304_v13  ;;  %9662 = vmatpush1.bf16.msra.mxu1 %v11306_v34  ;;  %v6779_v13 = vld [vmem:[%s16251_s10 + $0xf28] sm:$0xff]  ;;  %v11360_v34 = vcombine.low %v6766_v2, %v6770_v37 }
 0x672   :  { %9499 = vmatprep.subr.bf16.mxu0 %v11313_v14  ;;  %9663 = vmatprep.subr.bf16.mxu1 %v11315_v15  ;;  %v11362_v14 = vcombine.low %v6767_v4, %v6771_v5  ;;  %v11369_v15 = vcombine.high %v6774_v9, %v6778_v10  ;;  %v11371_v16 = vcombine.high %v6775_v11, %v6779_v13 }
 0x675   :  { %9500 = vmatpush1.bf16.msra.mxu0 %v11312_v21  ;;  %9664 = vmatpush1.bf16.msra.mxu1 %v11314_v24  ;;  %v6787_v21 = vld [vmem:[%s16251_s10 + $0xf68] sm:$0xff]  ;;  %v11368_v24 = vcombine.low %v6774_v9, %v6778_v10  ;;  %v6317_v9 = vld [vmem:[%s16251_s10 + $0xb8] sm:$0xff] }
 0x676   :  { %9501 = vmatprep.subr.bf16.mxu0 %v11321_v25  ;;  %9665 = vmatprep.subr.bf16.mxu1 %v11323_v26  ;;  %v11370_v25 = vcombine.low %v6775_v11, %v6779_v13  ;;  %v11377_v26 = vcombine.high %v6782_v18, %v6786_v19  ;;  %v11379_v27 = vcombine.high %v6783_v20, %v6787_v21 }
 0x679   :  { %9502 = vmatpush1.bf16.msra.mxu0 %v11320_v35  ;;  %9666 = vmatpush1.bf16.msra.mxu1 %v11322_v59  ;;  %v6795_v35 = vld [vmem:[%s16251_s10 + $0xfa8] sm:$0xff]  ;;  %v11376_v59 = vcombine.low %v6782_v18, %v6786_v19 }
 0x67a   :  { %9503 = vmatprep.subr.bf16.mxu0 %v11329_v43  ;;  %9667 = vmatprep.subr.bf16.mxu1 %v11331_v30  ;;  %v11378_v43 = vcombine.low %v6783_v20, %v6787_v21  ;;  %v4664_v30 = vsub.s32 6, %v12140_v47  ;;  %v11387_v33 = vcombine.high %v6791_v31, %v6795_v35 }
 0x67c   :  { %v4665_v22 = vrot.slane %v11993_v45, %v4664_v30  ;;  %v6337_v30 = vld [vmem:[%s16251_s10 + $0x158] sm:$0xff] }
 0x67d   :  { %9504 = vmatpush1.bf16.msra.mxu0 %v11328_v40  ;;  %9668 = vmatpush1.bf16.msra.mxu1 %v11330_v41  ;;  %v6799_v40 = vld [vmem:[%s16251_s10 + $0xfc8] sm:$0xff]  ;;  %v6349_v45 = vld [vmem:[%s16251_s10 + $0x1b8] sm:$0xff] }
 0x67e   :  { %9505 = vmatprep.subr.bf16.mxu0 %v11337_v42  ;;  %9669 = vmatprep.subr.bf16.mxu1 %v11339_v44  ;;  %v6803_v41 = vld [vmem:[%s16251_s10 + $0xfe8] sm:$0xff]  ;;  %v11384_v42 = vcombine.low %v6790_v28, %v6794_v56  ;;  %v11386_v44 = vcombine.low %v6791_v31, %v6795_v35  ;;  %v11454_v55 = vadd.f32 %v15240_v23, %v4665_v22  ;;  %v6309_v23 = vld [vmem:[%s16251_s10 + $0x78] sm:$0xff] }
 0x67f   :  { %v11395_v0 = vcombine.high %v6799_v40, %v6803_v41  ;;  %v11394_v54 = vcombine.low %v6799_v40, %v6803_v41  ;;  %v6344_v41 = vld [vmem:[%s16251_s10 + $0x190] sm:$0xff] }
 0x680   :  { %v15463_v37 = vpack.c.bf16 %v11454_v55, %v11454_v55 }
 0x681   :  { %9506 = vmatpush1.bf16.msra.mxu0 %v11336_v1  ;;  %9670 = vmatpush1.bf16.msra.mxu1 %v11338_v17  ;;  %v6296_v1 = vld [vmem:[%s16251_s10 + $0x10] sm:$0xff] }
 0x682   :  { %9507 = vmatprep.subr.bf16.mxu0 %v11345_v51  ;;  %9671 = vmatprep.subr.bf16.mxu1 %v11347_v32  ;;  %v6300_v17 = vld [vmem:[%s16251_s10 + $0x30] sm:$0xff]  ;;  %v6297_v51 = vld [vmem:[%s16251_s10 + $0x18] sm:$0xff] }
 0x683   :  { %v6301_v32 = vld [vmem:[%s16251_s10 + $0x38] sm:$0xff]  ;;  %v10893_v57 = vcombine.high %v6296_v1, %v6300_v17  ;;  %v10892_v2 = vcombine.low %v6296_v1, %v6300_v17  ;;  %v6352_v17 = vld [vmem:[%s16251_s10 + $0x1d0] sm:$0xff] }
 0x684   :  { %v10894_v4 = vcombine.low %v6297_v51, %v6301_v32 }
 0x685   :  { %9508 = vmatpush1.bf16.msra.mxu0 %v11344_v62  ;;  %9672 = vmatpush1.bf16.msra.mxu1 %v11346_v58  ;;  %v10895_v62 = vcombine.high %v6297_v51, %v6301_v32  ;;  %v6304_v58 = vld [vmem:[%s16251_s10 + $0x50] sm:$0xff]  ;;  %v6353_v32 = vld [vmem:[%s16251_s10 + $0x1d8] sm:$0xff] }
 0x686   :  { %9509 = vmatprep.subr.bf16.mxu0 %v11353_v60  ;;  %9673 = vmatprep.subr.bf16.mxu1 %v11355_v63  ;;  %v6308_v60 = vld [vmem:[%s16251_s10 + $0x70] sm:$0xff]  ;;  %v6305_v63 = vld [vmem:[%s16251_s10 + $0x58] sm:$0xff] }
 0x687   :  { %v10901_v5 = vcombine.high %v6304_v58, %v6308_v60  ;;  %v10900_v10 = vcombine.low %v6304_v58, %v6308_v60  ;;  %v10902_v11 = vcombine.low %v6305_v63, %v6309_v23  ;;  %v6356_v51 = vld [vmem:[%s16251_s10 + $0x1f0] sm:$0xff] }
 0x688   :  { %v6360_v58 = vld [vmem:[%s16251_s10 + $0x210] sm:$0xff] }
 0x689   :  { %9510 = vmatpush1.bf16.msra.mxu0 %v11352_v29  ;;  %9674 = vmatpush1.bf16.msra.mxu1 %v11354_v12  ;;  %v10903_v29 = vcombine.high %v6305_v63, %v6309_v23  ;;  %v6312_v12 = vld [vmem:[%s16251_s10 + $0x90] sm:$0xff]  ;;  %v6361_v63 = vld [vmem:[%s16251_s10 + $0x218] sm:$0xff] }
 0x68a   :  { %9511 = vmatprep.subr.bf16.mxu0 %v11361_v6  ;;  %9675 = vmatprep.subr.bf16.mxu1 %v11363_v7  ;;  %v6316_v6 = vld [vmem:[%s16251_s10 + $0xb0] sm:$0xff]  ;;  %v6313_v7 = vld [vmem:[%s16251_s10 + $0x98] sm:$0xff] }
 0x68b   :  { %v10909_v13 = vcombine.high %v6312_v12, %v6316_v6  ;;  %v10908_v18 = vcombine.low %v6312_v12, %v6316_v6  ;;  %v10910_v19 = vcombine.low %v6313_v7, %v6317_v9  ;;  %v6364_v60 = vld [vmem:[%s16251_s10 + $0x230] sm:$0xff]  ;;  %v6365_v23 = vld [vmem:[%s16251_s10 + $0x238] sm:$0xff] }
 0x68c   :  { %v6368_v12 = vld [vmem:[%s16251_s10 + $0x250] sm:$0xff] }
 0x68d   :  { %9512 = vmatpush1.bf16.msra.mxu0 %v11360_v34  ;;  %9676 = vmatpush1.bf16.msra.mxu1 %v11362_v14  ;;  %v10911_v34 = vcombine.high %v6313_v7, %v6317_v9  ;;  %v6320_v14 = vld [vmem:[%s16251_s10 + $0xd0] sm:$0xff]  ;;  %v6369_v7 = vld [vmem:[%s16251_s10 + $0x258] sm:$0xff] }
 0x68e   :  { %9513 = vmatprep.subr.bf16.mxu0 %v11369_v15  ;;  %9677 = vmatprep.subr.bf16.mxu1 %v11371_v16  ;;  %v6324_v15 = vld [vmem:[%s16251_s10 + $0xf0] sm:$0xff]  ;;  %v6321_v16 = vld [vmem:[%s16251_s10 + $0xd8] sm:$0xff] }
 0x68f   :  { %v10917_v20 = vcombine.high %v6320_v14, %v6324_v15  ;;  %v10916_v28 = vcombine.low %v6320_v14, %v6324_v15  ;;  %v6372_v6 = vld [vmem:[%s16251_s10 + $0x270] sm:$0xff]  ;;  %v6373_v9 = vld [vmem:[%s16251_s10 + $0x278] sm:$0xff] }
 0x690   :  { %v6376_v14 = vld [vmem:[%s16251_s10 + $0x290] sm:$0xff] }
 0x691   :  { %9514 = vmatpush1.bf16.msra.mxu0 %v11368_v24  ;;  %9678 = vmatpush1.bf16.msra.mxu1 %v11370_v25  ;;  %v6328_v24 = vld [vmem:[%s16251_s10 + $0x110] sm:$0xff] }
 0x692   :  { %9515 = vmatprep.subr.bf16.mxu0 %v11377_v26  ;;  %9679 = vmatprep.subr.bf16.mxu1 %v11379_v27  ;;  %v6332_v25 = vld [vmem:[%s16251_s10 + $0x130] sm:$0xff]  ;;  %v6329_v26 = vld [vmem:[%s16251_s10 + $0x118] sm:$0xff] }
 0x693   :  { %v6333_v27 = vld [vmem:[%s16251_s10 + $0x138] sm:$0xff]  ;;  %v10925_v31 = vcombine.high %v6328_v24, %v6332_v25  ;;  %v6380_v15 = vld [vmem:[%s16251_s10 + $0x2b0] sm:$0xff] }
 0x694   :  { %v10927_v35 = vcombine.high %v6329_v26, %v6333_v27  ;;  %v10926_v38 = vcombine.low %v6329_v26, %v6333_v27  ;;  %v6385_v26 = vld [vmem:[%s16251_s10 + $0x2d8] sm:$0xff] }
 0x695   :  { %9516 = vmatpush1.bf16.msra.mxu0 %v11376_v59  ;;  %9680 = vmatpush1.bf16.msra.mxu1 %v11378_v43  ;;  %v6336_v59 = vld [vmem:[%s16251_s10 + $0x150] sm:$0xff]  ;;  %v6389_v27 = vld [vmem:[%s16251_s10 + $0x2f8] sm:$0xff] }
 0x696   :  { %9517 = vmatprep.subr.bf16.mxu0 %v11385_v49  ;;  %9681 = vmatprep.subr.bf16.mxu1 %v11387_v33  ;;  %v6340_v43 = vld [vmem:[%s16251_s10 + $0x170] sm:$0xff]  ;;  %v6341_v49 = vld [vmem:[%s16251_s10 + $0x178] sm:$0xff]  ;;  %v10924_v33 = vcombine.low %v6328_v24, %v6332_v25 }
 0x697   :  { %v10933_v39 = vcombine.high %v6336_v59, %v6340_v43  ;;  %v10935_v40 = vcombine.high %v6337_v30, %v6341_v49  ;;  %v10932_v22 = vcombine.low %v6336_v59, %v6340_v43  ;;  %v6384_v24 = vld [vmem:[%s16251_s10 + $0x2d0] sm:$0xff] }
 0x698   :  { %v6388_v25 = vld [vmem:[%s16251_s10 + $0x2f0] sm:$0xff] }
 0x699   :  { %9518 = vmatpush1.bf16.msra.mxu0 %v11384_v42  ;;  %9682 = vmatpush1.bf16.msra.mxu1 %v11386_v44  ;;  %v6348_v42 = vld [vmem:[%s16251_s10 + $0x1b0] sm:$0xff]  ;;  %v6345_v44 = vld [vmem:[%s16251_s10 + $0x198] sm:$0xff] }
 0x69a   :  { %9519 = vmatprep.subr.bf16.mxu0 %v11393_v46  ;;  %9683 = vmatprep.subr.bf16.mxu1 %v11395_v0  ;;  %v10934_v46 = vcombine.low %v6337_v30, %v6341_v49  ;;  %v10941_v0 = vcombine.high %v6344_v41, %v6348_v42  ;;  %v10943_v1 = vcombine.high %v6345_v44, %v6349_v45  ;;  %v6392_v59 = vld [vmem:[%s16251_s10 + $0x310] sm:$0xff]  ;;  %v6393_v30 = vld [vmem:[%s16251_s10 + $0x318] sm:$0xff] }
 0x69b   :  { %v10942_v55 = vcombine.low %v6345_v44, %v6349_v45  ;;  %v6396_v43 = vld [vmem:[%s16251_s10 + $0x330] sm:$0xff]  ;;  %v6397_v49 = vld [vmem:[%s16251_s10 + $0x338] sm:$0xff] }
 0x69c   :  { %v6401_v44 = vld [vmem:[%s16251_s10 + $0x358] sm:$0xff] }
 0x69d   :  { %9520 = vmatpush1.bf16.msra.mxu0 %v11392_v53  ;;  %9684 = vmatpush1.bf16.msra.mxu1 %v11394_v54  ;;  %v6357_v53 = vld [vmem:[%s16251_s10 + $0x1f8] sm:$0xff]  ;;  %v10940_v54 = vcombine.low %v6344_v41, %v6348_v42  ;;  %v6400_v41 = vld [vmem:[%s16251_s10 + $0x350] sm:$0xff] }
 0x69e   :  { %9694 = vmatprep.subr.bf16.mxu0 %v10893_v57  ;;  %9858 = vmatprep.subr.bf16.mxu1 %v10895_v62  ;;  %v10949_v57 = vcombine.high %v6352_v17, %v6356_v51  ;;  %v10951_v62 = vcombine.high %v6353_v32, %v6357_v53  ;;  %v6404_v42 = vld [vmem:[%s16251_s10 + $0x370] sm:$0xff]  ;;  %v6405_v45 = vld [vmem:[%s16251_s10 + $0x378] sm:$0xff] }
 0x6a0   :  { %9522 = vmatmul.mubr.bf16.vlgmr.msra.gmra.mrb[28].mxu0 %v15463_v37  ;;  %9686 = vmatmul.mubr.bf16.vlgmr.msra.gmra.mrb[28].mxu1 %v15463_v37 }
 0x6a1   :  { %9695 = vmatpush1.bf16.msra.mxu0 %v10892_v2  ;;  %9726 = vmatprep.mubr.bf16.mxu0 %v14843_v50  ;;  %v10948_v2 = vcombine.low %v6352_v17, %v6356_v51  ;;  %v6408_v17 = vld [vmem:[%s16251_s10 + $0x390] sm:$0xff] }
 0x6a2   :  { %9859 = vmatpush1.bf16.msra.mxu1 %v10894_v4  ;;  %9890 = vmatprep.mubr.bf16.mxu1 %v14843_v50  ;;  %v6325_v50 = vld [vmem:[%s16251_s10 + $0xf8] sm:$0xff]  ;;  %v10950_v4 = vcombine.low %v6353_v32, %v6357_v53  ;;  %v6412_v51 = vld [vmem:[%s16251_s10 + $0x3b0] sm:$0xff] }
 0x6a3   :  { %9696 = vmatprep.subr.bf16.mxu0 %v10901_v5  ;;  %9860 = vmatprep.subr.bf16.mxu1 %v10903_v29  ;;  %v10919_v21 = vcombine.high %v6321_v16, %v6325_v50  ;;  %v10918_v56 = vcombine.low %v6321_v16, %v6325_v50  ;;  %v10957_v5 = vcombine.high %v6360_v58, %v6364_v60  ;;  %v6377_v16 = vld [vmem:[%s16251_s10 + $0x298] sm:$0xff] }
 0x6a4   :  { %v10959_v29 = vcombine.high %v6361_v63, %v6365_v23  ;;  %v6381_v50 = vld [vmem:[%s16251_s10 + $0x2b8] sm:$0xff] }
 0x6a5   :  { %9697 = vmatpush1.bf16.msra.mxu0 %v10900_v10  ;;  %v10956_v10 = vcombine.low %v6360_v58, %v6364_v60  ;;  %v6409_v32 = vld [vmem:[%s16251_s10 + $0x398] sm:$0xff]  ;;  %v6416_v58 = vld [vmem:[%s16251_s10 + $0x3d0] sm:$0xff] }
 0x6a6   :  { %9861 = vmatpush1.bf16.msra.mxu1 %v10902_v11  ;;  %9698 = vmatprep.subr.bf16.mxu0 %v10909_v13  ;;  %v10958_v11 = vcombine.low %v6361_v63, %v6365_v23  ;;  %v10965_v13 = vcombine.high %v6368_v12, %v6372_v6  ;;  %v6413_v53 = vld [vmem:[%s16251_s10 + $0x3b8] sm:$0xff]  ;;  %v6420_v60 = vld [vmem:[%s16251_s10 + $0x3f0] sm:$0xff] }
 0x6a7   :  { %9862 = vmatprep.subr.bf16.mxu1 %v10911_v34  ;;  %v10967_v34 = vcombine.high %v6369_v7, %v6373_v9  ;;  %v6417_v63 = vld [vmem:[%s16251_s10 + $0x3d8] sm:$0xff] }
 0x6a8   :  { %v6421_v23 = vld [vmem:[%s16251_s10 + $0x3f8] sm:$0xff] }
 0x6a9   :  { %9699 = vmatpush1.bf16.msra.mxu0 %v10908_v18  ;;  %v10964_v18 = vcombine.low %v6368_v12, %v6372_v6  ;;  %v6424_v12 = vld [vmem:[%s16251_s10 + $0x410] sm:$0xff] }
 0x6aa   :  { %9863 = vmatpush1.bf16.msra.mxu1 %v10910_v19  ;;  %9700 = vmatprep.subr.bf16.mxu0 %v10917_v20  ;;  %v10966_v19 = vcombine.low %v6369_v7, %v6373_v9  ;;  %v10973_v20 = vcombine.high %v6376_v14, %v6380_v15  ;;  %v6428_v6 = vld [vmem:[%s16251_s10 + $0x430] sm:$0xff]  ;;  %v6425_v7 = vld [vmem:[%s16251_s10 + $0x418] sm:$0xff] }
 0x6ab   :  { %9864 = vmatprep.subr.bf16.mxu1 %v10919_v21  ;;  %v10975_v21 = vcombine.high %v6377_v16, %v6381_v50  ;;  %v6429_v9 = vld [vmem:[%s16251_s10 + $0x438] sm:$0xff] }
 0x6ad   :  { %9701 = vmatpush1.bf16.msra.mxu0 %v10916_v28  ;;  %v10972_v28 = vcombine.low %v6376_v14, %v6380_v15  ;;  %v6432_v14 = vld [vmem:[%s16251_s10 + $0x450] sm:$0xff] }
 0x6ae   :  { %9865 = vmatpush1.bf16.msra.mxu1 %v10918_v56  ;;  %9702 = vmatprep.subr.bf16.mxu0 %v10925_v31  ;;  %v10974_v56 = vcombine.low %v6377_v16, %v6381_v50  ;;  %v10981_v31 = vcombine.high %v6384_v24, %v6388_v25  ;;  %v6436_v15 = vld [vmem:[%s16251_s10 + $0x470] sm:$0xff]  ;;  %v11020_v16 = vcombine.low %v6424_v12, %v6428_v6  ;;  %v6433_v50 = vld [vmem:[%s16251_s10 + $0x458] sm:$0xff] }
 0x6af   :  { %9866 = vmatprep.subr.bf16.mxu1 %v10927_v35  ;;  %v10983_v35 = vcombine.high %v6385_v26, %v6389_v27 }
 0x6b1   :  { %9703 = vmatpush1.bf16.msra.mxu0 %v10924_v33  ;;  %v10980_v33 = vcombine.low %v6384_v24, %v6388_v25  ;;  %v6444_v24 = vld [vmem:[%s16251_s10 + $0x4b0] sm:$0xff] }
 0x6b2   :  { %9867 = vmatpush1.bf16.msra.mxu1 %v10926_v38  ;;  %9704 = vmatprep.subr.bf16.mxu0 %v10933_v39  ;;  %v10982_v38 = vcombine.low %v6385_v26, %v6389_v27  ;;  %v10989_v39 = vcombine.high %v6392_v59, %v6396_v43  ;;  %v6441_v26 = vld [vmem:[%s16251_s10 + $0x498] sm:$0xff] }
 0x6b3   :  { %9868 = vmatprep.subr.bf16.mxu1 %v10935_v40  ;;  %v10991_v40 = vcombine.high %v6393_v30, %v6397_v49  ;;  %v6445_v27 = vld [vmem:[%s16251_s10 + $0x4b8] sm:$0xff] }
 0x6b5   :  { %9705 = vmatpush1.bf16.msra.mxu0 %v10932_v22  ;;  %v10988_v22 = vcombine.low %v6392_v59, %v6396_v43  ;;  %v6448_v59 = vld [vmem:[%s16251_s10 + $0x4d0] sm:$0xff] }
 0x6b6   :  { %9869 = vmatpush1.bf16.msra.mxu1 %v10934_v46  ;;  %9706 = vmatprep.subr.bf16.mxu0 %v10941_v0  ;;  %v10990_v46 = vcombine.low %v6393_v30, %v6397_v49  ;;  %v10997_v0 = vcombine.high %v6400_v41, %v6404_v42  ;;  %v6452_v43 = vld [vmem:[%s16251_s10 + $0x4f0] sm:$0xff]  ;;  %v6453_v30 = vld [vmem:[%s16251_s10 + $0x4f8] sm:$0xff]  ;;  %v11038_v49 = vcombine.low %v6441_v26, %v6445_v27 }
 0x6b7   :  { %9870 = vmatprep.subr.bf16.mxu1 %v10943_v1  ;;  %v10999_v1 = vcombine.high %v6401_v44, %v6405_v45 }
 0x6b9   :  { %9707 = vmatpush1.bf16.msra.mxu0 %v10940_v54  ;;  %v10996_v54 = vcombine.low %v6400_v41, %v6404_v42  ;;  %v6457_v41 = vld [vmem:[%s16251_s10 + $0x518] sm:$0xff] }
 0x6ba   :  { %9871 = vmatpush1.bf16.msra.mxu1 %v10942_v55  ;;  %9708 = vmatprep.subr.bf16.mxu0 %v10949_v57  ;;  %v10998_v55 = vcombine.low %v6401_v44, %v6405_v45  ;;  %v11005_v57 = vcombine.high %v6408_v17, %v6412_v51  ;;  %v6461_v42 = vld [vmem:[%s16251_s10 + $0x538] sm:$0xff]  ;;  %v11044_v44 = vcombine.low %v6448_v59, %v6452_v43 }
 0x6bb   :  { %9872 = vmatprep.subr.bf16.mxu1 %v10951_v62  ;;  %v11007_v62 = vcombine.high %v6409_v32, %v6413_v53 }
 0x6bd   :  { %9709 = vmatpush1.bf16.msra.mxu0 %v10948_v2  ;;  %v11004_v2 = vcombine.low %v6408_v17, %v6412_v51  ;;  %v6465_v17 = vld [vmem:[%s16251_s10 + $0x558] sm:$0xff] }
 0x6be   :  { %9873 = vmatpush1.bf16.msra.mxu1 %v10950_v4  ;;  %9710 = vmatprep.subr.bf16.mxu0 %v10957_v5  ;;  %v11006_v4 = vcombine.low %v6409_v32, %v6413_v53  ;;  %v11013_v5 = vcombine.high %v6416_v58, %v6420_v60  ;;  %v6469_v51 = vld [vmem:[%s16251_s10 + $0x578] sm:$0xff]  ;;  %v11054_v53 = vcombine.low %v6457_v41, %v6461_v42 }
 0x6bf   :  { %9874 = vmatprep.subr.bf16.mxu1 %v10959_v29  ;;  %v11015_v29 = vcombine.high %v6417_v63, %v6421_v23 }
 0x6c1   :  { %9711 = vmatpush1.bf16.msra.mxu0 %v10956_v10  ;;  %v11012_v10 = vcombine.low %v6416_v58, %v6420_v60  ;;  %v6473_v58 = vld [vmem:[%s16251_s10 + $0x598] sm:$0xff] }
 0x6c2   :  { %9875 = vmatpush1.bf16.msra.mxu1 %v10958_v11  ;;  %9712 = vmatprep.subr.bf16.mxu0 %v10965_v13  ;;  %v11014_v11 = vcombine.low %v6417_v63, %v6421_v23  ;;  %v11021_v13 = vcombine.high %v6424_v12, %v6428_v6  ;;  %v6477_v60 = vld [vmem:[%s16251_s10 + $0x5b8] sm:$0xff]  ;;  %v11062_v23 = vcombine.low %v6465_v17, %v6469_v51 }
 0x6c3   :  { %9876 = vmatprep.subr.bf16.mxu1 %v10967_v34  ;;  %v11023_v34 = vcombine.high %v6425_v7, %v6429_v9  ;;  %v6481_v12 = vld [vmem:[%s16251_s10 + $0x5d8] sm:$0xff] }
 0x6c4   :  { %v6485_v6 = vld [vmem:[%s16251_s10 + $0x5f8] sm:$0xff] }
 0x6c5   :  { %9713 = vmatpush1.bf16.msra.mxu0 %v10964_v18  ;;  %v6437_v18 = vld [vmem:[%s16251_s10 + $0x478] sm:$0xff] }
 0x6c6   :  { %9877 = vmatpush1.bf16.msra.mxu1 %v10966_v19  ;;  %9714 = vmatprep.subr.bf16.mxu0 %v10973_v20  ;;  %v11022_v19 = vcombine.low %v6425_v7, %v6429_v9  ;;  %v11029_v20 = vcombine.high %v6432_v14, %v6436_v15  ;;  %v11031_v25 = vcombine.high %v6433_v50, %v6437_v18 }
 0x6c7   :  { %9878 = vmatprep.subr.bf16.mxu1 %v10975_v21  ;;  %v6440_v21 = vld [vmem:[%s16251_s10 + $0x490] sm:$0xff]  ;;  %v11070_v9 = vcombine.low %v6473_v58, %v6477_v60 }
 0x6c9   :  { %9715 = vmatpush1.bf16.msra.mxu0 %v10972_v28  ;;  %v11028_v28 = vcombine.low %v6432_v14, %v6436_v15  ;;  %v6489_v14 = vld [vmem:[%s16251_s10 + $0x618] sm:$0xff] }
 0x6ca   :  { %9879 = vmatpush1.bf16.msra.mxu1 %v10974_v56  ;;  %9716 = vmatprep.subr.bf16.mxu0 %v10981_v31  ;;  %v11030_v56 = vcombine.low %v6433_v50, %v6437_v18  ;;  %v11037_v31 = vcombine.high %v6440_v21, %v6444_v24  ;;  %v6493_v15 = vld [vmem:[%s16251_s10 + $0x638] sm:$0xff]  ;;  %v11078_v50 = vcombine.low %v6481_v12, %v6485_v6 }
 0x6cb   :  { %9880 = vmatprep.subr.bf16.mxu1 %v10983_v35  ;;  %v11039_v35 = vcombine.high %v6441_v26, %v6445_v27  ;;  %v11086_v27 = vcombine.low %v6489_v14, %v6493_v15 }
 0x6cd   :  { %9717 = vmatpush1.bf16.msra.mxu0 %v10980_v33  ;;  %v11045_v33 = vcombine.high %v6448_v59, %v6452_v43  ;;  %v6505_v59 = vld [vmem:[%s16251_s10 + $0x698] sm:$0xff] }
 0x6ce   :  { %9881 = vmatpush1.bf16.msra.mxu1 %v10982_v38  ;;  %9718 = vmatprep.subr.bf16.mxu0 %v10989_v39  ;;  %v6456_v39 = vld [vmem:[%s16251_s10 + $0x510] sm:$0xff]  ;;  %v6509_v43 = vld [vmem:[%s16251_s10 + $0x6b8] sm:$0xff] }
 0x6cf   :  { %9882 = vmatprep.subr.bf16.mxu1 %v10991_v40  ;;  %v6460_v40 = vld [vmem:[%s16251_s10 + $0x530] sm:$0xff] }
 0x6d0   :  { %v11052_v32 = vcombine.low %v6456_v39, %v6460_v40 }
 0x6d1   :  { %9719 = vmatpush1.bf16.msra.mxu0 %v10988_v22  ;;  %v11053_v22 = vcombine.high %v6456_v39, %v6460_v40  ;;  %v6513_v39 = vld [vmem:[%s16251_s10 + $0x6d8] sm:$0xff] }
 0x6d2   :  { %9883 = vmatpush1.bf16.msra.mxu1 %v10990_v46  ;;  %9720 = vmatprep.subr.bf16.mxu0 %v10997_v0  ;;  %v11055_v46 = vcombine.high %v6457_v41, %v6461_v42  ;;  %v6464_v0 = vld [vmem:[%s16251_s10 + $0x550] sm:$0xff]  ;;  %v6517_v40 = vld [vmem:[%s16251_s10 + $0x6f8] sm:$0xff]  ;;  %v11102_v42 = vcombine.low %v6505_v59, %v6509_v43 }
 0x6d3   :  { %9884 = vmatprep.subr.bf16.mxu1 %v10999_v1  ;;  %v6468_v1 = vld [vmem:[%s16251_s10 + $0x570] sm:$0xff] }
 0x6d4   :  { %v11060_v63 = vcombine.low %v6464_v0, %v6468_v1 }
 0x6d5   :  { %9721 = vmatpush1.bf16.msra.mxu0 %v10996_v54  ;;  %v11061_v54 = vcombine.high %v6464_v0, %v6468_v1  ;;  %v6521_v0 = vld [vmem:[%s16251_s10 + $0x718] sm:$0xff] }
 0x6d6   :  { %9885 = vmatpush1.bf16.msra.mxu1 %v10998_v55  ;;  %9722 = vmatprep.subr.bf16.mxu0 %v11005_v57  ;;  %v11063_v55 = vcombine.high %v6465_v17, %v6469_v51  ;;  %v6472_v57 = vld [vmem:[%s16251_s10 + $0x590] sm:$0xff]  ;;  %v6525_v1 = vld [vmem:[%s16251_s10 + $0x738] sm:$0xff]  ;;  %v11110_v51 = vcombine.low %v6513_v39, %v6517_v40 }
 0x6d7   :  { %9886 = vmatprep.subr.bf16.mxu1 %v11007_v62  ;;  %v6476_v62 = vld [vmem:[%s16251_s10 + $0x5b0] sm:$0xff] }
 0x6d8   :  { %v11068_v7 = vcombine.low %v6472_v57, %v6476_v62 }
 0x6d9   :  { %9723 = vmatpush1.bf16.msra.mxu0 %v11004_v2  ;;  %v11069_v2 = vcombine.high %v6472_v57, %v6476_v62  ;;  %v6529_v57 = vld [vmem:[%s16251_s10 + $0x758] sm:$0xff] }
 0x6da   :  { %9887 = vmatpush1.bf16.msra.mxu1 %v11006_v4  ;;  %9724 = vmatprep.subr.bf16.mxu0 %v11013_v5  ;;  %v11071_v4 = vcombine.high %v6473_v58, %v6477_v60  ;;  %v6480_v5 = vld [vmem:[%s16251_s10 + $0x5d0] sm:$0xff]  ;;  %v6533_v62 = vld [vmem:[%s16251_s10 + $0x778] sm:$0xff]  ;;  %v11118_v60 = vcombine.low %v6521_v0, %v6525_v1 }
 0x6db   :  { %9888 = vmatprep.subr.bf16.mxu1 %v11015_v29  ;;  %v6484_v29 = vld [vmem:[%s16251_s10 + $0x5f0] sm:$0xff] }
 0x6dd   :  { %9725 = vmatpush1.bf16.msra.mxu0 %v11012_v10  ;;  %v11077_v10 = vcombine.high %v6480_v5, %v6484_v29 }
 0x6de   :  { %9889 = vmatpush1.bf16.msra.mxu1 %v11014_v11  ;;  %9735 = vmatprep.subr.bf16.mxu0 %v11021_v13  ;;  %v11079_v11 = vcombine.high %v6481_v12, %v6485_v6  ;;  %v6488_v13 = vld [vmem:[%s16251_s10 + $0x610] sm:$0xff]  ;;  %v11126_v6 = vcombine.low %v6529_v57, %v6533_v62 }
 0x6df   :  { %9899 = vmatprep.subr.bf16.mxu1 %v11023_v34  ;;  %v6492_v34 = vld [vmem:[%s16251_s10 + $0x630] sm:$0xff] }
 0x6e0   :  { %9727 = vmatmul.mubr.bf16.vlgmr.msra.gmra.mrb[32].mxu0 %v14845_v52  ;;  %v11085_v18 = vcombine.high %v6488_v13, %v6492_v34  ;;  %v11084_v26 = vcombine.low %v6488_v13, %v6492_v34  ;;  %v6545_v13 = vld [vmem:[%s16251_s10 + $0x7d8] sm:$0xff] }
 0x6e1   :  { %9891 = vmatmul.mubr.bf16.vlgmr.msra.gmra.mrb[32].mxu1 %v14845_v52  ;;  %9736 = vmatpush1.bf16.msra.mxu0 %v11020_v16  ;;  %v6449_v52 = vld [vmem:[%s16251_s10 + $0x4d8] sm:$0xff]  ;;  %v11076_v16 = vcombine.low %v6480_v5, %v6484_v29 }
 0x6e2   :  { %9767 = vmatprep.mubr.bf16.mxu0 %v14861_v61  ;;  %9900 = vmatpush1.bf16.msra.mxu1 %v11022_v19  ;;  %v11047_v38 = vcombine.high %v6449_v52, %v6453_v30  ;;  %v11046_v45 = vcombine.low %v6449_v52, %v6453_v30  ;;  %v11087_v19 = vcombine.high %v6489_v14, %v6493_v15  ;;  %v6537_v5 = vld [vmem:[%s16251_s10 + $0x798] sm:$0xff] }
 0x6e3   :  { %9931 = vmatprep.mubr.bf16.mxu1 %v14861_v61  ;;  %9737 = vmatprep.subr.bf16.mxu0 %v11029_v20  ;;  %v11036_v61 = vcombine.low %v6440_v21, %v6444_v24  ;;  %v6496_v20 = vld [vmem:[%s16251_s10 + $0x650] sm:$0xff]  ;;  %v6497_v24 = vld [vmem:[%s16251_s10 + $0x658] sm:$0xff] }
 0x6e4   :  { %9901 = vmatprep.subr.bf16.mxu1 %v11031_v25  ;;  %v6500_v21 = vld [vmem:[%s16251_s10 + $0x670] sm:$0xff]  ;;  %v6501_v25 = vld [vmem:[%s16251_s10 + $0x678] sm:$0xff] }
 0x6e5   :  { %9738 = vmatpush1.bf16.msra.mxu0 %v11028_v28  ;;  %v11093_v28 = vcombine.high %v6496_v20, %v6500_v21  ;;  %v11092_v52 = vcombine.low %v6496_v20, %v6500_v21  ;;  %v11094_v30 = vcombine.low %v6497_v24, %v6501_v25  ;;  %v6541_v29 = vld [vmem:[%s16251_s10 + $0x7b8] sm:$0xff] }
 0x6e6   :  { %9902 = vmatpush1.bf16.msra.mxu1 %v11030_v56  ;;  %9739 = vmatprep.subr.bf16.mxu0 %v11037_v31  ;;  %v11095_v56 = vcombine.high %v6497_v24, %v6501_v25  ;;  %v6504_v31 = vld [vmem:[%s16251_s10 + $0x690] sm:$0xff]  ;;  %v6549_v34 = vld [vmem:[%s16251_s10 + $0x7f8] sm:$0xff]  ;;  %v11134_v15 = vcombine.low %v6537_v5, %v6541_v29 }
 0x6e7   :  { %9903 = vmatprep.subr.bf16.mxu1 %v11039_v35  ;;  %v6508_v35 = vld [vmem:[%s16251_s10 + $0x6b0] sm:$0xff]  ;;  %v6553_v20 = vld [vmem:[%s16251_s10 + $0x818] sm:$0xff]  ;;  %v11142_v25 = vcombine.low %v6545_v13, %v6549_v34 }
 0x6e8   :  { %v11100_v41 = vcombine.low %v6504_v31, %v6508_v35  ;;  %v6557_v21 = vld [vmem:[%s16251_s10 + $0x838] sm:$0xff] }
 0x6e9   :  { %9740 = vmatpush1.bf16.msra.mxu0 %v11036_v61  ;;  %v11101_v61 = vcombine.high %v6504_v31, %v6508_v35  ;;  %v6561_v35 = vld [vmem:[%s16251_s10 + $0x858] sm:$0xff] }
 0x6ea   :  { %9904 = vmatpush1.bf16.msra.mxu1 %v11038_v49  ;;  %9741 = vmatprep.subr.bf16.mxu0 %v11045_v33  ;;  %v11103_v49 = vcombine.high %v6505_v59, %v6509_v43  ;;  %v6512_v33 = vld [vmem:[%s16251_s10 + $0x6d0] sm:$0xff]  ;;  %v6565_v59 = vld [vmem:[%s16251_s10 + $0x878] sm:$0xff]  ;;  %v11150_v43 = vcombine.low %v6553_v20, %v6557_v21 }
 0x6eb   :  { %9905 = vmatprep.subr.bf16.mxu1 %v11047_v38  ;;  %v6516_v38 = vld [vmem:[%s16251_s10 + $0x6f0] sm:$0xff] }
 0x6ec   :  { %v11108_v17 = vcombine.low %v6512_v33, %v6516_v38 }
 0x6ed   :  { %9742 = vmatpush1.bf16.msra.mxu0 %v11044_v44  ;;  %v11109_v44 = vcombine.high %v6512_v33, %v6516_v38  ;;  %v6569_v33 = vld [vmem:[%s16251_s10 + $0x898] sm:$0xff] }
 0x6ee   :  { %9906 = vmatpush1.bf16.msra.mxu1 %v11046_v45  ;;  %9743 = vmatprep.subr.bf16.mxu0 %v11053_v22  ;;  %v11111_v45 = vcombine.high %v6513_v39, %v6517_v40  ;;  %v6520_v22 = vld [vmem:[%s16251_s10 + $0x710] sm:$0xff]  ;;  %v6573_v38 = vld [vmem:[%s16251_s10 + $0x8b8] sm:$0xff]  ;;  %v11158_v40 = vcombine.low %v6561_v35, %v6565_v59 }
 0x6ef   :  { %9907 = vmatprep.subr.bf16.mxu1 %v11055_v46  ;;  %v6524_v46 = vld [vmem:[%s16251_s10 + $0x730] sm:$0xff] }
 0x6f0   :  { %v11116_v58 = vcombine.low %v6520_v22, %v6524_v46 }
 0x6f1   :  { %9744 = vmatpush1.bf16.msra.mxu0 %v11052_v32  ;;  %v11117_v32 = vcombine.high %v6520_v22, %v6524_v46  ;;  %v6581_v22 = vld [vmem:[%s16251_s10 + $0x8f8] sm:$0xff]  ;;  %v11166_v46 = vcombine.low %v6569_v33, %v6573_v38 }
 0x6f2   :  { %9908 = vmatpush1.bf16.msra.mxu1 %v11054_v53  ;;  %9745 = vmatprep.subr.bf16.mxu0 %v11061_v54  ;;  %v11119_v53 = vcombine.high %v6521_v0, %v6525_v1  ;;  %v6528_v54 = vld [vmem:[%s16251_s10 + $0x750] sm:$0xff] }
 0x6f3   :  { %9909 = vmatprep.subr.bf16.mxu1 %v11063_v55  ;;  %v6532_v55 = vld [vmem:[%s16251_s10 + $0x770] sm:$0xff] }
 0x6f4   :  { %v11124_v12 = vcombine.low %v6528_v54, %v6532_v55 }
 0x6f5   :  { %9746 = vmatpush1.bf16.msra.mxu0 %v11060_v63  ;;  %v11125_v63 = vcombine.high %v6528_v54, %v6532_v55 }
 0x6f6   :  { %9910 = vmatpush1.bf16.msra.mxu1 %v11062_v23  ;;  %9747 = vmatprep.subr.bf16.mxu0 %v11069_v2  ;;  %v11127_v23 = vcombine.high %v6529_v57, %v6533_v62  ;;  %v6536_v2 = vld [vmem:[%s16251_s10 + $0x790] sm:$0xff] }
 0x6f7   :  { %9911 = vmatprep.subr.bf16.mxu1 %v11071_v4  ;;  %v6540_v4 = vld [vmem:[%s16251_s10 + $0x7b0] sm:$0xff] }
 0x6f8   :  { %v11132_v14 = vcombine.low %v6536_v2, %v6540_v4 }
 0x6f9   :  { %9748 = vmatpush1.bf16.msra.mxu0 %v11068_v7  ;;  %v11133_v7 = vcombine.high %v6536_v2, %v6540_v4 }
 0x6fa   :  { %9912 = vmatpush1.bf16.msra.mxu1 %v11070_v9  ;;  %9749 = vmatprep.subr.bf16.mxu0 %v11077_v10  ;;  %v11135_v9 = vcombine.high %v6537_v5, %v6541_v29  ;;  %v6544_v10 = vld [vmem:[%s16251_s10 + $0x7d0] sm:$0xff] }
 0x6fb   :  { %9913 = vmatprep.subr.bf16.mxu1 %v11079_v11  ;;  %v6548_v11 = vld [vmem:[%s16251_s10 + $0x7f0] sm:$0xff] }
 0x6fc   :  { %v11140_v24 = vcombine.low %v6544_v10, %v6548_v11 }
 0x6fd   :  { %9750 = vmatpush1.bf16.msra.mxu0 %v11076_v16  ;;  %v11141_v16 = vcombine.high %v6544_v10, %v6548_v11 }
 0x6fe   :  { %9914 = vmatpush1.bf16.msra.mxu1 %v11078_v50  ;;  %9751 = vmatprep.subr.bf16.mxu0 %v11085_v18  ;;  %v11143_v50 = vcombine.high %v6545_v13, %v6549_v34  ;;  %v6552_v18 = vld [vmem:[%s16251_s10 + $0x810] sm:$0xff] }
 0x6ff   :  { %9915 = vmatprep.subr.bf16.mxu1 %v11087_v19  ;;  %v6556_v19 = vld [vmem:[%s16251_s10 + $0x830] sm:$0xff] }
 0x700   :  { %v11148_v31 = vcombine.low %v6552_v18, %v6556_v19 }
 0x701   :  { %9752 = vmatpush1.bf16.msra.mxu0 %v11084_v26  ;;  %v11149_v26 = vcombine.high %v6552_v18, %v6556_v19 }
 0x702   :  { %9916 = vmatpush1.bf16.msra.mxu1 %v11086_v27  ;;  %9753 = vmatprep.subr.bf16.mxu0 %v11093_v28  ;;  %v11151_v27 = vcombine.high %v6553_v20, %v6557_v21  ;;  %v6560_v28 = vld [vmem:[%s16251_s10 + $0x850] sm:$0xff] }
 0x703   :  { %9917 = vmatprep.subr.bf16.mxu1 %v11095_v56  ;;  %v6564_v56 = vld [vmem:[%s16251_s10 + $0x870] sm:$0xff] }
 0x704   :  { %v11156_v39 = vcombine.low %v6560_v28, %v6564_v56 }
 0x705   :  { %9754 = vmatpush1.bf16.msra.mxu0 %v11092_v52  ;;  %v11157_v52 = vcombine.high %v6560_v28, %v6564_v56 }
 0x706   :  { %9918 = vmatpush1.bf16.msra.mxu1 %v11094_v30  ;;  %9755 = vmatprep.subr.bf16.mxu0 %v11101_v61  ;;  %v6568_v30 = vld [vmem:[%s16251_s10 + $0x890] sm:$0xff] }
 0x707   :  { %9919 = vmatprep.subr.bf16.mxu1 %v11103_v49  ;;  %v6572_v61 = vld [vmem:[%s16251_s10 + $0x8b0] sm:$0xff]  ;;  %v11159_v49 = vcombine.high %v6561_v35, %v6565_v59 }
 0x708   :  { %v6624_v59 = vld [vmem:[%s16251_s10 + $0xa50] sm:$0xff] }
 0x709   :  { %9756 = vmatpush1.bf16.msra.mxu0 %v11100_v41  ;;  %v11165_v41 = vcombine.high %v6568_v30, %v6572_v61 }
 0x70a   :  { %9920 = vmatpush1.bf16.msra.mxu1 %v11102_v42  ;;  %9757 = vmatprep.subr.bf16.mxu0 %v11109_v44  ;;  %v11167_v42 = vcombine.high %v6569_v33, %v6573_v38  ;;  %v6576_v44 = vld [vmem:[%s16251_s10 + $0x8d0] sm:$0xff] }
 0x70b   :  { %9921 = vmatprep.subr.bf16.mxu1 %v11111_v45  ;;  %v6580_v45 = vld [vmem:[%s16251_s10 + $0x8f0] sm:$0xff] }
 0x70c   :  { %v11173_v0 = vcombine.high %v6576_v44, %v6580_v45  ;;  %v11172_v54 = vcombine.low %v6576_v44, %v6580_v45 }
 0x70d   :  { %9758 = vmatpush1.bf16.msra.mxu0 %v11108_v17  ;;  %v6584_v17 = vld [vmem:[%s16251_s10 + $0x910] sm:$0xff] }
 0x70e   :  { %9922 = vmatpush1.bf16.msra.mxu1 %v11110_v51  ;;  %9759 = vmatprep.subr.bf16.mxu0 %v11117_v32  ;;  %v6588_v51 = vld [vmem:[%s16251_s10 + $0x930] sm:$0xff]  ;;  %v6585_v32 = vld [vmem:[%s16251_s10 + $0x918] sm:$0xff] }
 0x70f   :  { %9923 = vmatprep.subr.bf16.mxu1 %v11119_v53  ;;  %v6589_v53 = vld [vmem:[%s16251_s10 + $0x938] sm:$0xff]  ;;  %v11181_v57 = vcombine.high %v6584_v17, %v6588_v51  ;;  %v11180_v2 = vcombine.low %v6584_v17, %v6588_v51 }
 0x710   :  { %v11183_v62 = vcombine.high %v6585_v32, %v6589_v53  ;;  %v11182_v4 = vcombine.low %v6585_v32, %v6589_v53 }
 0x711   :  { %9760 = vmatpush1.bf16.msra.mxu0 %v11116_v58  ;;  %v6592_v58 = vld [vmem:[%s16251_s10 + $0x950] sm:$0xff] }
 0x712   :  { %9924 = vmatpush1.bf16.msra.mxu1 %v11118_v60  ;;  %9761 = vmatprep.subr.bf16.mxu0 %v11125_v63  ;;  %v6596_v60 = vld [vmem:[%s16251_s10 + $0x970] sm:$0xff]  ;;  %v6593_v63 = vld [vmem:[%s16251_s10 + $0x958] sm:$0xff] }
 0x713   :  { %9925 = vmatprep.subr.bf16.mxu1 %v11127_v23  ;;  %v6597_v23 = vld [vmem:[%s16251_s10 + $0x978] sm:$0xff]  ;;  %v11189_v5 = vcombine.high %v6592_v58, %v6596_v60  ;;  %v11188_v10 = vcombine.low %v6592_v58, %v6596_v60 }
 0x714   :  { %v11191_v29 = vcombine.high %v6593_v63, %v6597_v23  ;;  %v11190_v11 = vcombine.low %v6593_v63, %v6597_v23 }
 0x715   :  { %9762 = vmatpush1.bf16.msra.mxu0 %v11124_v12  ;;  %v6600_v12 = vld [vmem:[%s16251_s10 + $0x990] sm:$0xff] }
 0x716   :  { %9926 = vmatpush1.bf16.msra.mxu1 %v11126_v6  ;;  %9763 = vmatprep.subr.bf16.mxu0 %v11133_v7  ;;  %v6604_v6 = vld [vmem:[%s16251_s10 + $0x9b0] sm:$0xff]  ;;  %v6601_v7 = vld [vmem:[%s16251_s10 + $0x998] sm:$0xff] }
 0x717   :  { %9927 = vmatprep.subr.bf16.mxu1 %v11135_v9  ;;  %v6605_v9 = vld [vmem:[%s16251_s10 + $0x9b8] sm:$0xff]  ;;  %v11197_v13 = vcombine.high %v6600_v12, %v6604_v6  ;;  %v11196_v18 = vcombine.low %v6600_v12, %v6604_v6 }
 0x718   :  { %v11199_v34 = vcombine.high %v6601_v7, %v6605_v9  ;;  %v11198_v19 = vcombine.low %v6601_v7, %v6605_v9 }
 0x719   :  { %9764 = vmatpush1.bf16.msra.mxu0 %v11132_v14  ;;  %v6608_v14 = vld [vmem:[%s16251_s10 + $0x9d0] sm:$0xff] }
 0x71a   :  { %9928 = vmatpush1.bf16.msra.mxu1 %v11134_v15  ;;  %9765 = vmatprep.subr.bf16.mxu0 %v11141_v16  ;;  %v6612_v15 = vld [vmem:[%s16251_s10 + $0x9f0] sm:$0xff]  ;;  %v6609_v16 = vld [vmem:[%s16251_s10 + $0x9d8] sm:$0xff] }
 0x71b   :  { %9929 = vmatprep.subr.bf16.mxu1 %v11143_v50  ;;  %v6613_v50 = vld [vmem:[%s16251_s10 + $0x9f8] sm:$0xff]  ;;  %v11205_v20 = vcombine.high %v6608_v14, %v6612_v15  ;;  %v11204_v28 = vcombine.low %v6608_v14, %v6612_v15 }
 0x71c   :  { %v11207_v21 = vcombine.high %v6609_v16, %v6613_v50  ;;  %v11206_v56 = vcombine.low %v6609_v16, %v6613_v50 }
 0x71d   :  { %9766 = vmatpush1.bf16.msra.mxu0 %v11140_v24  ;;  %v6616_v24 = vld [vmem:[%s16251_s10 + $0xa10] sm:$0xff] }
 0x71e   :  { %9930 = vmatpush1.bf16.msra.mxu1 %v11142_v25  ;;  %9776 = vmatprep.subr.bf16.mxu0 %v11149_v26  ;;  %v6620_v25 = vld [vmem:[%s16251_s10 + $0xa30] sm:$0xff]  ;;  %v6617_v26 = vld [vmem:[%s16251_s10 + $0xa18] sm:$0xff] }
 0x71f   :  { %9940 = vmatprep.subr.bf16.mxu1 %v11151_v27  ;;  %v6621_v27 = vld [vmem:[%s16251_s10 + $0xa38] sm:$0xff] }
 0x720   :  { %9768 = vmatmul.mubr.bf16.vlgmr.msra.gmra.mrb[32].mxu0 %v15050_v8  ;;  %v11215_v35 = vcombine.high %v6617_v26, %v6621_v27 }
 0x721   :  { %9932 = vmatmul.mubr.bf16.vlgmr.msra.gmra.mrb[32].mxu1 %v15050_v8  ;;  %9777 = vmatpush1.bf16.msra.mxu0 %v11148_v31  ;;  %v6577_v8 = vld [vmem:[%s16251_s10 + $0x8d8] sm:$0xff]  ;;  %v11213_v31 = vcombine.high %v6616_v24, %v6620_v25 }
 0x722   :  { %9808 = vmatprep.mubr.bf16.mxu0 %v15254_v36  ;;  %9941 = vmatpush1.bf16.msra.mxu1 %v11150_v43  ;;  %v11175_v1 = vcombine.high %v6577_v8, %v6581_v22  ;;  %v11174_v55 = vcombine.low %v6577_v8, %v6581_v22  ;;  %v6628_v43 = vld [vmem:[%s16251_s10 + $0xa70] sm:$0xff] }
 0x723   :  { %9972 = vmatprep.mubr.bf16.mxu1 %v15254_v36  ;;  %9778 = vmatprep.subr.bf16.mxu0 %v11157_v52  ;;  %v11164_v36 = vcombine.low %v6568_v30, %v6572_v61  ;;  %v6625_v52 = vld [vmem:[%s16251_s10 + $0xa58] sm:$0xff]  ;;  %v11212_v61 = vcombine.low %v6616_v24, %v6620_v25  ;;  %v11221_v33 = vcombine.high %v6624_v59, %v6628_v43 }
 0x724   :  { %9942 = vmatprep.subr.bf16.mxu1 %v11159_v49  ;;  %v6629_v30 = vld [vmem:[%s16251_s10 + $0xa78] sm:$0xff]  ;;  %v11214_v49 = vcombine.low %v6617_v26, %v6621_v27  ;;  %v11220_v44 = vcombine.low %v6624_v59, %v6628_v43 }
 0x725   :  { %9779 = vmatpush1.bf16.msra.mxu0 %v11156_v39  ;;  %v11223_v38 = vcombine.high %v6625_v52, %v6629_v30  ;;  %v6632_v39 = vld [vmem:[%s16251_s10 + $0xa90] sm:$0xff]  ;;  %v11222_v45 = vcombine.low %v6625_v52, %v6629_v30 }
 0x726   :  { %9943 = vmatpush1.bf16.msra.mxu1 %v11158_v40  ;;  %9780 = vmatprep.subr.bf16.mxu0 %v11165_v41  ;;  %v6636_v40 = vld [vmem:[%s16251_s10 + $0xab0] sm:$0xff]  ;;  %v6633_v41 = vld [vmem:[%s16251_s10 + $0xa98] sm:$0xff] }
 0x727   :  { %9944 = vmatprep.subr.bf16.mxu1 %v11167_v42  ;;  %v6637_v42 = vld [vmem:[%s16251_s10 + $0xab8] sm:$0xff]  ;;  %v11229_v8 = vcombine.high %v6632_v39, %v6636_v40  ;;  %v11228_v17 = vcombine.low %v6632_v39, %v6636_v40 }
 0x728   :  { %v11231_v22 = vcombine.high %v6633_v41, %v6637_v42  ;;  %v11230_v51 = vcombine.low %v6633_v41, %v6637_v42  ;;  %v6693_v39 = vld [vmem:[%s16251_s10 + $0xc78] sm:$0xff]  ;;  %v6696_v42 = vld [vmem:[%s16251_s10 + $0xc90] sm:$0xff] }
 0x729   :  { %9781 = vmatpush1.bf16.msra.mxu0 %v11164_v36  ;;  %v6640_v36 = vld [vmem:[%s16251_s10 + $0xad0] sm:$0xff] }
 0x72a   :  { %9945 = vmatpush1.bf16.msra.mxu1 %v11166_v46  ;;  %9782 = vmatprep.subr.bf16.mxu0 %v11173_v0  ;;  %v6644_v46 = vld [vmem:[%s16251_s10 + $0xaf0] sm:$0xff]  ;;  %v6641_v0 = vld [vmem:[%s16251_s10 + $0xad8] sm:$0xff] }
 0x72b   :  { %9946 = vmatprep.subr.bf16.mxu1 %v11175_v1  ;;  %v6645_v1 = vld [vmem:[%s16251_s10 + $0xaf8] sm:$0xff]  ;;  %v11237_v32 = vcombine.high %v6640_v36, %v6644_v46  ;;  %v11236_v58 = vcombine.low %v6640_v36, %v6644_v46 }
 0x72c   :  { %v11239_v53 = vcombine.high %v6641_v0, %v6645_v1  ;;  %v11238_v60 = vcombine.low %v6641_v0, %v6645_v1 }
 0x72d   :  { %9783 = vmatpush1.bf16.msra.mxu0 %v11172_v54  ;;  %v6648_v54 = vld [vmem:[%s16251_s10 + $0xb10] sm:$0xff] }
 0x72e   :  { %9947 = vmatpush1.bf16.msra.mxu1 %v11174_v55  ;;  %9784 = vmatprep.subr.bf16.mxu0 %v11181_v57  ;;  %v6652_v55 = vld [vmem:[%s16251_s10 + $0xb30] sm:$0xff]  ;;  %v6649_v57 = vld [vmem:[%s16251_s10 + $0xb18] sm:$0xff] }
 0x72f   :  { %9948 = vmatprep.subr.bf16.mxu1 %v11183_v62  ;;  %v6653_v62 = vld [vmem:[%s16251_s10 + $0xb38] sm:$0xff]  ;;  %v11245_v63 = vcombine.high %v6648_v54, %v6652_v55  ;;  %v11244_v12 = vcombine.low %v6648_v54, %v6652_v55 }
 0x730   :  { %v11247_v23 = vcombine.high %v6649_v57, %v6653_v62  ;;  %v11246_v6 = vcombine.low %v6649_v57, %v6653_v62  ;;  %v6712_v57 = vld [vmem:[%s16251_s10 + $0xd10] sm:$0xff] }
 0x731   :  { %9785 = vmatpush1.bf16.msra.mxu0 %v11180_v2  ;;  %v6656_v2 = vld [vmem:[%s16251_s10 + $0xb50] sm:$0xff] }
 0x732   :  { %9949 = vmatpush1.bf16.msra.mxu1 %v11182_v4  ;;  %9786 = vmatprep.subr.bf16.mxu0 %v11189_v5  ;;  %v6660_v4 = vld [vmem:[%s16251_s10 + $0xb70] sm:$0xff]  ;;  %v6657_v5 = vld [vmem:[%s16251_s10 + $0xb58] sm:$0xff] }
 0x733   :  { %9950 = vmatprep.subr.bf16.mxu1 %v11191_v29  ;;  %v6661_v29 = vld [vmem:[%s16251_s10 + $0xb78] sm:$0xff]  ;;  %v11253_v7 = vcombine.high %v6656_v2, %v6660_v4  ;;  %v11252_v14 = vcombine.low %v6656_v2, %v6660_v4  ;;  %v6716_v62 = vld [vmem:[%s16251_s10 + $0xd30] sm:$0xff] }
 0x734   :  { %v11255_v9 = vcombine.high %v6657_v5, %v6661_v29  ;;  %v11254_v15 = vcombine.low %v6657_v5, %v6661_v29  ;;  %v11309_v2 = vcombine.high %v6712_v57, %v6716_v62  ;;  %v11996_v5 = vmov 1983009808  }
 0x735   :  { %9787 = vmatpush1.bf16.msra.mxu0 %v11188_v10  ;;  %v6664_v10 = vld [vmem:[%s16251_s10 + $0xb90] sm:$0xff]  ;;  %v10033_v29 = vunpack.c.l.s4 %v11996_v5 }
 0x736   :  { %9951 = vmatpush1.bf16.msra.mxu1 %v11190_v11  ;;  %9788 = vmatprep.subr.bf16.mxu0 %v11197_v13  ;;  %v6668_v11 = vld [vmem:[%s16251_s10 + $0xbb0] sm:$0xff]  ;;  %v6665_v13 = vld [vmem:[%s16251_s10 + $0xb98] sm:$0xff] }
 0x737   :  { %9952 = vmatprep.subr.bf16.mxu1 %v11199_v34  ;;  %v6669_v34 = vld [vmem:[%s16251_s10 + $0xbb8] sm:$0xff]  ;;  %v11261_v16 = vcombine.high %v6664_v10, %v6668_v11  ;;  %v11260_v24 = vcombine.low %v6664_v10, %v6668_v11  ;;  %v11308_v10 = vcombine.low %v6712_v57, %v6716_v62 }
 0x738   :  { %v11263_v50 = vcombine.high %v6665_v13, %v6669_v34  ;;  %v11262_v25 = vcombine.low %v6665_v13, %v6669_v34  ;;  %v10034_v34 = vunpack.c.0.s8 %v10033_v29 }
 0x739   :  { %9789 = vmatpush1.bf16.msra.mxu0 %v11196_v18  ;;  %v6672_v18 = vld [vmem:[%s16251_s10 + $0xbd0] sm:$0xff] }
 0x73a   :  { %9953 = vmatpush1.bf16.msra.mxu1 %v11198_v19  ;;  %9790 = vmatprep.subr.bf16.mxu0 %v11205_v20  ;;  %v6676_v19 = vld [vmem:[%s16251_s10 + $0xbf0] sm:$0xff]  ;;  %v6673_v20 = vld [vmem:[%s16251_s10 + $0xbd8] sm:$0xff] }
 0x73b   :  { %9954 = vmatprep.subr.bf16.mxu1 %v11207_v21  ;;  %v6677_v21 = vld [vmem:[%s16251_s10 + $0xbf8] sm:$0xff]  ;;  %v11269_v26 = vcombine.high %v6672_v18, %v6676_v19  ;;  %v11268_v59 = vcombine.low %v6672_v18, %v6676_v19 }
 0x73c   :  { %v11271_v27 = vcombine.high %v6673_v20, %v6677_v21  ;;  %v11270_v43 = vcombine.low %v6673_v20, %v6677_v21  ;;  %v6733_v18 = vld [vmem:[%s16251_s10 + $0xdb8] sm:$0xff] }
 0x73d   :  { %9791 = vmatpush1.bf16.msra.mxu0 %v11204_v28  ;;  %v6680_v28 = vld [vmem:[%s16251_s10 + $0xc10] sm:$0xff] }
 0x73e   :  { %9955 = vmatpush1.bf16.msra.mxu1 %v11206_v56  ;;  %9792 = vmatprep.subr.bf16.mxu0 %v11213_v31  ;;  %v6684_v56 = vld [vmem:[%s16251_s10 + $0xc30] sm:$0xff]  ;;  %v6681_v31 = vld [vmem:[%s16251_s10 + $0xc18] sm:$0xff] }
 0x73f   :  { %9956 = vmatprep.subr.bf16.mxu1 %v11215_v35  ;;  %v6685_v35 = vld [vmem:[%s16251_s10 + $0xc38] sm:$0xff]  ;;  %v11277_v52 = vcombine.high %v6680_v28, %v6684_v56 }
 0x740   :  { %v11279_v30 = vcombine.high %v6681_v31, %v6685_v35  ;;  %v11278_v40 = vcombine.low %v6681_v31, %v6685_v35 }
 0x741   :  { %9793 = vmatpush1.bf16.msra.mxu0 %v11212_v61  ;;  %v6688_v61 = vld [vmem:[%s16251_s10 + $0xc50] sm:$0xff] }
 0x742   :  { %9957 = vmatpush1.bf16.msra.mxu1 %v11214_v49  ;;  %9794 = vmatprep.subr.bf16.mxu0 %v11221_v33  ;;  %v6692_v49 = vld [vmem:[%s16251_s10 + $0xc70] sm:$0xff]  ;;  %v11276_v33 = vcombine.low %v6680_v28, %v6684_v56 }
 0x743   :  { %9958 = vmatprep.subr.bf16.mxu1 %v11223_v38  ;;  %v6689_v38 = vld [vmem:[%s16251_s10 + $0xc58] sm:$0xff]  ;;  %v11285_v41 = vcombine.high %v6688_v61, %v6692_v49  ;;  %v11284_v36 = vcombine.low %v6688_v61, %v6692_v49  ;;  %v6736_v28 = vld [vmem:[%s16251_s10 + $0xdd0] sm:$0xff] }
 0x744   :  { %v11286_v46 = vcombine.low %v6689_v38, %v6693_v39  ;;  %v6740_v56 = vld [vmem:[%s16251_s10 + $0xdf0] sm:$0xff] }
 0x745   :  { %9795 = vmatpush1.bf16.msra.mxu0 %v11220_v44  ;;  %v6700_v44 = vld [vmem:[%s16251_s10 + $0xcb0] sm:$0xff] }
 0x746   :  { %9959 = vmatpush1.bf16.msra.mxu1 %v11222_v45  ;;  %9796 = vmatprep.subr.bf16.mxu0 %v11229_v8  ;;  %v11287_v45 = vcombine.high %v6689_v38, %v6693_v39  ;;  %v6697_v8 = vld [vmem:[%s16251_s10 + $0xc98] sm:$0xff]  ;;  %v11293_v0 = vcombine.high %v6696_v42, %v6700_v44 }
 0x747   :  { %9960 = vmatprep.subr.bf16.mxu1 %v11231_v22  ;;  %v6701_v22 = vld [vmem:[%s16251_s10 + $0xcb8] sm:$0xff] }
 0x748   :  { %v11295_v1 = vcombine.high %v6697_v8, %v6701_v22 }
 0x749   :  { %9797 = vmatpush1.bf16.msra.mxu0 %v11228_v17  ;;  %v6704_v17 = vld [vmem:[%s16251_s10 + $0xcd0] sm:$0xff] }
 0x74a   :  { %9961 = vmatpush1.bf16.msra.mxu1 %v11230_v51  ;;  %9798 = vmatprep.subr.bf16.mxu0 %v11237_v32  ;;  %v6708_v51 = vld [vmem:[%s16251_s10 + $0xcf0] sm:$0xff]  ;;  %v6709_v32 = vld [vmem:[%s16251_s10 + $0xcf8] sm:$0xff] }
 0x74b   :  { %9962 = vmatprep.subr.bf16.mxu1 %v11239_v53  ;;  %v11294_v53 = vcombine.low %v6697_v8, %v6701_v22  ;;  %v11301_v54 = vcombine.high %v6704_v17, %v6708_v51  ;;  %v6748_v8 = vld [vmem:[%s16251_s10 + $0xe30] sm:$0xff]  ;;  %v6745_v22 = vld [vmem:[%s16251_s10 + $0xe18] sm:$0xff] }
 0x74d   :  { %9799 = vmatpush1.bf16.msra.mxu0 %v11236_v58  ;;  %v6713_v58 = vld [vmem:[%s16251_s10 + $0xd18] sm:$0xff] }
 0x74e   :  { %9963 = vmatpush1.bf16.msra.mxu1 %v11238_v60  ;;  %9800 = vmatprep.subr.bf16.mxu0 %v11245_v63  ;;  %v6717_v60 = vld [vmem:[%s16251_s10 + $0xd38] sm:$0xff]  ;;  %v11300_v63 = vcombine.low %v6704_v17, %v6708_v51 }
 0x74f   :  { %9964 = vmatprep.subr.bf16.mxu1 %v11247_v23  ;;  %v11311_v4 = vcombine.high %v6713_v58, %v6717_v60  ;;  %v11310_v11 = vcombine.low %v6713_v58, %v6717_v60  ;;  %v6760_v58 = vld [vmem:[%s16251_s10 + $0xe90] sm:$0xff] }
 0x750   :  { %v6764_v60 = vld [vmem:[%s16251_s10 + $0xeb0] sm:$0xff] }
 0x751   :  { %9801 = vmatpush1.bf16.msra.mxu0 %v11244_v12  ;;  %v6720_v12 = vld [vmem:[%s16251_s10 + $0xd50] sm:$0xff]  ;;  %v11357_v5 = vcombine.high %v6760_v58, %v6764_v60 }
 0x752   :  { %9965 = vmatpush1.bf16.msra.mxu1 %v11246_v6  ;;  %9802 = vmatprep.subr.bf16.mxu0 %v11253_v7  ;;  %v6724_v6 = vld [vmem:[%s16251_s10 + $0xd70] sm:$0xff]  ;;  %v6721_v7 = vld [vmem:[%s16251_s10 + $0xd58] sm:$0xff] }
 0x753   :  { %9966 = vmatprep.subr.bf16.mxu1 %v11255_v9  ;;  %v6725_v9 = vld [vmem:[%s16251_s10 + $0xd78] sm:$0xff]  ;;  %v11317_v13 = vcombine.high %v6720_v12, %v6724_v6  ;;  %v11316_v19 = vcombine.low %v6720_v12, %v6724_v6  ;;  %v6768_v12 = vld [vmem:[%s16251_s10 + $0xed0] sm:$0xff] }
 0x754   :  { %v11318_v20 = vcombine.low %v6721_v7, %v6725_v9  ;;  %v6772_v6 = vld [vmem:[%s16251_s10 + $0xef0] sm:$0xff] }
 0x755   :  { %9803 = vmatpush1.bf16.msra.mxu0 %v11252_v14  ;;  %v11319_v14 = vcombine.high %v6721_v7, %v6725_v9  ;;  %v6769_v7 = vld [vmem:[%s16251_s10 + $0xed8] sm:$0xff] }
 0x756   :  { %9967 = vmatpush1.bf16.msra.mxu1 %v11254_v15  ;;  %9804 = vmatprep.subr.bf16.mxu0 %v11261_v16  ;;  %v6728_v15 = vld [vmem:[%s16251_s10 + $0xd90] sm:$0xff]  ;;  %v6773_v9 = vld [vmem:[%s16251_s10 + $0xef8] sm:$0xff] }
 0x757   :  { %9968 = vmatprep.subr.bf16.mxu1 %v11263_v50  ;;  %v6732_v16 = vld [vmem:[%s16251_s10 + $0xdb0] sm:$0xff]  ;;  %v6729_v50 = vld [vmem:[%s16251_s10 + $0xd98] sm:$0xff] }
 0x758   :  { %v11325_v21 = vcombine.high %v6728_v15, %v6732_v16  ;;  %v11324_v49 = vcombine.low %v6728_v15, %v6732_v16  ;;  %v11326_v39 = vcombine.low %v6729_v50, %v6733_v18  ;;  %v6780_v15 = vld [vmem:[%s16251_s10 + $0xf30] sm:$0xff]  ;;  %v6777_v16 = vld [vmem:[%s16251_s10 + $0xf18] sm:$0xff] }
 0x759   :  { %9805 = vmatpush1.bf16.msra.mxu0 %v11260_v24 }
 0x75a   :  { %9969 = vmatpush1.bf16.msra.mxu1 %v11262_v25  ;;  %9806 = vmatprep.subr.bf16.mxu0 %v11269_v26  ;;  %v16118_v26 = vsub.s32 %v10034_v34, %v12140_v47  ;;  %v6741_v47 = vld [vmem:[%s16251_s10 + $0xdf8] sm:$0xff]  ;;  %v11367_v34 = vcombine.high %v6769_v7, %v6773_v9 }
 0x75b   :  { %9970 = vmatprep.subr.bf16.mxu1 %v11271_v27  ;;  %v11327_v27 = vcombine.high %v6729_v50, %v6733_v18  ;;  %v6781_v50 = vld [vmem:[%s16251_s10 + $0xf38] sm:$0xff]  ;;  %v11364_v18 = vcombine.low %v6768_v12, %v6772_v6 }
 0x75d   :  { %9807 = vmatpush1.bf16.msra.mxu0 %v11268_v59  ;;  %v6737_v59 = vld [vmem:[%s16251_s10 + $0xdd8] sm:$0xff] }
 0x75e   :  { %9971 = vmatpush1.bf16.msra.mxu1 %v11270_v43  ;;  %9817 = vmatprep.subr.bf16.mxu0 %v11277_v52 }
 0x75f   :  { %9981 = vmatprep.subr.bf16.mxu1 %v11279_v30 }
 0x760   :  { %9809 = vmatmul.mubr.bf16.vlgmr.msra.gmra.mrb[32].mxu0 %v15256_v3 }
 0x761   :  { %9973 = vmatmul.mubr.bf16.vlgmr.msra.gmra.mrb[32].mxu1 %v15256_v3  ;;  %9818 = vmatpush1.bf16.msra.mxu0 %v11276_v33  ;;  %v6705_v3 = vld [vmem:[%s16251_s10 + $0xcd8] sm:$0xff] }
 0x762   :  { %9849 = vmatprep.mubr.bf16.mxu0 %v15272_v48  ;;  %9982 = vmatpush1.bf16.msra.mxu1 %v11278_v40  ;;  %v11303_v55 = vcombine.high %v6705_v3, %v6709_v32  ;;  %v11302_v23 = vcombine.low %v6705_v3, %v6709_v32  ;;  %v11333_v40 = vcombine.high %v6736_v28, %v6740_v56  ;;  %v6752_v3 = vld [vmem:[%s16251_s10 + $0xe50] sm:$0xff] }
 0x763   :  { %10013 = vmatprep.mubr.bf16.mxu1 %v15272_v48  ;;  %9819 = vmatprep.subr.bf16.mxu0 %v11285_v41  ;;  %v11292_v48 = vcombine.low %v6696_v42, %v6700_v44  ;;  %v11335_v44 = vcombine.high %v6737_v59, %v6741_v47  ;;  %v6756_v32 = vld [vmem:[%s16251_s10 + $0xe70] sm:$0xff] }
 0x764   :  { %9983 = vmatprep.subr.bf16.mxu1 %v11287_v45  ;;  %v6744_v45 = vld [vmem:[%s16251_s10 + $0xe10] sm:$0xff]  ;;  %v11349_v57 = vcombine.high %v6752_v3, %v6756_v32 }
 0x765   :  { %9820 = vmatpush1.bf16.msra.mxu0 %v11284_v36  ;;  %v6749_v36 = vld [vmem:[%s16251_s10 + $0xe38] sm:$0xff]  ;;  %v11341_v17 = vcombine.high %v6744_v45, %v6748_v8 }
 0x766   :  { %9984 = vmatpush1.bf16.msra.mxu1 %v11286_v46  ;;  %9821 = vmatprep.subr.bf16.mxu0 %v11293_v0  ;;  %v11332_v0 = vcombine.low %v6736_v28, %v6740_v56  ;;  %v11343_v51 = vcombine.high %v6745_v22, %v6749_v36  ;;  %v6789_v28 = vld [vmem:[%s16251_s10 + $0xf78] sm:$0xff] }
 0x767   :  { %9985 = vmatprep.subr.bf16.mxu1 %v11295_v1  ;;  %v11334_v1 = vcombine.low %v6737_v59, %v6741_v47  ;;  %v6792_v47 = vld [vmem:[%s16251_s10 + $0xf90] sm:$0xff] }
 0x769   :  { %9822 = vmatpush1.bf16.msra.mxu0 %v11292_v48  ;;  %v6753_v48 = vld [vmem:[%s16251_s10 + $0xe58] sm:$0xff] }
 0x76a   :  { %9986 = vmatpush1.bf16.msra.mxu1 %v11294_v53  ;;  %9823 = vmatprep.subr.bf16.mxu0 %v11301_v54  ;;  %v6757_v53 = vld [vmem:[%s16251_s10 + $0xe78] sm:$0xff]  ;;  %v11340_v54 = vcombine.low %v6744_v45, %v6748_v8 }
 0x76b   :  { %9987 = vmatprep.subr.bf16.mxu1 %v11303_v55  ;;  %v11342_v55 = vcombine.low %v6745_v22, %v6749_v36  ;;  %v11351_v62 = vcombine.high %v6753_v48, %v6757_v53 }
 0x76d   :  { %9824 = vmatpush1.bf16.msra.mxu0 %v11300_v63  ;;  %v6761_v63 = vld [vmem:[%s16251_s10 + $0xe98] sm:$0xff] }
 0x76e   :  { %9988 = vmatpush1.bf16.msra.mxu1 %v11302_v23  ;;  %9825 = vmatprep.subr.bf16.mxu0 %v11309_v2  ;;  %v6765_v23 = vld [vmem:[%s16251_s10 + $0xeb8] sm:$0xff]  ;;  %v11348_v2 = vcombine.low %v6752_v3, %v6756_v32 }
 0x76f   :  { %9989 = vmatprep.subr.bf16.mxu1 %v11311_v4  ;;  %v11350_v4 = vcombine.low %v6753_v48, %v6757_v53  ;;  %v11359_v29 = vcombine.high %v6761_v63, %v6765_v23 }
 0x771   :  { %9826 = vmatpush1.bf16.msra.mxu0 %v11308_v10  ;;  %v11356_v10 = vcombine.low %v6760_v58, %v6764_v60 }
 0x772   :  { %9990 = vmatpush1.bf16.msra.mxu1 %v11310_v11  ;;  %9827 = vmatprep.subr.bf16.mxu0 %v11317_v13  ;;  %v11358_v11 = vcombine.low %v6761_v63, %v6765_v23  ;;  %v11365_v13 = vcombine.high %v6768_v12, %v6772_v6 }
 0x773   :  { %v9523_v24 = vpop.f32.mrb[28].mxu0  ;;  %v9687_v25 = vpop.f32.mrb[28].mxu1  ;;  %9991 = vmatprep.subr.bf16.mxu1 %v11319_v14  ;;  %v6776_v14 = vld [vmem:[%s16251_s10 + $0xf10] sm:$0xff] }
 0x774   :  { %v9525_v31 = vpop.f32.mrb[29].mxu0  ;;  %v9689_v35 = vpop.f32.mrb[29].mxu1  ;;  %v11372_v56 = vcombine.low %v6776_v14, %v6780_v15 }
 0x775   :  { %v10030_v43 = vcombine.low %v9523_v24, %v9525_v31  ;;  %v10031_v52 = vcombine.low %v9687_v25, %v9689_v35  ;;  %v9527_v30 = vpop.f32.mrb[30].mxu0  ;;  %v9691_v61 = vpop.f32.mrb[30].mxu1  ;;  %9828 = vmatpush1.bf16.msra.mxu0 %v11316_v19  ;;  %v11366_v19 = vcombine.low %v6769_v7, %v6773_v9  ;;  %v6784_v24 = vld [vmem:[%s16251_s10 + $0xf50] sm:$0xff]  ;;  %v11374_v31 = vcombine.low %v6777_v16, %v6781_v50 }
 0x776   :  { %9992 = vmatpush1.bf16.msra.mxu1 %v11318_v20  ;;  %v9528_v33 = vpop.f32.mrb[31].mxu0  ;;  %v9692_v38 = vpop.f32.mrb[31].mxu1  ;;  %9829 = vmatprep.subr.bf16.mxu0 %v11325_v21  ;;  %v11373_v20 = vcombine.high %v6776_v14, %v6780_v15  ;;  %v11375_v21 = vcombine.high %v6777_v16, %v6781_v50  ;;  %v6788_v25 = vld [vmem:[%s16251_s10 + $0xf70] sm:$0xff]  ;;  %v6797_v30 = vld [vmem:[%s16251_s10 + $0xfb8] sm:$0xff] }
 0x777   :  { %v10038_v41 = vrot.slane %v10030_v43, %v16118_v26  ;;  %v10045_v42 = vrot.slane %v10031_v52, %v16118_v26  ;;  %9993 = vmatprep.subr.bf16.mxu1 %v11327_v27  ;;  %v6785_v27 = vld [vmem:[%s16251_s10 + $0xf58] sm:$0xff]  ;;  %v11381_v35 = vcombine.high %v6784_v24, %v6788_v25  ;;  %v6796_v43 = vld [vmem:[%s16251_s10 + $0xfb0] sm:$0xff]  ;;  %v11380_v61 = vcombine.low %v6784_v24, %v6788_v25 }
 0x778   :  { %v11383_v59 = vcombine.high %v6785_v27, %v6789_v28  ;;  %v6793_v52 = vld [vmem:[%s16251_s10 + $0xf98] sm:$0xff]  ;;  %v11389_v33 = vcombine.high %v6792_v47, %v6796_v43 }
 0x779   :  { %v10046_v46 = vcombine.low %v10038_v41, %v10045_v42  ;;  %9830 = vmatpush1.bf16.msra.mxu0 %v11324_v49  ;;  %v11382_v49 = vcombine.low %v6785_v27, %v6789_v28  ;;  %v11391_v38 = vcombine.high %v6793_v52, %v6797_v30  ;;  %v6801_v41 = vld [vmem:[%s16251_s10 + $0xfd8] sm:$0xff]  ;;  %v11390_v45 = vcombine.low %v6793_v52, %v6797_v30 }
 0x77a   :  { %9994 = vmatpush1.bf16.msra.mxu1 %v11326_v39  ;;  %9831 = vmatprep.subr.bf16.mxu0 %v11333_v40  ;;  %v6800_v39 = vld [vmem:[%s16251_s10 + $0xfd0] sm:$0xff]  ;;  %v6805_v42 = vld [vmem:[%s16251_s10 + $0xff8] sm:$0xff] }
 0x77b   :  { %10066 = vst [vmem:[%s16253_s13] sm:$0xff] %v10046_v46  ;;  %9995 = vmatprep.subr.bf16.mxu1 %v11335_v44  ;;  %v6804_v40 = vld [vmem:[%s16251_s10 + $0xff0] sm:$0xff]  ;;  %v11388_v44 = vcombine.low %v6792_v47, %v6796_v43  ;;  %v11399_v22 = vcombine.high %v6801_v41, %v6805_v42  ;;  %v11398_v46 = vcombine.low %v6801_v41, %v6805_v42 }
 0x77c   :  { %v11397_v8 = vcombine.high %v6800_v39, %v6804_v40  ;;  %v11396_v36 = vcombine.low %v6800_v39, %v6804_v40 }
 0x77d   :  { %9832 = vmatpush1.bf16.msra.mxu0 %v11332_v0 }
 0x77e   :  { %9996 = vmatpush1.bf16.msra.mxu1 %v11334_v1  ;;  %9833 = vmatprep.subr.bf16.mxu0 %v11341_v17 }
 0x77f   :  { %9997 = vmatprep.subr.bf16.mxu1 %v11343_v51 }
 0x781   :  { %9834 = vmatpush1.bf16.msra.mxu0 %v11340_v54 }
 0x782   :  { %9998 = vmatpush1.bf16.msra.mxu1 %v11342_v55  ;;  %9835 = vmatprep.subr.bf16.mxu0 %v11349_v57 }
 0x783   :  { %9999 = vmatprep.subr.bf16.mxu1 %v11351_v62 }
 0x785   :  { %9836 = vmatpush1.bf16.msra.mxu0 %v11348_v2 }
 0x786   :  { %10000 = vmatpush1.bf16.msra.mxu1 %v11350_v4  ;;  %9837 = vmatprep.subr.bf16.mxu0 %v11357_v5 }
 0x787   :  { %10001 = vmatprep.subr.bf16.mxu1 %v11359_v29 }
 0x789   :  { %9838 = vmatpush1.bf16.msra.mxu0 %v11356_v10 }
 0x78a   :  { %10002 = vmatpush1.bf16.msra.mxu1 %v11358_v11  ;;  %9839 = vmatprep.subr.bf16.mxu0 %v11365_v13 }
 0x78b   :  { %10003 = vmatprep.subr.bf16.mxu1 %v11367_v34 }
 0x78d   :  { %9840 = vmatpush1.bf16.msra.mxu0 %v11364_v18 }
 0x78e   :  { %10004 = vmatpush1.bf16.msra.mxu1 %v11366_v19  ;;  %9841 = vmatprep.subr.bf16.mxu0 %v11373_v20 }
 0x78f   :  { %10005 = vmatprep.subr.bf16.mxu1 %v11375_v21 }
 0x791   :  { %9842 = vmatpush1.bf16.msra.mxu0 %v11372_v56 }
 0x792   :  { %10006 = vmatpush1.bf16.msra.mxu1 %v11374_v31  ;;  %9843 = vmatprep.subr.bf16.mxu0 %v11381_v35 }
 0x793   :  { %10007 = vmatprep.subr.bf16.mxu1 %v11383_v59 }
 0x795   :  { %9844 = vmatpush1.bf16.msra.mxu0 %v11380_v61 }
 0x796   :  { %10008 = vmatpush1.bf16.msra.mxu1 %v11382_v49  ;;  %9845 = vmatprep.subr.bf16.mxu0 %v11389_v33 }
 0x797   :  { %10009 = vmatprep.subr.bf16.mxu1 %v11391_v38 }
 0x799   :  { %9846 = vmatpush1.bf16.msra.mxu0 %v11388_v44 }
 0x79a   :  { %10010 = vmatpush1.bf16.msra.mxu1 %v11390_v45  ;;  %9847 = vmatprep.subr.bf16.mxu0 %v11397_v8 }
 0x79b   :  { %10011 = vmatprep.subr.bf16.mxu1 %v11399_v22 }
 0x79d   :  { %9848 = vmatpush1.bf16.msra.mxu0 %v11396_v36 }
 0x79e   :  { %10012 = vmatpush1.bf16.msra.mxu1 %v11398_v46 }
 0x7a0   :  { %9850 = vmatmul.mubr.bf16.vlgmr.msra.gmra.mrb[32].mxu0 %v15463_v37 }
 0x7a1   :  { %10014 = vmatmul.mubr.bf16.vlgmr.msra.gmra.mrb[32].mxu1 %v15463_v37 }
 0x873   :  { %v9851_v0 = vpop.f32.mrb[32].mxu0 }
 0x874   :  { %v10015_v1 = vpop.f32.mrb[32].mxu1  ;;  %v9853_v17 = vpop.f32.mrb[33].mxu0 }
 0x875   :  { %v10047_v51 = vcombine.low %v9851_v0, %v9853_v17  ;;  %v10017_v3 = vpop.f32.mrb[33].mxu1  ;;  %v9855_v32 = vpop.f32.mrb[34].mxu0 }
 0x876   :  { %v10048_v48 = vcombine.low %v10015_v1, %v10017_v3  ;;  %v10019_v53 = vpop.f32.mrb[34].mxu1  ;;  %v9856_v54 = vpop.f32.mrb[35].mxu0 }
 0x877   :  { %v10055_v55 = vrot.slane %v10047_v51, %v16118_v26  ;;  %v10020_v57 = vpop.f32.mrb[35].mxu1 }
 0x878   :  { %v10062_v62 = vrot.slane %v10048_v48, %v16118_v26 }
 0x87a   :  { %v10063_v58 = vcombine.low %v10055_v55, %v10062_v62 }
 0x87c   :  { %10067 = vst [vmem:[%s16253_s13 + $0x8] sm:$0xff] %v10063_v58 }

// kernel: conv_vae_forward.14
= control target key start
LH: loop header
LB: loop body
LE: loop exit
PB: predicated region body
PF: predicated region fallthrough
CT: control target
= control target key end

     0   :  { %vm67_vm0 = vcmask 130048   ;;  %v2395_v0 = vmov 0.0   ;;  %vm1145_vm1 = vmmov 0   ;;  %vm927_vm2 = vcmask 392192   ;;  %s2390_s3 = inlined_call_operand.vmem [shape: bf16[16,48], index: 3, kind: input, shape index: {}]   ;;  %s2391_s0 = inlined_call_operand.vmem [shape: f32[392,16], index: 0, kind: input, shape index: {}]   ;;  %s2392_s1 = inlined_call_operand.vmem [shape: f32[1,16], index: 1, kind: input, shape index: {}]   ;;  %s2393_s2 = inlined_call_operand.vmem [shape: f32[1,16], index: 2, kind: input, shape index: {}]   ;;  %s2394_s4 = inlined_call_operand.vmem [shape: f32[392,48], index: 4, kind: output, shape index: {}]  }
   0x1   :  { %1035 = vmatprep.subr.bf16.mxu0 %v2395_v0  ;;  %v1141_v1 = vld [vmem:[%s2390_s3] sm:$0xff]   ;;  %1037 = vmatprep.mubr.msk.bf16.mxu0 %vm1145_vm1, %v2395_v0  ;;  %v1185_v3 = vld [vmem:[%s2391_s0 + $0x8] sm:$0xff]  ;;  %v1190_v4 = vld [vmem:[%s2391_s0 + $0x10] sm:$0xff] }
   0x2   :  { %v1180_v2 = vld [vmem:[%s2391_s0] sm:$0xff]  ;;  %1137 = vmatprep.subr.bf16.mxu1 %v2395_v0  ;;  %1089 = vmatprep.mubr.msk.bf16.mxu1 %vm1145_vm1, %v2395_v0  ;;  %v1198_v5 = vld [vmem:[%s2391_s0 + $0x18] sm:$0xff]  ;;  %v69_v7 = vsel %vm67_vm0, %v1185_v3, 0.0  ;;  %v71_v8 = vsel %vm67_vm0, %v1190_v4, 0.0  ;;  %v1216_v12 = vld [vmem:[%s2391_s0 + $0x28] sm:$0xff] }
   0x3   :  { %1036 = vmatpush3.bf16.msra.mxu0 %v1141_v1  ;;  %v68_v6 = vsel %vm67_vm0, %v1180_v2, 0.0  ;;  %1138 = vmatpush3.bf16.msra.mxu1 %v1141_v1  ;;  %v1209_v9 = vld [vmem:[%s2391_s0 + $0x20] sm:$0xff]  ;;  %v73_v11 = vsel %vm67_vm0, %v1198_v5, 0.0  ;;  %v1223_v15 = vld [vmem:[%s2391_s0 + $0x30] sm:$0xff]  ;;  %v77_v17 = vsel %vm67_vm0, %v1216_v12, 0.0  ;;  %v1230_v18 = vld [vmem:[%s2391_s0 + $0x38] sm:$0xff] }
   0x4   :  { %v70_v10 = vadd.f32 %v69_v7, %v68_v6  ;;  %v75_v14 = vsel %vm67_vm0, %v1209_v9, 0.0  ;;  %v79_v20 = vsel %vm67_vm0, %v1223_v15, 0.0  ;;  %v1237_v21 = vld [vmem:[%s2391_s0 + $0x40] sm:$0xff]  ;;  %v81_v23 = vsel %vm67_vm0, %v1230_v18, 0.0  ;;  %v1244_v24 = vld [vmem:[%s2391_s0 + $0x48] sm:$0xff]  ;;  %v1251_v27 = vld [vmem:[%s2391_s0 + $0x50] sm:$0xff] }
   0x5   :  { %v83_v26 = vsel %vm67_vm0, %v1237_v21, 0.0  ;;  %v85_v29 = vsel %vm67_vm0, %v1244_v24, 0.0  ;;  %v1258_v30 = vld [vmem:[%s2391_s0 + $0x58] sm:$0xff]  ;;  %v87_v32 = vsel %vm67_vm0, %v1251_v27, 0.0  ;;  %v1265_v33 = vld [vmem:[%s2391_s0 + $0x60] sm:$0xff]  ;;  %v1272_v36 = vld [vmem:[%s2391_s0 + $0x68] sm:$0xff] }
   0x6   :  { %v72_v13 = vadd.f32 %v71_v8, %v70_v10  ;;  %v89_v35 = vsel %vm67_vm0, %v1258_v30, 0.0  ;;  %v91_v38 = vsel %vm67_vm0, %v1265_v33, 0.0  ;;  %v1279_v39 = vld [vmem:[%s2391_s0 + $0x70] sm:$0xff]  ;;  %v93_v41 = vsel %vm67_vm0, %v1272_v36, 0.0  ;;  %v1286_v42 = vld [vmem:[%s2391_s0 + $0x78] sm:$0xff]  ;;  %v1293_v45 = vld [vmem:[%s2391_s0 + $0x80] sm:$0xff] }
   0x7   :  { %v95_v44 = vsel %vm67_vm0, %v1279_v39, 0.0  ;;  %v97_v47 = vsel %vm67_vm0, %v1286_v42, 0.0  ;;  %v1300_v48 = vld [vmem:[%s2391_s0 + $0x88] sm:$0xff]  ;;  %v99_v50 = vsel %vm67_vm0, %v1293_v45, 0.0  ;;  %v1307_v51 = vld [vmem:[%s2391_s0 + $0x90] sm:$0xff]  ;;  %v1314_v54 = vld [vmem:[%s2391_s0 + $0x98] sm:$0xff] }
   0x8   :  { %v74_v16 = vadd.f32 %v73_v11, %v72_v13  ;;  %v101_v53 = vsel %vm67_vm0, %v1300_v48, 0.0  ;;  %v103_v56 = vsel %vm67_vm0, %v1307_v51, 0.0  ;;  %v1321_v57 = vld [vmem:[%s2391_s0 + $0xa0] sm:$0xff]  ;;  %v105_v59 = vsel %vm67_vm0, %v1314_v54, 0.0  ;;  %v1328_v60 = vld [vmem:[%s2391_s0 + $0xa8] sm:$0xff]  ;;  %v1335_v63 = vld [vmem:[%s2391_s0 + $0xb0] sm:$0xff] }
   0x9   :  { %v107_v62 = vsel %vm67_vm0, %v1321_v57, 0.0  ;;  %v109_v6 = vsel %vm67_vm0, %v1328_v60, 0.0  ;;  %v1342_v7 = vld [vmem:[%s2391_s0 + $0xb8] sm:$0xff]  ;;  %v111_v10 = vsel %vm67_vm0, %v1335_v63, 0.0  ;;  %v1349_v11 = vld [vmem:[%s2391_s0 + $0xc0] sm:$0xff] }
   0xa   :  { %v76_v19 = vadd.f32 %v75_v14, %v74_v16  ;;  %v113_v14 = vsel %vm67_vm0, %v1342_v7, 0.0  ;;  %v1356_v16 = vld [vmem:[%s2391_s0 + $0xc8] sm:$0xff] }
   0xc   :  { %v78_v22 = vadd.f32 %v77_v17, %v76_v19  ;;  %v115_v19 = vsel %vm67_vm0, %v1349_v11, 0.0 }
   0xe   :  { %v80_v25 = vadd.f32 %v79_v20, %v78_v22  ;;  %v1363_v20 = vld [vmem:[%s2391_s0 + $0xd0] sm:$0xff] }
  0x10   :  { %v82_v28 = vadd.f32 %v81_v23, %v80_v25  ;;  %v117_v23 = vsel %vm67_vm0, %v1356_v16, 0.0  ;;  %v1370_v25 = vld [vmem:[%s2391_s0 + $0xd8] sm:$0xff] }
  0x12   :  { %v84_v31 = vadd.f32 %v83_v26, %v82_v28  ;;  %v119_v28 = vsel %vm67_vm0, %v1363_v20, 0.0 }
  0x14   :  { %v86_v34 = vadd.f32 %v85_v29, %v84_v31  ;;  %v1377_v29 = vld [vmem:[%s2391_s0 + $0xe0] sm:$0xff] }
  0x16   :  { %v88_v37 = vadd.f32 %v87_v32, %v86_v34  ;;  %v121_v32 = vsel %vm67_vm0, %v1370_v25, 0.0  ;;  %v1384_v34 = vld [vmem:[%s2391_s0 + $0xe8] sm:$0xff] }
  0x18   :  { %v90_v40 = vadd.f32 %v89_v35, %v88_v37  ;;  %v123_v37 = vsel %vm67_vm0, %v1377_v29, 0.0 }
  0x1a   :  { %v92_v43 = vadd.f32 %v91_v38, %v90_v40  ;;  %v1391_v38 = vld [vmem:[%s2391_s0 + $0xf0] sm:$0xff] }
  0x1c   :  { %v94_v46 = vadd.f32 %v93_v41, %v92_v43  ;;  %v125_v41 = vsel %vm67_vm0, %v1384_v34, 0.0  ;;  %v1398_v43 = vld [vmem:[%s2391_s0 + $0xf8] sm:$0xff] }
  0x1e   :  { %v96_v49 = vadd.f32 %v95_v44, %v94_v46  ;;  %v127_v46 = vsel %vm67_vm0, %v1391_v38, 0.0 }
  0x20   :  { %v98_v52 = vadd.f32 %v97_v47, %v96_v49  ;;  %v1405_v47 = vld [vmem:[%s2391_s0 + $0x100] sm:$0xff] }
  0x22   :  { %v100_v55 = vadd.f32 %v99_v50, %v98_v52  ;;  %v129_v50 = vsel %vm67_vm0, %v1398_v43, 0.0  ;;  %v1412_v52 = vld [vmem:[%s2391_s0 + $0x108] sm:$0xff] }
  0x24   :  { %v102_v58 = vadd.f32 %v101_v53, %v100_v55  ;;  %v131_v55 = vsel %vm67_vm0, %v1405_v47, 0.0 }
  0x26   :  { %v104_v61 = vadd.f32 %v103_v56, %v102_v58  ;;  %v1419_v56 = vld [vmem:[%s2391_s0 + $0x110] sm:$0xff] }
  0x28   :  { %v106_v1 = vadd.f32 %v105_v59, %v104_v61  ;;  %v133_v59 = vsel %vm67_vm0, %v1412_v52, 0.0  ;;  %v1426_v61 = vld [vmem:[%s2391_s0 + $0x118] sm:$0xff] }
  0x2a   :  { %v108_v8 = vadd.f32 %v107_v62, %v106_v1  ;;  %v135_v1 = vsel %vm67_vm0, %v1419_v56, 0.0 }
  0x2c   :  { %v110_v13 = vadd.f32 %v109_v6, %v108_v8  ;;  %v1433_v6 = vld [vmem:[%s2391_s0 + $0x120] sm:$0xff] }
  0x2e   :  { %v112_v17 = vadd.f32 %v111_v10, %v110_v13  ;;  %v137_v10 = vsel %vm67_vm0, %v1426_v61, 0.0  ;;  %v1440_v13 = vld [vmem:[%s2391_s0 + $0x128] sm:$0xff] }
  0x30   :  { %v114_v22 = vadd.f32 %v113_v14, %v112_v17  ;;  %v139_v17 = vsel %vm67_vm0, %v1433_v6, 0.0 }
  0x32   :  { %v116_v26 = vadd.f32 %v115_v19, %v114_v22  ;;  %v1447_v19 = vld [vmem:[%s2391_s0 + $0x130] sm:$0xff] }
  0x34   :  { %v118_v31 = vadd.f32 %v117_v23, %v116_v26  ;;  %v141_v23 = vsel %vm67_vm0, %v1440_v13, 0.0  ;;  %v1454_v26 = vld [vmem:[%s2391_s0 + $0x138] sm:$0xff] }
  0x36   :  { %v120_v35 = vadd.f32 %v119_v28, %v118_v31  ;;  %v143_v31 = vsel %vm67_vm0, %v1447_v19, 0.0 }
  0x38   :  { %v122_v40 = vadd.f32 %v121_v32, %v120_v35  ;;  %v1461_v32 = vld [vmem:[%s2391_s0 + $0x140] sm:$0xff] }
  0x3a   :  { %v124_v44 = vadd.f32 %v123_v37, %v122_v40  ;;  %v145_v37 = vsel %vm67_vm0, %v1454_v26, 0.0  ;;  %v1468_v40 = vld [vmem:[%s2391_s0 + $0x148] sm:$0xff] }
  0x3c   :  { %v126_v49 = vadd.f32 %v125_v41, %v124_v44  ;;  %v147_v44 = vsel %vm67_vm0, %v1461_v32, 0.0 }
  0x3e   :  { %v128_v53 = vadd.f32 %v127_v46, %v126_v49  ;;  %v1475_v46 = vld [vmem:[%s2391_s0 + $0x150] sm:$0xff] }
  0x40   :  { %v130_v58 = vadd.f32 %v129_v50, %v128_v53  ;;  %v149_v50 = vsel %vm67_vm0, %v1468_v40, 0.0  ;;  %v1482_v53 = vld [vmem:[%s2391_s0 + $0x158] sm:$0xff] }
  0x42   :  { %v132_v62 = vadd.f32 %v131_v55, %v130_v58  ;;  %v151_v58 = vsel %vm67_vm0, %v1475_v46, 0.0 }
  0x44   :  { %v134_v8 = vadd.f32 %v133_v59, %v132_v62  ;;  %v1489_v59 = vld [vmem:[%s2391_s0 + $0x160] sm:$0xff] }
  0x46   :  { %v136_v14 = vadd.f32 %v135_v1, %v134_v8  ;;  %v153_v1 = vsel %vm67_vm0, %v1482_v53, 0.0  ;;  %v1496_v8 = vld [vmem:[%s2391_s0 + $0x168] sm:$0xff] }
  0x48   :  { %v138_v22 = vadd.f32 %v137_v10, %v136_v14  ;;  %v155_v14 = vsel %vm67_vm0, %v1489_v59, 0.0 }
  0x4a   :  { %v140_v28 = vadd.f32 %v139_v17, %v138_v22  ;;  %v1503_v17 = vld [vmem:[%s2391_s0 + $0x170] sm:$0xff] }
  0x4b   :  { %2404 = vst [vmem:[#allocation2_spill] sm:$0xff] %v1503_v17 }
  0x4c   :  { %v142_v35 = vadd.f32 %v141_v23, %v140_v28  ;;  %v157_v23 = vsel %vm67_vm0, %v1496_v8, 0.0  ;;  %v1510_v28 = vld [vmem:[%s2391_s0 + $0x178] sm:$0xff] }
  0x4e   :  { %v144_v41 = vadd.f32 %v143_v31, %v142_v35  ;;  %v159_v35 = vsel %vm67_vm0, %v1503_v17, 0.0 }
  0x50   :  { %v146_v49 = vadd.f32 %v145_v37, %v144_v41  ;;  %v1517_v37 = vld [vmem:[%s2391_s0 + $0x180] sm:$0xff] }
  0x52   :  { %v148_v55 = vadd.f32 %v147_v44, %v146_v49  ;;  %v161_v44 = vsel %vm67_vm0, %v1510_v28, 0.0 }
  0x54   :  { %v150_v62 = vadd.f32 %v149_v50, %v148_v55  ;;  %v163_v50 = vsel %vm67_vm0, %v1517_v37, 0.0 }
  0x56   :  { %v152_v10 = vadd.f32 %v151_v58, %v150_v62 }
  0x58   :  { %v154_v22 = vadd.f32 %v153_v1, %v152_v10 }
  0x5a   :  { %v156_v31 = vadd.f32 %v155_v14, %v154_v22 }
  0x5c   :  { %v158_v41 = vadd.f32 %v157_v23, %v156_v31 }
  0x5e   :  { %v160_v49 = vadd.f32 %v159_v35, %v158_v41 }
  0x60   :  { %v162_v55 = vadd.f32 %v161_v44, %v160_v49 }
  0x62   :  { %v164_v58 = vadd.f32 %v163_v50, %v162_v55 }
  0x64   :  { %v165_v62 = vrot.slane %v164_v58, 4 }
  0x66   :  { %v166_v1 = vadd.f32 %v165_v62, %v164_v58 }
  0x68   :  { %v167_v10 = vrot.slane %v166_v1, 2 }
  0x6a   :  { %v168_v14 = vadd.f32 %v167_v10, %v166_v1 }
  0x6c   :  { %v169_v22 = vrot.slane %v168_v14, 1 }
  0x6e   :  { %v170_v0 = vadd.f32 %v169_v22, %v168_v14 }
  0x70   :  { %v1523_v17 = vmul.f32 0.0025510204, %v170_v0 }
  0x72   :  { %v1527_v23 = vsub.f32 %v1180_v2, %v1523_v17  ;;  %v1531_v31 = vsub.f32 %v1185_v3, %v1523_v17  ;;  %v1535_v35 = vsub.f32 %v1190_v4, %v1523_v17  ;;  %v1539_v41 = vsub.f32 %v1198_v5, %v1523_v17 }
  0x73   :  { %v1543_v0 = vsub.f32 %v1209_v9, %v1523_v17  ;;  %v1553_v4 = vsub.f32 %v1216_v12, %v1523_v17  ;;  %v1559_v9 = vsub.f32 %v1223_v15, %v1523_v17  ;;  %v1568_v12 = vsub.f32 %v1230_v18, %v1523_v17 }
  0x74   :  { %v222_v2 = vmul.f32 %v1527_v23, %v1527_v23  ;;  %v223_v44 = vmul.f32 %v1531_v31, %v1531_v31  ;;  %v224_v3 = vmul.f32 %v1535_v35, %v1535_v35  ;;  %v225_v5 = vmul.f32 %v1539_v41, %v1539_v41 }
  0x75   :  { %v226_v49 = vmul.f32 %v1543_v0, %v1543_v0  ;;  %v227_v1 = vmul.f32 %v1553_v4, %v1553_v4  ;;  %v1575_v14 = vsub.f32 %v1237_v21, %v1523_v17  ;;  %v228_v22 = vmul.f32 %v1559_v9, %v1559_v9 }
  0x76   :  { %v271_v50 = vsel %vm67_vm0, %v222_v2, 0.0  ;;  %v272_v55 = vsel %vm67_vm0, %v223_v44, 0.0  ;;  %v274_v62 = vsel %vm67_vm0, %v224_v3, 0.0  ;;  %v276_v15 = vsel %vm67_vm0, %v225_v5, 0.0 }
  0x77   :  { %v273_v58 = vadd.f32 %v272_v55, %v271_v50  ;;  %v278_v2 = vsel %vm67_vm0, %v226_v49, 0.0  ;;  %v1582_v18 = vsub.f32 %v1244_v24, %v1523_v17  ;;  %v229_v3 = vmul.f32 %v1568_v12, %v1568_v12 }
  0x78   :  { %v280_v5 = vsel %vm67_vm0, %v227_v1, 0.0  ;;  %v1589_v21 = vsub.f32 %v1251_v27, %v1523_v17  ;;  %v230_v55 = vmul.f32 %v1575_v14, %v1575_v14  ;;  %v282_v49 = vsel %vm67_vm0, %v228_v22, 0.0 }
  0x79   :  { %v275_v10 = vadd.f32 %v274_v62, %v273_v58  ;;  %v1596_v24 = vsub.f32 %v1258_v30, %v1523_v17  ;;  %v231_v62 = vmul.f32 %v1582_v18, %v1582_v18  ;;  %v284_v1 = vsel %vm67_vm0, %v229_v3, 0.0 }
  0x7a   :  { %v1603_v27 = vsub.f32 %v1265_v33, %v1523_v17  ;;  %v286_v22 = vsel %vm67_vm0, %v230_v55, 0.0  ;;  %v1610_v30 = vsub.f32 %v1272_v36, %v1523_v17  ;;  %v1617_v33 = vsub.f32 %v1279_v39, %v1523_v17 }
  0x7b   :  { %v277_v44 = vadd.f32 %v276_v15, %v275_v10  ;;  %v232_v10 = vmul.f32 %v1589_v21, %v1589_v21  ;;  %v288_v3 = vsel %vm67_vm0, %v231_v62, 0.0  ;;  %v1624_v36 = vsub.f32 %v1286_v42, %v1523_v17 }
  0x7c   :  { %v1631_v39 = vsub.f32 %v1293_v45, %v1523_v17  ;;  %v1638_v42 = vsub.f32 %v1300_v48, %v1523_v17  ;;  %v1645_v45 = vsub.f32 %v1307_v51, %v1523_v17  ;;  %v1652_v48 = vsub.f32 %v1314_v54, %v1523_v17 }
  0x7d   :  { %v279_v50 = vadd.f32 %v278_v2, %v277_v44  ;;  %v233_v44 = vmul.f32 %v1596_v24, %v1596_v24  ;;  %v290_v55 = vsel %vm67_vm0, %v232_v10, 0.0  ;;  %v1659_v51 = vsub.f32 %v1321_v57, %v1523_v17 }
  0x7e   :  { %v1666_v54 = vsub.f32 %v1328_v60, %v1523_v17  ;;  %v1673_v57 = vsub.f32 %v1335_v63, %v1523_v17  ;;  %v1680_v60 = vsub.f32 %v1342_v7, %v1523_v17  ;;  %v1687_v63 = vsub.f32 %v1349_v11, %v1523_v17 }
  0x7f   :  { %v281_v58 = vadd.f32 %v280_v5, %v279_v50  ;;  %v234_v50 = vmul.f32 %v1603_v27, %v1603_v27  ;;  %v292_v62 = vsel %vm67_vm0, %v233_v44, 0.0  ;;  %v1694_v7 = vsub.f32 %v1356_v16, %v1523_v17 }
  0x80   :  { %2405 = vst [vmem:[#allocation3_spill] sm:$0xff] %v1673_v57  ;;  %2406 = vst [vmem:[#allocation4_spill] sm:$0xff] %v1680_v60  ;;  %v1701_v11 = vsub.f32 %v1363_v20, %v1523_v17  ;;  %v1708_v16 = vsub.f32 %v1370_v25, %v1523_v17  ;;  %v1715_v20 = vsub.f32 %v1377_v29, %v1523_v17 }
  0x81   :  { %v283_v15 = vadd.f32 %v282_v49, %v281_v58  ;;  %v235_v58 = vmul.f32 %v1610_v30, %v1610_v30  ;;  %v294_v10 = vsel %vm67_vm0, %v234_v50, 0.0  ;;  %2407 = vst [vmem:[#allocation5_spill] sm:$0xff] %v1687_v63  ;;  %2408 = vst [vmem:[#allocation6_spill] sm:$0xff] %v1694_v7  ;;  %v1722_v25 = vsub.f32 %v1384_v34, %v1523_v17 }
  0x82   :  { %v1729_v29 = vsub.f32 %v1391_v38, %v1523_v17  ;;  %v1736_v34 = vsub.f32 %v1398_v43, %v1523_v17  ;;  %v1743_v38 = vsub.f32 %v1405_v47, %v1523_v17  ;;  %v1750_v43 = vsub.f32 %v1412_v52, %v1523_v17 }
  0x83   :  { %v285_v2 = vadd.f32 %v284_v1, %v283_v15  ;;  %v236_v15 = vmul.f32 %v1617_v33, %v1617_v33  ;;  %v296_v44 = vsel %vm67_vm0, %v235_v58, 0.0  ;;  %v1757_v47 = vsub.f32 %v1419_v56, %v1523_v17 }
  0x84   :  { %v1764_v52 = vsub.f32 %v1426_v61, %v1523_v17  ;;  %v1771_v56 = vsub.f32 %v1433_v6, %v1523_v17  ;;  %v1778_v61 = vsub.f32 %v1440_v13, %v1523_v17  ;;  %v1785_v6 = vsub.f32 %v1447_v19, %v1523_v17 }
  0x85   :  { %v287_v5 = vadd.f32 %v286_v22, %v285_v2  ;;  %v237_v2 = vmul.f32 %v1624_v36, %v1624_v36  ;;  %v298_v50 = vsel %vm67_vm0, %v236_v15, 0.0  ;;  %v1792_v13 = vsub.f32 %v1454_v26, %v1523_v17 }
  0x86   :  { %v1799_v19 = vsub.f32 %v1461_v32, %v1523_v17  ;;  %v1806_v26 = vsub.f32 %v1468_v40, %v1523_v17  ;;  %v1813_v32 = vsub.f32 %v1475_v46, %v1523_v17  ;;  %v1820_v40 = vsub.f32 %v1482_v53, %v1523_v17 }
  0x87   :  { %v289_v49 = vadd.f32 %v288_v3, %v287_v5  ;;  %v238_v5 = vmul.f32 %v1631_v39, %v1631_v39  ;;  %v300_v58 = vsel %vm67_vm0, %v237_v2, 0.0  ;;  %v1827_v46 = vsub.f32 %v1489_v59, %v1523_v17 }
  0x88   :  { %v1834_v53 = vsub.f32 %v1496_v8, %v1523_v17  ;;  %v1848_v8 = vsub.f32 %v1510_v28, %v1523_v17 }
  0x89   :  { %v291_v1 = vadd.f32 %v290_v55, %v289_v49  ;;  %v239_v49 = vmul.f32 %v1638_v42, %v1638_v42  ;;  %v302_v15 = vsel %vm67_vm0, %v238_v5, 0.0 }
  0x8a   :  { %v269_v28 = vmul.f32 %v1848_v8, %v1848_v8 }
  0x8b   :  { %v293_v22 = vadd.f32 %v292_v62, %v291_v1  ;;  %v240_v1 = vmul.f32 %v1645_v45, %v1645_v45  ;;  %v304_v2 = vsel %vm67_vm0, %v239_v49, 0.0 }
  0x8d   :  { %v295_v3 = vadd.f32 %v294_v10, %v293_v22  ;;  %v241_v22 = vmul.f32 %v1652_v48, %v1652_v48  ;;  %v306_v5 = vsel %vm67_vm0, %v240_v1, 0.0 }
  0x8f   :  { %v297_v55 = vadd.f32 %v296_v44, %v295_v3  ;;  %v242_v3 = vmul.f32 %v1659_v51, %v1659_v51  ;;  %v308_v49 = vsel %vm67_vm0, %v241_v22, 0.0 }
  0x91   :  { %v299_v62 = vadd.f32 %v298_v50, %v297_v55  ;;  %v243_v55 = vmul.f32 %v1666_v54, %v1666_v54  ;;  %v310_v1 = vsel %vm67_vm0, %v242_v3, 0.0 }
  0x93   :  { %v301_v10 = vadd.f32 %v300_v58, %v299_v62  ;;  %v244_v62 = vmul.f32 %v1673_v57, %v1673_v57  ;;  %v312_v22 = vsel %vm67_vm0, %v243_v55, 0.0 }
  0x95   :  { %v303_v44 = vadd.f32 %v302_v15, %v301_v10  ;;  %v245_v10 = vmul.f32 %v1680_v60, %v1680_v60  ;;  %v314_v3 = vsel %vm67_vm0, %v244_v62, 0.0 }
  0x97   :  { %v305_v50 = vadd.f32 %v304_v2, %v303_v44  ;;  %v246_v44 = vmul.f32 %v1687_v63, %v1687_v63  ;;  %v316_v55 = vsel %vm67_vm0, %v245_v10, 0.0 }
  0x99   :  { %v307_v58 = vadd.f32 %v306_v5, %v305_v50  ;;  %v247_v50 = vmul.f32 %v1694_v7, %v1694_v7  ;;  %v318_v62 = vsel %vm67_vm0, %v246_v44, 0.0 }
  0x9b   :  { %v309_v15 = vadd.f32 %v308_v49, %v307_v58  ;;  %v248_v58 = vmul.f32 %v1701_v11, %v1701_v11  ;;  %v320_v10 = vsel %vm67_vm0, %v247_v50, 0.0 }
  0x9d   :  { %v311_v2 = vadd.f32 %v310_v1, %v309_v15  ;;  %v249_v15 = vmul.f32 %v1708_v16, %v1708_v16  ;;  %v322_v44 = vsel %vm67_vm0, %v248_v58, 0.0 }
  0x9f   :  { %v313_v5 = vadd.f32 %v312_v22, %v311_v2  ;;  %v250_v2 = vmul.f32 %v1715_v20, %v1715_v20  ;;  %v324_v50 = vsel %vm67_vm0, %v249_v15, 0.0 }
  0xa1   :  { %v315_v49 = vadd.f32 %v314_v3, %v313_v5  ;;  %v251_v5 = vmul.f32 %v1722_v25, %v1722_v25  ;;  %v326_v58 = vsel %vm67_vm0, %v250_v2, 0.0 }
  0xa3   :  { %v317_v1 = vadd.f32 %v316_v55, %v315_v49  ;;  %v252_v49 = vmul.f32 %v1729_v29, %v1729_v29  ;;  %v328_v15 = vsel %vm67_vm0, %v251_v5, 0.0 }
  0xa5   :  { %v319_v22 = vadd.f32 %v318_v62, %v317_v1  ;;  %v253_v1 = vmul.f32 %v1736_v34, %v1736_v34  ;;  %v330_v2 = vsel %vm67_vm0, %v252_v49, 0.0 }
  0xa7   :  { %v321_v3 = vadd.f32 %v320_v10, %v319_v22  ;;  %v254_v22 = vmul.f32 %v1743_v38, %v1743_v38  ;;  %v332_v5 = vsel %vm67_vm0, %v253_v1, 0.0 }
  0xa9   :  { %v323_v55 = vadd.f32 %v322_v44, %v321_v3  ;;  %v255_v3 = vmul.f32 %v1750_v43, %v1750_v43  ;;  %v334_v49 = vsel %vm67_vm0, %v254_v22, 0.0 }
  0xab   :  { %v325_v62 = vadd.f32 %v324_v50, %v323_v55  ;;  %v256_v55 = vmul.f32 %v1757_v47, %v1757_v47  ;;  %v336_v1 = vsel %vm67_vm0, %v255_v3, 0.0 }
  0xad   :  { %v327_v10 = vadd.f32 %v326_v58, %v325_v62  ;;  %v257_v62 = vmul.f32 %v1764_v52, %v1764_v52  ;;  %v338_v22 = vsel %vm67_vm0, %v256_v55, 0.0 }
  0xaf   :  { %v329_v44 = vadd.f32 %v328_v15, %v327_v10  ;;  %v258_v10 = vmul.f32 %v1771_v56, %v1771_v56  ;;  %v340_v3 = vsel %vm67_vm0, %v257_v62, 0.0 }
  0xb1   :  { %v331_v50 = vadd.f32 %v330_v2, %v329_v44  ;;  %v259_v44 = vmul.f32 %v1778_v61, %v1778_v61  ;;  %v342_v55 = vsel %vm67_vm0, %v258_v10, 0.0 }
  0xb3   :  { %v333_v58 = vadd.f32 %v332_v5, %v331_v50  ;;  %v260_v50 = vmul.f32 %v1785_v6, %v1785_v6  ;;  %v344_v62 = vsel %vm67_vm0, %v259_v44, 0.0 }
  0xb5   :  { %v335_v15 = vadd.f32 %v334_v49, %v333_v58  ;;  %v261_v58 = vmul.f32 %v1792_v13, %v1792_v13  ;;  %v346_v10 = vsel %vm67_vm0, %v260_v50, 0.0 }
  0xb7   :  { %v337_v2 = vadd.f32 %v336_v1, %v335_v15  ;;  %v262_v15 = vmul.f32 %v1799_v19, %v1799_v19  ;;  %v348_v44 = vsel %vm67_vm0, %v261_v58, 0.0 }
  0xb9   :  { %v339_v5 = vadd.f32 %v338_v22, %v337_v2  ;;  %v263_v2 = vmul.f32 %v1806_v26, %v1806_v26  ;;  %v350_v50 = vsel %vm67_vm0, %v262_v15, 0.0 }
  0xbb   :  { %v341_v49 = vadd.f32 %v340_v3, %v339_v5  ;;  %v264_v5 = vmul.f32 %v1813_v32, %v1813_v32  ;;  %v352_v58 = vsel %vm67_vm0, %v263_v2, 0.0 }
  0xbd   :  { %v343_v1 = vadd.f32 %v342_v55, %v341_v49  ;;  %v265_v49 = vmul.f32 %v1820_v40, %v1820_v40  ;;  %v354_v15 = vsel %vm67_vm0, %v264_v5, 0.0 }
  0xbf   :  { %v345_v22 = vadd.f32 %v344_v62, %v343_v1  ;;  %v2409_v1 = vld [vmem:[#allocation2_spill] sm:$0xff]  ;;  %v356_v2 = vsel %vm67_vm0, %v265_v49, 0.0 }
  0xc0   :  { %v1841_v59 = vsub.f32 %v2409_v1, %v1523_v17  ;;  %2410 = vst [vmem:[#allocation2_spill] sm:$0xff] %v1848_v8 }
  0xc1   :  { %v347_v3 = vadd.f32 %v346_v10, %v345_v22  ;;  %v266_v10 = vmul.f32 %v1827_v46, %v1827_v46 }
  0xc3   :  { %v349_v55 = vadd.f32 %v348_v44, %v347_v3  ;;  %v267_v44 = vmul.f32 %v1834_v53, %v1834_v53  ;;  %v358_v5 = vsel %vm67_vm0, %v266_v10, 0.0 }
  0xc5   :  { %v351_v62 = vadd.f32 %v350_v50, %v349_v55  ;;  %v1855_v50 = vsub.f32 %v1517_v37, %v1523_v17  ;;  %v268_v55 = vmul.f32 %v1841_v59, %v1841_v59  ;;  %v364_v17 = vsel %vm67_vm0, %v269_v28, 0.0 }
  0xc7   :  { %v353_v22 = vadd.f32 %v352_v58, %v351_v62  ;;  %2411 = vst [vmem:[#allocation7_spill] sm:$0xff] %v1855_v50  ;;  %v360_v62 = vsel %vm67_vm0, %v267_v44, 0.0  ;;  %v270_v49 = vmul.f32 %v1855_v50, %v1855_v50 }
  0xc9   :  { %v355_v3 = vadd.f32 %v354_v15, %v353_v22  ;;  %v362_v15 = vsel %vm67_vm0, %v268_v55, 0.0  ;;  %v366_v7 = vsel %vm67_vm0, %v270_v49, 0.0  ;;  %v1873_v55 = vld [vmem:[%s2392_s1] ss:$0 sm:$0xff] }
  0xcb   :  { %v357_v58 = vadd.f32 %v356_v2, %v355_v3 }
  0xcd   :  { %v359_v1 = vadd.f32 %v358_v5, %v357_v58 }
  0xcf   :  { %v361_v22 = vadd.f32 %v360_v62, %v359_v1 }
  0xd1   :  { %v363_v37 = vadd.f32 %v362_v15, %v361_v22 }
  0xd3   :  { %v365_v63 = vadd.f32 %v364_v17, %v363_v37 }
  0xd5   :  { %v367_v10 = vadd.f32 %v366_v7, %v365_v63  ;;  %v1886_v7 = vld [vmem:[%s2393_s2] ss:$0 sm:$0xff] }
  0xd7   :  { %v368_v2 = vrot.slane %v367_v10, 4 }
  0xd9   :  { %v369_v3 = vadd.f32 %v368_v2, %v367_v10 }
  0xdb   :  { %v370_v60 = vrot.slane %v369_v3, 2 }
  0xdd   :  { %v371_v57 = vadd.f32 %v370_v60, %v369_v3 }
  0xdf   :  { %v372_v8 = vrot.slane %v371_v57, 1 }
  0xe1   :  { %v373_v44 = vadd.f32 %v372_v8, %v371_v57 }
  0xe3   :  { %v374_v5 = vmul.f32 0.0025510204, %v373_v44 }
  0xe5   :  { %v375_v58 = vadd.f32 1e-05, %v374_v5 }
  0xe7   :  { %1142 = vrsqrt.f32 %v375_v58 }
  0xf1   :  { %v1868_v50 = vpop.eup %1142 }
  0xf2   :  { %v377_v28 = vmul.f32 %v1868_v50, %v1527_v23  ;;  %v378_v63 = vmul.f32 %v1868_v50, %v1531_v31  ;;  %v403_v60 = vmul.f32 %v1868_v50, %v1701_v11  ;;  %v404_v57 = vmul.f32 %v1868_v50, %v1708_v16 }
  0xf3   :  { %v379_v8 = vmul.f32 %v1868_v50, %v1535_v35  ;;  %v380_v23 = vmul.f32 %v1868_v50, %v1539_v41  ;;  %v405_v31 = vmul.f32 %v1868_v50, %v1715_v20  ;;  %v406_v11 = vmul.f32 %v1868_v50, %v1722_v25 }
  0xf4   :  { %v433_v62 = vmul.f32 %v1873_v55, %v377_v28  ;;  %v434_v16 = vmul.f32 %v1873_v55, %v378_v63  ;;  %v459_v1 = vmul.f32 %v1873_v55, %v403_v60  ;;  %v460_v49 = vmul.f32 %v1873_v55, %v404_v57 }
  0xf5   :  { %v435_v15 = vmul.f32 %v1873_v55, %v379_v8  ;;  %v436_v35 = vmul.f32 %v1873_v55, %v380_v23  ;;  %v461_v41 = vmul.f32 %v1873_v55, %v405_v31  ;;  %v462_v22 = vmul.f32 %v1873_v55, %v406_v11 }
  0xf6   :  { %v489_v20 = vadd.f32 %v1886_v7, %v433_v62  ;;  %v490_v25 = vadd.f32 %v1886_v7, %v434_v16  ;;  %v515_v17 = vadd.f32 %v1886_v7, %v459_v1  ;;  %v516_v37 = vadd.f32 %v1886_v7, %v460_v49 }
  0xf7   :  { %v491_v10 = vadd.f32 %v1886_v7, %v435_v15  ;;  %v492_v2 = vadd.f32 %v1886_v7, %v436_v35  ;;  %v517_v3 = vadd.f32 %v1886_v7, %v461_v41  ;;  %v518_v44 = vadd.f32 %v1886_v7, %v462_v22 }
  0xf8   :  { %v538_v5 = vmax.f32 %v489_v20, 0.0  ;;  %v539_v58 = vmax.f32 %v490_v25, 0.0  ;;  %v564_v28 = vmax.f32 %v515_v17, 0.0  ;;  %v565_v63 = vmax.f32 %v516_v37, 0.0 }
  0xf9   :  { %v540_v60 = vmax.f32 %v491_v10, 0.0  ;;  %v381_v23 = vmul.f32 %v1868_v50, %v1543_v0  ;;  %v382_v31 = vmul.f32 %v1868_v50, %v1553_v4  ;;  %v541_v11 = vmax.f32 %v492_v2, 0.0 }
  0xfa   :  { %v587_v57 = vpack.c.bf16 %v539_v58, %v538_v5  ;;  %v600_v8 = vpack.c.bf16 %v565_v63, %v564_v28  ;;  %v566_v62 = vmax.f32 %v517_v3, 0.0  ;;  %v407_v16 = vmul.f32 %v1868_v50, %v1729_v29 }
  0xfb   :  { %v408_v1 = vmul.f32 %v1868_v50, %v1736_v34  ;;  %v567_v49 = vmax.f32 %v518_v44, 0.0  ;;  %v437_v15 = vmul.f32 %v1873_v55, %v381_v23  ;;  %v438_v0 = vmul.f32 %v1873_v55, %v382_v31 }
  0xfc   :  { %1038 = vmatmul.mubr.msk.bf16.vlgmr.msra.gmra.mrb[0].mxu0 %vm67_vm0, %v587_v57  ;;  %1090 = vmatmul.mubr.msk.bf16.vlgmr.msra.gmra.mrb[0].mxu1 %vm67_vm0, %v600_v8  ;;  %v383_v4 = vmul.f32 %v1868_v50, %v1559_v9  ;;  %v2412_v35 = vmov 0.0   ;;  %v463_v29 = vmul.f32 %v1873_v55, %v407_v16  ;;  %v384_v41 = vmul.f32 %v1868_v50, %v1568_v12 }
  0xfd   :  { %1041 = vmatprep.mubr.msk.bf16.mxu0 %vm1145_vm1, %v2412_v35  ;;  %1093 = vmatprep.mubr.msk.bf16.mxu1 %vm1145_vm1, %v2412_v35  ;;  %v464_v34 = vmul.f32 %v1873_v55, %v408_v1  ;;  %v493_v22 = vadd.f32 %v1886_v7, %v437_v15  ;;  %v494_v20 = vadd.f32 %v1886_v7, %v438_v0 }
  0xfe   :  { %v439_v25 = vmul.f32 %v1873_v55, %v383_v4  ;;  %v409_v9 = vmul.f32 %v1868_v50, %v1743_v38  ;;  %v519_v17 = vadd.f32 %v1886_v7, %v463_v29  ;;  %v440_v37 = vmul.f32 %v1873_v55, %v384_v41 }
  0xff   :  { %v410_v10 = vmul.f32 %v1868_v50, %v1750_v43  ;;  %v588_v2 = vpack.c.bf16 %v541_v11, %v540_v60  ;;  %v601_v3 = vpack.c.bf16 %v567_v49, %v566_v62  ;;  %v520_v12 = vadd.f32 %v1886_v7, %v464_v34 }
 0x100   :  { %v465_v44 = vmul.f32 %v1873_v55, %v409_v9  ;;  %v542_v5 = vmax.f32 %v493_v22, 0.0  ;;  %v543_v58 = vmax.f32 %v494_v20, 0.0  ;;  %v495_v28 = vadd.f32 %v1886_v7, %v439_v25 }
 0x101   :  { %v466_v63 = vmul.f32 %v1873_v55, %v410_v10  ;;  %v496_v38 = vadd.f32 %v1886_v7, %v440_v37  ;;  %v385_v57 = vmul.f32 %v1868_v50, %v1575_v14  ;;  %v568_v8 = vmax.f32 %v519_v17, 0.0 }
 0x102   :  { %v521_v43 = vadd.f32 %v1886_v7, %v465_v44  ;;  %v386_v23 = vmul.f32 %v1868_v50, %v1582_v18  ;;  %v569_v31 = vmax.f32 %v520_v12, 0.0  ;;  %v411_v62 = vmul.f32 %v1868_v50, %v1757_v47 }
 0x103   :  { %v522_v60 = vadd.f32 %v1886_v7, %v466_v63  ;;  %v441_v11 = vmul.f32 %v1873_v55, %v385_v57  ;;  %v412_v14 = vmul.f32 %v1868_v50, %v1764_v52  ;;  %v589_v16 = vpack.c.bf16 %v543_v58, %v542_v5 }
 0x104   :  { %1042 = vmatmul.mubr.msk.bf16.gmra.mrb[4].mxu0 %vm67_vm0, %v588_v2  ;;  %1094 = vmatmul.mubr.msk.bf16.gmra.mrb[4].mxu1 %vm67_vm0, %v601_v3  ;;  %v544_v18 = vmax.f32 %v495_v28, 0.0  ;;  %v442_v1 = vmul.f32 %v1873_v55, %v386_v23  ;;  %v387_v49 = vmul.f32 %v1868_v50, %v1589_v21  ;;  %v545_v15 = vmax.f32 %v496_v38, 0.0 }
 0x105   :  { %1045 = vmatprep.mubr.msk.bf16.mxu0 %vm1145_vm1, %v2412_v35  ;;  %1097 = vmatprep.mubr.msk.bf16.mxu1 %vm1145_vm1, %v2412_v35  ;;  %v467_v0 = vmul.f32 %v1873_v55, %v411_v62  ;;  %v468_v47 = vmul.f32 %v1873_v55, %v412_v14  ;;  %v388_v52 = vmul.f32 %v1868_v50, %v1596_v24  ;;  %v570_v4 = vmax.f32 %v521_v43, 0.0 }
 0x106   :  { %v571_v29 = vmax.f32 %v522_v60, 0.0  ;;  %v443_v34 = vmul.f32 %v1873_v55, %v387_v49  ;;  %v413_v41 = vmul.f32 %v1868_v50, %v1771_v56  ;;  %v602_v22 = vpack.c.bf16 %v569_v31, %v568_v8 }
 0x107   :  { %v497_v20 = vadd.f32 %v1886_v7, %v441_v11  ;;  %v498_v21 = vadd.f32 %v1886_v7, %v442_v1  ;;  %v444_v25 = vmul.f32 %v1873_v55, %v388_v52  ;;  %v523_v9 = vadd.f32 %v1886_v7, %v467_v0 }
 0x108   :  { %v414_v17 = vmul.f32 %v1868_v50, %v1778_v61  ;;  %v469_v24 = vmul.f32 %v1873_v55, %v413_v41  ;;  %v590_v37 = vpack.c.bf16 %v545_v15, %v544_v18  ;;  %v524_v10 = vadd.f32 %v1886_v7, %v468_v47 }
 0x109   :  { %v499_v2 = vadd.f32 %v1886_v7, %v443_v34  ;;  %v389_v56 = vmul.f32 %v1868_v50, %v1603_v27  ;;  %v603_v3 = vpack.c.bf16 %v571_v29, %v570_v4  ;;  %v500_v12 = vadd.f32 %v1886_v7, %v444_v25 }
 0x10a   :  { %v470_v44 = vmul.f32 %v1873_v55, %v414_v17  ;;  %v525_v5 = vadd.f32 %v1886_v7, %v469_v24  ;;  %v546_v61 = vmax.f32 %v497_v20, 0.0  ;;  %v547_v58 = vmax.f32 %v498_v21, 0.0 }
 0x10b   :  { %v390_v28 = vmul.f32 %v1868_v50, %v1610_v30  ;;  %v445_v63 = vmul.f32 %v1873_v55, %v389_v56  ;;  %v572_v27 = vmax.f32 %v523_v9, 0.0  ;;  %v415_v57 = vmul.f32 %v1868_v50, %v1785_v6 }
 0x10c   :  { %1046 = vmatmul.mubr.msk.bf16.gmra.mrb[8].mxu0 %vm67_vm0, %v589_v16  ;;  %1098 = vmatmul.mubr.msk.bf16.gmra.mrb[8].mxu1 %vm67_vm0, %v602_v22  ;;  %v526_v38 = vadd.f32 %v1886_v7, %v470_v44  ;;  %v416_v8 = vmul.f32 %v1868_v50, %v1792_v13  ;;  %v573_v43 = vmax.f32 %v524_v10, 0.0  ;;  %v548_v60 = vmax.f32 %v499_v2, 0.0 }
 0x10d   :  { %1049 = vmatprep.mubr.msk.bf16.mxu0 %vm1145_vm1, %v2412_v35  ;;  %1101 = vmatprep.mubr.msk.bf16.mxu1 %vm1145_vm1, %v2412_v35  ;;  %v446_v30 = vmul.f32 %v1873_v55, %v390_v28  ;;  %v391_v23 = vmul.f32 %v1868_v50, %v1617_v33  ;;  %v549_v31 = vmax.f32 %v500_v12, 0.0  ;;  %v574_v11 = vmax.f32 %v525_v5, 0.0 }
 0x10e   :  { %v471_v62 = vmul.f32 %v1873_v55, %v415_v57  ;;  %v472_v14 = vmul.f32 %v1873_v55, %v416_v8  ;;  %v575_v16 = vmax.f32 %v526_v38, 0.0  ;;  %v2009_v18 = vadd.f32 %v1886_v7, %v445_v63 }
 0x10f   :  { %v392_v6 = vmul.f32 %v1868_v50, %v1624_v36  ;;  %v447_v13 = vmul.f32 %v1873_v55, %v391_v23  ;;  %v2015_v1 = vadd.f32 %v1886_v7, %v446_v30  ;;  %v591_v49 = vpack.c.bf16 %v547_v58, %v546_v61 }
 0x110   :  { %v2018_v33 = vadd.f32 %v1886_v7, %v471_v62  ;;  %v417_v15 = vmul.f32 %v1868_v50, %v1799_v19  ;;  %v604_v0 = vpack.c.bf16 %v573_v43, %v572_v27  ;;  %v2022_v47 = vpack.c.bf16 %v549_v31, %v548_v60 }
 0x111   :  { %v2025_v52 = vadd.f32 %v1886_v7, %v472_v14  ;;  %v393_v36 = vmul.f32 %v1868_v50, %v1631_v39  ;;  %v2031_v4 = vpack.c.bf16 %v575_v16, %v574_v11  ;;  %v550_v29 = vmax.f32 %v2009_v18, 0.0 }
 0x112   :  { %v448_v34 = vmul.f32 %v1873_v55, %v392_v6  ;;  %v2036_v19 = vadd.f32 %v1886_v7, %v447_v13  ;;  %v551_v39 = vmax.f32 %v2015_v1, 0.0  ;;  %v418_v41 = vmul.f32 %v1868_v50, %v1806_v26  ;;  %v2413_v6 = vld [vmem:[#allocation2_spill] sm:$0xff] }
 0x113   :  { %v394_v22 = vmul.f32 %v1868_v50, %v1638_v42  ;;  %v449_v20 = vmul.f32 %v1873_v55, %v393_v36  ;;  %v576_v21 = vmax.f32 %v2018_v33, 0.0  ;;  %v2050_v25 = vmul.f32 %v1873_v55, %v417_v15  ;;  %v2414_v36 = vld [vmem:[#allocation3_spill] sm:$0xff] }
 0x114   :  { %1050 = vmatmul.mubr.msk.bf16.gmra.mrb[12].mxu0 %vm67_vm0, %v590_v37  ;;  %1102 = vmatmul.mubr.msk.bf16.gmra.mrb[12].mxu1 %vm67_vm0, %v603_v3  ;;  %v419_v9 = vmul.f32 %v1868_v50, %v1813_v32  ;;  %v420_v17 = vmul.f32 %v1868_v50, %v1820_v40  ;;  %v577_v24 = vmax.f32 %v2025_v52, 0.0  ;;  %v395_v42 = vmul.f32 %v1868_v50, %v1645_v45 }
 0x115   :  { %1053 = vmatprep.mubr.msk.bf16.mxu0 %vm1145_vm1, %v2412_v35  ;;  %1105 = vmatprep.mubr.msk.bf16.mxu1 %vm1145_vm1, %v2412_v35  ;;  %v450_v26 = vmul.f32 %v1873_v55, %v394_v22  ;;  %v505_v37 = vadd.f32 %v1886_v7, %v449_v20  ;;  %v2062_v10 = vadd.f32 %v1886_v7, %v448_v34  ;;  %v2415_v20 = vld [vmem:[#allocation4_spill] sm:$0xff] }
 0x116   :  { %v475_v2 = vmul.f32 %v1873_v55, %v419_v9  ;;  %v476_v56 = vmul.f32 %v1873_v55, %v420_v17  ;;  %v396_v32 = vmul.f32 %v1868_v50, %v1652_v48  ;;  %v451_v12 = vmul.f32 %v1873_v55, %v395_v42 }
 0x117   :  { %v506_v40 = vadd.f32 %v1886_v7, %v450_v26  ;;  %v554_v3 = vmax.f32 %v505_v37, 0.0  ;;  %v421_v44 = vmul.f32 %v1868_v50, %v1827_v46  ;;  %v2073_v45 = vmul.f32 %v1873_v55, %v418_v41  ;;  %v2416_v37 = vld [vmem:[#allocation7_spill] sm:$0xff] }
 0x118   :  { %v531_v5 = vadd.f32 %v1886_v7, %v475_v2  ;;  %v532_v61 = vadd.f32 %v1886_v7, %v476_v56  ;;  %v452_v58 = vmul.f32 %v1873_v55, %v396_v32  ;;  %v507_v48 = vadd.f32 %v1886_v7, %v451_v12 }
 0x119   :  { %v555_v28 = vmax.f32 %v506_v40, 0.0  ;;  %v422_v63 = vmul.f32 %v1868_v50, %v1834_v53  ;;  %v477_v27 = vmul.f32 %v1873_v55, %v421_v44  ;;  %v397_v8 = vmul.f32 %v1868_v50, %v1659_v51 }
 0x11a   :  { %v580_v46 = vmax.f32 %v531_v5, 0.0  ;;  %v581_v38 = vmax.f32 %v532_v61, 0.0  ;;  %v508_v57 = vadd.f32 %v1886_v7, %v452_v58  ;;  %v556_v43 = vmax.f32 %v507_v48, 0.0  ;;  %v2417_v5 = vld [vmem:[#allocation5_spill] sm:$0xff]  ;;  %v2418_v48 = vld [vmem:[#allocation6_spill] sm:$0xff] }
 0x11b   :  { %v2091_v53 = vpack.c.bf16 %v555_v28, %v554_v3  ;;  %v478_v60 = vmul.f32 %v1873_v55, %v422_v63  ;;  %v533_v30 = vadd.f32 %v1886_v7, %v477_v27  ;;  %v398_v11 = vmul.f32 %v1868_v50, %v1666_v54 }
 0x11c   :  { %1054 = vmatmul.mubr.msk.bf16.gmra.mrb[16].mxu0 %vm67_vm0, %v591_v49  ;;  %1106 = vmatmul.mubr.msk.bf16.gmra.mrb[16].mxu1 %vm67_vm0, %v604_v0  ;;  %v2095_v23 = vpack.c.bf16 %v581_v38, %v580_v46  ;;  %v557_v31 = vmax.f32 %v508_v57, 0.0  ;;  %v453_v51 = vmul.f32 %v1873_v55, %v397_v8  ;;  %v423_v16 = vmul.f32 %v1868_v50, %v1841_v59 }
 0x11d   :  { %1057 = vmatprep.mubr.msk.bf16.mxu0 %vm1145_vm1, %v2412_v35  ;;  %1109 = vmatprep.mubr.msk.bf16.mxu1 %vm1145_vm1, %v2412_v35  ;;  %v534_v62 = vadd.f32 %v1886_v7, %v478_v60  ;;  %v582_v14 = vmax.f32 %v533_v30, 0.0  ;;  %v424_v13 = vmul.f32 %v1868_v50, %v2413_v6  ;;  %v454_v15 = vmul.f32 %v1873_v55, %v398_v11 }
 0x11e   :  { %v2105_v49 = vpack.c.bf16 %v557_v31, %v556_v43  ;;  %v509_v0 = vadd.f32 %v1886_v7, %v453_v51  ;;  %v399_v54 = vmul.f32 %v1868_v50, %v2414_v36  ;;  %v479_v41 = vmul.f32 %v1873_v55, %v423_v16 }
 0x11f   :  { %v583_v34 = vmax.f32 %v534_v62, 0.0  ;;  %v480_v22 = vmul.f32 %v1873_v55, %v424_v13  ;;  %v400_v59 = vmul.f32 %v1868_v50, %v2415_v20  ;;  %v510_v9 = vadd.f32 %v1886_v7, %v454_v15 }
 0x120   :  { %v558_v17 = vmax.f32 %v509_v0, 0.0  ;;  %v455_v26 = vmul.f32 %v1873_v55, %v399_v54  ;;  %v425_v42 = vmul.f32 %v1868_v50, %v2416_v37  ;;  %v535_v56 = vadd.f32 %v1886_v7, %v479_v41 }
 0x121   :  { %v609_v2 = vpack.c.bf16 %v583_v34, %v582_v14  ;;  %v536_v32 = vadd.f32 %v1886_v7, %v480_v22  ;;  %v456_v40 = vmul.f32 %v1873_v55, %v400_v59  ;;  %v559_v3 = vmax.f32 %v510_v9, 0.0 }
 0x122   :  { %v511_v12 = vadd.f32 %v1886_v7, %v455_v26  ;;  %v481_v44 = vmul.f32 %v1873_v55, %v425_v42  ;;  %v401_v61 = vmul.f32 %v1868_v50, %v2417_v5  ;;  %v584_v58 = vmax.f32 %v535_v56, 0.0 }
 0x123   :  { %v585_v28 = vmax.f32 %v536_v32, 0.0  ;;  %v597_v63 = vpack.c.bf16 %v559_v3, %v558_v17  ;;  %v593_v57 = vpack.c.bf16 %v551_v39, %v550_v29  ;;  %v529_v30 = vadd.f32 %v1886_v7, %v2050_v25 }
 0x124   :  { %1058 = vmatmul.mubr.msk.bf16.gmra.mrb[20].mxu0 %vm67_vm0, %v2022_v47  ;;  %1110 = vmatmul.mubr.msk.bf16.gmra.mrb[20].mxu1 %vm67_vm0, %v2031_v4  ;;  %v512_v47 = vadd.f32 %v1886_v7, %v456_v40  ;;  %v402_v4 = vmul.f32 %v1868_v50, %v2418_v48  ;;  %v560_v27 = vmax.f32 %v511_v12, 0.0  ;;  %v537_v46 = vadd.f32 %v1886_v7, %v481_v44 }
 0x125   :  { %1061 = vmatprep.mubr.msk.bf16.mxu0 %vm1145_vm1, %v2412_v35  ;;  %1113 = vmatprep.mubr.msk.bf16.mxu1 %vm1145_vm1, %v2412_v35  ;;  %v457_v38 = vmul.f32 %v1873_v55, %v401_v61  ;;  %v610_v8 = vpack.c.bf16 %v585_v28, %v584_v58  ;;  %v606_v50 = vpack.c.bf16 %v577_v24, %v576_v21  ;;  %v553_v33 = vmax.f32 %v2062_v10, 0.0 }
 0x126   :  { %v561_v43 = vmax.f32 %v512_v47, 0.0  ;;  %v458_v60 = vmul.f32 %v1873_v55, %v402_v4  ;;  %v530_v31 = vadd.f32 %v1886_v7, %v2073_v45  ;;  %v552_v55 = vmax.f32 %v2036_v19, 0.0 }
 0x127   :  { %v513_v18 = vadd.f32 %v1886_v7, %v457_v38  ;;  %v578_v52 = vmax.f32 %v529_v30, 0.0  ;;  %v586_v19 = vmax.f32 %v537_v46, 0.0 }
 0x128   :  { %v598_v11 = vpack.c.bf16 %v561_v43, %v560_v27  ;;  %v514_v1 = vadd.f32 %v1886_v7, %v458_v60  ;;  %v579_v21 = vmax.f32 %v530_v31, 0.0  ;;  %v594_v7 = vpack.c.bf16 %v553_v33, %v552_v55 }
 0x129   :  { %v562_v29 = vmax.f32 %v513_v18, 0.0  ;;  %v611_v10 = vpack.c.bf16 %v586_v19, %v586_v19 }
 0x12a   :  { %v563_v39 = vmax.f32 %v514_v1, 0.0  ;;  %v607_v24 = vpack.c.bf16 %v579_v21, %v578_v52 }
 0x12c   :  { %1062 = vmatmul.mubr.msk.bf16.gmra.mrb[24].mxu0 %vm67_vm0, %v593_v57  ;;  %1114 = vmatmul.mubr.msk.bf16.gmra.mrb[24].mxu1 %vm67_vm0, %v606_v50  ;;  %v599_v25 = vpack.c.bf16 %v563_v39, %v562_v29 }
 0x12d   :  { %1065 = vmatprep.mubr.msk.bf16.mxu0 %vm1145_vm1, %v2412_v35  ;;  %1117 = vmatprep.mubr.msk.bf16.mxu1 %vm1145_vm1, %v2412_v35 }
 0x134   :  { %1066 = vmatmul.mubr.msk.bf16.gmra.mrb[28].mxu0 %vm67_vm0, %v594_v7  ;;  %1118 = vmatmul.mubr.msk.bf16.gmra.mrb[28].mxu1 %vm67_vm0, %v607_v24 }
 0x135   :  { %1069 = vmatprep.mubr.msk.bf16.mxu0 %vm1145_vm1, %v2412_v35  ;;  %1121 = vmatprep.mubr.msk.bf16.mxu1 %vm1145_vm1, %v2412_v35 }
 0x13c   :  { %1070 = vmatmul.mubr.msk.bf16.gmra.mrb[32].mxu0 %vm67_vm0, %v2091_v53  ;;  %1122 = vmatmul.mubr.msk.bf16.gmra.mrb[32].mxu1 %vm67_vm0, %v2095_v23 }
 0x13d   :  { %1073 = vmatprep.mubr.msk.bf16.mxu0 %vm1145_vm1, %v2412_v35  ;;  %1125 = vmatprep.mubr.msk.bf16.mxu1 %vm1145_vm1, %v2412_v35 }
 0x144   :  { %1074 = vmatmul.mubr.msk.bf16.gmra.mrb[36].mxu0 %vm67_vm0, %v2105_v49  ;;  %1126 = vmatmul.mubr.msk.bf16.gmra.mrb[36].mxu1 %vm67_vm0, %v609_v2 }
 0x145   :  { %1077 = vmatprep.mubr.msk.bf16.mxu0 %vm1145_vm1, %v2412_v35  ;;  %1129 = vmatprep.mubr.msk.bf16.mxu1 %vm1145_vm1, %v2412_v35 }
 0x14c   :  { %1078 = vmatmul.mubr.msk.bf16.gmra.mrb[40].mxu0 %vm67_vm0, %v597_v63  ;;  %1130 = vmatmul.mubr.msk.bf16.gmra.mrb[40].mxu1 %vm67_vm0, %v610_v8 }
 0x14d   :  { %1081 = vmatprep.mubr.msk.bf16.mxu0 %vm1145_vm1, %v2412_v35  ;;  %1133 = vmatprep.mubr.msk.bf16.mxu1 %vm1145_vm1, %v2412_v35 }
 0x154   :  { %1082 = vmatmul.mubr.msk.bf16.gmra.mrb[44].mxu0 %vm67_vm0, %v598_v11  ;;  %1134 = vmatmul.mubr.msk.bf16.gmra.mrb[44].mxu1 %vm67_vm0, %v611_v10 }
 0x155   :  { %1085 = vmatprep.mubr.msk.bf16.mxu0 %vm1145_vm1, %v2412_v35 }
 0x15c   :  { %1086 = vmatmul.mubr.msk.bf16.gmra.mrb[48].mxu0 %vm67_vm0, %v599_v25 }
 0x1cf   :  { %v729_v45 = vpop.f32.mrb[0].mxu0  ;;  %v833_v53 = vpop.f32.mrb[0].mxu1 }
 0x1d0   :  { %928 = vst.msk [vmem:[%s2394_s4] sm:$0xff] %vm927_vm2, %v729_v45  ;;  %v1039_v23 = vpop.f32.mrb[1].mxu0  ;;  %954 = vst.msk [vmem:[%s2394_s4 + $0xd0] sm:$0xff] %vm927_vm2, %v833_v53  ;;  %v1091_v51 = vpop.f32.mrb[1].mxu1 }
 0x1d1   :  { %v732_v62 = vpop.f32.mrb[2].mxu0  ;;  %v836_v14 = vpop.f32.mrb[2].mxu1 }
 0x1d2   :  { %929 = vst.msk [vmem:[%s2394_s4 + $0x8] sm:$0xff] %vm927_vm2, %v732_v62  ;;  %v1040_v35 = vpop.f32.mrb[3].mxu0  ;;  %955 = vst.msk [vmem:[%s2394_s4 + $0xd8] sm:$0xff] %vm927_vm2, %v836_v14  ;;  %v1092_v16 = vpop.f32.mrb[3].mxu1 }
 0x1d7   :  { %v737_v6 = vpop.f32.mrb[4].mxu0  ;;  %v841_v13 = vpop.f32.mrb[4].mxu1 }
 0x1d8   :  { %930 = vst.msk [vmem:[%s2394_s4 + $0x10] sm:$0xff] %vm927_vm2, %v737_v6  ;;  %v1043_v49 = vpop.f32.mrb[5].mxu0  ;;  %956 = vst.msk [vmem:[%s2394_s4 + $0xe0] sm:$0xff] %vm927_vm2, %v841_v13  ;;  %v1095_v15 = vpop.f32.mrb[5].mxu1 }
 0x1d9   :  { %v740_v0 = vpop.f32.mrb[6].mxu0  ;;  %v844_v36 = vpop.f32.mrb[6].mxu1 }
 0x1da   :  { %931 = vst.msk [vmem:[%s2394_s4 + $0x18] sm:$0xff] %vm927_vm2, %v740_v0  ;;  %v1044_v54 = vpop.f32.mrb[7].mxu0  ;;  %957 = vst.msk [vmem:[%s2394_s4 + $0xe8] sm:$0xff] %vm927_vm2, %v844_v36  ;;  %v1096_v34 = vpop.f32.mrb[7].mxu1 }
 0x1df   :  { %v745_v41 = vpop.f32.mrb[8].mxu0  ;;  %v849_v22 = vpop.f32.mrb[8].mxu1 }
 0x1e0   :  { %932 = vst.msk [vmem:[%s2394_s4 + $0x20] sm:$0xff] %vm927_vm2, %v745_v41  ;;  %v1047_v20 = vpop.f32.mrb[9].mxu0  ;;  %958 = vst.msk [vmem:[%s2394_s4 + $0xf0] sm:$0xff] %vm927_vm2, %v849_v22  ;;  %v1099_v59 = vpop.f32.mrb[9].mxu1 }
 0x1e1   :  { %v748_v9 = vpop.f32.mrb[10].mxu0  ;;  %v852_v17 = vpop.f32.mrb[10].mxu1 }
 0x1e2   :  { %933 = vst.msk [vmem:[%s2394_s4 + $0x28] sm:$0xff] %vm927_vm2, %v748_v9  ;;  %v1048_v26 = vpop.f32.mrb[11].mxu0  ;;  %959 = vst.msk [vmem:[%s2394_s4 + $0xf8] sm:$0xff] %vm927_vm2, %v852_v17  ;;  %v1100_v37 = vpop.f32.mrb[11].mxu1 }
 0x1e7   :  { %v753_v42 = vpop.f32.mrb[12].mxu0  ;;  %v857_v2 = vpop.f32.mrb[12].mxu1 }
 0x1e8   :  { %934 = vst.msk [vmem:[%s2394_s4 + $0x30] sm:$0xff] %vm927_vm2, %v753_v42  ;;  %v1051_v56 = vpop.f32.mrb[13].mxu0  ;;  %960 = vst.msk [vmem:[%s2394_s4 + $0x100] sm:$0xff] %vm927_vm2, %v857_v2  ;;  %v1103_v32 = vpop.f32.mrb[13].mxu1 }
 0x1e9   :  { %v756_v40 = vpop.f32.mrb[14].mxu0  ;;  %v860_v3 = vpop.f32.mrb[14].mxu1 }
 0x1ea   :  { %935 = vst.msk [vmem:[%s2394_s4 + $0x38] sm:$0xff] %vm927_vm2, %v756_v40  ;;  %v1052_v12 = vpop.f32.mrb[15].mxu0  ;;  %961 = vst.msk [vmem:[%s2394_s4 + $0x108] sm:$0xff] %vm927_vm2, %v860_v3  ;;  %v1104_v44 = vpop.f32.mrb[15].mxu1 }
 0x1ef   :  { %v761_v5 = vpop.f32.mrb[16].mxu0  ;;  %v865_v61 = vpop.f32.mrb[16].mxu1 }
 0x1f0   :  { %936 = vst.msk [vmem:[%s2394_s4 + $0x40] sm:$0xff] %vm927_vm2, %v761_v5  ;;  %v1055_v58 = vpop.f32.mrb[17].mxu0  ;;  %962 = vst.msk [vmem:[%s2394_s4 + $0x110] sm:$0xff] %vm927_vm2, %v865_v61  ;;  %v1107_v28 = vpop.f32.mrb[17].mxu1 }
 0x1f1   :  { %v764_v47 = vpop.f32.mrb[18].mxu0  ;;  %v868_v48 = vpop.f32.mrb[18].mxu1 }
 0x1f2   :  { %937 = vst.msk [vmem:[%s2394_s4 + $0x48] sm:$0xff] %vm927_vm2, %v764_v47  ;;  %v1056_v4 = vpop.f32.mrb[19].mxu0  ;;  %963 = vst.msk [vmem:[%s2394_s4 + $0x118] sm:$0xff] %vm927_vm2, %v868_v48  ;;  %v1108_v63 = vpop.f32.mrb[19].mxu1 }
 0x1f7   :  { %v769_v27 = vpop.f32.mrb[20].mxu0  ;;  %v873_v46 = vpop.f32.mrb[20].mxu1 }
 0x1f8   :  { %938 = vst.msk [vmem:[%s2394_s4 + $0x50] sm:$0xff] %vm927_vm2, %v769_v27  ;;  %v1059_v38 = vpop.f32.mrb[21].mxu0  ;;  %964 = vst.msk [vmem:[%s2394_s4 + $0x120] sm:$0xff] %vm927_vm2, %v873_v46  ;;  %v1111_v57 = vpop.f32.mrb[21].mxu1 }
 0x1f9   :  { %v772_v8 = vpop.f32.mrb[22].mxu0  ;;  %v876_v43 = vpop.f32.mrb[22].mxu1 }
 0x1fa   :  { %939 = vst.msk [vmem:[%s2394_s4 + $0x58] sm:$0xff] %vm927_vm2, %v772_v8  ;;  %v1060_v60 = vpop.f32.mrb[23].mxu0  ;;  %965 = vst.msk [vmem:[%s2394_s4 + $0x128] sm:$0xff] %vm927_vm2, %v876_v43  ;;  %v1112_v50 = vpop.f32.mrb[23].mxu1 }
 0x1ff   :  { %v777_v30 = vpop.f32.mrb[24].mxu0  ;;  %v881_v31 = vpop.f32.mrb[24].mxu1 }
 0x200   :  { %940 = vst.msk [vmem:[%s2394_s4 + $0x60] sm:$0xff] %vm927_vm2, %v777_v30  ;;  %v1063_v18 = vpop.f32.mrb[25].mxu0  ;;  %966 = vst.msk [vmem:[%s2394_s4 + $0x130] sm:$0xff] %vm927_vm2, %v881_v31  ;;  %v1115_v11 = vpop.f32.mrb[25].mxu1 }
 0x201   :  { %v780_v1 = vpop.f32.mrb[26].mxu0  ;;  %v884_v29 = vpop.f32.mrb[26].mxu1 }
 0x202   :  { %941 = vst.msk [vmem:[%s2394_s4 + $0x68] sm:$0xff] %vm927_vm2, %v780_v1  ;;  %v1064_v39 = vpop.f32.mrb[27].mxu0  ;;  %967 = vst.msk [vmem:[%s2394_s4 + $0x138] sm:$0xff] %vm927_vm2, %v884_v29  ;;  %v1116_v55 = vpop.f32.mrb[27].mxu1 }
 0x207   :  { %v785_v33 = vpop.f32.mrb[28].mxu0  ;;  %v889_v52 = vpop.f32.mrb[28].mxu1 }
 0x208   :  { %942 = vst.msk [vmem:[%s2394_s4 + $0x70] sm:$0xff] %vm927_vm2, %v785_v33  ;;  %v1067_v21 = vpop.f32.mrb[29].mxu0  ;;  %968 = vst.msk [vmem:[%s2394_s4 + $0x140] sm:$0xff] %vm927_vm2, %v889_v52  ;;  %v1119_v25 = vpop.f32.mrb[29].mxu1 }
 0x209   :  { %v788_v7 = vpop.f32.mrb[30].mxu0  ;;  %v892_v24 = vpop.f32.mrb[30].mxu1 }
 0x20a   :  { %943 = vst.msk [vmem:[%s2394_s4 + $0x78] sm:$0xff] %vm927_vm2, %v788_v7  ;;  %v1068_v19 = vpop.f32.mrb[31].mxu0  ;;  %969 = vst.msk [vmem:[%s2394_s4 + $0x148] sm:$0xff] %vm927_vm2, %v892_v24  ;;  %v1120_v10 = vpop.f32.mrb[31].mxu1 }
 0x20f   :  { %v793_v45 = vpop.f32.mrb[32].mxu0  ;;  %v897_v53 = vpop.f32.mrb[32].mxu1 }
 0x210   :  { %944 = vst.msk [vmem:[%s2394_s4 + $0x80] sm:$0xff] %vm927_vm2, %v793_v45  ;;  %v1071_v23 = vpop.f32.mrb[33].mxu0  ;;  %970 = vst.msk [vmem:[%s2394_s4 + $0x150] sm:$0xff] %vm927_vm2, %v897_v53  ;;  %v1123_v51 = vpop.f32.mrb[33].mxu1 }
 0x211   :  { %v796_v62 = vpop.f32.mrb[34].mxu0  ;;  %v900_v14 = vpop.f32.mrb[34].mxu1 }
 0x212   :  { %945 = vst.msk [vmem:[%s2394_s4 + $0x88] sm:$0xff] %vm927_vm2, %v796_v62  ;;  %v1072_v35 = vpop.f32.mrb[35].mxu0  ;;  %971 = vst.msk [vmem:[%s2394_s4 + $0x158] sm:$0xff] %vm927_vm2, %v900_v14  ;;  %v1124_v16 = vpop.f32.mrb[35].mxu1 }
 0x217   :  { %v801_v6 = vpop.f32.mrb[36].mxu0  ;;  %v905_v13 = vpop.f32.mrb[36].mxu1 }
 0x218   :  { %946 = vst.msk [vmem:[%s2394_s4 + $0x90] sm:$0xff] %vm927_vm2, %v801_v6  ;;  %v1075_v49 = vpop.f32.mrb[37].mxu0  ;;  %972 = vst.msk [vmem:[%s2394_s4 + $0x160] sm:$0xff] %vm927_vm2, %v905_v13  ;;  %v1127_v15 = vpop.f32.mrb[37].mxu1 }
 0x219   :  { %v804_v0 = vpop.f32.mrb[38].mxu0  ;;  %v908_v36 = vpop.f32.mrb[38].mxu1 }
 0x21a   :  { %947 = vst.msk [vmem:[%s2394_s4 + $0x98] sm:$0xff] %vm927_vm2, %v804_v0  ;;  %v1076_v54 = vpop.f32.mrb[39].mxu0  ;;  %973 = vst.msk [vmem:[%s2394_s4 + $0x168] sm:$0xff] %vm927_vm2, %v908_v36  ;;  %v1128_v34 = vpop.f32.mrb[39].mxu1 }
 0x21f   :  { %v809_v41 = vpop.f32.mrb[40].mxu0  ;;  %v913_v22 = vpop.f32.mrb[40].mxu1 }
 0x220   :  { %948 = vst.msk [vmem:[%s2394_s4 + $0xa0] sm:$0xff] %vm927_vm2, %v809_v41  ;;  %v1079_v20 = vpop.f32.mrb[41].mxu0  ;;  %974 = vst.msk [vmem:[%s2394_s4 + $0x170] sm:$0xff] %vm927_vm2, %v913_v22  ;;  %v1131_v59 = vpop.f32.mrb[41].mxu1 }
 0x221   :  { %v812_v9 = vpop.f32.mrb[42].mxu0  ;;  %v916_v17 = vpop.f32.mrb[42].mxu1 }
 0x222   :  { %949 = vst.msk [vmem:[%s2394_s4 + $0xa8] sm:$0xff] %vm927_vm2, %v812_v9  ;;  %v1080_v26 = vpop.f32.mrb[43].mxu0  ;;  %975 = vst.msk [vmem:[%s2394_s4 + $0x178] sm:$0xff] %vm927_vm2, %v916_v17  ;;  %v1132_v37 = vpop.f32.mrb[43].mxu1 }
 0x227   :  { %v817_v42 = vpop.f32.mrb[44].mxu0  ;;  %v921_v2 = vpop.f32.mrb[44].mxu1 }
 0x228   :  { %950 = vst.msk [vmem:[%s2394_s4 + $0xb0] sm:$0xff] %vm927_vm2, %v817_v42  ;;  %v1083_v56 = vpop.f32.mrb[45].mxu0  ;;  %976 = vst.msk [vmem:[%s2394_s4 + $0x180] sm:$0xff] %vm927_vm2, %v921_v2  ;;  %v1135_v32 = vpop.f32.mrb[45].mxu1 }
 0x229   :  { %v820_v40 = vpop.f32.mrb[46].mxu0  ;;  %v924_v3 = vpop.f32.mrb[46].mxu1 }
 0x22a   :  { %951 = vst.msk [vmem:[%s2394_s4 + $0xb8] sm:$0xff] %vm927_vm2, %v820_v40  ;;  %v1084_v12 = vpop.f32.mrb[47].mxu0  ;;  %v1136_v44 = vpop.f32.mrb[47].mxu1 }
 0x22f   :  { %v825_v5 = vpop.f32.mrb[48].mxu0 }
 0x230   :  { %952 = vst.msk [vmem:[%s2394_s4 + $0xc0] sm:$0xff] %vm927_vm2, %v825_v5  ;;  %v1087_v61 = vpop.f32.mrb[49].mxu0 }
 0x231   :  { %v828_v58 = vpop.f32.mrb[50].mxu0 }
 0x232   :  { %953 = vst.msk [vmem:[%s2394_s4 + $0xc8] sm:$0xff] %vm927_vm2, %v828_v58  ;;  %v1088_v28 = vpop.f32.mrb[51].mxu0 }

// kernel: conv_vae_forward.15
= control target key start
LH: loop header
LB: loop body
LE: loop exit
PB: predicated region body
PF: predicated region fallthrough
CT: control target
= control target key end

     0   :  { %vm72_vm3 = vcmask 1041408   ;;  %vm73_vm5 = vcmask 1043458   ;;  %vm75_vm8 = vcmask 390148   ;;  %s147_s0 = inlined_call_operand.vmem [shape: f32[2,2352], index: 0, kind: input, shape index: {}]   ;;  %s148_s1 = inlined_call_operand.vmem [shape: f32[2,2352], index: 1, kind: output, shape index: {}]  }
   0x1   :  { %v8_v0 = vld [vmem:[%s147_s0] sm:$0xff]  ;;  %v9_v1 = vld [vmem:[%s147_s0 + $0x8] sm:$0xff]  ;;  %v10_v2 = vld [vmem:[%s147_s0 + $0x10] sm:$0xff] }
   0x2   :  { %v13_v3 = vand.u32 2147483647, %v8_v0  ;;  %v14_v4 = vand.u32 2147483647, %v9_v1  ;;  %v15_v5 = vand.u32 2147483647, %v10_v2  ;;  %vm74_vm7 = vmor %vm73_vm5, %vm72_vm3 }
   0x3   :  { %v11_v6 = vld [vmem:[%s147_s0 + $0x18] sm:$0xff]  ;;  %v127_v7 = vld [vmem:[%s147_s0 + $0x20] sm:$0x3f]  ;;  %vm43_vm0 = vcmp.ge.f32.partialorder %v8_v0, 0.0  ;;  %vm44_vm1 = vcmp.ge.f32.partialorder %v9_v1, 0.0  ;;  %vm45_vm2 = vcmp.ge.f32.partialorder %v10_v2, 0.0  ;;  %vm76_vm9 = vmor %vm75_vm8, %vm74_vm7 }
   0x4   :  { %v18_v8 = vsub.f32 0.0, %v13_v3  ;;  %v19_v9 = vsub.f32 0.0, %v14_v4  ;;  %v16_v10 = vand.u32 2147483647, %v11_v6  ;;  %v20_v11 = vsub.f32 0.0, %v15_v5 }
   0x5   :  { %v17_v12 = vand.u32 2147483647, %v127_v7  ;;  %vm46_vm4 = vcmp.ge.f32.partialorder %v11_v6, 0.0  ;;  %vm47_vm6 = vcmp.ge.f32.partialorder %v127_v7, 0.0 }
   0x6   :  { %v23_v13 = vmul.f32 1.442695, %v18_v8  ;;  %v25_v14 = vmul.f32 1.442695, %v19_v9  ;;  %v21_v15 = vsub.f32 0.0, %v16_v10 }
   0x7   :  { %v27_v16 = vmul.f32 1.442695, %v20_v11  ;;  %v22_v17 = vsub.f32 0.0, %v17_v12 }
   0x8   :  { %82 = vpow2.f32 %v23_v13  ;;  %v29_v18 = vmul.f32 1.442695, %v21_v15 }
   0x9   :  { %84 = vpow2.f32 %v25_v14  ;;  %v31_v19 = vmul.f32 1.442695, %v22_v17 }
   0xa   :  { %86 = vpow2.f32 %v27_v16 }
   0xb   :  { %88 = vpow2.f32 %v29_v18 }
   0xc   :  { %90 = vpow2.f32 %v31_v19 }
  0x12   :  { %v83_v20 = vpop.eup %82 }
  0x13   :  { %v85_v21 = vpop.eup %84  ;;  %v33_v22 = vadd.f32 1.0, %v83_v20 }
  0x14   :  { %v87_v23 = vpop.eup %86  ;;  %v34_v24 = vadd.f32 1.0, %v85_v21 }
  0x15   :  { %v89_v25 = vpop.eup %88  ;;  %92 = vrcp.f32 %v33_v22  ;;  %v35_v26 = vadd.f32 1.0, %v87_v23 }
  0x16   :  { %v91_v27 = vpop.eup %90  ;;  %94 = vrcp.f32 %v34_v24  ;;  %v36_v28 = vadd.f32 1.0, %v89_v25 }
  0x17   :  { %96 = vrcp.f32 %v35_v26  ;;  %v37_v29 = vadd.f32 1.0, %v91_v27 }
  0x18   :  { %98 = vrcp.f32 %v36_v28 }
  0x19   :  { %100 = vrcp.f32 %v37_v29 }
  0x1f   :  { %v93_v30 = vpop.eup %92 }
  0x20   :  { %v95_v31 = vpop.eup %94  ;;  %v48_v32 = vsub.f32 1.0, %v93_v30 }
  0x21   :  { %v97_v33 = vpop.eup %96  ;;  %v49_v34 = vsub.f32 1.0, %v95_v31 }
  0x22   :  { %v99_v35 = vpop.eup %98  ;;  %v53_v36 = vsel %vm43_vm0, %v93_v30, %v48_v32  ;;  %v50_v37 = vsub.f32 1.0, %v97_v33 }
  0x23   :  { %v101_v38 = vpop.eup %100  ;;  %v58_v39 = vmax.f32 %v53_v36, 0.0  ;;  %v54_v40 = vsel %vm44_vm1, %v95_v31, %v49_v34  ;;  %v51_v41 = vsub.f32 1.0, %v99_v35 }
  0x24   :  { %v59_v42 = vmax.f32 %v54_v40, 0.0  ;;  %v55_v43 = vsel %vm45_vm2, %v97_v33, %v50_v37  ;;  %v52_v44 = vsub.f32 1.0, %v101_v38 }
  0x25   :  { %v63_v45 = vmin.f32 %v58_v39, 1.0  ;;  %v60_v46 = vmax.f32 %v55_v43, 0.0  ;;  %v56_v47 = vsel %vm46_vm4, %v99_v35, %v51_v41 }
  0x26   :  { %v64_v48 = vmin.f32 %v59_v42, 1.0  ;;  %v61_v49 = vmax.f32 %v56_v47, 0.0  ;;  %v57_v50 = vsel %vm47_vm6, %v101_v38, %v52_v44 }
  0x27   :  { %68 = vst [vmem:[%s148_s1] sm:$0xff] %v63_v45  ;;  %v65_v51 = vmin.f32 %v60_v46, 1.0  ;;  %v62_v52 = vmax.f32 %v57_v50, 0.0 }
  0x28   :  { %69 = vst [vmem:[%s148_s1 + $0x8] sm:$0xff] %v64_v48  ;;  %v66_v53 = vmin.f32 %v61_v49, 1.0 }
  0x29   :  { %70 = vst [vmem:[%s148_s1 + $0x10] sm:$0xff] %v65_v51  ;;  %v67_v54 = vmin.f32 %v62_v52, 1.0 }
  0x2a   :  { %71 = vst [vmem:[%s148_s1 + $0x18] sm:$0xff] %v66_v53 }
  0x2b   :  { %77 = vst.msk [vmem:[%s148_s1 + $0x20] sm:$0x3f] %vm76_vm9, %v67_v54 }

</bundles_post_ra>
